<compile_context>
chip_gen: v6e
topology: v6e:2x2x1
jax: 0.10.0
libtpu: 0.0.40
codegen_flags: <defaults>
</compile_context>

<pallas_src>
import functools
import math
import numpy as np

import jax
import jax.numpy as jnp
from jax import lax
from jax.experimental import pallas as pl
from jax.experimental.pallas import tpu as pltpu

VMEM_LIMIT = 48 * 1024 * 1024     # <= v7x's 64 MiB physical VMEM

# Row indices of the stacked (N_VD, D_pad) per-layer vector parameters.
(VD_FFN1_LN_G, VD_FFN1_LN_B, VD_FFN1_B2,
 VD_ATT_LN_G, VD_ATT_LN_B, VD_ATT_BO,
 VD_CONV_LN_G, VD_CONV_LN_B, VD_GLU_BA, VD_GLU_BG,
 VD_DW_B, VD_GN_G, VD_GN_B, VD_PW2_B,
 VD_FFN2_LN_G, VD_FFN2_LN_B, VD_FFN2_B2,
 VD_FIN_LN_G, VD_FIN_LN_B) = range(19)
N_VD = 19


def _round_up(n, m):
    return ((n + m - 1) // m) * m


def _full_spec(shape):
    # whole-array block, same block every grid step -> weights stay resident in VMEM
    return pl.BlockSpec(shape, lambda *_: (0,) * len(shape))


# ---------------------------------------------------------------------------
# Fused conformer-layer kernel (one batch element per grid step)
# ---------------------------------------------------------------------------

def _make_layer_kernel(T, T_pad, D, D_pad, H, HDp, K):
    hd = D // H
    pad = (K - 1) // 2
    scale = 1.0 / math.sqrt(hd)
    inv_d = 1.0 / D
    lane_masked = D != D_pad
    bf16, f32 = jnp.bfloat16, jnp.float32

    def kernel(x_ref, bias_ref, w1a, w1b, wq, wk, wv, wo, wga, wgg, dww, wpw2,
               w2a, w2b, vd, vf, vqkv, o_ref):
        lane_mask = ((lax.broadcasted_iota(jnp.int32, (1, D_pad), 1) < D).astype(f32)
                     if lane_masked else None)
        row_ids = lax.broadcasted_iota(jnp.int32, (T_pad, 1), 0)

        def vrow(ref, i):                       # (1, width) row of a stacked-vector input
            return ref[i:i + 1, :]

        def layernorm(x, g, b):                 # fp32 stats over the D real lanes only
            m = jnp.sum(x, axis=-1, keepdims=True) * inv_d
            xc = x - m
            if lane_masked:
                xc = xc * lane_mask             # padded lanes contribute 0 to the variance
            var = jnp.sum(xc * xc, axis=-1, keepdims=True) * inv_d
            return xc * lax.rsqrt(var + 1e-5) * g + b

        def ffn(x, ln_g, ln_b, w_in, b_in, w_out, b_out):
            h = layernorm(x, ln_g, ln_b).astype(bf16)
            h = jnp.dot(h, w_in[...], preferred_element_type=f32) + b_in
            h = h * jax.nn.sigmoid(h)                                   # SiLU
            y = jnp.dot(h.astype(bf16), w_out[...], preferred_element_type=f32) + b_out
            return x + 0.5 * y                                          # half-step residual

        x = x_ref[...]                                                  # (T_pad, D_pad) fp32

        # ------------------------------ FFN1 ------------------------------
        x = ffn(x, vrow(vd, VD_FFN1_LN_G), vrow(vd, VD_FFN1_LN_B),
                w1a, vrow(vf, 0), w1b, vrow(vd, VD_FFN1_B2))

        # ------------------------------ MHSA ------------------------------
        h = layernorm(x, vrow(vd, VD_ATT_LN_G), vrow(vd, VD_ATT_LN_B)).astype(bf16)
        q = jnp.dot(h, wq[...], preferred_element_type=f32) + vrow(vqkv, 0)
        k = jnp.dot(h, wk[...], preferred_element_type=f32) + vrow(vqkv, 1)
        v = jnp.dot(h, wv[...], preferred_element_type=f32) + vrow(vqkv, 2)
        qb, kb, vb = q.astype(bf16), k.astype(bf16), v.astype(bf16)     # cast once
        bias = bias_ref[...]                                            # (1, T_pad) key mask
        y = jnp.zeros((T_pad, D_pad), f32)
        for head in range(H):                   # static unroll; 128-aligned lane slices only
            sl = slice(head * HDp, (head + 1) * HDp)
            s = lax.dot_general(qb[:, sl], kb[:, sl], (((1,), (1,)), ((), ())),
                                preferred_element_type=f32) * scale + bias
            m = jnp.max(s, axis=-1, keepdims=True)
            p = jnp.exp(s - m)
            p = p / jnp.sum(p, axis=-1, keepdims=True)                  # exact softmax
            ctx = jnp.dot(p.astype(bf16), vb[:, sl], preferred_element_type=f32)
            # per-head slice of the out-projection, summed -> no lane concat needed
            y = y + jnp.dot(ctx.astype(bf16), wo[sl, :], preferred_element_type=f32)
        x = x + y + vrow(vd, VD_ATT_BO)                                 # residual in epilogue

        # ------------------------ Convolution module ------------------------
        h = layernorm(x, vrow(vd, VD_CONV_LN_G), vrow(vd, VD_CONV_LN_B)).astype(bf16)
        a = jnp.dot(h, wga[...], preferred_element_type=f32) + vrow(vd, VD_GLU_BA)
        g = jnp.dot(h, wgg[...], preferred_element_type=f32) + vrow(vd, VD_GLU_BG)
        u = a * jax.nn.sigmoid(g)                                       # GLU
        u = jnp.where(row_ids < T, u, 0.0)      # halo rows must be exact zeros for the taps
        # Depthwise 'same' conv: taps via XLU sublane rotations.  The >= pad zero halo at
        # the end of the buffer makes every wrapped read land on a zero row, so no per-tap
        # edge masks or sublane-misaligned slices are required.
        acc = u * dww[pad:pad + 1, :]
        for kk in range(K):
            if kk == pad:
                continue
            rolled = pltpu.roll(u, shift=(pad - kk) % T_pad, axis=0)
            acc = acc + rolled * dww[kk:kk + 1, :]
        c = acc + vrow(vd, VD_DW_B)
        # GroupNorm(num_groups=1): statistics over the true (T, D) region only.
        c_valid = jnp.where(row_ids < T, c, 0.0)
        denom = 1.0 / float(T * D)
        mu = jnp.sum(jnp.sum(c_valid, axis=-1, keepdims=True), axis=0, keepdims=True) * denom
        sq = jnp.sum(jnp.sum(c_valid * c_valid, axis=-1, keepdims=True),
                     axis=0, keepdims=True) * denom
        var = jnp.maximum(sq - mu * mu, 0.0)
        cn = (c - mu) * lax.rsqrt(var + 1e-5) * vrow(vd, VD_GN_G) + vrow(vd, VD_GN_B)
        cn = cn * jax.nn.sigmoid(cn)                                    # SiLU
        y = jnp.dot(cn.astype(bf16), wpw2[...], preferred_element_type=f32) + vrow(vd, VD_PW2_B)
        x = x + y                                                       # residual

        # -------------------- FFN2 + final LayerNorm ----------------------
        x = ffn(x, vrow(vd, VD_FFN2_LN_G), vrow(vd, VD_FFN2_LN_B),
                w2a, vrow(vf, 1), w2b, vrow(vd, VD_FFN2_B2))
        x = layernorm(x, vrow(vd, VD_FIN_LN_G), vrow(vd, VD_FIN_LN_B))
        o_ref[...] = x                                                  # lane-dense store

    return kernel


@functools.lru_cache(maxsize=None)
def _layer_call_builder(B, T, T_pad, D, D_pad, F_pad, H, HDp, K):
    nq = H * HDp
    kernel = _make_layer_kernel(T, T_pad, D, D_pad, H, HDp, K)
    in_specs = [
        pl.BlockSpec((None, T_pad, D_pad), lambda b: (b, 0, 0)),   # x (one batch element)
        pl.BlockSpec((None, 1, T_pad), lambda b: (b, 0, 0)),       # key-pad bias
        _full_spec((D_pad, F_pad)), _full_spec((F_pad, D_pad)),    # ffn1 w1, w2
        _full_spec((D_pad, nq)), _full_spec((D_pad, nq)),          # wq, wk
        _full_spec((D_pad, nq)), _full_spec((nq, D_pad)),          # wv, wo
        _full_spec((D_pad, D_pad)), _full_spec((D_pad, D_pad)),    # GLU pointwise a / g
        _full_spec((K, D_pad)), _full_spec((D_pad, D_pad)),        # depthwise, pw2
        _full_spec((D_pad, F_pad)), _full_spec((F_pad, D_pad)),    # ffn2 w1, w2
        _full_spec((N_VD, D_pad)), _full_spec((2, F_pad)), _full_spec((3, nq)),  # vectors
    ]
    return pl.pallas_call(
        kernel,
        grid=(B,),
        in_specs=in_specs,
        out_specs=pl.BlockSpec((None, T_pad, D_pad), lambda b: (b, 0, 0)),
        out_shape=jax.ShapeDtypeStruct((B, T_pad, D_pad), jnp.float32),
        compiler_params=pltpu.CompilerParams(
            dimension_semantics=("parallel",),        # B steps shard across v7x's 2 TCs
            vmem_limit_bytes=VMEM_LIMIT),
    )


def conformer_layer_pallas(x_pad, bias, lp, *, T, D, H):
    B, T_pad, D_pad = x_pad.shape
    F_pad = lp["w1a"].shape[1]
    HDp = lp["wq"].shape[1] // H
    K = lp["dww"].shape[0]
    call = _layer_call_builder(B, T, T_pad, D, D_pad, F_pad, H, HDp, K)
    return call(x_pad, bias,
                lp["w1a"], lp["w1b"], lp["wq"], lp["wk"], lp["wv"], lp["wo"],
                lp["wga"], lp["wgg"], lp["dww"], lp["wpw2"], lp["w2a"], lp["w2b"],
                lp["vd"], lp["vf"], lp["vqkv"])


# ---------------------------------------------------------------------------
# Parameter preparation: pad/pack/split once, bf16 weights, fp32 vectors
# ---------------------------------------------------------------------------

def _pad2(w, r, c):
    return jnp.pad(w, ((0, r - w.shape[0]), (0, c - w.shape[1])))


def _pad1(v, n):
    return jnp.pad(v, (0, n - v.shape[0]))


def prepare_params(raw, text_dim, num_heads):
    D, H = text_dim, num_heads
    hd = D // H
    D_pad = _round_up(D, 128)
    HDp = _round_up(hd, 128)
    nq = H * HDp
    bf = jnp.bfloat16
    layers = []
    for p in raw["pre_layers"] + raw["body_layers"]:
        F = p["ffn1"]["w1"].shape[1]
        F_pad = _round_up(F, 128)
        K = p["dw_w"].shape[0]

        inw, inb, wo_raw = p["in_proj_w"], p["in_proj_b"], p["out_proj_w"]
        wq = jnp.zeros((D_pad, nq), jnp.float32)
        wk = jnp.zeros((D_pad, nq), jnp.float32)
        wv = jnp.zeros((D_pad, nq), jnp.float32)
        wo = jnp.zeros((nq, D_pad), jnp.float32)
        bq = jnp.zeros((nq,), jnp.float32)
        bk = jnp.zeros((nq,), jnp.float32)
        bv = jnp.zeros((nq,), jnp.float32)
        for h in range(H):                       # per-head split + 128-lane padding, once
            src = slice(h * hd, (h + 1) * hd)
            dst = h * HDp
            wq = wq.at[:D, dst:dst + hd].set(inw[:, :D][:, src])
            wk = wk.at[:D, dst:dst + hd].set(inw[:, D:2 * D][:, src])
            wv = wv.at[:D, dst:dst + hd].set(inw[:, 2 * D:][:, src])
            wo = wo.at[dst:dst + hd, :D].set(wo_raw[src, :])
            bq = bq.at[dst:dst + hd].set(inb[:D][src])
            bk = bk.at[dst:dst + hd].set(inb[D:2 * D][src])
            bv = bv.at[dst:dst + hd].set(inb[2 * D:][src])

        vd = jnp.stack([
            _pad1(p["ffn1"]["ln_g"], D_pad), _pad1(p["ffn1"]["ln_b"], D_pad),
            _pad1(p["ffn1"]["b2"], D_pad),
            _pad1(p["attn_ln_g"], D_pad), _pad1(p["attn_ln_b"], D_pad),
            _pad1(p["out_proj_b"], D_pad),
            _pad1(p["conv_ln_g"], D_pad), _pad1(p["conv_ln_b"], D_pad),
            _pad1(p["pw1_b"][:D], D_pad), _pad1(p["pw1_b"][D:], D_pad),
            _pad1(p["dw_b"], D_pad), _pad1(p["gn_g"], D_pad), _pad1(p["gn_b"], D_pad),
            _pad1(p["pw2_b"], D_pad),
            _pad1(p["ffn2"]["ln_g"], D_pad), _pad1(p["ffn2"]["ln_b"], D_pad),
            _pad1(p["ffn2"]["b2"], D_pad),
            _pad1(p["final_ln_g"], D_pad), _pad1(p["final_ln_b"], D_pad),
        ], axis=0)
        vf = jnp.stack([_pad1(p["ffn1"]["b1"], F_pad), _pad1(p["ffn2"]["b1"], F_pad)], axis=0)
        vqkv = jnp.stack([bq, bk, bv], axis=0)

        layers.append(dict(
            w1a=_pad2(p["ffn1"]["w1"], D_pad, F_pad).astype(bf),
            w1b=_pad2(p["ffn1"]["w2"], F_pad, D_pad).astype(bf),
            wq=wq.astype(bf), wk=wk.astype(bf), wv=wv.astype(bf), wo=wo.astype(bf),
            wga=_pad2(p["pw1_w"][:, :D], D_pad, D_pad).astype(bf),
            wgg=_pad2(p["pw1_w"][:, D:], D_pad, D_pad).astype(bf),
            dww=_pad2(p["dw_w"], p["dw_w"].shape[0], D_pad),     # fp32 (VPU MAC, v5e-safe)
            wpw2=_pad2(p["pw2_w"], D_pad, D_pad).astype(bf),
            w2a=_pad2(p["ffn2"]["w1"], D_pad, F_pad).astype(bf),
            w2b=_pad2(p["ffn2"]["w2"], F_pad, D_pad).astype(bf),
            vd=vd.astype(jnp.float32), vf=vf.astype(jnp.float32),
            vqkv=vqkv.astype(jnp.float32),
        ))
    return dict(mel_w=raw["mel_proj_w"].reshape(-1, D), mel_b=raw["mel_proj_b"],
                out_w=raw["out_w"], out_b=raw["out_b"], layers=layers)


# ---------------------------------------------------------------------------
# Shared (plain-XLA) front / back ends — tiny matmuls left to XLA per review
# ---------------------------------------------------------------------------

def _front_end(mel, text, input_lengths, l_max, mel_w, mel_b):
    mel_cl = jnp.transpose(mel, (0, 2, 1))                     # (B, T_mel, mel_dim)
    text_cl = jnp.transpose(text[:, :, :l_max], (0, 2, 1))     # (B, l_max, D)
    t_mel = mel_cl.shape[1]
    xp = jnp.pad(mel_cl, ((0, 0), (1, 1), (0, 0)))
    cols = jnp.concatenate([xp[:, i:i + t_mel, :] for i in range(3)], axis=-1)
    mel_p = jnp.dot(cols, mel_w) + mel_b                       # Conv1d(k=3, pad=1) via im2col
    x = jnp.concatenate([mel_p, text_cl], axis=1)              # (B, T, D)
    lengths = input_lengths + t_mel
    return x, lengths, t_mel


def _back_end(x, t_mel, out_w, out_b, text_channels, max_size, l_max):
    B = x.shape[0]
    x_mel, x_text = x[:, :t_mel, :], x[:, t_mel:, :]
    s = jnp.dot(jnp.mean(x_mel, axis=1), out_w) + out_b        # style head (tiny -> XLA)
    text_return = jnp.zeros((B, text_channels, max_size), jnp.float32)
    text_return = text_return.at[:, :, :l_max].set(jnp.transpose(x_text, (0, 2, 1)))
    return s, text_return


def style_encoder_forward(prep, mel, text, input_lengths, *, l_max, max_size,
                          text_dim, num_heads):
    D = text_dim
    x, lengths, t_mel = _front_end(mel, text, input_lengths, l_max,
                                   prep["mel_w"], prep["mel_b"])
    B, T, _ = x.shape
    D_pad = _round_up(D, 128)
    halo = max((int(lp["dww"].shape[0]) - 1) // 2 for lp in prep["layers"])
    T_pad = _round_up(T + halo, 8)                             # zero time-halo for conv taps
    x = jnp.pad(x, ((0, 0), (0, T_pad - T), (0, D_pad - D)))
    bias = jnp.where(jnp.arange(T_pad)[None, :] >= lengths[:, None],
                     -1e9, 0.0).astype(jnp.float32)[:, None, :]   # additive key-pad mask
    for lp in prep["layers"]:
        x = conformer_layer_pallas(x, bias, lp, T=T, D=D, H=num_heads)
    x = x[:, :T, :D]
    return _back_end(x, t_mel, prep["out_w"], prep["out_b"], D, max_size, l_max)


# ---------------------------------------------------------------------------
# Pure-JAX reference (same math: bf16 matmuls, fp32 norms) — correctness check
# ---------------------------------------------------------------------------

def _bf16_dot(a, b):
    return jnp.dot(a.astype(jnp.bfloat16), b.astype(jnp.bfloat16),
                   preferred_element_type=jnp.float32)


def _ref_layernorm(x, g, b):
    m = jnp.mean(x, axis=-1, keepdims=True)
    v = jnp.mean(jnp.square(x - m), axis=-1, keepdims=True)
    return (x - m) * lax.rsqrt(v + 1e-5) * g + b


def _ref_ffn(x, pf):
    h = _ref_layernorm(x, pf["ln_g"], pf["ln_b"])
    h = _bf16_dot(h, pf["w1"]) + pf["b1"]
    h = h * jax.nn.sigmoid(h)
    return x + 0.5 * (_bf16_dot(h, pf["w2"]) + pf["b2"])


def _ref_layer(x, p, bias3, num_heads):
    B, T, D = x.shape
    hd = D // num_heads
    x = _ref_ffn(x, p["ffn1"])
    # MHSA
    h = _ref_layernorm(x, p["attn_ln_g"], p["attn_ln_b"])
    q = (_bf16_dot(h, p["in_proj_w"][:, :D]) + p["in_proj_b"][:D]).reshape(B, T, num_heads, hd)
    k = (_bf16_dot(h, p["in_proj_w"][:, D:2 * D]) + p["in_proj_b"][D:2 * D]).reshape(B, T, num_heads, hd)
    v = (_bf16_dot(h, p["in_proj_w"][:, 2 * D:]) + p["in_proj_b"][2 * D:]).reshape(B, T, num_heads, hd)
    s = jnp.einsum("bqhd,bkhd->bhqk", q.astype(jnp.bfloat16), k.astype(jnp.bfloat16),
                   preferred_element_type=jnp.float32) * (1.0 / math.sqrt(hd))
    s = s + bias3[:, :, None, :]
    pr = jax.nn.softmax(s, axis=-1)
    o = jnp.einsum("bhqk,bkhd->bqhd", pr.astype(jnp.bfloat16), v.astype(jnp.bfloat16),
                   preferred_element_type=jnp.float32).reshape(B, T, D)
    x = x + _bf16_dot(o, p["out_proj_w"]) + p["out_proj_b"]
    # Conv module
    K = p["dw_w"].shape[0]
    padk = (K - 1) // 2
    h = _ref_layernorm(x, p["conv_ln_g"], p["conv_ln_b"])
    a = _bf16_dot(h, p["pw1_w"][:, :D]) + p["pw1_b"][:D]
    g = _bf16_dot(h, p["pw1_w"][:, D:]) + p["pw1_b"][D:]
    u = a * jax.nn.sigmoid(g)
    up = jnp.pad(u, ((0, 0), (padk, padk), (0, 0)))
    c = sum(up[:, i:i + T, :] * p["dw_w"][i][None, None, :] for i in range(K)) + p["dw_b"]
    m = jnp.mean(c, axis=(1, 2), keepdims=True)
    vv = jnp.mean(jnp.square(c - m), axis=(1, 2), keepdims=True)
    c = (c - m) * lax.rsqrt(vv + 1e-5) * p["gn_g"] + p["gn_b"]
    c = c * jax.nn.sigmoid(c)
    x = x + _bf16_dot(c, p["pw2_w"]) + p["pw2_b"]
    # FFN2 + final LN
    x = _ref_ffn(x, p["ffn2"])
    return _ref_layernorm(x, p["final_ln_g"], p["final_ln_b"])


def style_encoder_forward_ref(raw, mel, text, input_lengths, l_max, max_size, num_heads):
    D = raw["out_w"].shape[0]
    x, lengths, t_mel = _front_end(mel, text, input_lengths, l_max,
                                   raw["mel_proj_w"].reshape(-1, D), raw["mel_proj_b"])
    T = x.shape[1]
    bias3 = jnp.where(jnp.arange(T)[None, :] >= lengths[:, None],
                      -1e9, 0.0).astype(jnp.float32)[:, None, :]
    for p in raw["pre_layers"] + raw["body_layers"]:
        x = _ref_layer(x, p, bias3, num_heads)
    return _back_end(x, t_mel, raw["out_w"], raw["out_b"], D, max_size, l_max)


# ---------------------------------------------------------------------------
# Parameter init (mirrors the PyTorch module structure, self-consistent layout)
# ---------------------------------------------------------------------------

def init_params(key, mel_dim, text_dim, style_dim, num_layers):
    keys = iter(jax.random.split(key, 256))

    def rnd(shape, fan_in):
        return jax.random.normal(next(keys), shape, jnp.float32) / np.sqrt(fan_in)

    D, F = text_dim, 2 * text_dim

    def make_layer(K):
        def ffn():
            return dict(ln_g=jnp.ones((D,)), ln_b=jnp.zeros((D,)),
                        w1=rnd((D, F), D), b1=rnd((F,), D),
                        w2=rnd((F, D), F), b2=rnd((D,), F))
        return dict(
            ffn1=ffn(), ffn2=ffn(),
            attn_ln_g=jnp.ones((D,)), attn_ln_b=jnp.zeros((D,)),
            in_proj_w=rnd((D, 3 * D), D), in_proj_b=rnd((3 * D,), D),
            out_proj_w=rnd((D, D), D), out_proj_b=rnd((D,), D),
            conv_ln_g=jnp.ones((D,)), conv_ln_b=jnp.zeros((D,)),
            pw1_w=rnd((D, 2 * D), D), pw1_b=rnd((2 * D,), D),
            dw_w=rnd((K, D), K), dw_b=rnd((D,), K),
            gn_g=jnp.ones((D,)), gn_b=jnp.zeros((D,)),
            pw2_w=rnd((D, D), D), pw2_b=rnd((D,), D),
            final_ln_g=jnp.ones((D,)), final_ln_b=jnp.zeros((D,)),
        )

    return dict(
        mel_proj_w=rnd((3, mel_dim, D), 3 * mel_dim),
        mel_proj_b=rnd((D,), 3 * mel_dim),
        pre_layers=[make_layer(31)],                                   # conformer_pre (K=31)
        body_layers=[make_layer(15) for _ in range(num_layers - 1)],   # conformer_body (K=15)
        out_w=rnd((D, style_dim), D),
        out_b=rnd((style_dim,), D),
    )


if __name__ == "__main__":
    MEL_DIM, TEXT_DIM, STYLE_DIM, NUM_HEADS, NUM_LAYERS = 8, 32, 16, 4, 2
    B, T_MEL, T_TEXT, MAX_SIZE = 2, 12, 16, 16

    root = jax.random.PRNGKey(0)
    k_par, k_mel, k_text = jax.random.split(root, 3)
    raw = init_params(k_par, MEL_DIM, TEXT_DIM, STYLE_DIM, NUM_LAYERS)
    prep = prepare_params(raw, TEXT_DIM, NUM_HEADS)       # pad/pack/split/cast once

    mel = jax.random.normal(k_mel, (B, MEL_DIM, T_MEL), jnp.float32)
    text = jax.random.normal(k_text, (B, TEXT_DIM, T_TEXT), jnp.float32)
    input_lengths = jnp.array([10, 8], dtype=jnp.int32)
    l_max = int(np.max(np.asarray(input_lengths)))        # host-side once; static under jit

    @functools.partial(jax.jit,
                       static_argnames=("l_max", "max_size", "text_dim", "num_heads"))
    def fwd(prep, mel, text, input_lengths, *, l_max, max_size, text_dim, num_heads):
        return style_encoder_forward(prep, mel, text, input_lengths, l_max=l_max,
                                     max_size=max_size, text_dim=text_dim,
                                     num_heads=num_heads)

    s, text_ret = fwd(prep, mel, text, input_lengths, l_max=l_max, max_size=MAX_SIZE,
                      text_dim=TEXT_DIM, num_heads=NUM_HEADS)
    s, text_ret = jax.block_until_ready((s, text_ret))

    s_ref, text_ret_ref = style_encoder_forward_ref(raw, mel, text, input_lengths,
                                                    l_max, MAX_SIZE, NUM_HEADS)
    np.testing.assert_allclose(np.asarray(s), np.asarray(s_ref), rtol=2e-2, atol=2e-2)
    np.testing.assert_allclose(np.asarray(text_ret), np.asarray(text_ret_ref),
                               rtol=2e-2, atol=2e-2)

    assert s.shape == (B, STYLE_DIM) and text_ret.shape == (B, TEXT_DIM, MAX_SIZE)
    print("KERNEL_OK")
</pallas_src>

<mosaic_0001>
module attributes {stable_mosaic.version = 11 : i64} {
  func.func @kernel(%arg0: i32, %arg1: memref<1x40x128xf32, #tpu.memory_space<vmem>>, %arg2: memref<1x1x40xf32, #tpu.memory_space<vmem>>, %arg3: memref<128x128xbf16, #tpu.memory_space<vmem>>, %arg4: memref<128x128xbf16, #tpu.memory_space<vmem>>, %arg5: memref<128x512xbf16, #tpu.memory_space<vmem>>, %arg6: memref<128x512xbf16, #tpu.memory_space<vmem>>, %arg7: memref<128x512xbf16, #tpu.memory_space<vmem>>, %arg8: memref<512x128xbf16, #tpu.memory_space<vmem>>, %arg9: memref<128x128xbf16, #tpu.memory_space<vmem>>, %arg10: memref<128x128xbf16, #tpu.memory_space<vmem>>, %arg11: memref<31x128xf32, #tpu.memory_space<vmem>>, %arg12: memref<128x128xbf16, #tpu.memory_space<vmem>>, %arg13: memref<128x128xbf16, #tpu.memory_space<vmem>>, %arg14: memref<128x128xbf16, #tpu.memory_space<vmem>>, %arg15: memref<19x128xf32, #tpu.memory_space<vmem>>, %arg16: memref<2x128xf32, #tpu.memory_space<vmem>>, %arg17: memref<3x512xf32, #tpu.memory_space<vmem>>, %arg18: memref<1x40x128xf32, #tpu.memory_space<vmem>>) attributes {dimension_semantics = [#tpu.dimension_semantics<parallel>], iteration_bounds = array<i64: 2>, scalar_prefetch = 0 : i64, scratch_operands = 0 : i64, tpu.core_type = #tpu.core_type<tc>, window_params = [{transform_indices = @transform_0, window_bounds = array<i64: 1, 40, 128>}, {transform_indices = @transform_1, window_bounds = array<i64: 1, 1, 40>}, {pipeline_mode = #tpu.pipeline_mode<synchronous>, transform_indices = @transform_2, window_bounds = array<i64: 128, 128>}, {pipeline_mode = #tpu.pipeline_mode<synchronous>, transform_indices = @transform_3, window_bounds = array<i64: 128, 128>}, {pipeline_mode = #tpu.pipeline_mode<synchronous>, transform_indices = @transform_4, window_bounds = array<i64: 128, 512>}, {pipeline_mode = #tpu.pipeline_mode<synchronous>, transform_indices = @transform_5, window_bounds = array<i64: 128, 512>}, {pipeline_mode = #tpu.pipeline_mode<synchronous>, transform_indices = @transform_6, window_bounds = array<i64: 128, 512>}, {pipeline_mode = #tpu.pipeline_mode<synchronous>, transform_indices = @transform_7, window_bounds = array<i64: 512, 128>}, {pipeline_mode = #tpu.pipeline_mode<synchronous>, transform_indices = @transform_8, window_bounds = array<i64: 128, 128>}, {pipeline_mode = #tpu.pipeline_mode<synchronous>, transform_indices = @transform_9, window_bounds = array<i64: 128, 128>}, {pipeline_mode = #tpu.pipeline_mode<synchronous>, transform_indices = @transform_10, window_bounds = array<i64: 31, 128>}, {pipeline_mode = #tpu.pipeline_mode<synchronous>, transform_indices = @transform_11, window_bounds = array<i64: 128, 128>}, {pipeline_mode = #tpu.pipeline_mode<synchronous>, transform_indices = @transform_12, window_bounds = array<i64: 128, 128>}, {pipeline_mode = #tpu.pipeline_mode<synchronous>, transform_indices = @transform_13, window_bounds = array<i64: 128, 128>}, {pipeline_mode = #tpu.pipeline_mode<synchronous>, transform_indices = @transform_14, window_bounds = array<i64: 19, 128>}, {pipeline_mode = #tpu.pipeline_mode<synchronous>, transform_indices = @transform_15, window_bounds = array<i64: 2, 128>}, {pipeline_mode = #tpu.pipeline_mode<synchronous>, transform_indices = @transform_16, window_bounds = array<i64: 3, 512>}, {transform_indices = @transform_17, window_bounds = array<i64: 1, 40, 128>}]} {
    %0 = tpu.iota {dimensions = array<i32: 1>} : vector<1x128xi32>
    %c32_i32 = arith.constant 32 : i32
    %1 = vector.broadcast %c32_i32 : i32 to vector<1x128xi32>
    %2 = arith.cmpi slt, %0, %1 : vector<1x128xi32>
    %3 = arith.extui %2 : vector<1x128xi1> to vector<1x128xi32>
    %4 = arith.sitofp %3 : vector<1x128xi32> to vector<1x128xf32>
    %5 = tpu.iota {dimensions = array<i32: 0>} : vector<40x1xi32>
    %c0 = arith.constant 0 : index
    %c0_0 = arith.constant 0 : index
    %c0_1 = arith.constant 0 : index
    %6 = vector.load %arg1[%c0, %c0_0, %c0_1] : memref<1x40x128xf32, #tpu.memory_space<vmem>>, vector<1x40x128xf32>
    %7 = vector.shape_cast %6 : vector<1x40x128xf32> to vector<40x128xf32>
    %c0_2 = arith.constant 0 : index
    %c0_3 = arith.constant 0 : index
    %8 = vector.load %arg15[%c0_2, %c0_3] : memref<19x128xf32, #tpu.memory_space<vmem>>, vector<1x128xf32>
    %c1 = arith.constant 1 : index
    %c0_4 = arith.constant 0 : index
    %9 = vector.load %arg15[%c1, %c0_4] : memref<19x128xf32, #tpu.memory_space<vmem>>, vector<1x128xf32>
    %c0_5 = arith.constant 0 : index
    %c0_6 = arith.constant 0 : index
    %10 = vector.load %arg16[%c0_5, %c0_6] : memref<2x128xf32, #tpu.memory_space<vmem>>, vector<1x128xf32>
    %c2 = arith.constant 2 : index
    %c0_7 = arith.constant 0 : index
    %11 = vector.load %arg15[%c2, %c0_7] : memref<19x128xf32, #tpu.memory_space<vmem>>, vector<1x128xf32>
    %cst = arith.constant dense<0.000000e+00> : vector<40xf32>
    %12 = vector.multi_reduction <add>, %7, %cst [1] : vector<40x128xf32> to vector<40xf32>
    %13 = vector.shape_cast %12 : vector<40xf32> to vector<40x1xf32>
    %cst_8 = arith.constant 3.125000e-02 : f32
    %14 = vector.broadcast %cst_8 : f32 to vector<40x1xf32>
    %15 = arith.mulf %13, %14 : vector<40x1xf32>
    %16 = vector.broadcast %15 : vector<40x1xf32> to vector<40x128xf32>
    %17 = arith.subf %7, %16 : vector<40x128xf32>
    %18 = vector.broadcast %4 : vector<1x128xf32> to vector<40x128xf32>
    %19 = arith.mulf %17, %18 : vector<40x128xf32>
    %20 = arith.mulf %19, %19 : vector<40x128xf32>
    %cst_9 = arith.constant dense<0.000000e+00> : vector<40xf32>
    %21 = vector.multi_reduction <add>, %20, %cst_9 [1] : vector<40x128xf32> to vector<40xf32>
    %22 = vector.shape_cast %21 : vector<40xf32> to vector<40x1xf32>
    %cst_10 = arith.constant 3.125000e-02 : f32
    %23 = vector.broadcast %cst_10 : f32 to vector<40x1xf32>
    %24 = arith.mulf %22, %23 : vector<40x1xf32>
    %cst_11 = arith.constant 9.99999974E-6 : f32
    %25 = vector.broadcast %cst_11 : f32 to vector<40x1xf32>
    %26 = arith.addf %24, %25 : vector<40x1xf32>
    %27 = math.rsqrt %26 : vector<40x1xf32>
    %28 = vector.broadcast %27 : vector<40x1xf32> to vector<40x128xf32>
    %29 = arith.mulf %19, %28 : vector<40x128xf32>
    %30 = vector.broadcast %8 : vector<1x128xf32> to vector<40x128xf32>
    %31 = arith.mulf %29, %30 : vector<40x128xf32>
    %32 = vector.broadcast %9 : vector<1x128xf32> to vector<40x128xf32>
    %33 = arith.addf %31, %32 : vector<40x128xf32>
    %34 = arith.truncf %33 : vector<40x128xf32> to vector<40x128xbf16>
    %c0_12 = arith.constant 0 : index
    %c0_13 = arith.constant 0 : index
    %35 = vector.load %arg3[%c0_12, %c0_13] : memref<128x128xbf16, #tpu.memory_space<vmem>>, vector<128x128xbf16>
    %cst_14 = arith.constant dense<0.000000e+00> : vector<40x128xf32>
    %36 = tpu.matmul %34, %35, %cst_14 {dimension_numbers = #tpu.dot_dimension_numbers<[1], [0], [0], [1], [0, 0, 1, 1], [], []>} : vector<40x128xbf16>, vector<128x128xbf16>, vector<40x128xf32> -> vector<40x128xf32>
    %37 = vector.broadcast %10 : vector<1x128xf32> to vector<40x128xf32>
    %38 = arith.addf %36, %37 : vector<40x128xf32>
    %39 = arith.negf %38 : vector<40x128xf32>
    %40 = math.exp %39 : vector<40x128xf32>
    %cst_15 = arith.constant 1.000000e+00 : f32
    %41 = vector.broadcast %cst_15 : f32 to vector<40x128xf32>
    %42 = arith.addf %41, %40 : vector<40x128xf32>
    %43 = arith.divf %41, %42 : vector<40x128xf32>
    %44 = arith.mulf %38, %43 : vector<40x128xf32>
    %45 = arith.truncf %44 : vector<40x128xf32> to vector<40x128xbf16>
    %c0_16 = arith.constant 0 : index
    %c0_17 = arith.constant 0 : index
    %46 = vector.load %arg4[%c0_16, %c0_17] : memref<128x128xbf16, #tpu.memory_space<vmem>>, vector<128x128xbf16>
    %cst_18 = arith.constant dense<0.000000e+00> : vector<40x128xf32>
    %47 = tpu.matmul %45, %46, %cst_18 {dimension_numbers = #tpu.dot_dimension_numbers<[1], [0], [0], [1], [0, 0, 1, 1], [], []>} : vector<40x128xbf16>, vector<128x128xbf16>, vector<40x128xf32> -> vector<40x128xf32>
    %48 = vector.broadcast %11 : vector<1x128xf32> to vector<40x128xf32>
    %49 = arith.addf %47, %48 : vector<40x128xf32>
    %cst_19 = arith.constant 5.000000e-01 : f32
    %50 = vector.broadcast %cst_19 : f32 to vector<40x128xf32>
    %51 = arith.mulf %50, %49 : vector<40x128xf32>
    %52 = arith.addf %7, %51 : vector<40x128xf32>
    %c3 = arith.constant 3 : index
    %c0_20 = arith.constant 0 : index
    %53 = vector.load %arg15[%c3, %c0_20] : memref<19x128xf32, #tpu.memory_space<vmem>>, vector<1x128xf32>
    %c4 = arith.constant 4 : index
    %c0_21 = arith.constant 0 : index
    %54 = vector.load %arg15[%c4, %c0_21] : memref<19x128xf32, #tpu.memory_space<vmem>>, vector<1x128xf32>
    %cst_22 = arith.constant dense<0.000000e+00> : vector<40xf32>
    %55 = vector.multi_reduction <add>, %52, %cst_22 [1] : vector<40x128xf32> to vector<40xf32>
    %56 = vector.shape_cast %55 : vector<40xf32> to vector<40x1xf32>
    %cst_23 = arith.constant 3.125000e-02 : f32
    %57 = vector.broadcast %cst_23 : f32 to vector<40x1xf32>
    %58 = arith.mulf %56, %57 : vector<40x1xf32>
    %59 = vector.broadcast %58 : vector<40x1xf32> to vector<40x128xf32>
    %60 = arith.subf %52, %59 : vector<40x128xf32>
    %61 = vector.broadcast %4 : vector<1x128xf32> to vector<40x128xf32>
    %62 = arith.mulf %60, %61 : vector<40x128xf32>
    %63 = arith.mulf %62, %62 : vector<40x128xf32>
    %cst_24 = arith.constant dense<0.000000e+00> : vector<40xf32>
    %64 = vector.multi_reduction <add>, %63, %cst_24 [1] : vector<40x128xf32> to vector<40xf32>
    %65 = vector.shape_cast %64 : vector<40xf32> to vector<40x1xf32>
    %cst_25 = arith.constant 3.125000e-02 : f32
    %66 = vector.broadcast %cst_25 : f32 to vector<40x1xf32>
    %67 = arith.mulf %65, %66 : vector<40x1xf32>
    %cst_26 = arith.constant 9.99999974E-6 : f32
    %68 = vector.broadcast %cst_26 : f32 to vector<40x1xf32>
    %69 = arith.addf %67, %68 : vector<40x1xf32>
    %70 = math.rsqrt %69 : vector<40x1xf32>
    %71 = vector.broadcast %70 : vector<40x1xf32> to vector<40x128xf32>
    %72 = arith.mulf %62, %71 : vector<40x128xf32>
    %73 = vector.broadcast %53 : vector<1x128xf32> to vector<40x128xf32>
    %74 = arith.mulf %72, %73 : vector<40x128xf32>
    %75 = vector.broadcast %54 : vector<1x128xf32> to vector<40x128xf32>
    %76 = arith.addf %74, %75 : vector<40x128xf32>
    %77 = arith.truncf %76 : vector<40x128xf32> to vector<40x128xbf16>
    %c0_27 = arith.constant 0 : index
    %c0_28 = arith.constant 0 : index
    %78 = vector.load %arg5[%c0_27, %c0_28] : memref<128x512xbf16, #tpu.memory_space<vmem>>, vector<128x512xbf16>
    %cst_29 = arith.constant dense<0.000000e+00> : vector<40x512xf32>
    %79 = tpu.matmul %77, %78, %cst_29 {dimension_numbers = #tpu.dot_dimension_numbers<[1], [0], [0], [1], [0, 0, 1, 1], [], []>} : vector<40x128xbf16>, vector<128x512xbf16>, vector<40x512xf32> -> vector<40x512xf32>
    %c0_30 = arith.constant 0 : index
    %c0_31 = arith.constant 0 : index
    %80 = vector.load %arg17[%c0_30, %c0_31] : memref<3x512xf32, #tpu.memory_space<vmem>>, vector<1x512xf32>
    %81 = vector.broadcast %80 : vector<1x512xf32> to vector<40x512xf32>
    %82 = arith.addf %79, %81 : vector<40x512xf32>
    %c0_32 = arith.constant 0 : index
    %c0_33 = arith.constant 0 : index
    %83 = vector.load %arg6[%c0_32, %c0_33] : memref<128x512xbf16, #tpu.memory_space<vmem>>, vector<128x512xbf16>
    %cst_34 = arith.constant dense<0.000000e+00> : vector<40x512xf32>
    %84 = tpu.matmul %77, %83, %cst_34 {dimension_numbers = #tpu.dot_dimension_numbers<[1], [0], [0], [1], [0, 0, 1, 1], [], []>} : vector<40x128xbf16>, vector<128x512xbf16>, vector<40x512xf32> -> vector<40x512xf32>
    %c1_35 = arith.constant 1 : index
    %c0_36 = arith.constant 0 : index
    %85 = vector.load %arg17[%c1_35, %c0_36] : memref<3x512xf32, #tpu.memory_space<vmem>>, vector<1x512xf32>
    %86 = vector.broadcast %85 : vector<1x512xf32> to vector<40x512xf32>
    %87 = arith.addf %84, %86 : vector<40x512xf32>
    %c0_37 = arith.constant 0 : index
    %c0_38 = arith.constant 0 : index
    %88 = vector.load %arg7[%c0_37, %c0_38] : memref<128x512xbf16, #tpu.memory_space<vmem>>, vector<128x512xbf16>
    %cst_39 = arith.constant dense<0.000000e+00> : vector<40x512xf32>
    %89 = tpu.matmul %77, %88, %cst_39 {dimension_numbers = #tpu.dot_dimension_numbers<[1], [0], [0], [1], [0, 0, 1, 1], [], []>} : vector<40x128xbf16>, vector<128x512xbf16>, vector<40x512xf32> -> vector<40x512xf32>
    %c2_40 = arith.constant 2 : index
    %c0_41 = arith.constant 0 : index
    %90 = vector.load %arg17[%c2_40, %c0_41] : memref<3x512xf32, #tpu.memory_space<vmem>>, vector<1x512xf32>
    %91 = vector.broadcast %90 : vector<1x512xf32> to vector<40x512xf32>
    %92 = arith.addf %89, %91 : vector<40x512xf32>
    %93 = arith.truncf %82 : vector<40x512xf32> to vector<40x512xbf16>
    %94 = arith.truncf %87 : vector<40x512xf32> to vector<40x512xbf16>
    %95 = arith.truncf %92 : vector<40x512xf32> to vector<40x512xbf16>
    %c0_42 = arith.constant 0 : index
    %c0_43 = arith.constant 0 : index
    %c0_44 = arith.constant 0 : index
    %96 = vector.load %arg2[%c0_42, %c0_43, %c0_44] : memref<1x1x40xf32, #tpu.memory_space<vmem>>, vector<1x1x40xf32>
    %97 = vector.shape_cast %96 : vector<1x1x40xf32> to vector<1x40xf32>
    %cst_45 = arith.constant 0.000000e+00 : f32
    %98 = vector.broadcast %cst_45 : f32 to vector<40x128xf32>
    %99 = vector.extract_strided_slice %93 {offsets = [0, 0], sizes = [40, 128], strides = [1, 1]} : vector<40x512xbf16> to vector<40x128xbf16>
    %100 = vector.extract_strided_slice %94 {offsets = [0, 0], sizes = [40, 128], strides = [1, 1]} : vector<40x512xbf16> to vector<40x128xbf16>
    %cst_46 = arith.constant dense<0.000000e+00> : vector<40x40xf32>
    %101 = tpu.matmul %99, %100, %cst_46 {dimension_numbers = #tpu.dot_dimension_numbers<[1], [1], [0], [0], [0, 0, 1, 0], [], []>} : vector<40x128xbf16>, vector<40x128xbf16>, vector<40x40xf32> -> vector<40x40xf32>
    %cst_47 = arith.constant 0.353553385 : f32
    %102 = vector.broadcast %cst_47 : f32 to vector<40x40xf32>
    %103 = arith.mulf %101, %102 : vector<40x40xf32>
    %104 = vector.broadcast %97 : vector<1x40xf32> to vector<40x40xf32>
    %105 = arith.addf %103, %104 : vector<40x40xf32>
    %cst_48 = arith.constant dense<0xFF800000> : vector<40xf32>
    %106 = vector.multi_reduction <maximumf>, %105, %cst_48 [1] : vector<40x40xf32> to vector<40xf32>
    %107 = vector.shape_cast %106 : vector<40xf32> to vector<40x1xf32>
    %108 = vector.broadcast %107 : vector<40x1xf32> to vector<40x40xf32>
    %109 = arith.subf %105, %108 : vector<40x40xf32>
    %110 = math.exp %109 : vector<40x40xf32>
    %cst_49 = arith.constant dense<0.000000e+00> : vector<40xf32>
    %111 = vector.multi_reduction <add>, %110, %cst_49 [1] : vector<40x40xf32> to vector<40xf32>
    %112 = vector.shape_cast %111 : vector<40xf32> to vector<40x1xf32>
    %113 = vector.broadcast %112 : vector<40x1xf32> to vector<40x40xf32>
    %114 = arith.divf %110, %113 : vector<40x40xf32>
    %115 = arith.truncf %114 : vector<40x40xf32> to vector<40x40xbf16>
    %116 = vector.extract_strided_slice %95 {offsets = [0, 0], sizes = [40, 128], strides = [1, 1]} : vector<40x512xbf16> to vector<40x128xbf16>
    %cst_50 = arith.constant dense<0.000000e+00> : vector<40x128xf32>
    %117 = tpu.matmul %115, %116, %cst_50 {dimension_numbers = #tpu.dot_dimension_numbers<[1], [0], [0], [1], [0, 0, 1, 1], [], []>} : vector<40x40xbf16>, vector<40x128xbf16>, vector<40x128xf32> -> vector<40x128xf32>
    %118 = arith.truncf %117 : vector<40x128xf32> to vector<40x128xbf16>
    %c0_51 = arith.constant 0 : index
    %c0_52 = arith.constant 0 : index
    %119 = vector.load %arg8[%c0_51, %c0_52] : memref<512x128xbf16, #tpu.memory_space<vmem>>, vector<128x128xbf16>
    %cst_53 = arith.constant dense<0.000000e+00> : vector<40x128xf32>
    %120 = tpu.matmul %118, %119, %cst_53 {dimension_numbers = #tpu.dot_dimension_numbers<[1], [0], [0], [1], [0, 0, 1, 1], [], []>} : vector<40x128xbf16>, vector<128x128xbf16>, vector<40x128xf32> -> vector<40x128xf32>
    %121 = arith.addf %98, %120 : vector<40x128xf32>
    %122 = vector.extract_strided_slice %93 {offsets = [0, 128], sizes = [40, 128], strides = [1, 1]} : vector<40x512xbf16> to vector<40x128xbf16>
    %123 = vector.extract_strided_slice %94 {offsets = [0, 128], sizes = [40, 128], strides = [1, 1]} : vector<40x512xbf16> to vector<40x128xbf16>
    %cst_54 = arith.constant dense<0.000000e+00> : vector<40x40xf32>
    %124 = tpu.matmul %122, %123, %cst_54 {dimension_numbers = #tpu.dot_dimension_numbers<[1], [1], [0], [0], [0, 0, 1, 0], [], []>} : vector<40x128xbf16>, vector<40x128xbf16>, vector<40x40xf32> -> vector<40x40xf32>
    %cst_55 = arith.constant 0.353553385 : f32
    %125 = vector.broadcast %cst_55 : f32 to vector<40x40xf32>
    %126 = arith.mulf %124, %125 : vector<40x40xf32>
    %127 = vector.broadcast %97 : vector<1x40xf32> to vector<40x40xf32>
    %128 = arith.addf %126, %127 : vector<40x40xf32>
    %cst_56 = arith.constant dense<0xFF800000> : vector<40xf32>
    %129 = vector.multi_reduction <maximumf>, %128, %cst_56 [1] : vector<40x40xf32> to vector<40xf32>
    %130 = vector.shape_cast %129 : vector<40xf32> to vector<40x1xf32>
    %131 = vector.broadcast %130 : vector<40x1xf32> to vector<40x40xf32>
    %132 = arith.subf %128, %131 : vector<40x40xf32>
    %133 = math.exp %132 : vector<40x40xf32>
    %cst_57 = arith.constant dense<0.000000e+00> : vector<40xf32>
    %134 = vector.multi_reduction <add>, %133, %cst_57 [1] : vector<40x40xf32> to vector<40xf32>
    %135 = vector.shape_cast %134 : vector<40xf32> to vector<40x1xf32>
    %136 = vector.broadcast %135 : vector<40x1xf32> to vector<40x40xf32>
    %137 = arith.divf %133, %136 : vector<40x40xf32>
    %138 = arith.truncf %137 : vector<40x40xf32> to vector<40x40xbf16>
    %139 = vector.extract_strided_slice %95 {offsets = [0, 128], sizes = [40, 128], strides = [1, 1]} : vector<40x512xbf16> to vector<40x128xbf16>
    %cst_58 = arith.constant dense<0.000000e+00> : vector<40x128xf32>
    %140 = tpu.matmul %138, %139, %cst_58 {dimension_numbers = #tpu.dot_dimension_numbers<[1], [0], [0], [1], [0, 0, 1, 1], [], []>} : vector<40x40xbf16>, vector<40x128xbf16>, vector<40x128xf32> -> vector<40x128xf32>
    %141 = arith.truncf %140 : vector<40x128xf32> to vector<40x128xbf16>
    %c128 = arith.constant 128 : index
    %c0_59 = arith.constant 0 : index
    %142 = vector.load %arg8[%c128, %c0_59] : memref<512x128xbf16, #tpu.memory_space<vmem>>, vector<128x128xbf16>
    %cst_60 = arith.constant dense<0.000000e+00> : vector<40x128xf32>
    %143 = tpu.matmul %141, %142, %cst_60 {dimension_numbers = #tpu.dot_dimension_numbers<[1], [0], [0], [1], [0, 0, 1, 1], [], []>} : vector<40x128xbf16>, vector<128x128xbf16>, vector<40x128xf32> -> vector<40x128xf32>
    %144 = arith.addf %121, %143 : vector<40x128xf32>
    %145 = vector.extract_strided_slice %93 {offsets = [0, 256], sizes = [40, 128], strides = [1, 1]} : vector<40x512xbf16> to vector<40x128xbf16>
    %146 = vector.extract_strided_slice %94 {offsets = [0, 256], sizes = [40, 128], strides = [1, 1]} : vector<40x512xbf16> to vector<40x128xbf16>
    %cst_61 = arith.constant dense<0.000000e+00> : vector<40x40xf32>
    %147 = tpu.matmul %145, %146, %cst_61 {dimension_numbers = #tpu.dot_dimension_numbers<[1], [1], [0], [0], [0, 0, 1, 0], [], []>} : vector<40x128xbf16>, vector<40x128xbf16>, vector<40x40xf32> -> vector<40x40xf32>
    %cst_62 = arith.constant 0.353553385 : f32
    %148 = vector.broadcast %cst_62 : f32 to vector<40x40xf32>
    %149 = arith.mulf %147, %148 : vector<40x40xf32>
    %150 = vector.broadcast %97 : vector<1x40xf32> to vector<40x40xf32>
    %151 = arith.addf %149, %150 : vector<40x40xf32>
    %cst_63 = arith.constant dense<0xFF800000> : vector<40xf32>
    %152 = vector.multi_reduction <maximumf>, %151, %cst_63 [1] : vector<40x40xf32> to vector<40xf32>
    %153 = vector.shape_cast %152 : vector<40xf32> to vector<40x1xf32>
    %154 = vector.broadcast %153 : vector<40x1xf32> to vector<40x40xf32>
    %155 = arith.subf %151, %154 : vector<40x40xf32>
    %156 = math.exp %155 : vector<40x40xf32>
    %cst_64 = arith.constant dense<0.000000e+00> : vector<40xf32>
    %157 = vector.multi_reduction <add>, %156, %cst_64 [1] : vector<40x40xf32> to vector<40xf32>
    %158 = vector.shape_cast %157 : vector<40xf32> to vector<40x1xf32>
    %159 = vector.broadcast %158 : vector<40x1xf32> to vector<40x40xf32>
    %160 = arith.divf %156, %159 : vector<40x40xf32>
    %161 = arith.truncf %160 : vector<40x40xf32> to vector<40x40xbf16>
    %162 = vector.extract_strided_slice %95 {offsets = [0, 256], sizes = [40, 128], strides = [1, 1]} : vector<40x512xbf16> to vector<40x128xbf16>
    %cst_65 = arith.constant dense<0.000000e+00> : vector<40x128xf32>
    %163 = tpu.matmul %161, %162, %cst_65 {dimension_numbers = #tpu.dot_dimension_numbers<[1], [0], [0], [1], [0, 0, 1, 1], [], []>} : vector<40x40xbf16>, vector<40x128xbf16>, vector<40x128xf32> -> vector<40x128xf32>
    %164 = arith.truncf %163 : vector<40x128xf32> to vector<40x128xbf16>
    %c256 = arith.constant 256 : index
    %c0_66 = arith.constant 0 : index
    %165 = vector.load %arg8[%c256, %c0_66] : memref<512x128xbf16, #tpu.memory_space<vmem>>, vector<128x128xbf16>
    %cst_67 = arith.constant dense<0.000000e+00> : vector<40x128xf32>
    %166 = tpu.matmul %164, %165, %cst_67 {dimension_numbers = #tpu.dot_dimension_numbers<[1], [0], [0], [1], [0, 0, 1, 1], [], []>} : vector<40x128xbf16>, vector<128x128xbf16>, vector<40x128xf32> -> vector<40x128xf32>
    %167 = arith.addf %144, %166 : vector<40x128xf32>
    %168 = vector.extract_strided_slice %93 {offsets = [0, 384], sizes = [40, 128], strides = [1, 1]} : vector<40x512xbf16> to vector<40x128xbf16>
    %169 = vector.extract_strided_slice %94 {offsets = [0, 384], sizes = [40, 128], strides = [1, 1]} : vector<40x512xbf16> to vector<40x128xbf16>
    %cst_68 = arith.constant dense<0.000000e+00> : vector<40x40xf32>
    %170 = tpu.matmul %168, %169, %cst_68 {dimension_numbers = #tpu.dot_dimension_numbers<[1], [1], [0], [0], [0, 0, 1, 0], [], []>} : vector<40x128xbf16>, vector<40x128xbf16>, vector<40x40xf32> -> vector<40x40xf32>
    %cst_69 = arith.constant 0.353553385 : f32
    %171 = vector.broadcast %cst_69 : f32 to vector<40x40xf32>
    %172 = arith.mulf %170, %171 : vector<40x40xf32>
    %173 = vector.broadcast %97 : vector<1x40xf32> to vector<40x40xf32>
    %174 = arith.addf %172, %173 : vector<40x40xf32>
    %cst_70 = arith.constant dense<0xFF800000> : vector<40xf32>
    %175 = vector.multi_reduction <maximumf>, %174, %cst_70 [1] : vector<40x40xf32> to vector<40xf32>
    %176 = vector.shape_cast %175 : vector<40xf32> to vector<40x1xf32>
    %177 = vector.broadcast %176 : vector<40x1xf32> to vector<40x40xf32>
    %178 = arith.subf %174, %177 : vector<40x40xf32>
    %179 = math.exp %178 : vector<40x40xf32>
    %cst_71 = arith.constant dense<0.000000e+00> : vector<40xf32>
    %180 = vector.multi_reduction <add>, %179, %cst_71 [1] : vector<40x40xf32> to vector<40xf32>
    %181 = vector.shape_cast %180 : vector<40xf32> to vector<40x1xf32>
    %182 = vector.broadcast %181 : vector<40x1xf32> to vector<40x40xf32>
    %183 = arith.divf %179, %182 : vector<40x40xf32>
    %184 = arith.truncf %183 : vector<40x40xf32> to vector<40x40xbf16>
    %185 = vector.extract_strided_slice %95 {offsets = [0, 384], sizes = [40, 128], strides = [1, 1]} : vector<40x512xbf16> to vector<40x128xbf16>
    %cst_72 = arith.constant dense<0.000000e+00> : vector<40x128xf32>
    %186 = tpu.matmul %184, %185, %cst_72 {dimension_numbers = #tpu.dot_dimension_numbers<[1], [0], [0], [1], [0, 0, 1, 1], [], []>} : vector<40x40xbf16>, vector<40x128xbf16>, vector<40x128xf32> -> vector<40x128xf32>
    %187 = arith.truncf %186 : vector<40x128xf32> to vector<40x128xbf16>
    %c384 = arith.constant 384 : index
    %c0_73 = arith.constant 0 : index
    %188 = vector.load %arg8[%c384, %c0_73] : memref<512x128xbf16, #tpu.memory_space<vmem>>, vector<128x128xbf16>
    %cst_74 = arith.constant dense<0.000000e+00> : vector<40x128xf32>
    %189 = tpu.matmul %187, %188, %cst_74 {dimension_numbers = #tpu.dot_dimension_numbers<[1], [0], [0], [1], [0, 0, 1, 1], [], []>} : vector<40x128xbf16>, vector<128x128xbf16>, vector<40x128xf32> -> vector<40x128xf32>
    %190 = arith.addf %167, %189 : vector<40x128xf32>
    %191 = arith.addf %52, %190 : vector<40x128xf32>
    %c5 = arith.constant 5 : index
    %c0_75 = arith.constant 0 : index
    %192 = vector.load %arg15[%c5, %c0_75] : memref<19x128xf32, #tpu.memory_space<vmem>>, vector<1x128xf32>
    %193 = vector.broadcast %192 : vector<1x128xf32> to vector<40x128xf32>
    %194 = arith.addf %191, %193 : vector<40x128xf32>
    %c6 = arith.constant 6 : index
    %c0_76 = arith.constant 0 : index
    %195 = vector.load %arg15[%c6, %c0_76] : memref<19x128xf32, #tpu.memory_space<vmem>>, vector<1x128xf32>
    %c7 = arith.constant 7 : index
    %c0_77 = arith.constant 0 : index
    %196 = vector.load %arg15[%c7, %c0_77] : memref<19x128xf32, #tpu.memory_space<vmem>>, vector<1x128xf32>
    %cst_78 = arith.constant dense<0.000000e+00> : vector<40xf32>
    %197 = vector.multi_reduction <add>, %194, %cst_78 [1] : vector<40x128xf32> to vector<40xf32>
    %198 = vector.shape_cast %197 : vector<40xf32> to vector<40x1xf32>
    %cst_79 = arith.constant 3.125000e-02 : f32
    %199 = vector.broadcast %cst_79 : f32 to vector<40x1xf32>
    %200 = arith.mulf %198, %199 : vector<40x1xf32>
    %201 = vector.broadcast %200 : vector<40x1xf32> to vector<40x128xf32>
    %202 = arith.subf %194, %201 : vector<40x128xf32>
    %203 = vector.broadcast %4 : vector<1x128xf32> to vector<40x128xf32>
    %204 = arith.mulf %202, %203 : vector<40x128xf32>
    %205 = arith.mulf %204, %204 : vector<40x128xf32>
    %cst_80 = arith.constant dense<0.000000e+00> : vector<40xf32>
    %206 = vector.multi_reduction <add>, %205, %cst_80 [1] : vector<40x128xf32> to vector<40xf32>
    %207 = vector.shape_cast %206 : vector<40xf32> to vector<40x1xf32>
    %cst_81 = arith.constant 3.125000e-02 : f32
    %208 = vector.broadcast %cst_81 : f32 to vector<40x1xf32>
    %209 = arith.mulf %207, %208 : vector<40x1xf32>
    %cst_82 = arith.constant 9.99999974E-6 : f32
    %210 = vector.broadcast %cst_82 : f32 to vector<40x1xf32>
    %211 = arith.addf %209, %210 : vector<40x1xf32>
    %212 = math.rsqrt %211 : vector<40x1xf32>
    %213 = vector.broadcast %212 : vector<40x1xf32> to vector<40x128xf32>
    %214 = arith.mulf %204, %213 : vector<40x128xf32>
    %215 = vector.broadcast %195 : vector<1x128xf32> to vector<40x128xf32>
    %216 = arith.mulf %214, %215 : vector<40x128xf32>
    %217 = vector.broadcast %196 : vector<1x128xf32> to vector<40x128xf32>
    %218 = arith.addf %216, %217 : vector<40x128xf32>
    %219 = arith.truncf %218 : vector<40x128xf32> to vector<40x128xbf16>
    %c0_83 = arith.constant 0 : index
    %c0_84 = arith.constant 0 : index
    %220 = vector.load %arg9[%c0_83, %c0_84] : memref<128x128xbf16, #tpu.memory_space<vmem>>, vector<128x128xbf16>
    %cst_85 = arith.constant dense<0.000000e+00> : vector<40x128xf32>
    %221 = tpu.matmul %219, %220, %cst_85 {dimension_numbers = #tpu.dot_dimension_numbers<[1], [0], [0], [1], [0, 0, 1, 1], [], []>} : vector<40x128xbf16>, vector<128x128xbf16>, vector<40x128xf32> -> vector<40x128xf32>
    %c8 = arith.constant 8 : index
    %c0_86 = arith.constant 0 : index
    %222 = vector.load %arg15[%c8, %c0_86] : memref<19x128xf32, #tpu.memory_space<vmem>>, vector<1x128xf32>
    %223 = vector.broadcast %222 : vector<1x128xf32> to vector<40x128xf32>
    %224 = arith.addf %221, %223 : vector<40x128xf32>
    %c0_87 = arith.constant 0 : index
    %c0_88 = arith.constant 0 : index
    %225 = vector.load %arg10[%c0_87, %c0_88] : memref<128x128xbf16, #tpu.memory_space<vmem>>, vector<128x128xbf16>
    %cst_89 = arith.constant dense<0.000000e+00> : vector<40x128xf32>
    %226 = tpu.matmul %219, %225, %cst_89 {dimension_numbers = #tpu.dot_dimension_numbers<[1], [0], [0], [1], [0, 0, 1, 1], [], []>} : vector<40x128xbf16>, vector<128x128xbf16>, vector<40x128xf32> -> vector<40x128xf32>
    %c9 = arith.constant 9 : index
    %c0_90 = arith.constant 0 : index
    %227 = vector.load %arg15[%c9, %c0_90] : memref<19x128xf32, #tpu.memory_space<vmem>>, vector<1x128xf32>
    %228 = vector.broadcast %227 : vector<1x128xf32> to vector<40x128xf32>
    %229 = arith.addf %226, %228 : vector<40x128xf32>
    %230 = arith.negf %229 : vector<40x128xf32>
    %231 = math.exp %230 : vector<40x128xf32>
    %cst_91 = arith.constant 1.000000e+00 : f32
    %232 = vector.broadcast %cst_91 : f32 to vector<40x128xf32>
    %233 = arith.addf %232, %231 : vector<40x128xf32>
    %234 = arith.divf %232, %233 : vector<40x128xf32>
    %235 = arith.mulf %224, %234 : vector<40x128xf32>
    %c22_i32 = arith.constant 22 : i32
    %236 = vector.broadcast %c22_i32 : i32 to vector<40x1xi32>
    %237 = arith.cmpi slt, %5, %236 : vector<40x1xi32>
    %cst_92 = arith.constant 0.000000e+00 : f32
    %238 = vector.shape_cast %237 : vector<40x1xi1> to vector<40x1xi1>
    %239 = vector.broadcast %238 : vector<40x1xi1> to vector<40x128xi1>
    %240 = vector.broadcast %cst_92 : f32 to vector<40x128xf32>
    %241 = arith.select %239, %235, %240 : vector<40x128xi1>, vector<40x128xf32>
    %c15 = arith.constant 15 : index
    %c0_93 = arith.constant 0 : index
    %242 = vector.load %arg11[%c15, %c0_93] : memref<31x128xf32, #tpu.memory_space<vmem>>, vector<1x128xf32>
    %243 = vector.broadcast %242 : vector<1x128xf32> to vector<40x128xf32>
    %244 = arith.mulf %241, %243 : vector<40x128xf32>
    %c15_i32 = arith.constant 15 : i32
    %245 = tpu.dynamic_rotate %241 by %c15_i32 dim 0 : vector<40x128xf32>, i32 -> vector<40x128xf32>
    %c0_94 = arith.constant 0 : index
    %c0_95 = arith.constant 0 : index
    %246 = vector.load %arg11[%c0_94, %c0_95] : memref<31x128xf32, #tpu.memory_space<vmem>>, vector<1x128xf32>
    %247 = vector.broadcast %246 : vector<1x128xf32> to vector<40x128xf32>
    %248 = arith.mulf %245, %247 : vector<40x128xf32>
    %249 = arith.addf %244, %248 : vector<40x128xf32>
    %c14_i32 = arith.constant 14 : i32
    %250 = tpu.dynamic_rotate %241 by %c14_i32 dim 0 : vector<40x128xf32>, i32 -> vector<40x128xf32>
    %c1_96 = arith.constant 1 : index
    %c0_97 = arith.constant 0 : index
    %251 = vector.load %arg11[%c1_96, %c0_97] : memref<31x128xf32, #tpu.memory_space<vmem>>, vector<1x128xf32>
    %252 = vector.broadcast %251 : vector<1x128xf32> to vector<40x128xf32>
    %253 = arith.mulf %250, %252 : vector<40x128xf32>
    %254 = arith.addf %249, %253 : vector<40x128xf32>
    %c13_i32 = arith.constant 13 : i32
    %255 = tpu.dynamic_rotate %241 by %c13_i32 dim 0 : vector<40x128xf32>, i32 -> vector<40x128xf32>
    %c2_98 = arith.constant 2 : index
    %c0_99 = arith.constant 0 : index
    %256 = vector.load %arg11[%c2_98, %c0_99] : memref<31x128xf32, #tpu.memory_space<vmem>>, vector<1x128xf32>
    %257 = vector.broadcast %256 : vector<1x128xf32> to vector<40x128xf32>
    %258 = arith.mulf %255, %257 : vector<40x128xf32>
    %259 = arith.addf %254, %258 : vector<40x128xf32>
    %c12_i32 = arith.constant 12 : i32
    %260 = tpu.dynamic_rotate %241 by %c12_i32 dim 0 : vector<40x128xf32>, i32 -> vector<40x128xf32>
    %c3_100 = arith.constant 3 : index
    %c0_101 = arith.constant 0 : index
    %261 = vector.load %arg11[%c3_100, %c0_101] : memref<31x128xf32, #tpu.memory_space<vmem>>, vector<1x128xf32>
    %262 = vector.broadcast %261 : vector<1x128xf32> to vector<40x128xf32>
    %263 = arith.mulf %260, %262 : vector<40x128xf32>
    %264 = arith.addf %259, %263 : vector<40x128xf32>
    %c11_i32 = arith.constant 11 : i32
    %265 = tpu.dynamic_rotate %241 by %c11_i32 dim 0 : vector<40x128xf32>, i32 -> vector<40x128xf32>
    %c4_102 = arith.constant 4 : index
    %c0_103 = arith.constant 0 : index
    %266 = vector.load %arg11[%c4_102, %c0_103] : memref<31x128xf32, #tpu.memory_space<vmem>>, vector<1x128xf32>
    %267 = vector.broadcast %266 : vector<1x128xf32> to vector<40x128xf32>
    %268 = arith.mulf %265, %267 : vector<40x128xf32>
    %269 = arith.addf %264, %268 : vector<40x128xf32>
    %c10_i32 = arith.constant 10 : i32
    %270 = tpu.dynamic_rotate %241 by %c10_i32 dim 0 : vector<40x128xf32>, i32 -> vector<40x128xf32>
    %c5_104 = arith.constant 5 : index
    %c0_105 = arith.constant 0 : index
    %271 = vector.load %arg11[%c5_104, %c0_105] : memref<31x128xf32, #tpu.memory_space<vmem>>, vector<1x128xf32>
    %272 = vector.broadcast %271 : vector<1x128xf32> to vector<40x128xf32>
    %273 = arith.mulf %270, %272 : vector<40x128xf32>
    %274 = arith.addf %269, %273 : vector<40x128xf32>
    %c9_i32 = arith.constant 9 : i32
    %275 = tpu.dynamic_rotate %241 by %c9_i32 dim 0 : vector<40x128xf32>, i32 -> vector<40x128xf32>
    %c6_106 = arith.constant 6 : index
    %c0_107 = arith.constant 0 : index
    %276 = vector.load %arg11[%c6_106, %c0_107] : memref<31x128xf32, #tpu.memory_space<vmem>>, vector<1x128xf32>
    %277 = vector.broadcast %276 : vector<1x128xf32> to vector<40x128xf32>
    %278 = arith.mulf %275, %277 : vector<40x128xf32>
    %279 = arith.addf %274, %278 : vector<40x128xf32>
    %c8_i32 = arith.constant 8 : i32
    %280 = tpu.dynamic_rotate %241 by %c8_i32 dim 0 : vector<40x128xf32>, i32 -> vector<40x128xf32>
    %c7_108 = arith.constant 7 : index
    %c0_109 = arith.constant 0 : index
    %281 = vector.load %arg11[%c7_108, %c0_109] : memref<31x128xf32, #tpu.memory_space<vmem>>, vector<1x128xf32>
    %282 = vector.broadcast %281 : vector<1x128xf32> to vector<40x128xf32>
    %283 = arith.mulf %280, %282 : vector<40x128xf32>
    %284 = arith.addf %279, %283 : vector<40x128xf32>
    %c7_i32 = arith.constant 7 : i32
    %285 = tpu.dynamic_rotate %241 by %c7_i32 dim 0 : vector<40x128xf32>, i32 -> vector<40x128xf32>
    %c8_110 = arith.constant 8 : index
    %c0_111 = arith.constant 0 : index
    %286 = vector.load %arg11[%c8_110, %c0_111] : memref<31x128xf32, #tpu.memory_space<vmem>>, vector<1x128xf32>
    %287 = vector.broadcast %286 : vector<1x128xf32> to vector<40x128xf32>
    %288 = arith.mulf %285, %287 : vector<40x128xf32>
    %289 = arith.addf %284, %288 : vector<40x128xf32>
    %c6_i32 = arith.constant 6 : i32
    %290 = tpu.dynamic_rotate %241 by %c6_i32 dim 0 : vector<40x128xf32>, i32 -> vector<40x128xf32>
    %c9_112 = arith.constant 9 : index
    %c0_113 = arith.constant 0 : index
    %291 = vector.load %arg11[%c9_112, %c0_113] : memref<31x128xf32, #tpu.memory_space<vmem>>, vector<1x128xf32>
    %292 = vector.broadcast %291 : vector<1x128xf32> to vector<40x128xf32>
    %293 = arith.mulf %290, %292 : vector<40x128xf32>
    %294 = arith.addf %289, %293 : vector<40x128xf32>
    %c5_i32 = arith.constant 5 : i32
    %295 = tpu.dynamic_rotate %241 by %c5_i32 dim 0 : vector<40x128xf32>, i32 -> vector<40x128xf32>
    %c10 = arith.constant 10 : index
    %c0_114 = arith.constant 0 : index
    %296 = vector.load %arg11[%c10, %c0_114] : memref<31x128xf32, #tpu.memory_space<vmem>>, vector<1x128xf32>
    %297 = vector.broadcast %296 : vector<1x128xf32> to vector<40x128xf32>
    %298 = arith.mulf %295, %297 : vector<40x128xf32>
    %299 = arith.addf %294, %298 : vector<40x128xf32>
    %c4_i32 = arith.constant 4 : i32
    %300 = tpu.dynamic_rotate %241 by %c4_i32 dim 0 : vector<40x128xf32>, i32 -> vector<40x128xf32>
    %c11 = arith.constant 11 : index
    %c0_115 = arith.constant 0 : index
    %301 = vector.load %arg11[%c11, %c0_115] : memref<31x128xf32, #tpu.memory_space<vmem>>, vector<1x128xf32>
    %302 = vector.broadcast %301 : vector<1x128xf32> to vector<40x128xf32>
    %303 = arith.mulf %300, %302 : vector<40x128xf32>
    %304 = arith.addf %299, %303 : vector<40x128xf32>
    %c3_i32 = arith.constant 3 : i32
    %305 = tpu.dynamic_rotate %241 by %c3_i32 dim 0 : vector<40x128xf32>, i32 -> vector<40x128xf32>
    %c12 = arith.constant 12 : index
    %c0_116 = arith.constant 0 : index
    %306 = vector.load %arg11[%c12, %c0_116] : memref<31x128xf32, #tpu.memory_space<vmem>>, vector<1x128xf32>
    %307 = vector.broadcast %306 : vector<1x128xf32> to vector<40x128xf32>
    %308 = arith.mulf %305, %307 : vector<40x128xf32>
    %309 = arith.addf %304, %308 : vector<40x128xf32>
    %c2_i32 = arith.constant 2 : i32
    %310 = tpu.dynamic_rotate %241 by %c2_i32 dim 0 : vector<40x128xf32>, i32 -> vector<40x128xf32>
    %c13 = arith.constant 13 : index
    %c0_117 = arith.constant 0 : index
    %311 = vector.load %arg11[%c13, %c0_117] : memref<31x128xf32, #tpu.memory_space<vmem>>, vector<1x128xf32>
    %312 = vector.broadcast %311 : vector<1x128xf32> to vector<40x128xf32>
    %313 = arith.mulf %310, %312 : vector<40x128xf32>
    %314 = arith.addf %309, %313 : vector<40x128xf32>
    %c1_i32 = arith.constant 1 : i32
    %315 = tpu.dynamic_rotate %241 by %c1_i32 dim 0 : vector<40x128xf32>, i32 -> vector<40x128xf32>
    %c14 = arith.constant 14 : index
    %c0_118 = arith.constant 0 : index
    %316 = vector.load %arg11[%c14, %c0_118] : memref<31x128xf32, #tpu.memory_space<vmem>>, vector<1x128xf32>
    %317 = vector.broadcast %316 : vector<1x128xf32> to vector<40x128xf32>
    %318 = arith.mulf %315, %317 : vector<40x128xf32>
    %319 = arith.addf %314, %318 : vector<40x128xf32>
    %c39_i32 = arith.constant 39 : i32
    %320 = tpu.dynamic_rotate %241 by %c39_i32 dim 0 : vector<40x128xf32>, i32 -> vector<40x128xf32>
    %c16 = arith.constant 16 : index
    %c0_119 = arith.constant 0 : index
    %321 = vector.load %arg11[%c16, %c0_119] : memref<31x128xf32, #tpu.memory_space<vmem>>, vector<1x128xf32>
    %322 = vector.broadcast %321 : vector<1x128xf32> to vector<40x128xf32>
    %323 = arith.mulf %320, %322 : vector<40x128xf32>
    %324 = arith.addf %319, %323 : vector<40x128xf32>
    %c38_i32 = arith.constant 38 : i32
    %325 = tpu.dynamic_rotate %241 by %c38_i32 dim 0 : vector<40x128xf32>, i32 -> vector<40x128xf32>
    %c17 = arith.constant 17 : index
    %c0_120 = arith.constant 0 : index
    %326 = vector.load %arg11[%c17, %c0_120] : memref<31x128xf32, #tpu.memory_space<vmem>>, vector<1x128xf32>
    %327 = vector.broadcast %326 : vector<1x128xf32> to vector<40x128xf32>
    %328 = arith.mulf %325, %327 : vector<40x128xf32>
    %329 = arith.addf %324, %328 : vector<40x128xf32>
    %c37_i32 = arith.constant 37 : i32
    %330 = tpu.dynamic_rotate %241 by %c37_i32 dim 0 : vector<40x128xf32>, i32 -> vector<40x128xf32>
    %c18 = arith.constant 18 : index
    %c0_121 = arith.constant 0 : index
    %331 = vector.load %arg11[%c18, %c0_121] : memref<31x128xf32, #tpu.memory_space<vmem>>, vector<1x128xf32>
    %332 = vector.broadcast %331 : vector<1x128xf32> to vector<40x128xf32>
    %333 = arith.mulf %330, %332 : vector<40x128xf32>
    %334 = arith.addf %329, %333 : vector<40x128xf32>
    %c36_i32 = arith.constant 36 : i32
    %335 = tpu.dynamic_rotate %241 by %c36_i32 dim 0 : vector<40x128xf32>, i32 -> vector<40x128xf32>
    %c19 = arith.constant 19 : index
    %c0_122 = arith.constant 0 : index
    %336 = vector.load %arg11[%c19, %c0_122] : memref<31x128xf32, #tpu.memory_space<vmem>>, vector<1x128xf32>
    %337 = vector.broadcast %336 : vector<1x128xf32> to vector<40x128xf32>
    %338 = arith.mulf %335, %337 : vector<40x128xf32>
    %339 = arith.addf %334, %338 : vector<40x128xf32>
    %c35_i32 = arith.constant 35 : i32
    %340 = tpu.dynamic_rotate %241 by %c35_i32 dim 0 : vector<40x128xf32>, i32 -> vector<40x128xf32>
    %c20 = arith.constant 20 : index
    %c0_123 = arith.constant 0 : index
    %341 = vector.load %arg11[%c20, %c0_123] : memref<31x128xf32, #tpu.memory_space<vmem>>, vector<1x128xf32>
    %342 = vector.broadcast %341 : vector<1x128xf32> to vector<40x128xf32>
    %343 = arith.mulf %340, %342 : vector<40x128xf32>
    %344 = arith.addf %339, %343 : vector<40x128xf32>
    %c34_i32 = arith.constant 34 : i32
    %345 = tpu.dynamic_rotate %241 by %c34_i32 dim 0 : vector<40x128xf32>, i32 -> vector<40x128xf32>
    %c21 = arith.constant 21 : index
    %c0_124 = arith.constant 0 : index
    %346 = vector.load %arg11[%c21, %c0_124] : memref<31x128xf32, #tpu.memory_space<vmem>>, vector<1x128xf32>
    %347 = vector.broadcast %346 : vector<1x128xf32> to vector<40x128xf32>
    %348 = arith.mulf %345, %347 : vector<40x128xf32>
    %349 = arith.addf %344, %348 : vector<40x128xf32>
    %c33_i32 = arith.constant 33 : i32
    %350 = tpu.dynamic_rotate %241 by %c33_i32 dim 0 : vector<40x128xf32>, i32 -> vector<40x128xf32>
    %c22 = arith.constant 22 : index
    %c0_125 = arith.constant 0 : index
    %351 = vector.load %arg11[%c22, %c0_125] : memref<31x128xf32, #tpu.memory_space<vmem>>, vector<1x128xf32>
    %352 = vector.broadcast %351 : vector<1x128xf32> to vector<40x128xf32>
    %353 = arith.mulf %350, %352 : vector<40x128xf32>
    %354 = arith.addf %349, %353 : vector<40x128xf32>
    %c32_i32_126 = arith.constant 32 : i32
    %355 = tpu.dynamic_rotate %241 by %c32_i32_126 dim 0 : vector<40x128xf32>, i32 -> vector<40x128xf32>
    %c23 = arith.constant 23 : index
    %c0_127 = arith.constant 0 : index
    %356 = vector.load %arg11[%c23, %c0_127] : memref<31x128xf32, #tpu.memory_space<vmem>>, vector<1x128xf32>
    %357 = vector.broadcast %356 : vector<1x128xf32> to vector<40x128xf32>
    %358 = arith.mulf %355, %357 : vector<40x128xf32>
    %359 = arith.addf %354, %358 : vector<40x128xf32>
    %c31_i32 = arith.constant 31 : i32
    %360 = tpu.dynamic_rotate %241 by %c31_i32 dim 0 : vector<40x128xf32>, i32 -> vector<40x128xf32>
    %c24 = arith.constant 24 : index
    %c0_128 = arith.constant 0 : index
    %361 = vector.load %arg11[%c24, %c0_128] : memref<31x128xf32, #tpu.memory_space<vmem>>, vector<1x128xf32>
    %362 = vector.broadcast %361 : vector<1x128xf32> to vector<40x128xf32>
    %363 = arith.mulf %360, %362 : vector<40x128xf32>
    %364 = arith.addf %359, %363 : vector<40x128xf32>
    %c30_i32 = arith.constant 30 : i32
    %365 = tpu.dynamic_rotate %241 by %c30_i32 dim 0 : vector<40x128xf32>, i32 -> vector<40x128xf32>
    %c25 = arith.constant 25 : index
    %c0_129 = arith.constant 0 : index
    %366 = vector.load %arg11[%c25, %c0_129] : memref<31x128xf32, #tpu.memory_space<vmem>>, vector<1x128xf32>
    %367 = vector.broadcast %366 : vector<1x128xf32> to vector<40x128xf32>
    %368 = arith.mulf %365, %367 : vector<40x128xf32>
    %369 = arith.addf %364, %368 : vector<40x128xf32>
    %c29_i32 = arith.constant 29 : i32
    %370 = tpu.dynamic_rotate %241 by %c29_i32 dim 0 : vector<40x128xf32>, i32 -> vector<40x128xf32>
    %c26 = arith.constant 26 : index
    %c0_130 = arith.constant 0 : index
    %371 = vector.load %arg11[%c26, %c0_130] : memref<31x128xf32, #tpu.memory_space<vmem>>, vector<1x128xf32>
    %372 = vector.broadcast %371 : vector<1x128xf32> to vector<40x128xf32>
    %373 = arith.mulf %370, %372 : vector<40x128xf32>
    %374 = arith.addf %369, %373 : vector<40x128xf32>
    %c28_i32 = arith.constant 28 : i32
    %375 = tpu.dynamic_rotate %241 by %c28_i32 dim 0 : vector<40x128xf32>, i32 -> vector<40x128xf32>
    %c27 = arith.constant 27 : index
    %c0_131 = arith.constant 0 : index
    %376 = vector.load %arg11[%c27, %c0_131] : memref<31x128xf32, #tpu.memory_space<vmem>>, vector<1x128xf32>
    %377 = vector.broadcast %376 : vector<1x128xf32> to vector<40x128xf32>
    %378 = arith.mulf %375, %377 : vector<40x128xf32>
    %379 = arith.addf %374, %378 : vector<40x128xf32>
    %c27_i32 = arith.constant 27 : i32
    %380 = tpu.dynamic_rotate %241 by %c27_i32 dim 0 : vector<40x128xf32>, i32 -> vector<40x128xf32>
    %c28 = arith.constant 28 : index
    %c0_132 = arith.constant 0 : index
    %381 = vector.load %arg11[%c28, %c0_132] : memref<31x128xf32, #tpu.memory_space<vmem>>, vector<1x128xf32>
    %382 = vector.broadcast %381 : vector<1x128xf32> to vector<40x128xf32>
    %383 = arith.mulf %380, %382 : vector<40x128xf32>
    %384 = arith.addf %379, %383 : vector<40x128xf32>
    %c26_i32 = arith.constant 26 : i32
    %385 = tpu.dynamic_rotate %241 by %c26_i32 dim 0 : vector<40x128xf32>, i32 -> vector<40x128xf32>
    %c29 = arith.constant 29 : index
    %c0_133 = arith.constant 0 : index
    %386 = vector.load %arg11[%c29, %c0_133] : memref<31x128xf32, #tpu.memory_space<vmem>>, vector<1x128xf32>
    %387 = vector.broadcast %386 : vector<1x128xf32> to vector<40x128xf32>
    %388 = arith.mulf %385, %387 : vector<40x128xf32>
    %389 = arith.addf %384, %388 : vector<40x128xf32>
    %c25_i32 = arith.constant 25 : i32
    %390 = tpu.dynamic_rotate %241 by %c25_i32 dim 0 : vector<40x128xf32>, i32 -> vector<40x128xf32>
    %c30 = arith.constant 30 : index
    %c0_134 = arith.constant 0 : index
    %391 = vector.load %arg11[%c30, %c0_134] : memref<31x128xf32, #tpu.memory_space<vmem>>, vector<1x128xf32>
    %392 = vector.broadcast %391 : vector<1x128xf32> to vector<40x128xf32>
    %393 = arith.mulf %390, %392 : vector<40x128xf32>
    %394 = arith.addf %389, %393 : vector<40x128xf32>
    %c10_135 = arith.constant 10 : index
    %c0_136 = arith.constant 0 : index
    %395 = vector.load %arg15[%c10_135, %c0_136] : memref<19x128xf32, #tpu.memory_space<vmem>>, vector<1x128xf32>
    %396 = vector.broadcast %395 : vector<1x128xf32> to vector<40x128xf32>
    %397 = arith.addf %394, %396 : vector<40x128xf32>
    %c22_i32_137 = arith.constant 22 : i32
    %398 = vector.broadcast %c22_i32_137 : i32 to vector<40x1xi32>
    %399 = arith.cmpi slt, %5, %398 : vector<40x1xi32>
    %cst_138 = arith.constant 0.000000e+00 : f32
    %400 = vector.shape_cast %399 : vector<40x1xi1> to vector<40x1xi1>
    %401 = vector.broadcast %400 : vector<40x1xi1> to vector<40x128xi1>
    %402 = vector.broadcast %cst_138 : f32 to vector<40x128xf32>
    %403 = arith.select %401, %397, %402 : vector<40x128xi1>, vector<40x128xf32>
    %cst_139 = arith.constant dense<0.000000e+00> : vector<40xf32>
    %404 = vector.multi_reduction <add>, %403, %cst_139 [1] : vector<40x128xf32> to vector<40xf32>
    %405 = vector.shape_cast %404 : vector<40xf32> to vector<40x1xf32>
    %cst_140 = arith.constant dense<0.000000e+00> : vector<1xf32>
    %406 = vector.multi_reduction <add>, %405, %cst_140 [0] : vector<40x1xf32> to vector<1xf32>
    %407 = vector.shape_cast %406 : vector<1xf32> to vector<1x1xf32>
    %cst_141 = arith.constant 0.00142045459 : f32
    %408 = vector.broadcast %cst_141 : f32 to vector<1x1xf32>
    %409 = arith.mulf %407, %408 : vector<1x1xf32>
    %410 = arith.mulf %403, %403 : vector<40x128xf32>
    %cst_142 = arith.constant dense<0.000000e+00> : vector<40xf32>
    %411 = vector.multi_reduction <add>, %410, %cst_142 [1] : vector<40x128xf32> to vector<40xf32>
    %412 = vector.shape_cast %411 : vector<40xf32> to vector<40x1xf32>
    %cst_143 = arith.constant dense<0.000000e+00> : vector<1xf32>
    %413 = vector.multi_reduction <add>, %412, %cst_143 [0] : vector<40x1xf32> to vector<1xf32>
    %414 = vector.shape_cast %413 : vector<1xf32> to vector<1x1xf32>
    %cst_144 = arith.constant 0.00142045459 : f32
    %415 = vector.broadcast %cst_144 : f32 to vector<1x1xf32>
    %416 = arith.mulf %414, %415 : vector<1x1xf32>
    %417 = arith.mulf %409, %409 : vector<1x1xf32>
    %418 = arith.subf %416, %417 : vector<1x1xf32>
    %cst_145 = arith.constant 0.000000e+00 : f32
    %419 = vector.broadcast %cst_145 : f32 to vector<1x1xf32>
    %420 = arith.maximumf %418, %419 : vector<1x1xf32>
    %421 = vector.broadcast %409 : vector<1x1xf32> to vector<40x128xf32>
    %422 = arith.subf %397, %421 : vector<40x128xf32>
    %cst_146 = arith.constant 9.99999974E-6 : f32
    %423 = vector.broadcast %cst_146 : f32 to vector<1x1xf32>
    %424 = arith.addf %420, %423 : vector<1x1xf32>
    %425 = math.rsqrt %424 : vector<1x1xf32>
    %426 = vector.broadcast %425 : vector<1x1xf32> to vector<40x128xf32>
    %427 = arith.mulf %422, %426 : vector<40x128xf32>
    %c11_147 = arith.constant 11 : index
    %c0_148 = arith.constant 0 : index
    %428 = vector.load %arg15[%c11_147, %c0_148] : memref<19x128xf32, #tpu.memory_space<vmem>>, vector<1x128xf32>
    %429 = vector.broadcast %428 : vector<1x128xf32> to vector<40x128xf32>
    %430 = arith.mulf %427, %429 : vector<40x128xf32>
    %c12_149 = arith.constant 12 : index
    %c0_150 = arith.constant 0 : index
    %431 = vector.load %arg15[%c12_149, %c0_150] : memref<19x128xf32, #tpu.memory_space<vmem>>, vector<1x128xf32>
    %432 = vector.broadcast %431 : vector<1x128xf32> to vector<40x128xf32>
    %433 = arith.addf %430, %432 : vector<40x128xf32>
    %434 = arith.negf %433 : vector<40x128xf32>
    %435 = math.exp %434 : vector<40x128xf32>
    %cst_151 = arith.constant 1.000000e+00 : f32
    %436 = vector.broadcast %cst_151 : f32 to vector<40x128xf32>
    %437 = arith.addf %436, %435 : vector<40x128xf32>
    %438 = arith.divf %436, %437 : vector<40x128xf32>
    %439 = arith.mulf %433, %438 : vector<40x128xf32>
    %440 = arith.truncf %439 : vector<40x128xf32> to vector<40x128xbf16>
    %c0_152 = arith.constant 0 : index
    %c0_153 = arith.constant 0 : index
    %441 = vector.load %arg12[%c0_152, %c0_153] : memref<128x128xbf16, #tpu.memory_space<vmem>>, vector<128x128xbf16>
    %cst_154 = arith.constant dense<0.000000e+00> : vector<40x128xf32>
    %442 = tpu.matmul %440, %441, %cst_154 {dimension_numbers = #tpu.dot_dimension_numbers<[1], [0], [0], [1], [0, 0, 1, 1], [], []>} : vector<40x128xbf16>, vector<128x128xbf16>, vector<40x128xf32> -> vector<40x128xf32>
    %c13_155 = arith.constant 13 : index
    %c0_156 = arith.constant 0 : index
    %443 = vector.load %arg15[%c13_155, %c0_156] : memref<19x128xf32, #tpu.memory_space<vmem>>, vector<1x128xf32>
    %444 = vector.broadcast %443 : vector<1x128xf32> to vector<40x128xf32>
    %445 = arith.addf %442, %444 : vector<40x128xf32>
    %446 = arith.addf %194, %445 : vector<40x128xf32>
    %c14_157 = arith.constant 14 : index
    %c0_158 = arith.constant 0 : index
    %447 = vector.load %arg15[%c14_157, %c0_158] : memref<19x128xf32, #tpu.memory_space<vmem>>, vector<1x128xf32>
    %c15_159 = arith.constant 15 : index
    %c0_160 = arith.constant 0 : index
    %448 = vector.load %arg15[%c15_159, %c0_160] : memref<19x128xf32, #tpu.memory_space<vmem>>, vector<1x128xf32>
    %c1_161 = arith.constant 1 : index
    %c0_162 = arith.constant 0 : index
    %449 = vector.load %arg16[%c1_161, %c0_162] : memref<2x128xf32, #tpu.memory_space<vmem>>, vector<1x128xf32>
    %c16_163 = arith.constant 16 : index
    %c0_164 = arith.constant 0 : index
    %450 = vector.load %arg15[%c16_163, %c0_164] : memref<19x128xf32, #tpu.memory_space<vmem>>, vector<1x128xf32>
    %cst_165 = arith.constant dense<0.000000e+00> : vector<40xf32>
    %451 = vector.multi_reduction <add>, %446, %cst_165 [1] : vector<40x128xf32> to vector<40xf32>
    %452 = vector.shape_cast %451 : vector<40xf32> to vector<40x1xf32>
    %cst_166 = arith.constant 3.125000e-02 : f32
    %453 = vector.broadcast %cst_166 : f32 to vector<40x1xf32>
    %454 = arith.mulf %452, %453 : vector<40x1xf32>
    %455 = vector.broadcast %454 : vector<40x1xf32> to vector<40x128xf32>
    %456 = arith.subf %446, %455 : vector<40x128xf32>
    %457 = vector.broadcast %4 : vector<1x128xf32> to vector<40x128xf32>
    %458 = arith.mulf %456, %457 : vector<40x128xf32>
    %459 = arith.mulf %458, %458 : vector<40x128xf32>
    %cst_167 = arith.constant dense<0.000000e+00> : vector<40xf32>
    %460 = vector.multi_reduction <add>, %459, %cst_167 [1] : vector<40x128xf32> to vector<40xf32>
    %461 = vector.shape_cast %460 : vector<40xf32> to vector<40x1xf32>
    %cst_168 = arith.constant 3.125000e-02 : f32
    %462 = vector.broadcast %cst_168 : f32 to vector<40x1xf32>
    %463 = arith.mulf %461, %462 : vector<40x1xf32>
    %cst_169 = arith.constant 9.99999974E-6 : f32
    %464 = vector.broadcast %cst_169 : f32 to vector<40x1xf32>
    %465 = arith.addf %463, %464 : vector<40x1xf32>
    %466 = math.rsqrt %465 : vector<40x1xf32>
    %467 = vector.broadcast %466 : vector<40x1xf32> to vector<40x128xf32>
    %468 = arith.mulf %458, %467 : vector<40x128xf32>
    %469 = vector.broadcast %447 : vector<1x128xf32> to vector<40x128xf32>
    %470 = arith.mulf %468, %469 : vector<40x128xf32>
    %471 = vector.broadcast %448 : vector<1x128xf32> to vector<40x128xf32>
    %472 = arith.addf %470, %471 : vector<40x128xf32>
    %473 = arith.truncf %472 : vector<40x128xf32> to vector<40x128xbf16>
    %c0_170 = arith.constant 0 : index
    %c0_171 = arith.constant 0 : index
    %474 = vector.load %arg13[%c0_170, %c0_171] : memref<128x128xbf16, #tpu.memory_space<vmem>>, vector<128x128xbf16>
    %cst_172 = arith.constant dense<0.000000e+00> : vector<40x128xf32>
    %475 = tpu.matmul %473, %474, %cst_172 {dimension_numbers = #tpu.dot_dimension_numbers<[1], [0], [0], [1], [0, 0, 1, 1], [], []>} : vector<40x128xbf16>, vector<128x128xbf16>, vector<40x128xf32> -> vector<40x128xf32>
    %476 = vector.broadcast %449 : vector<1x128xf32> to vector<40x128xf32>
    %477 = arith.addf %475, %476 : vector<40x128xf32>
    %478 = arith.negf %477 : vector<40x128xf32>
    %479 = math.exp %478 : vector<40x128xf32>
    %cst_173 = arith.constant 1.000000e+00 : f32
    %480 = vector.broadcast %cst_173 : f32 to vector<40x128xf32>
    %481 = arith.addf %480, %479 : vector<40x128xf32>
    %482 = arith.divf %480, %481 : vector<40x128xf32>
    %483 = arith.mulf %477, %482 : vector<40x128xf32>
    %484 = arith.truncf %483 : vector<40x128xf32> to vector<40x128xbf16>
    %c0_174 = arith.constant 0 : index
    %c0_175 = arith.constant 0 : index
    %485 = vector.load %arg14[%c0_174, %c0_175] : memref<128x128xbf16, #tpu.memory_space<vmem>>, vector<128x128xbf16>
    %cst_176 = arith.constant dense<0.000000e+00> : vector<40x128xf32>
    %486 = tpu.matmul %484, %485, %cst_176 {dimension_numbers = #tpu.dot_dimension_numbers<[1], [0], [0], [1], [0, 0, 1, 1], [], []>} : vector<40x128xbf16>, vector<128x128xbf16>, vector<40x128xf32> -> vector<40x128xf32>
    %487 = vector.broadcast %450 : vector<1x128xf32> to vector<40x128xf32>
    %488 = arith.addf %486, %487 : vector<40x128xf32>
    %cst_177 = arith.constant 5.000000e-01 : f32
    %489 = vector.broadcast %cst_177 : f32 to vector<40x128xf32>
    %490 = arith.mulf %489, %488 : vector<40x128xf32>
    %491 = arith.addf %446, %490 : vector<40x128xf32>
    %c17_178 = arith.constant 17 : index
    %c0_179 = arith.constant 0 : index
    %492 = vector.load %arg15[%c17_178, %c0_179] : memref<19x128xf32, #tpu.memory_space<vmem>>, vector<1x128xf32>
    %c18_180 = arith.constant 18 : index
    %c0_181 = arith.constant 0 : index
    %493 = vector.load %arg15[%c18_180, %c0_181] : memref<19x128xf32, #tpu.memory_space<vmem>>, vector<1x128xf32>
    %cst_182 = arith.constant dense<0.000000e+00> : vector<40xf32>
    %494 = vector.multi_reduction <add>, %491, %cst_182 [1] : vector<40x128xf32> to vector<40xf32>
    %495 = vector.shape_cast %494 : vector<40xf32> to vector<40x1xf32>
    %cst_183 = arith.constant 3.125000e-02 : f32
    %496 = vector.broadcast %cst_183 : f32 to vector<40x1xf32>
    %497 = arith.mulf %495, %496 : vector<40x1xf32>
    %498 = vector.broadcast %497 : vector<40x1xf32> to vector<40x128xf32>
    %499 = arith.subf %491, %498 : vector<40x128xf32>
    %500 = vector.broadcast %4 : vector<1x128xf32> to vector<40x128xf32>
    %501 = arith.mulf %499, %500 : vector<40x128xf32>
    %502 = arith.mulf %501, %501 : vector<40x128xf32>
    %cst_184 = arith.constant dense<0.000000e+00> : vector<40xf32>
    %503 = vector.multi_reduction <add>, %502, %cst_184 [1] : vector<40x128xf32> to vector<40xf32>
    %504 = vector.shape_cast %503 : vector<40xf32> to vector<40x1xf32>
    %cst_185 = arith.constant 3.125000e-02 : f32
    %505 = vector.broadcast %cst_185 : f32 to vector<40x1xf32>
    %506 = arith.mulf %504, %505 : vector<40x1xf32>
    %cst_186 = arith.constant 9.99999974E-6 : f32
    %507 = vector.broadcast %cst_186 : f32 to vector<40x1xf32>
    %508 = arith.addf %506, %507 : vector<40x1xf32>
    %509 = math.rsqrt %508 : vector<40x1xf32>
    %510 = vector.broadcast %509 : vector<40x1xf32> to vector<40x128xf32>
    %511 = arith.mulf %501, %510 : vector<40x128xf32>
    %512 = vector.broadcast %492 : vector<1x128xf32> to vector<40x128xf32>
    %513 = arith.mulf %511, %512 : vector<40x128xf32>
    %514 = vector.broadcast %493 : vector<1x128xf32> to vector<40x128xf32>
    %515 = arith.addf %513, %514 : vector<40x128xf32>
    %c0_187 = arith.constant 0 : index
    %c0_188 = arith.constant 0 : index
    %c0_189 = arith.constant 0 : index
    %516 = vector.load %arg18[%c0_187, %c0_188, %c0_189] : memref<1x40x128xf32, #tpu.memory_space<vmem>>, vector<1x40x128xf32>
    %517 = vector.shape_cast %516 : vector<1x40x128xf32> to vector<40x128xf32>
    %518 = vector.shape_cast %515 : vector<40x128xf32> to vector<1x40x128xf32>
    tpu.vector_store %arg18[%c0_187, %c0_188, %c0_189], %518 {strides = array<i32>} : memref<1x40x128xf32, #tpu.memory_space<vmem>>, vector<1x40x128xf32>,
    return
  }
  func.func @transform_0(%arg0: i32) -> (i32, i32, i32) {
    %c0_i32 = arith.constant 0 : i32
    %c0_i32_0 = arith.constant 0 : i32
    %c0_i32_1 = arith.constant 0 : i32
    return %arg0, %c0_i32, %c0_i32_0 : i32, i32, i32
  }
  func.func @transform_1(%arg0: i32) -> (i32, i32, i32) {
    %c0_i32 = arith.constant 0 : i32
    %c0_i32_0 = arith.constant 0 : i32
    %c0_i32_1 = arith.constant 0 : i32
    return %arg0, %c0_i32, %c0_i32_0 : i32, i32, i32
  }
  func.func @transform_2(%arg0: i32) -> (i32, i32) {
    %c0_i32 = arith.constant 0 : i32
    %c0_i32_0 = arith.constant 0 : i32
    %c0_i32_1 = arith.constant 0 : i32
    return %c0_i32, %c0_i32_0 : i32, i32
  }
  func.func @transform_3(%arg0: i32) -> (i32, i32) {
    %c0_i32 = arith.constant 0 : i32
    %c0_i32_0 = arith.constant 0 : i32
    %c0_i32_1 = arith.constant 0 : i32
    return %c0_i32, %c0_i32_0 : i32, i32
  }
  func.func @transform_4(%arg0: i32) -> (i32, i32) {
    %c0_i32 = arith.constant 0 : i32
    %c0_i32_0 = arith.constant 0 : i32
    %c0_i32_1 = arith.constant 0 : i32
    return %c0_i32, %c0_i32_0 : i32, i32
  }
  func.func @transform_5(%arg0: i32) -> (i32, i32) {
    %c0_i32 = arith.constant 0 : i32
    %c0_i32_0 = arith.constant 0 : i32
    %c0_i32_1 = arith.constant 0 : i32
    return %c0_i32, %c0_i32_0 : i32, i32
  }
  func.func @transform_6(%arg0: i32) -> (i32, i32) {
    %c0_i32 = arith.constant 0 : i32
    %c0_i32_0 = arith.constant 0 : i32
    %c0_i32_1 = arith.constant 0 : i32
    return %c0_i32, %c0_i32_0 : i32, i32
  }
  func.func @transform_7(%arg0: i32) -> (i32, i32) {
    %c0_i32 = arith.constant 0 : i32
    %c0_i32_0 = arith.constant 0 : i32
    %c0_i32_1 = arith.constant 0 : i32
    return %c0_i32, %c0_i32_0 : i32, i32
  }
  func.func @transform_8(%arg0: i32) -> (i32, i32) {
    %c0_i32 = arith.constant 0 : i32
    %c0_i32_0 = arith.constant 0 : i32
    %c0_i32_1 = arith.constant 0 : i32
    return %c0_i32, %c0_i32_0 : i32, i32
  }
  func.func @transform_9(%arg0: i32) -> (i32, i32) {
    %c0_i32 = arith.constant 0 : i32
    %c0_i32_0 = arith.constant 0 : i32
    %c0_i32_1 = arith.constant 0 : i32
    return %c0_i32, %c0_i32_0 : i32, i32
  }
  func.func @transform_10(%arg0: i32) -> (i32, i32) {
    %c0_i32 = arith.constant 0 : i32
    %c0_i32_0 = arith.constant 0 : i32
    %c0_i32_1 = arith.constant 0 : i32
    return %c0_i32, %c0_i32_0 : i32, i32
  }
  func.func @transform_11(%arg0: i32) -> (i32, i32) {
    %c0_i32 = arith.constant 0 : i32
    %c0_i32_0 = arith.constant 0 : i32
    %c0_i32_1 = arith.constant 0 : i32
    return %c0_i32, %c0_i32_0 : i32, i32
  }
  func.func @transform_12(%arg0: i32) -> (i32, i32) {
    %c0_i32 = arith.constant 0 : i32
    %c0_i32_0 = arith.constant 0 : i32
    %c0_i32_1 = arith.constant 0 : i32
    return %c0_i32, %c0_i32_0 : i32, i32
  }
  func.func @transform_13(%arg0: i32) -> (i32, i32) {
    %c0_i32 = arith.constant 0 : i32
    %c0_i32_0 = arith.constant 0 : i32
    %c0_i32_1 = arith.constant 0 : i32
    return %c0_i32, %c0_i32_0 : i32, i32
  }
  func.func @transform_14(%arg0: i32) -> (i32, i32) {
    %c0_i32 = arith.constant 0 : i32
    %c0_i32_0 = arith.constant 0 : i32
    %c0_i32_1 = arith.constant 0 : i32
    return %c0_i32, %c0_i32_0 : i32, i32
  }
  func.func @transform_15(%arg0: i32) -> (i32, i32) {
    %c0_i32 = arith.constant 0 : i32
    %c0_i32_0 = arith.constant 0 : i32
    %c0_i32_1 = arith.constant 0 : i32
    return %c0_i32, %c0_i32_0 : i32, i32
  }
  func.func @transform_16(%arg0: i32) -> (i32, i32) {
    %c0_i32 = arith.constant 0 : i32
    %c0_i32_0 = arith.constant 0 : i32
    %c0_i32_1 = arith.constant 0 : i32
    return %c0_i32, %c0_i32_0 : i32, i32
  }
  func.func @transform_17(%arg0: i32) -> (i32, i32, i32) {
    %c0_i32 = arith.constant 0 : i32
    %c0_i32_0 = arith.constant 0 : i32
    %c0_i32_1 = arith.constant 0 : i32
    return %arg0, %c0_i32, %c0_i32_0 : i32, i32, i32
  }
}

module attributes {stable_mosaic.version = 11 : i64} {
  func.func @kernel(%arg0: i32, %arg1: memref<1x40x128xf32, #tpu.memory_space<vmem>>, %arg2: memref<1x1x40xf32, #tpu.memory_space<vmem>>, %arg3: memref<128x128xbf16, #tpu.memory_space<vmem>>, %arg4: memref<128x128xbf16, #tpu.memory_space<vmem>>, %arg5: memref<128x512xbf16, #tpu.memory_space<vmem>>, %arg6: memref<128x512xbf16, #tpu.memory_space<vmem>>, %arg7: memref<128x512xbf16, #tpu.memory_space<vmem>>, %arg8: memref<512x128xbf16, #tpu.memory_space<vmem>>, %arg9: memref<128x128xbf16, #tpu.memory_space<vmem>>, %arg10: memref<128x128xbf16, #tpu.memory_space<vmem>>, %arg11: memref<15x128xf32, #tpu.memory_space<vmem>>, %arg12: memref<128x128xbf16, #tpu.memory_space<vmem>>, %arg13: memref<128x128xbf16, #tpu.memory_space<vmem>>, %arg14: memref<128x128xbf16, #tpu.memory_space<vmem>>, %arg15: memref<19x128xf32, #tpu.memory_space<vmem>>, %arg16: memref<2x128xf32, #tpu.memory_space<vmem>>, %arg17: memref<3x512xf32, #tpu.memory_space<vmem>>, %arg18: memref<1x40x128xf32, #tpu.memory_space<vmem>>) attributes {dimension_semantics = [#tpu.dimension_semantics<parallel>], iteration_bounds = array<i64: 2>, scalar_prefetch = 0 : i64, scratch_operands = 0 : i64, tpu.core_type = #tpu.core_type<tc>, window_params = [{transform_indices = @transform_0, window_bounds = array<i64: 1, 40, 128>}, {transform_indices = @transform_1, window_bounds = array<i64: 1, 1, 40>}, {pipeline_mode = #tpu.pipeline_mode<synchronous>, transform_indices = @transform_2, window_bounds = array<i64: 128, 128>}, {pipeline_mode = #tpu.pipeline_mode<synchronous>, transform_indices = @transform_3, window_bounds = array<i64: 128, 128>}, {pipeline_mode = #tpu.pipeline_mode<synchronous>, transform_indices = @transform_4, window_bounds = array<i64: 128, 512>}, {pipeline_mode = #tpu.pipeline_mode<synchronous>, transform_indices = @transform_5, window_bounds = array<i64: 128, 512>}, {pipeline_mode = #tpu.pipeline_mode<synchronous>, transform_indices = @transform_6, window_bounds = array<i64: 128, 512>}, {pipeline_mode = #tpu.pipeline_mode<synchronous>, transform_indices = @transform_7, window_bounds = array<i64: 512, 128>}, {pipeline_mode = #tpu.pipeline_mode<synchronous>, transform_indices = @transform_8, window_bounds = array<i64: 128, 128>}, {pipeline_mode = #tpu.pipeline_mode<synchronous>, transform_indices = @transform_9, window_bounds = array<i64: 128, 128>}, {pipeline_mode = #tpu.pipeline_mode<synchronous>, transform_indices = @transform_10, window_bounds = array<i64: 15, 128>}, {pipeline_mode = #tpu.pipeline_mode<synchronous>, transform_indices = @transform_11, window_bounds = array<i64: 128, 128>}, {pipeline_mode = #tpu.pipeline_mode<synchronous>, transform_indices = @transform_12, window_bounds = array<i64: 128, 128>}, {pipeline_mode = #tpu.pipeline_mode<synchronous>, transform_indices = @transform_13, window_bounds = array<i64: 128, 128>}, {pipeline_mode = #tpu.pipeline_mode<synchronous>, transform_indices = @transform_14, window_bounds = array<i64: 19, 128>}, {pipeline_mode = #tpu.pipeline_mode<synchronous>, transform_indices = @transform_15, window_bounds = array<i64: 2, 128>}, {pipeline_mode = #tpu.pipeline_mode<synchronous>, transform_indices = @transform_16, window_bounds = array<i64: 3, 512>}, {transform_indices = @transform_17, window_bounds = array<i64: 1, 40, 128>}]} {
    %0 = tpu.iota {dimensions = array<i32: 1>} : vector<1x128xi32>
    %c32_i32 = arith.constant 32 : i32
    %1 = vector.broadcast %c32_i32 : i32 to vector<1x128xi32>
    %2 = arith.cmpi slt, %0, %1 : vector<1x128xi32>
    %3 = arith.extui %2 : vector<1x128xi1> to vector<1x128xi32>
    %4 = arith.sitofp %3 : vector<1x128xi32> to vector<1x128xf32>
    %5 = tpu.iota {dimensions = array<i32: 0>} : vector<40x1xi32>
    %c0 = arith.constant 0 : index
    %c0_0 = arith.constant 0 : index
    %c0_1 = arith.constant 0 : index
    %6 = vector.load %arg1[%c0, %c0_0, %c0_1] : memref<1x40x128xf32, #tpu.memory_space<vmem>>, vector<1x40x128xf32>
    %7 = vector.shape_cast %6 : vector<1x40x128xf32> to vector<40x128xf32>
    %c0_2 = arith.constant 0 : index
    %c0_3 = arith.constant 0 : index
    %8 = vector.load %arg15[%c0_2, %c0_3] : memref<19x128xf32, #tpu.memory_space<vmem>>, vector<1x128xf32>
    %c1 = arith.constant 1 : index
    %c0_4 = arith.constant 0 : index
    %9 = vector.load %arg15[%c1, %c0_4] : memref<19x128xf32, #tpu.memory_space<vmem>>, vector<1x128xf32>
    %c0_5 = arith.constant 0 : index
    %c0_6 = arith.constant 0 : index
    %10 = vector.load %arg16[%c0_5, %c0_6] : memref<2x128xf32, #tpu.memory_space<vmem>>, vector<1x128xf32>
    %c2 = arith.constant 2 : index
    %c0_7 = arith.constant 0 : index
    %11 = vector.load %arg15[%c2, %c0_7] : memref<19x128xf32, #tpu.memory_space<vmem>>, vector<1x128xf32>
    %cst = arith.constant dense<0.000000e+00> : vector<40xf32>
    %12 = vector.multi_reduction <add>, %7, %cst [1] : vector<40x128xf32> to vector<40xf32>
    %13 = vector.shape_cast %12 : vector<40xf32> to vector<40x1xf32>
    %cst_8 = arith.constant 3.125000e-02 : f32
    %14 = vector.broadcast %cst_8 : f32 to vector<40x1xf32>
    %15 = arith.mulf %13, %14 : vector<40x1xf32>
    %16 = vector.broadcast %15 : vector<40x1xf32> to vector<40x128xf32>
    %17 = arith.subf %7, %16 : vector<40x128xf32>
    %18 = vector.broadcast %4 : vector<1x128xf32> to vector<40x128xf32>
    %19 = arith.mulf %17, %18 : vector<40x128xf32>
    %20 = arith.mulf %19, %19 : vector<40x128xf32>
    %cst_9 = arith.constant dense<0.000000e+00> : vector<40xf32>
    %21 = vector.multi_reduction <add>, %20, %cst_9 [1] : vector<40x128xf32> to vector<40xf32>
    %22 = vector.shape_cast %21 : vector<40xf32> to vector<40x1xf32>
    %cst_10 = arith.constant 3.125000e-02 : f32
    %23 = vector.broadcast %cst_10 : f32 to vector<40x1xf32>
    %24 = arith.mulf %22, %23 : vector<40x1xf32>
    %cst_11 = arith.constant 9.99999974E-6 : f32
    %25 = vector.broadcast %cst_11 : f32 to vector<40x1xf32>
    %26 = arith.addf %24, %25 : vector<40x1xf32>
    %27 = math.rsqrt %26 : vector<40x1xf32>
    %28 = vector.broadcast %27 : vector<40x1xf32> to vector<40x128xf32>
    %29 = arith.mulf %19, %28 : vector<40x128xf32>
    %30 = vector.broadcast %8 : vector<1x128xf32> to vector<40x128xf32>
    %31 = arith.mulf %29, %30 : vector<40x128xf32>
    %32 = vector.broadcast %9 : vector<1x128xf32> to vector<40x128xf32>
    %33 = arith.addf %31, %32 : vector<40x128xf32>
    %34 = arith.truncf %33 : vector<40x128xf32> to vector<40x128xbf16>
    %c0_12 = arith.constant 0 : index
    %c0_13 = arith.constant 0 : index
    %35 = vector.load %arg3[%c0_12, %c0_13] : memref<128x128xbf16, #tpu.memory_space<vmem>>, vector<128x128xbf16>
    %cst_14 = arith.constant dense<0.000000e+00> : vector<40x128xf32>
    %36 = tpu.matmul %34, %35, %cst_14 {dimension_numbers = #tpu.dot_dimension_numbers<[1], [0], [0], [1], [0, 0, 1, 1], [], []>} : vector<40x128xbf16>, vector<128x128xbf16>, vector<40x128xf32> -> vector<40x128xf32>
    %37 = vector.broadcast %10 : vector<1x128xf32> to vector<40x128xf32>
    %38 = arith.addf %36, %37 : vector<40x128xf32>
    %39 = arith.negf %38 : vector<40x128xf32>
    %40 = math.exp %39 : vector<40x128xf32>
    %cst_15 = arith.constant 1.000000e+00 : f32
    %41 = vector.broadcast %cst_15 : f32 to vector<40x128xf32>
    %42 = arith.addf %41, %40 : vector<40x128xf32>
    %43 = arith.divf %41, %42 : vector<40x128xf32>
    %44 = arith.mulf %38, %43 : vector<40x128xf32>
    %45 = arith.truncf %44 : vector<40x128xf32> to vector<40x128xbf16>
    %c0_16 = arith.constant 0 : index
    %c0_17 = arith.constant 0 : index
    %46 = vector.load %arg4[%c0_16, %c0_17] : memref<128x128xbf16, #tpu.memory_space<vmem>>, vector<128x128xbf16>
    %cst_18 = arith.constant dense<0.000000e+00> : vector<40x128xf32>
    %47 = tpu.matmul %45, %46, %cst_18 {dimension_numbers = #tpu.dot_dimension_numbers<[1], [0], [0], [1], [0, 0, 1, 1], [], []>} : vector<40x128xbf16>, vector<128x128xbf16>, vector<40x128xf32> -> vector<40x128xf32>
    %48 = vector.broadcast %11 : vector<1x128xf32> to vector<40x128xf32>
    %49 = arith.addf %47, %48 : vector<40x128xf32>
    %cst_19 = arith.constant 5.000000e-01 : f32
    %50 = vector.broadcast %cst_19 : f32 to vector<40x128xf32>
    %51 = arith.mulf %50, %49 : vector<40x128xf32>
    %52 = arith.addf %7, %51 : vector<40x128xf32>
    %c3 = arith.constant 3 : index
    %c0_20 = arith.constant 0 : index
    %53 = vector.load %arg15[%c3, %c0_20] : memref<19x128xf32, #tpu.memory_space<vmem>>, vector<1x128xf32>
    %c4 = arith.constant 4 : index
    %c0_21 = arith.constant 0 : index
    %54 = vector.load %arg15[%c4, %c0_21] : memref<19x128xf32, #tpu.memory_space<vmem>>, vector<1x128xf32>
    %cst_22 = arith.constant dense<0.000000e+00> : vector<40xf32>
    %55 = vector.multi_reduction <add>, %52, %cst_22 [1] : vector<40x128xf32> to vector<40xf32>
    %56 = vector.shape_cast %55 : vector<40xf32> to vector<40x1xf32>
    %cst_23 = arith.constant 3.125000e-02 : f32
    %57 = vector.broadcast %cst_23 : f32 to vector<40x1xf32>
    %58 = arith.mulf %56, %57 : vector<40x1xf32>
    %59 = vector.broadcast %58 : vector<40x1xf32> to vector<40x128xf32>
    %60 = arith.subf %52, %59 : vector<40x128xf32>
    %61 = vector.broadcast %4 : vector<1x128xf32> to vector<40x128xf32>
    %62 = arith.mulf %60, %61 : vector<40x128xf32>
    %63 = arith.mulf %62, %62 : vector<40x128xf32>
    %cst_24 = arith.constant dense<0.000000e+00> : vector<40xf32>
    %64 = vector.multi_reduction <add>, %63, %cst_24 [1] : vector<40x128xf32> to vector<40xf32>
    %65 = vector.shape_cast %64 : vector<40xf32> to vector<40x1xf32>
    %cst_25 = arith.constant 3.125000e-02 : f32
    %66 = vector.broadcast %cst_25 : f32 to vector<40x1xf32>
    %67 = arith.mulf %65, %66 : vector<40x1xf32>
    %cst_26 = arith.constant 9.99999974E-6 : f32
    %68 = vector.broadcast %cst_26 : f32 to vector<40x1xf32>
    %69 = arith.addf %67, %68 : vector<40x1xf32>
    %70 = math.rsqrt %69 : vector<40x1xf32>
    %71 = vector.broadcast %70 : vector<40x1xf32> to vector<40x128xf32>
    %72 = arith.mulf %62, %71 : vector<40x128xf32>
    %73 = vector.broadcast %53 : vector<1x128xf32> to vector<40x128xf32>
    %74 = arith.mulf %72, %73 : vector<40x128xf32>
    %75 = vector.broadcast %54 : vector<1x128xf32> to vector<40x128xf32>
    %76 = arith.addf %74, %75 : vector<40x128xf32>
    %77 = arith.truncf %76 : vector<40x128xf32> to vector<40x128xbf16>
    %c0_27 = arith.constant 0 : index
    %c0_28 = arith.constant 0 : index
    %78 = vector.load %arg5[%c0_27, %c0_28] : memref<128x512xbf16, #tpu.memory_space<vmem>>, vector<128x512xbf16>
    %cst_29 = arith.constant dense<0.000000e+00> : vector<40x512xf32>
    %79 = tpu.matmul %77, %78, %cst_29 {dimension_numbers = #tpu.dot_dimension_numbers<[1], [0], [0], [1], [0, 0, 1, 1], [], []>} : vector<40x128xbf16>, vector<128x512xbf16>, vector<40x512xf32> -> vector<40x512xf32>
    %c0_30 = arith.constant 0 : index
    %c0_31 = arith.constant 0 : index
    %80 = vector.load %arg17[%c0_30, %c0_31] : memref<3x512xf32, #tpu.memory_space<vmem>>, vector<1x512xf32>
    %81 = vector.broadcast %80 : vector<1x512xf32> to vector<40x512xf32>
    %82 = arith.addf %79, %81 : vector<40x512xf32>
    %c0_32 = arith.constant 0 : index
    %c0_33 = arith.constant 0 : index
    %83 = vector.load %arg6[%c0_32, %c0_33] : memref<128x512xbf16, #tpu.memory_space<vmem>>, vector<128x512xbf16>
    %cst_34 = arith.constant dense<0.000000e+00> : vector<40x512xf32>
    %84 = tpu.matmul %77, %83, %cst_34 {dimension_numbers = #tpu.dot_dimension_numbers<[1], [0], [0], [1], [0, 0, 1, 1], [], []>} : vector<40x128xbf16>, vector<128x512xbf16>, vector<40x512xf32> -> vector<40x512xf32>
    %c1_35 = arith.constant 1 : index
    %c0_36 = arith.constant 0 : index
    %85 = vector.load %arg17[%c1_35, %c0_36] : memref<3x512xf32, #tpu.memory_space<vmem>>, vector<1x512xf32>
    %86 = vector.broadcast %85 : vector<1x512xf32> to vector<40x512xf32>
    %87 = arith.addf %84, %86 : vector<40x512xf32>
    %c0_37 = arith.constant 0 : index
    %c0_38 = arith.constant 0 : index
    %88 = vector.load %arg7[%c0_37, %c0_38] : memref<128x512xbf16, #tpu.memory_space<vmem>>, vector<128x512xbf16>
    %cst_39 = arith.constant dense<0.000000e+00> : vector<40x512xf32>
    %89 = tpu.matmul %77, %88, %cst_39 {dimension_numbers = #tpu.dot_dimension_numbers<[1], [0], [0], [1], [0, 0, 1, 1], [], []>} : vector<40x128xbf16>, vector<128x512xbf16>, vector<40x512xf32> -> vector<40x512xf32>
    %c2_40 = arith.constant 2 : index
    %c0_41 = arith.constant 0 : index
    %90 = vector.load %arg17[%c2_40, %c0_41] : memref<3x512xf32, #tpu.memory_space<vmem>>, vector<1x512xf32>
    %91 = vector.broadcast %90 : vector<1x512xf32> to vector<40x512xf32>
    %92 = arith.addf %89, %91 : vector<40x512xf32>
    %93 = arith.truncf %82 : vector<40x512xf32> to vector<40x512xbf16>
    %94 = arith.truncf %87 : vector<40x512xf32> to vector<40x512xbf16>
    %95 = arith.truncf %92 : vector<40x512xf32> to vector<40x512xbf16>
    %c0_42 = arith.constant 0 : index
    %c0_43 = arith.constant 0 : index
    %c0_44 = arith.constant 0 : index
    %96 = vector.load %arg2[%c0_42, %c0_43, %c0_44] : memref<1x1x40xf32, #tpu.memory_space<vmem>>, vector<1x1x40xf32>
    %97 = vector.shape_cast %96 : vector<1x1x40xf32> to vector<1x40xf32>
    %cst_45 = arith.constant 0.000000e+00 : f32
    %98 = vector.broadcast %cst_45 : f32 to vector<40x128xf32>
    %99 = vector.extract_strided_slice %93 {offsets = [0, 0], sizes = [40, 128], strides = [1, 1]} : vector<40x512xbf16> to vector<40x128xbf16>
    %100 = vector.extract_strided_slice %94 {offsets = [0, 0], sizes = [40, 128], strides = [1, 1]} : vector<40x512xbf16> to vector<40x128xbf16>
    %cst_46 = arith.constant dense<0.000000e+00> : vector<40x40xf32>
    %101 = tpu.matmul %99, %100, %cst_46 {dimension_numbers = #tpu.dot_dimension_numbers<[1], [1], [0], [0], [0, 0, 1, 0], [], []>} : vector<40x128xbf16>, vector<40x128xbf16>, vector<40x40xf32> -> vector<40x40xf32>
    %cst_47 = arith.constant 0.353553385 : f32
    %102 = vector.broadcast %cst_47 : f32 to vector<40x40xf32>
    %103 = arith.mulf %101, %102 : vector<40x40xf32>
    %104 = vector.broadcast %97 : vector<1x40xf32> to vector<40x40xf32>
    %105 = arith.addf %103, %104 : vector<40x40xf32>
    %cst_48 = arith.constant dense<0xFF800000> : vector<40xf32>
    %106 = vector.multi_reduction <maximumf>, %105, %cst_48 [1] : vector<40x40xf32> to vector<40xf32>
    %107 = vector.shape_cast %106 : vector<40xf32> to vector<40x1xf32>
    %108 = vector.broadcast %107 : vector<40x1xf32> to vector<40x40xf32>
    %109 = arith.subf %105, %108 : vector<40x40xf32>
    %110 = math.exp %109 : vector<40x40xf32>
    %cst_49 = arith.constant dense<0.000000e+00> : vector<40xf32>
    %111 = vector.multi_reduction <add>, %110, %cst_49 [1] : vector<40x40xf32> to vector<40xf32>
    %112 = vector.shape_cast %111 : vector<40xf32> to vector<40x1xf32>
    %113 = vector.broadcast %112 : vector<40x1xf32> to vector<40x40xf32>
    %114 = arith.divf %110, %113 : vector<40x40xf32>
    %115 = arith.truncf %114 : vector<40x40xf32> to vector<40x40xbf16>
    %116 = vector.extract_strided_slice %95 {offsets = [0, 0], sizes = [40, 128], strides = [1, 1]} : vector<40x512xbf16> to vector<40x128xbf16>
    %cst_50 = arith.constant dense<0.000000e+00> : vector<40x128xf32>
    %117 = tpu.matmul %115, %116, %cst_50 {dimension_numbers = #tpu.dot_dimension_numbers<[1], [0], [0], [1], [0, 0, 1, 1], [], []>} : vector<40x40xbf16>, vector<40x128xbf16>, vector<40x128xf32> -> vector<40x128xf32>
    %118 = arith.truncf %117 : vector<40x128xf32> to vector<40x128xbf16>
    %c0_51 = arith.constant 0 : index
    %c0_52 = arith.constant 0 : index
    %119 = vector.load %arg8[%c0_51, %c0_52] : memref<512x128xbf16, #tpu.memory_space<vmem>>, vector<128x128xbf16>
    %cst_53 = arith.constant dense<0.000000e+00> : vector<40x128xf32>
    %120 = tpu.matmul %118, %119, %cst_53 {dimension_numbers = #tpu.dot_dimension_numbers<[1], [0], [0], [1], [0, 0, 1, 1], [], []>} : vector<40x128xbf16>, vector<128x128xbf16>, vector<40x128xf32> -> vector<40x128xf32>
    %121 = arith.addf %98, %120 : vector<40x128xf32>
    %122 = vector.extract_strided_slice %93 {offsets = [0, 128], sizes = [40, 128], strides = [1, 1]} : vector<40x512xbf16> to vector<40x128xbf16>
    %123 = vector.extract_strided_slice %94 {offsets = [0, 128], sizes = [40, 128], strides = [1, 1]} : vector<40x512xbf16> to vector<40x128xbf16>
    %cst_54 = arith.constant dense<0.000000e+00> : vector<40x40xf32>
    %124 = tpu.matmul %122, %123, %cst_54 {dimension_numbers = #tpu.dot_dimension_numbers<[1], [1], [0], [0], [0, 0, 1, 0], [], []>} : vector<40x128xbf16>, vector<40x128xbf16>, vector<40x40xf32> -> vector<40x40xf32>
    %cst_55 = arith.constant 0.353553385 : f32
    %125 = vector.broadcast %cst_55 : f32 to vector<40x40xf32>
    %126 = arith.mulf %124, %125 : vector<40x40xf32>
    %127 = vector.broadcast %97 : vector<1x40xf32> to vector<40x40xf32>
    %128 = arith.addf %126, %127 : vector<40x40xf32>
    %cst_56 = arith.constant dense<0xFF800000> : vector<40xf32>
    %129 = vector.multi_reduction <maximumf>, %128, %cst_56 [1] : vector<40x40xf32> to vector<40xf32>
    %130 = vector.shape_cast %129 : vector<40xf32> to vector<40x1xf32>
    %131 = vector.broadcast %130 : vector<40x1xf32> to vector<40x40xf32>
    %132 = arith.subf %128, %131 : vector<40x40xf32>
    %133 = math.exp %132 : vector<40x40xf32>
    %cst_57 = arith.constant dense<0.000000e+00> : vector<40xf32>
    %134 = vector.multi_reduction <add>, %133, %cst_57 [1] : vector<40x40xf32> to vector<40xf32>
    %135 = vector.shape_cast %134 : vector<40xf32> to vector<40x1xf32>
    %136 = vector.broadcast %135 : vector<40x1xf32> to vector<40x40xf32>
    %137 = arith.divf %133, %136 : vector<40x40xf32>
    %138 = arith.truncf %137 : vector<40x40xf32> to vector<40x40xbf16>
    %139 = vector.extract_strided_slice %95 {offsets = [0, 128], sizes = [40, 128], strides = [1, 1]} : vector<40x512xbf16> to vector<40x128xbf16>
    %cst_58 = arith.constant dense<0.000000e+00> : vector<40x128xf32>
    %140 = tpu.matmul %138, %139, %cst_58 {dimension_numbers = #tpu.dot_dimension_numbers<[1], [0], [0], [1], [0, 0, 1, 1], [], []>} : vector<40x40xbf16>, vector<40x128xbf16>, vector<40x128xf32> -> vector<40x128xf32>
    %141 = arith.truncf %140 : vector<40x128xf32> to vector<40x128xbf16>
    %c128 = arith.constant 128 : index
    %c0_59 = arith.constant 0 : index
    %142 = vector.load %arg8[%c128, %c0_59] : memref<512x128xbf16, #tpu.memory_space<vmem>>, vector<128x128xbf16>
    %cst_60 = arith.constant dense<0.000000e+00> : vector<40x128xf32>
    %143 = tpu.matmul %141, %142, %cst_60 {dimension_numbers = #tpu.dot_dimension_numbers<[1], [0], [0], [1], [0, 0, 1, 1], [], []>} : vector<40x128xbf16>, vector<128x128xbf16>, vector<40x128xf32> -> vector<40x128xf32>
    %144 = arith.addf %121, %143 : vector<40x128xf32>
    %145 = vector.extract_strided_slice %93 {offsets = [0, 256], sizes = [40, 128], strides = [1, 1]} : vector<40x512xbf16> to vector<40x128xbf16>
    %146 = vector.extract_strided_slice %94 {offsets = [0, 256], sizes = [40, 128], strides = [1, 1]} : vector<40x512xbf16> to vector<40x128xbf16>
    %cst_61 = arith.constant dense<0.000000e+00> : vector<40x40xf32>
    %147 = tpu.matmul %145, %146, %cst_61 {dimension_numbers = #tpu.dot_dimension_numbers<[1], [1], [0], [0], [0, 0, 1, 0], [], []>} : vector<40x128xbf16>, vector<40x128xbf16>, vector<40x40xf32> -> vector<40x40xf32>
    %cst_62 = arith.constant 0.353553385 : f32
    %148 = vector.broadcast %cst_62 : f32 to vector<40x40xf32>
    %149 = arith.mulf %147, %148 : vector<40x40xf32>
    %150 = vector.broadcast %97 : vector<1x40xf32> to vector<40x40xf32>
    %151 = arith.addf %149, %150 : vector<40x40xf32>
    %cst_63 = arith.constant dense<0xFF800000> : vector<40xf32>
    %152 = vector.multi_reduction <maximumf>, %151, %cst_63 [1] : vector<40x40xf32> to vector<40xf32>
    %153 = vector.shape_cast %152 : vector<40xf32> to vector<40x1xf32>
    %154 = vector.broadcast %153 : vector<40x1xf32> to vector<40x40xf32>
    %155 = arith.subf %151, %154 : vector<40x40xf32>
    %156 = math.exp %155 : vector<40x40xf32>
    %cst_64 = arith.constant dense<0.000000e+00> : vector<40xf32>
    %157 = vector.multi_reduction <add>, %156, %cst_64 [1] : vector<40x40xf32> to vector<40xf32>
    %158 = vector.shape_cast %157 : vector<40xf32> to vector<40x1xf32>
    %159 = vector.broadcast %158 : vector<40x1xf32> to vector<40x40xf32>
    %160 = arith.divf %156, %159 : vector<40x40xf32>
    %161 = arith.truncf %160 : vector<40x40xf32> to vector<40x40xbf16>
    %162 = vector.extract_strided_slice %95 {offsets = [0, 256], sizes = [40, 128], strides = [1, 1]} : vector<40x512xbf16> to vector<40x128xbf16>
    %cst_65 = arith.constant dense<0.000000e+00> : vector<40x128xf32>
    %163 = tpu.matmul %161, %162, %cst_65 {dimension_numbers = #tpu.dot_dimension_numbers<[1], [0], [0], [1], [0, 0, 1, 1], [], []>} : vector<40x40xbf16>, vector<40x128xbf16>, vector<40x128xf32> -> vector<40x128xf32>
    %164 = arith.truncf %163 : vector<40x128xf32> to vector<40x128xbf16>
    %c256 = arith.constant 256 : index
    %c0_66 = arith.constant 0 : index
    %165 = vector.load %arg8[%c256, %c0_66] : memref<512x128xbf16, #tpu.memory_space<vmem>>, vector<128x128xbf16>
    %cst_67 = arith.constant dense<0.000000e+00> : vector<40x128xf32>
    %166 = tpu.matmul %164, %165, %cst_67 {dimension_numbers = #tpu.dot_dimension_numbers<[1], [0], [0], [1], [0, 0, 1, 1], [], []>} : vector<40x128xbf16>, vector<128x128xbf16>, vector<40x128xf32> -> vector<40x128xf32>
    %167 = arith.addf %144, %166 : vector<40x128xf32>
    %168 = vector.extract_strided_slice %93 {offsets = [0, 384], sizes = [40, 128], strides = [1, 1]} : vector<40x512xbf16> to vector<40x128xbf16>
    %169 = vector.extract_strided_slice %94 {offsets = [0, 384], sizes = [40, 128], strides = [1, 1]} : vector<40x512xbf16> to vector<40x128xbf16>
    %cst_68 = arith.constant dense<0.000000e+00> : vector<40x40xf32>
    %170 = tpu.matmul %168, %169, %cst_68 {dimension_numbers = #tpu.dot_dimension_numbers<[1], [1], [0], [0], [0, 0, 1, 0], [], []>} : vector<40x128xbf16>, vector<40x128xbf16>, vector<40x40xf32> -> vector<40x40xf32>
    %cst_69 = arith.constant 0.353553385 : f32
    %171 = vector.broadcast %cst_69 : f32 to vector<40x40xf32>
    %172 = arith.mulf %170, %171 : vector<40x40xf32>
    %173 = vector.broadcast %97 : vector<1x40xf32> to vector<40x40xf32>
    %174 = arith.addf %172, %173 : vector<40x40xf32>
    %cst_70 = arith.constant dense<0xFF800000> : vector<40xf32>
    %175 = vector.multi_reduction <maximumf>, %174, %cst_70 [1] : vector<40x40xf32> to vector<40xf32>
    %176 = vector.shape_cast %175 : vector<40xf32> to vector<40x1xf32>
    %177 = vector.broadcast %176 : vector<40x1xf32> to vector<40x40xf32>
    %178 = arith.subf %174, %177 : vector<40x40xf32>
    %179 = math.exp %178 : vector<40x40xf32>
    %cst_71 = arith.constant dense<0.000000e+00> : vector<40xf32>
    %180 = vector.multi_reduction <add>, %179, %cst_71 [1] : vector<40x40xf32> to vector<40xf32>
    %181 = vector.shape_cast %180 : vector<40xf32> to vector<40x1xf32>
    %182 = vector.broadcast %181 : vector<40x1xf32> to vector<40x40xf32>
    %183 = arith.divf %179, %182 : vector<40x40xf32>
    %184 = arith.truncf %183 : vector<40x40xf32> to vector<40x40xbf16>
    %185 = vector.extract_strided_slice %95 {offsets = [0, 384], sizes = [40, 128], strides = [1, 1]} : vector<40x512xbf16> to vector<40x128xbf16>
    %cst_72 = arith.constant dense<0.000000e+00> : vector<40x128xf32>
    %186 = tpu.matmul %184, %185, %cst_72 {dimension_numbers = #tpu.dot_dimension_numbers<[1], [0], [0], [1], [0, 0, 1, 1], [], []>} : vector<40x40xbf16>, vector<40x128xbf16>, vector<40x128xf32> -> vector<40x128xf32>
    %187 = arith.truncf %186 : vector<40x128xf32> to vector<40x128xbf16>
    %c384 = arith.constant 384 : index
    %c0_73 = arith.constant 0 : index
    %188 = vector.load %arg8[%c384, %c0_73] : memref<512x128xbf16, #tpu.memory_space<vmem>>, vector<128x128xbf16>
    %cst_74 = arith.constant dense<0.000000e+00> : vector<40x128xf32>
    %189 = tpu.matmul %187, %188, %cst_74 {dimension_numbers = #tpu.dot_dimension_numbers<[1], [0], [0], [1], [0, 0, 1, 1], [], []>} : vector<40x128xbf16>, vector<128x128xbf16>, vector<40x128xf32> -> vector<40x128xf32>
    %190 = arith.addf %167, %189 : vector<40x128xf32>
    %191 = arith.addf %52, %190 : vector<40x128xf32>
    %c5 = arith.constant 5 : index
    %c0_75 = arith.constant 0 : index
    %192 = vector.load %arg15[%c5, %c0_75] : memref<19x128xf32, #tpu.memory_space<vmem>>, vector<1x128xf32>
    %193 = vector.broadcast %192 : vector<1x128xf32> to vector<40x128xf32>
    %194 = arith.addf %191, %193 : vector<40x128xf32>
    %c6 = arith.constant 6 : index
    %c0_76 = arith.constant 0 : index
    %195 = vector.load %arg15[%c6, %c0_76] : memref<19x128xf32, #tpu.memory_space<vmem>>, vector<1x128xf32>
    %c7 = arith.constant 7 : index
    %c0_77 = arith.constant 0 : index
    %196 = vector.load %arg15[%c7, %c0_77] : memref<19x128xf32, #tpu.memory_space<vmem>>, vector<1x128xf32>
    %cst_78 = arith.constant dense<0.000000e+00> : vector<40xf32>
    %197 = vector.multi_reduction <add>, %194, %cst_78 [1] : vector<40x128xf32> to vector<40xf32>
    %198 = vector.shape_cast %197 : vector<40xf32> to vector<40x1xf32>
    %cst_79 = arith.constant 3.125000e-02 : f32
    %199 = vector.broadcast %cst_79 : f32 to vector<40x1xf32>
    %200 = arith.mulf %198, %199 : vector<40x1xf32>
    %201 = vector.broadcast %200 : vector<40x1xf32> to vector<40x128xf32>
    %202 = arith.subf %194, %201 : vector<40x128xf32>
    %203 = vector.broadcast %4 : vector<1x128xf32> to vector<40x128xf32>
    %204 = arith.mulf %202, %203 : vector<40x128xf32>
    %205 = arith.mulf %204, %204 : vector<40x128xf32>
    %cst_80 = arith.constant dense<0.000000e+00> : vector<40xf32>
    %206 = vector.multi_reduction <add>, %205, %cst_80 [1] : vector<40x128xf32> to vector<40xf32>
    %207 = vector.shape_cast %206 : vector<40xf32> to vector<40x1xf32>
    %cst_81 = arith.constant 3.125000e-02 : f32
    %208 = vector.broadcast %cst_81 : f32 to vector<40x1xf32>
    %209 = arith.mulf %207, %208 : vector<40x1xf32>
    %cst_82 = arith.constant 9.99999974E-6 : f32
    %210 = vector.broadcast %cst_82 : f32 to vector<40x1xf32>
    %211 = arith.addf %209, %210 : vector<40x1xf32>
    %212 = math.rsqrt %211 : vector<40x1xf32>
    %213 = vector.broadcast %212 : vector<40x1xf32> to vector<40x128xf32>
    %214 = arith.mulf %204, %213 : vector<40x128xf32>
    %215 = vector.broadcast %195 : vector<1x128xf32> to vector<40x128xf32>
    %216 = arith.mulf %214, %215 : vector<40x128xf32>
    %217 = vector.broadcast %196 : vector<1x128xf32> to vector<40x128xf32>
    %218 = arith.addf %216, %217 : vector<40x128xf32>
    %219 = arith.truncf %218 : vector<40x128xf32> to vector<40x128xbf16>
    %c0_83 = arith.constant 0 : index
    %c0_84 = arith.constant 0 : index
    %220 = vector.load %arg9[%c0_83, %c0_84] : memref<128x128xbf16, #tpu.memory_space<vmem>>, vector<128x128xbf16>
    %cst_85 = arith.constant dense<0.000000e+00> : vector<40x128xf32>
    %221 = tpu.matmul %219, %220, %cst_85 {dimension_numbers = #tpu.dot_dimension_numbers<[1], [0], [0], [1], [0, 0, 1, 1], [], []>} : vector<40x128xbf16>, vector<128x128xbf16>, vector<40x128xf32> -> vector<40x128xf32>
    %c8 = arith.constant 8 : index
    %c0_86 = arith.constant 0 : index
    %222 = vector.load %arg15[%c8, %c0_86] : memref<19x128xf32, #tpu.memory_space<vmem>>, vector<1x128xf32>
    %223 = vector.broadcast %222 : vector<1x128xf32> to vector<40x128xf32>
    %224 = arith.addf %221, %223 : vector<40x128xf32>
    %c0_87 = arith.constant 0 : index
    %c0_88 = arith.constant 0 : index
    %225 = vector.load %arg10[%c0_87, %c0_88] : memref<128x128xbf16, #tpu.memory_space<vmem>>, vector<128x128xbf16>
    %cst_89 = arith.constant dense<0.000000e+00> : vector<40x128xf32>
    %226 = tpu.matmul %219, %225, %cst_89 {dimension_numbers = #tpu.dot_dimension_numbers<[1], [0], [0], [1], [0, 0, 1, 1], [], []>} : vector<40x128xbf16>, vector<128x128xbf16>, vector<40x128xf32> -> vector<40x128xf32>
    %c9 = arith.constant 9 : index
    %c0_90 = arith.constant 0 : index
    %227 = vector.load %arg15[%c9, %c0_90] : memref<19x128xf32, #tpu.memory_space<vmem>>, vector<1x128xf32>
    %228 = vector.broadcast %227 : vector<1x128xf32> to vector<40x128xf32>
    %229 = arith.addf %226, %228 : vector<40x128xf32>
    %230 = arith.negf %229 : vector<40x128xf32>
    %231 = math.exp %230 : vector<40x128xf32>
    %cst_91 = arith.constant 1.000000e+00 : f32
    %232 = vector.broadcast %cst_91 : f32 to vector<40x128xf32>
    %233 = arith.addf %232, %231 : vector<40x128xf32>
    %234 = arith.divf %232, %233 : vector<40x128xf32>
    %235 = arith.mulf %224, %234 : vector<40x128xf32>
    %c22_i32 = arith.constant 22 : i32
    %236 = vector.broadcast %c22_i32 : i32 to vector<40x1xi32>
    %237 = arith.cmpi slt, %5, %236 : vector<40x1xi32>
    %cst_92 = arith.constant 0.000000e+00 : f32
    %238 = vector.shape_cast %237 : vector<40x1xi1> to vector<40x1xi1>
    %239 = vector.broadcast %238 : vector<40x1xi1> to vector<40x128xi1>
    %240 = vector.broadcast %cst_92 : f32 to vector<40x128xf32>
    %241 = arith.select %239, %235, %240 : vector<40x128xi1>, vector<40x128xf32>
    %c7_93 = arith.constant 7 : index
    %c0_94 = arith.constant 0 : index
    %242 = vector.load %arg11[%c7_93, %c0_94] : memref<15x128xf32, #tpu.memory_space<vmem>>, vector<1x128xf32>
    %243 = vector.broadcast %242 : vector<1x128xf32> to vector<40x128xf32>
    %244 = arith.mulf %241, %243 : vector<40x128xf32>
    %c7_i32 = arith.constant 7 : i32
    %245 = tpu.dynamic_rotate %241 by %c7_i32 dim 0 : vector<40x128xf32>, i32 -> vector<40x128xf32>
    %c0_95 = arith.constant 0 : index
    %c0_96 = arith.constant 0 : index
    %246 = vector.load %arg11[%c0_95, %c0_96] : memref<15x128xf32, #tpu.memory_space<vmem>>, vector<1x128xf32>
    %247 = vector.broadcast %246 : vector<1x128xf32> to vector<40x128xf32>
    %248 = arith.mulf %245, %247 : vector<40x128xf32>
    %249 = arith.addf %244, %248 : vector<40x128xf32>
    %c6_i32 = arith.constant 6 : i32
    %250 = tpu.dynamic_rotate %241 by %c6_i32 dim 0 : vector<40x128xf32>, i32 -> vector<40x128xf32>
    %c1_97 = arith.constant 1 : index
    %c0_98 = arith.constant 0 : index
    %251 = vector.load %arg11[%c1_97, %c0_98] : memref<15x128xf32, #tpu.memory_space<vmem>>, vector<1x128xf32>
    %252 = vector.broadcast %251 : vector<1x128xf32> to vector<40x128xf32>
    %253 = arith.mulf %250, %252 : vector<40x128xf32>
    %254 = arith.addf %249, %253 : vector<40x128xf32>
    %c5_i32 = arith.constant 5 : i32
    %255 = tpu.dynamic_rotate %241 by %c5_i32 dim 0 : vector<40x128xf32>, i32 -> vector<40x128xf32>
    %c2_99 = arith.constant 2 : index
    %c0_100 = arith.constant 0 : index
    %256 = vector.load %arg11[%c2_99, %c0_100] : memref<15x128xf32, #tpu.memory_space<vmem>>, vector<1x128xf32>
    %257 = vector.broadcast %256 : vector<1x128xf32> to vector<40x128xf32>
    %258 = arith.mulf %255, %257 : vector<40x128xf32>
    %259 = arith.addf %254, %258 : vector<40x128xf32>
    %c4_i32 = arith.constant 4 : i32
    %260 = tpu.dynamic_rotate %241 by %c4_i32 dim 0 : vector<40x128xf32>, i32 -> vector<40x128xf32>
    %c3_101 = arith.constant 3 : index
    %c0_102 = arith.constant 0 : index
    %261 = vector.load %arg11[%c3_101, %c0_102] : memref<15x128xf32, #tpu.memory_space<vmem>>, vector<1x128xf32>
    %262 = vector.broadcast %261 : vector<1x128xf32> to vector<40x128xf32>
    %263 = arith.mulf %260, %262 : vector<40x128xf32>
    %264 = arith.addf %259, %263 : vector<40x128xf32>
    %c3_i32 = arith.constant 3 : i32
    %265 = tpu.dynamic_rotate %241 by %c3_i32 dim 0 : vector<40x128xf32>, i32 -> vector<40x128xf32>
    %c4_103 = arith.constant 4 : index
    %c0_104 = arith.constant 0 : index
    %266 = vector.load %arg11[%c4_103, %c0_104] : memref<15x128xf32, #tpu.memory_space<vmem>>, vector<1x128xf32>
    %267 = vector.broadcast %266 : vector<1x128xf32> to vector<40x128xf32>
    %268 = arith.mulf %265, %267 : vector<40x128xf32>
    %269 = arith.addf %264, %268 : vector<40x128xf32>
    %c2_i32 = arith.constant 2 : i32
    %270 = tpu.dynamic_rotate %241 by %c2_i32 dim 0 : vector<40x128xf32>, i32 -> vector<40x128xf32>
    %c5_105 = arith.constant 5 : index
    %c0_106 = arith.constant 0 : index
    %271 = vector.load %arg11[%c5_105, %c0_106] : memref<15x128xf32, #tpu.memory_space<vmem>>, vector<1x128xf32>
    %272 = vector.broadcast %271 : vector<1x128xf32> to vector<40x128xf32>
    %273 = arith.mulf %270, %272 : vector<40x128xf32>
    %274 = arith.addf %269, %273 : vector<40x128xf32>
    %c1_i32 = arith.constant 1 : i32
    %275 = tpu.dynamic_rotate %241 by %c1_i32 dim 0 : vector<40x128xf32>, i32 -> vector<40x128xf32>
    %c6_107 = arith.constant 6 : index
    %c0_108 = arith.constant 0 : index
    %276 = vector.load %arg11[%c6_107, %c0_108] : memref<15x128xf32, #tpu.memory_space<vmem>>, vector<1x128xf32>
    %277 = vector.broadcast %276 : vector<1x128xf32> to vector<40x128xf32>
    %278 = arith.mulf %275, %277 : vector<40x128xf32>
    %279 = arith.addf %274, %278 : vector<40x128xf32>
    %c39_i32 = arith.constant 39 : i32
    %280 = tpu.dynamic_rotate %241 by %c39_i32 dim 0 : vector<40x128xf32>, i32 -> vector<40x128xf32>
    %c8_109 = arith.constant 8 : index
    %c0_110 = arith.constant 0 : index
    %281 = vector.load %arg11[%c8_109, %c0_110] : memref<15x128xf32, #tpu.memory_space<vmem>>, vector<1x128xf32>
    %282 = vector.broadcast %281 : vector<1x128xf32> to vector<40x128xf32>
    %283 = arith.mulf %280, %282 : vector<40x128xf32>
    %284 = arith.addf %279, %283 : vector<40x128xf32>
    %c38_i32 = arith.constant 38 : i32
    %285 = tpu.dynamic_rotate %241 by %c38_i32 dim 0 : vector<40x128xf32>, i32 -> vector<40x128xf32>
    %c9_111 = arith.constant 9 : index
    %c0_112 = arith.constant 0 : index
    %286 = vector.load %arg11[%c9_111, %c0_112] : memref<15x128xf32, #tpu.memory_space<vmem>>, vector<1x128xf32>
    %287 = vector.broadcast %286 : vector<1x128xf32> to vector<40x128xf32>
    %288 = arith.mulf %285, %287 : vector<40x128xf32>
    %289 = arith.addf %284, %288 : vector<40x128xf32>
    %c37_i32 = arith.constant 37 : i32
    %290 = tpu.dynamic_rotate %241 by %c37_i32 dim 0 : vector<40x128xf32>, i32 -> vector<40x128xf32>
    %c10 = arith.constant 10 : index
    %c0_113 = arith.constant 0 : index
    %291 = vector.load %arg11[%c10, %c0_113] : memref<15x128xf32, #tpu.memory_space<vmem>>, vector<1x128xf32>
    %292 = vector.broadcast %291 : vector<1x128xf32> to vector<40x128xf32>
    %293 = arith.mulf %290, %292 : vector<40x128xf32>
    %294 = arith.addf %289, %293 : vector<40x128xf32>
    %c36_i32 = arith.constant 36 : i32
    %295 = tpu.dynamic_rotate %241 by %c36_i32 dim 0 : vector<40x128xf32>, i32 -> vector<40x128xf32>
    %c11 = arith.constant 11 : index
    %c0_114 = arith.constant 0 : index
    %296 = vector.load %arg11[%c11, %c0_114] : memref<15x128xf32, #tpu.memory_space<vmem>>, vector<1x128xf32>
    %297 = vector.broadcast %296 : vector<1x128xf32> to vector<40x128xf32>
    %298 = arith.mulf %295, %297 : vector<40x128xf32>
    %299 = arith.addf %294, %298 : vector<40x128xf32>
    %c35_i32 = arith.constant 35 : i32
    %300 = tpu.dynamic_rotate %241 by %c35_i32 dim 0 : vector<40x128xf32>, i32 -> vector<40x128xf32>
    %c12 = arith.constant 12 : index
    %c0_115 = arith.constant 0 : index
    %301 = vector.load %arg11[%c12, %c0_115] : memref<15x128xf32, #tpu.memory_space<vmem>>, vector<1x128xf32>
    %302 = vector.broadcast %301 : vector<1x128xf32> to vector<40x128xf32>
    %303 = arith.mulf %300, %302 : vector<40x128xf32>
    %304 = arith.addf %299, %303 : vector<40x128xf32>
    %c34_i32 = arith.constant 34 : i32
    %305 = tpu.dynamic_rotate %241 by %c34_i32 dim 0 : vector<40x128xf32>, i32 -> vector<40x128xf32>
    %c13 = arith.constant 13 : index
    %c0_116 = arith.constant 0 : index
    %306 = vector.load %arg11[%c13, %c0_116] : memref<15x128xf32, #tpu.memory_space<vmem>>, vector<1x128xf32>
    %307 = vector.broadcast %306 : vector<1x128xf32> to vector<40x128xf32>
    %308 = arith.mulf %305, %307 : vector<40x128xf32>
    %309 = arith.addf %304, %308 : vector<40x128xf32>
    %c33_i32 = arith.constant 33 : i32
    %310 = tpu.dynamic_rotate %241 by %c33_i32 dim 0 : vector<40x128xf32>, i32 -> vector<40x128xf32>
    %c14 = arith.constant 14 : index
    %c0_117 = arith.constant 0 : index
    %311 = vector.load %arg11[%c14, %c0_117] : memref<15x128xf32, #tpu.memory_space<vmem>>, vector<1x128xf32>
    %312 = vector.broadcast %311 : vector<1x128xf32> to vector<40x128xf32>
    %313 = arith.mulf %310, %312 : vector<40x128xf32>
    %314 = arith.addf %309, %313 : vector<40x128xf32>
    %c10_118 = arith.constant 10 : index
    %c0_119 = arith.constant 0 : index
    %315 = vector.load %arg15[%c10_118, %c0_119] : memref<19x128xf32, #tpu.memory_space<vmem>>, vector<1x128xf32>
    %316 = vector.broadcast %315 : vector<1x128xf32> to vector<40x128xf32>
    %317 = arith.addf %314, %316 : vector<40x128xf32>
    %c22_i32_120 = arith.constant 22 : i32
    %318 = vector.broadcast %c22_i32_120 : i32 to vector<40x1xi32>
    %319 = arith.cmpi slt, %5, %318 : vector<40x1xi32>
    %cst_121 = arith.constant 0.000000e+00 : f32
    %320 = vector.shape_cast %319 : vector<40x1xi1> to vector<40x1xi1>
    %321 = vector.broadcast %320 : vector<40x1xi1> to vector<40x128xi1>
    %322 = vector.broadcast %cst_121 : f32 to vector<40x128xf32>
    %323 = arith.select %321, %317, %322 : vector<40x128xi1>, vector<40x128xf32>
    %cst_122 = arith.constant dense<0.000000e+00> : vector<40xf32>
    %324 = vector.multi_reduction <add>, %323, %cst_122 [1] : vector<40x128xf32> to vector<40xf32>
    %325 = vector.shape_cast %324 : vector<40xf32> to vector<40x1xf32>
    %cst_123 = arith.constant dense<0.000000e+00> : vector<1xf32>
    %326 = vector.multi_reduction <add>, %325, %cst_123 [0] : vector<40x1xf32> to vector<1xf32>
    %327 = vector.shape_cast %326 : vector<1xf32> to vector<1x1xf32>
    %cst_124 = arith.constant 0.00142045459 : f32
    %328 = vector.broadcast %cst_124 : f32 to vector<1x1xf32>
    %329 = arith.mulf %327, %328 : vector<1x1xf32>
    %330 = arith.mulf %323, %323 : vector<40x128xf32>
    %cst_125 = arith.constant dense<0.000000e+00> : vector<40xf32>
    %331 = vector.multi_reduction <add>, %330, %cst_125 [1] : vector<40x128xf32> to vector<40xf32>
    %332 = vector.shape_cast %331 : vector<40xf32> to vector<40x1xf32>
    %cst_126 = arith.constant dense<0.000000e+00> : vector<1xf32>
    %333 = vector.multi_reduction <add>, %332, %cst_126 [0] : vector<40x1xf32> to vector<1xf32>
    %334 = vector.shape_cast %333 : vector<1xf32> to vector<1x1xf32>
    %cst_127 = arith.constant 0.00142045459 : f32
    %335 = vector.broadcast %cst_127 : f32 to vector<1x1xf32>
    %336 = arith.mulf %334, %335 : vector<1x1xf32>
    %337 = arith.mulf %329, %329 : vector<1x1xf32>
    %338 = arith.subf %336, %337 : vector<1x1xf32>
    %cst_128 = arith.constant 0.000000e+00 : f32
    %339 = vector.broadcast %cst_128 : f32 to vector<1x1xf32>
    %340 = arith.maximumf %338, %339 : vector<1x1xf32>
    %341 = vector.broadcast %329 : vector<1x1xf32> to vector<40x128xf32>
    %342 = arith.subf %317, %341 : vector<40x128xf32>
    %cst_129 = arith.constant 9.99999974E-6 : f32
    %343 = vector.broadcast %cst_129 : f32 to vector<1x1xf32>
    %344 = arith.addf %340, %343 : vector<1x1xf32>
    %345 = math.rsqrt %344 : vector<1x1xf32>
    %346 = vector.broadcast %345 : vector<1x1xf32> to vector<40x128xf32>
    %347 = arith.mulf %342, %346 : vector<40x128xf32>
    %c11_130 = arith.constant 11 : index
    %c0_131 = arith.constant 0 : index
    %348 = vector.load %arg15[%c11_130, %c0_131] : memref<19x128xf32, #tpu.memory_space<vmem>>, vector<1x128xf32>
    %349 = vector.broadcast %348 : vector<1x128xf32> to vector<40x128xf32>
    %350 = arith.mulf %347, %349 : vector<40x128xf32>
    %c12_132 = arith.constant 12 : index
    %c0_133 = arith.constant 0 : index
    %351 = vector.load %arg15[%c12_132, %c0_133] : memref<19x128xf32, #tpu.memory_space<vmem>>, vector<1x128xf32>
    %352 = vector.broadcast %351 : vector<1x128xf32> to vector<40x128xf32>
    %353 = arith.addf %350, %352 : vector<40x128xf32>
    %354 = arith.negf %353 : vector<40x128xf32>
    %355 = math.exp %354 : vector<40x128xf32>
    %cst_134 = arith.constant 1.000000e+00 : f32
    %356 = vector.broadcast %cst_134 : f32 to vector<40x128xf32>
    %357 = arith.addf %356, %355 : vector<40x128xf32>
    %358 = arith.divf %356, %357 : vector<40x128xf32>
    %359 = arith.mulf %353, %358 : vector<40x128xf32>
    %360 = arith.truncf %359 : vector<40x128xf32> to vector<40x128xbf16>
    %c0_135 = arith.constant 0 : index
    %c0_136 = arith.constant 0 : index
    %361 = vector.load %arg12[%c0_135, %c0_136] : memref<128x128xbf16, #tpu.memory_space<vmem>>, vector<128x128xbf16>
    %cst_137 = arith.constant dense<0.000000e+00> : vector<40x128xf32>
    %362 = tpu.matmul %360, %361, %cst_137 {dimension_numbers = #tpu.dot_dimension_numbers<[1], [0], [0], [1], [0, 0, 1, 1], [], []>} : vector<40x128xbf16>, vector<128x128xbf16>, vector<40x128xf32> -> vector<40x128xf32>
    %c13_138 = arith.constant 13 : index
    %c0_139 = arith.constant 0 : index
    %363 = vector.load %arg15[%c13_138, %c0_139] : memref<19x128xf32, #tpu.memory_space<vmem>>, vector<1x128xf32>
    %364 = vector.broadcast %363 : vector<1x128xf32> to vector<40x128xf32>
    %365 = arith.addf %362, %364 : vector<40x128xf32>
    %366 = arith.addf %194, %365 : vector<40x128xf32>
    %c14_140 = arith.constant 14 : index
    %c0_141 = arith.constant 0 : index
    %367 = vector.load %arg15[%c14_140, %c0_141] : memref<19x128xf32, #tpu.memory_space<vmem>>, vector<1x128xf32>
    %c15 = arith.constant 15 : index
    %c0_142 = arith.constant 0 : index
    %368 = vector.load %arg15[%c15, %c0_142] : memref<19x128xf32, #tpu.memory_space<vmem>>, vector<1x128xf32>
    %c1_143 = arith.constant 1 : index
    %c0_144 = arith.constant 0 : index
    %369 = vector.load %arg16[%c1_143, %c0_144] : memref<2x128xf32, #tpu.memory_space<vmem>>, vector<1x128xf32>
    %c16 = arith.constant 16 : index
    %c0_145 = arith.constant 0 : index
    %370 = vector.load %arg15[%c16, %c0_145] : memref<19x128xf32, #tpu.memory_space<vmem>>, vector<1x128xf32>
    %cst_146 = arith.constant dense<0.000000e+00> : vector<40xf32>
    %371 = vector.multi_reduction <add>, %366, %cst_146 [1] : vector<40x128xf32> to vector<40xf32>
    %372 = vector.shape_cast %371 : vector<40xf32> to vector<40x1xf32>
    %cst_147 = arith.constant 3.125000e-02 : f32
    %373 = vector.broadcast %cst_147 : f32 to vector<40x1xf32>
    %374 = arith.mulf %372, %373 : vector<40x1xf32>
    %375 = vector.broadcast %374 : vector<40x1xf32> to vector<40x128xf32>
    %376 = arith.subf %366, %375 : vector<40x128xf32>
    %377 = vector.broadcast %4 : vector<1x128xf32> to vector<40x128xf32>
    %378 = arith.mulf %376, %377 : vector<40x128xf32>
    %379 = arith.mulf %378, %378 : vector<40x128xf32>
    %cst_148 = arith.constant dense<0.000000e+00> : vector<40xf32>
    %380 = vector.multi_reduction <add>, %379, %cst_148 [1] : vector<40x128xf32> to vector<40xf32>
    %381 = vector.shape_cast %380 : vector<40xf32> to vector<40x1xf32>
    %cst_149 = arith.constant 3.125000e-02 : f32
    %382 = vector.broadcast %cst_149 : f32 to vector<40x1xf32>
    %383 = arith.mulf %381, %382 : vector<40x1xf32>
    %cst_150 = arith.constant 9.99999974E-6 : f32
    %384 = vector.broadcast %cst_150 : f32 to vector<40x1xf32>
    %385 = arith.addf %383, %384 : vector<40x1xf32>
    %386 = math.rsqrt %385 : vector<40x1xf32>
    %387 = vector.broadcast %386 : vector<40x1xf32> to vector<40x128xf32>
    %388 = arith.mulf %378, %387 : vector<40x128xf32>
    %389 = vector.broadcast %367 : vector<1x128xf32> to vector<40x128xf32>
    %390 = arith.mulf %388, %389 : vector<40x128xf32>
    %391 = vector.broadcast %368 : vector<1x128xf32> to vector<40x128xf32>
    %392 = arith.addf %390, %391 : vector<40x128xf32>
    %393 = arith.truncf %392 : vector<40x128xf32> to vector<40x128xbf16>
    %c0_151 = arith.constant 0 : index
    %c0_152 = arith.constant 0 : index
    %394 = vector.load %arg13[%c0_151, %c0_152] : memref<128x128xbf16, #tpu.memory_space<vmem>>, vector<128x128xbf16>
    %cst_153 = arith.constant dense<0.000000e+00> : vector<40x128xf32>
    %395 = tpu.matmul %393, %394, %cst_153 {dimension_numbers = #tpu.dot_dimension_numbers<[1], [0], [0], [1], [0, 0, 1, 1], [], []>} : vector<40x128xbf16>, vector<128x128xbf16>, vector<40x128xf32> -> vector<40x128xf32>
    %396 = vector.broadcast %369 : vector<1x128xf32> to vector<40x128xf32>
    %397 = arith.addf %395, %396 : vector<40x128xf32>
    %398 = arith.negf %397 : vector<40x128xf32>
    %399 = math.exp %398 : vector<40x128xf32>
    %cst_154 = arith.constant 1.000000e+00 : f32
    %400 = vector.broadcast %cst_154 : f32 to vector<40x128xf32>
    %401 = arith.addf %400, %399 : vector<40x128xf32>
    %402 = arith.divf %400, %401 : vector<40x128xf32>
    %403 = arith.mulf %397, %402 : vector<40x128xf32>
    %404 = arith.truncf %403 : vector<40x128xf32> to vector<40x128xbf16>
    %c0_155 = arith.constant 0 : index
    %c0_156 = arith.constant 0 : index
    %405 = vector.load %arg14[%c0_155, %c0_156] : memref<128x128xbf16, #tpu.memory_space<vmem>>, vector<128x128xbf16>
    %cst_157 = arith.constant dense<0.000000e+00> : vector<40x128xf32>
    %406 = tpu.matmul %404, %405, %cst_157 {dimension_numbers = #tpu.dot_dimension_numbers<[1], [0], [0], [1], [0, 0, 1, 1], [], []>} : vector<40x128xbf16>, vector<128x128xbf16>, vector<40x128xf32> -> vector<40x128xf32>
    %407 = vector.broadcast %370 : vector<1x128xf32> to vector<40x128xf32>
    %408 = arith.addf %406, %407 : vector<40x128xf32>
    %cst_158 = arith.constant 5.000000e-01 : f32
    %409 = vector.broadcast %cst_158 : f32 to vector<40x128xf32>
    %410 = arith.mulf %409, %408 : vector<40x128xf32>
    %411 = arith.addf %366, %410 : vector<40x128xf32>
    %c17 = arith.constant 17 : index
    %c0_159 = arith.constant 0 : index
    %412 = vector.load %arg15[%c17, %c0_159] : memref<19x128xf32, #tpu.memory_space<vmem>>, vector<1x128xf32>
    %c18 = arith.constant 18 : index
    %c0_160 = arith.constant 0 : index
    %413 = vector.load %arg15[%c18, %c0_160] : memref<19x128xf32, #tpu.memory_space<vmem>>, vector<1x128xf32>
    %cst_161 = arith.constant dense<0.000000e+00> : vector<40xf32>
    %414 = vector.multi_reduction <add>, %411, %cst_161 [1] : vector<40x128xf32> to vector<40xf32>
    %415 = vector.shape_cast %414 : vector<40xf32> to vector<40x1xf32>
    %cst_162 = arith.constant 3.125000e-02 : f32
    %416 = vector.broadcast %cst_162 : f32 to vector<40x1xf32>
    %417 = arith.mulf %415, %416 : vector<40x1xf32>
    %418 = vector.broadcast %417 : vector<40x1xf32> to vector<40x128xf32>
    %419 = arith.subf %411, %418 : vector<40x128xf32>
    %420 = vector.broadcast %4 : vector<1x128xf32> to vector<40x128xf32>
    %421 = arith.mulf %419, %420 : vector<40x128xf32>
    %422 = arith.mulf %421, %421 : vector<40x128xf32>
    %cst_163 = arith.constant dense<0.000000e+00> : vector<40xf32>
    %423 = vector.multi_reduction <add>, %422, %cst_163 [1] : vector<40x128xf32> to vector<40xf32>
    %424 = vector.shape_cast %423 : vector<40xf32> to vector<40x1xf32>
    %cst_164 = arith.constant 3.125000e-02 : f32
    %425 = vector.broadcast %cst_164 : f32 to vector<40x1xf32>
    %426 = arith.mulf %424, %425 : vector<40x1xf32>
    %cst_165 = arith.constant 9.99999974E-6 : f32
    %427 = vector.broadcast %cst_165 : f32 to vector<40x1xf32>
    %428 = arith.addf %426, %427 : vector<40x1xf32>
    %429 = math.rsqrt %428 : vector<40x1xf32>
    %430 = vector.broadcast %429 : vector<40x1xf32> to vector<40x128xf32>
    %431 = arith.mulf %421, %430 : vector<40x128xf32>
    %432 = vector.broadcast %412 : vector<1x128xf32> to vector<40x128xf32>
    %433 = arith.mulf %431, %432 : vector<40x128xf32>
    %434 = vector.broadcast %413 : vector<1x128xf32> to vector<40x128xf32>
    %435 = arith.addf %433, %434 : vector<40x128xf32>
    %c0_166 = arith.constant 0 : index
    %c0_167 = arith.constant 0 : index
    %c0_168 = arith.constant 0 : index
    %436 = vector.load %arg18[%c0_166, %c0_167, %c0_168] : memref<1x40x128xf32, #tpu.memory_space<vmem>>, vector<1x40x128xf32>
    %437 = vector.shape_cast %436 : vector<1x40x128xf32> to vector<40x128xf32>
    %438 = vector.shape_cast %435 : vector<40x128xf32> to vector<1x40x128xf32>
    tpu.vector_store %arg18[%c0_166, %c0_167, %c0_168], %438 {strides = array<i32>} : memref<1x40x128xf32, #tpu.memory_space<vmem>>, vector<1x40x128xf32>,
    return
  }
  func.func @transform_0(%arg0: i32) -> (i32, i32, i32) {
    %c0_i32 = arith.constant 0 : i32
    %c0_i32_0 = arith.constant 0 : i32
    %c0_i32_1 = arith.constant 0 : i32
    return %arg0, %c0_i32, %c0_i32_0 : i32, i32, i32
  }
  func.func @transform_1(%arg0: i32) -> (i32, i32, i32) {
    %c0_i32 = arith.constant 0 : i32
    %c0_i32_0 = arith.constant 0 : i32
    %c0_i32_1 = arith.constant 0 : i32
    return %arg0, %c0_i32, %c0_i32_0 : i32, i32, i32
  }
  func.func @transform_2(%arg0: i32) -> (i32, i32) {
    %c0_i32 = arith.constant 0 : i32
    %c0_i32_0 = arith.constant 0 : i32
    %c0_i32_1 = arith.constant 0 : i32
    return %c0_i32, %c0_i32_0 : i32, i32
  }
  func.func @transform_3(%arg0: i32) -> (i32, i32) {
    %c0_i32 = arith.constant 0 : i32
    %c0_i32_0 = arith.constant 0 : i32
    %c0_i32_1 = arith.constant 0 : i32
    return %c0_i32, %c0_i32_0 : i32, i32
  }
  func.func @transform_4(%arg0: i32) -> (i32, i32) {
    %c0_i32 = arith.constant 0 : i32
    %c0_i32_0 = arith.constant 0 : i32
    %c0_i32_1 = arith.constant 0 : i32
    return %c0_i32, %c0_i32_0 : i32, i32
  }
  func.func @transform_5(%arg0: i32) -> (i32, i32) {
    %c0_i32 = arith.constant 0 : i32
    %c0_i32_0 = arith.constant 0 : i32
    %c0_i32_1 = arith.constant 0 : i32
    return %c0_i32, %c0_i32_0 : i32, i32
  }
  func.func @transform_6(%arg0: i32) -> (i32, i32) {
    %c0_i32 = arith.constant 0 : i32
    %c0_i32_0 = arith.constant 0 : i32
    %c0_i32_1 = arith.constant 0 : i32
    return %c0_i32, %c0_i32_0 : i32, i32
  }
  func.func @transform_7(%arg0: i32) -> (i32, i32) {
    %c0_i32 = arith.constant 0 : i32
    %c0_i32_0 = arith.constant 0 : i32
    %c0_i32_1 = arith.constant 0 : i32
    return %c0_i32, %c0_i32_0 : i32, i32
  }
  func.func @transform_8(%arg0: i32) -> (i32, i32) {
    %c0_i32 = arith.constant 0 : i32
    %c0_i32_0 = arith.constant 0 : i32
    %c0_i32_1 = arith.constant 0 : i32
    return %c0_i32, %c0_i32_0 : i32, i32
  }
  func.func @transform_9(%arg0: i32) -> (i32, i32) {
    %c0_i32 = arith.constant 0 : i32
    %c0_i32_0 = arith.constant 0 : i32
    %c0_i32_1 = arith.constant 0 : i32
    return %c0_i32, %c0_i32_0 : i32, i32
  }
  func.func @transform_10(%arg0: i32) -> (i32, i32) {
    %c0_i32 = arith.constant 0 : i32
    %c0_i32_0 = arith.constant 0 : i32
    %c0_i32_1 = arith.constant 0 : i32
    return %c0_i32, %c0_i32_0 : i32, i32
  }
  func.func @transform_11(%arg0: i32) -> (i32, i32) {
    %c0_i32 = arith.constant 0 : i32
    %c0_i32_0 = arith.constant 0 : i32
    %c0_i32_1 = arith.constant 0 : i32
    return %c0_i32, %c0_i32_0 : i32, i32
  }
  func.func @transform_12(%arg0: i32) -> (i32, i32) {
    %c0_i32 = arith.constant 0 : i32
    %c0_i32_0 = arith.constant 0 : i32
    %c0_i32_1 = arith.constant 0 : i32
    return %c0_i32, %c0_i32_0 : i32, i32
  }
  func.func @transform_13(%arg0: i32) -> (i32, i32) {
    %c0_i32 = arith.constant 0 : i32
    %c0_i32_0 = arith.constant 0 : i32
    %c0_i32_1 = arith.constant 0 : i32
    return %c0_i32, %c0_i32_0 : i32, i32
  }
  func.func @transform_14(%arg0: i32) -> (i32, i32) {
    %c0_i32 = arith.constant 0 : i32
    %c0_i32_0 = arith.constant 0 : i32
    %c0_i32_1 = arith.constant 0 : i32
    return %c0_i32, %c0_i32_0 : i32, i32
  }
  func.func @transform_15(%arg0: i32) -> (i32, i32) {
    %c0_i32 = arith.constant 0 : i32
    %c0_i32_0 = arith.constant 0 : i32
    %c0_i32_1 = arith.constant 0 : i32
    return %c0_i32, %c0_i32_0 : i32, i32
  }
  func.func @transform_16(%arg0: i32) -> (i32, i32) {
    %c0_i32 = arith.constant 0 : i32
    %c0_i32_0 = arith.constant 0 : i32
    %c0_i32_1 = arith.constant 0 : i32
    return %c0_i32, %c0_i32_0 : i32, i32
  }
  func.func @transform_17(%arg0: i32) -> (i32, i32, i32) {
    %c0_i32 = arith.constant 0 : i32
    %c0_i32_0 = arith.constant 0 : i32
    %c0_i32_1 = arith.constant 0 : i32
    return %arg0, %c0_i32, %c0_i32_0 : i32, i32, i32
  }
}

</mosaic_0001>

<bundles_post_ra>
// kernel: fwd.3
= control target key start
LH: loop header
LB: loop body
LE: loop exit
PB: predicated region body
PF: predicated region fallthrough
CT: control target
= control target key end

     0   :  { %s6301_s24 = smov 0   ;;  %s8240_s0 = inlined_call_operand.vmem [shape: f32[2,40,128], index: 0, kind: input, shape index: {}]   ;;  %s8241_s1 = inlined_call_operand.vmem [shape: f32[2,1,40], index: 1, kind: input, shape index: {}]   ;;  %s8242_s2 = inlined_call_operand.vmem [shape: bf16[128,128], index: 2, kind: input, shape index: {}]   ;;  %s8243_s3 = inlined_call_operand.vmem [shape: bf16[128,128], index: 3, kind: input, shape index: {}]   ;;  %s8244_s4 = inlined_call_operand.vmem [shape: bf16[128,512], index: 4, kind: input, shape index: {}]   ;;  %s8245_s5 = inlined_call_operand.vmem [shape: bf16[128,512], index: 5, kind: input, shape index: {}]   ;;  %s8246_s6 = inlined_call_operand.vmem [shape: bf16[128,512], index: 6, kind: input, shape index: {}]   ;;  %s8247_s7 = inlined_call_operand.vmem [shape: bf16[512,128], index: 7, kind: input, shape index: {}]   ;;  %s8248_s8 = inlined_call_operand.vmem [shape: bf16[128,128], index: 8, kind: input, shape index: {}]   ;;  %s8249_s9 = inlined_call_operand.vmem [shape: bf16[128,128], index: 9, kind: input, shape index: {}]   ;;  %s8250_s10 = inlined_call_operand.vmem [shape: f32[15,128], index: 10, kind: input, shape index: {}]   ;;  %s8251_s11 = inlined_call_operand.vmem [shape: bf16[128,128], index: 11, kind: input, shape index: {}]   ;;  %s8252_s12 = inlined_call_operand.vmem [shape: bf16[128,128], index: 12, kind: input, shape index: {}]   ;;  %s8253_s13 = inlined_call_operand.vmem [shape: bf16[128,128], index: 13, kind: input, shape index: {}]   ;;  %s8254_s14 = inlined_call_operand.vmem [shape: f32[19,128], index: 14, kind: input, shape index: {}]   ;;  %s8255_s15 = inlined_call_operand.vmem [shape: f32[2,128], index: 15, kind: input, shape index: {}]   ;;  %s8256_s16 = inlined_call_operand.vmem [shape: f32[3,512], index: 16, kind: input, shape index: {}]   ;;  %s8257_s17 = inlined_call_operand.vmem [shape: f32[2,40,128], index: 17, kind: output, shape index: {}]  }
   0x1   :  { %8287 = sst [smem:[#allocation20_spill]] %s8240_s0 }
   0x2   :  { %8288 = sst [smem:[#allocation21_spill]] %s8241_s1 }
   0x3 LB: > { %s4864_s25 = sadd.s32 4294967295, %s6206_s24   ;;  %p4868_p0 = scmp.ge.s32.totalorder %s6206_s24, 1  ;;  %s6206_s24 = sphi %s6301_s24, %s27_s24  }
   0x4   : > { %p495_p1 = scmp.lt.s32.totalorder %s6206_s24, 3 }
   0x6   : > { %p496_p2 = pnand %p4868_p0, %p495_p1 }
   0x8   : > { %499 = sbr.rel (%p496_p2) target bundleno = 5662 (0x161e), region = 88 }
   0xd   : > { %p550_p3 = scmp.lt.s32.totalorder %s4864_s25, 1  ;;  %s8289_s29 = sld [smem:[#allocation20_spill]]  ;;  %v8258_v5 = vmov 0.0   ;;  %v5762_v6 = vld [vmem:[%s8242_s2 + $0x38] sm:$0xff]   ;;  %v564_v7 = vlaneseq  ;;  %v5763_v35 = vld [vmem:[%s8242_s2 + $0x30] sm:$0xff]   ;;  %v5764_v36 = vld [vmem:[%s8242_s2 + $0x28] sm:$0xff]  }
   0xe   : > { %5298 = vmatprep.subr.bf16.mxu0 %v8258_v5  ;;  %5326 = vmatprep.subr.bf16.mxu1 %v8258_v5  ;;  %v5765_v37 = vld [vmem:[%s8242_s2 + $0x20] sm:$0xff]   ;;  %v5766_v38 = vld [vmem:[%s8242_s2 + $0x18] sm:$0xff]   ;;  %vm6209_vm1 = vmmov 0   ;;  %v5767_v39 = vld [vmem:[%s8242_s2 + $0x10] sm:$0xff]   ;;  %vm2231_vm2 = vcmask 1043456   ;;  %s8311_s20 = sld [smem:[#allocation21_spill]] }
   0xf   : > { %s8360_s25 = smov (!%p550_p3, %s4864_s25), 1  ;;  %5299 = vmatpush3.bf16.msra.mxu0 %v5762_v6  ;;  %v565_v8 = vand.u32 127, %v564_v7  ;;  %5314 = vmatprep.mubr.msk.bf16.mxu0 %vm6209_vm1, %v8258_v5  ;;  %v5768_v40 = vld [vmem:[%s8242_s2 + $0x8] sm:$0xff]   ;;  %v5769_v41 = vld [vmem:[%s8242_s2] sm:$0xff]   ;;  %vm2163_vm3 = vcmask 326656  }
  0x10   : > { %s5750_s26 = smul.u32 40, %s8360_s25  ;;  %5300 = vmatprep.subr.bf16.mxu0 %v8258_v5  ;;  %5342 = vmatprep.mubr.msk.bf16.mxu1 %vm6209_vm1, %v8258_v5  ;;  %v4872_v59 = vld [vmem:[%s8254_s14] ss:$0 sm:$0xff]  ;;  %v4873_v6 = vld [vmem:[%s8254_s14 + $0x1] ss:$0 sm:$0xff] }
  0x11   : > { %vm566_vm0 = vcmp.lt.s32.totalorder %v565_v8, 32 }
  0x12   : > { %v6340_v13 = vsel %vm566_vm0, 1.0, %v8258_v5  ;;  %s562_s18 = scalar_lea.vmem %s8257_s17, %s5750_s26 }
  0x13   : > { %s554_s0 = scalar_lea.vmem %s8289_s29, %s5750_s26  ;;  %8290 = vst [vmem:[#allocation2_spill] sm:$0xff] %v6340_v13  ;;  %5301 = vmatpush3.bf16.msra.mxu0 %v5763_v35 }
  0x14   : > { %v6317_v0 = vld [vmem:[%s554_s0] sm:$0xff]  ;;  %v6319_v1 = vld [vmem:[%s554_s0 + $0x10] sm:$0xff]  ;;  %v6323_v2 = vld [vmem:[%s554_s0 + $0x8] sm:$0xff]  ;;  %5302 = vmatprep.subr.bf16.mxu0 %v8258_v5  ;;  %s7107_s21 = scalar_lea.vmem %s8311_s20, %s8360_s25 }
  0x15   : > { %584 = vadd.xlane.f32.xlu0 %v6317_v0  ;;  %588 = vadd.xlane.f32.xlu1 %v6319_v1  ;;  %v6325_v3 = vld [vmem:[%s554_s0 + $0x18] sm:$0xff]  ;;  %v6327_v4 = vld [vmem:[%s554_s0 + $0x20] sm:$0xff] }
  0x17   : > { %5303 = vmatpush3.bf16.msra.mxu0 %v5764_v36 }
  0x18   : > { %5304 = vmatprep.subr.bf16.mxu0 %v8258_v5 }
  0x19   : > { %586 = vadd.xlane.f32.xlu0 %v6323_v2  ;;  %590 = vadd.xlane.f32.xlu1 %v6325_v3 }
  0x1b   : > { %5305 = vmatpush3.bf16.msra.mxu0 %v5765_v37 }
  0x1c   : > { %5306 = vmatprep.subr.bf16.mxu0 %v8258_v5 }
  0x1d   : > { %592 = vadd.xlane.f32.xlu0 %v6327_v4 }
  0x1f   : > { %5307 = vmatpush3.bf16.msra.mxu0 %v5766_v38 }
  0x20   : > { %5308 = vmatprep.subr.bf16.mxu0 %v8258_v5 }
  0x23   : > { %5309 = vmatpush3.bf16.msra.mxu0 %v5767_v39 }
  0x24   : > { %5310 = vmatprep.subr.bf16.mxu0 %v8258_v5 }
  0x27   : > { %5311 = vmatpush3.bf16.msra.mxu0 %v5768_v40 }
  0x28   : > { %5312 = vmatprep.subr.bf16.mxu0 %v8258_v5 }
  0x2b   : > { %5313 = vmatpush3.bf16.msra.mxu0 %v5769_v41 }
  0x9e   : > { %v585_v9 = vpop.xlane.xlu0 %584  ;;  %v589_v10 = vpop.xlane.xlu1 %588 }
  0x9f   : > { %v594_v11 = vmul.f32 0.03125, %v585_v9  ;;  %v596_v12 = vmul.f32 0.03125, %v589_v10 }
  0xa1   : > { %v599_v14 = vsub.f32 %v6317_v0, %v594_v11  ;;  %v601_v15 = vsub.f32 %v6319_v1, %v596_v12 }
  0xa2   : > { %v587_v16 = vpop.xlane.xlu0 %586  ;;  %v591_v17 = vpop.xlane.xlu1 %590 }
  0xa3   : > { %v595_v18 = vmul.f32 0.03125, %v587_v16  ;;  %v597_v19 = vmul.f32 0.03125, %v591_v17  ;;  %v6345_v20 = vmul.f32 %v6340_v13, %v599_v14  ;;  %v6348_v21 = vmul.f32 %v6340_v13, %v601_v15 }
  0xa5   : > { %v600_v22 = vsub.f32 %v6323_v2, %v595_v18  ;;  %v602_v23 = vsub.f32 %v6325_v3, %v597_v19  ;;  %v609_v24 = vmul.f32 %v6345_v20, %v6345_v20  ;;  %v611_v27 = vmul.f32 %v6348_v21, %v6348_v21 }
  0xa6   : > { %v593_v25 = vpop.xlane.xlu0 %592 }
  0xa7   : > { %v598_v26 = vmul.f32 0.03125, %v593_v25  ;;  %614 = vadd.xlane.f32.xlu1 %v609_v24  ;;  %v605_v28 = vmul.f32 %v6340_v13, %v600_v22  ;;  %v6358_v29 = vmul.f32 %v6340_v13, %v602_v23 }
  0xa9   : > { %v603_v30 = vsub.f32 %v6327_v4, %v598_v26  ;;  %v610_v31 = vmul.f32 %v605_v28, %v605_v28  ;;  %v612_v32 = vmul.f32 %v6358_v29, %v6358_v29  ;;  %v5770_v26 = vld [vmem:[%s8243_s3 + $0x38] sm:$0xff]  }
  0xaa   : > { %5327 = vmatpush3.bf16.msra.mxu1 %v5770_v26 }
  0xab   : > { %618 = vadd.xlane.f32.xlu1 %v611_v27  ;;  %616 = vadd.xlane.f32.xlu0 %v610_v31  ;;  %v6364_v33 = vmul.f32 %v6340_v13, %v603_v30  ;;  %v5771_v27 = vld [vmem:[%s8243_s3 + $0x30] sm:$0xff]   ;;  %v5774_v30 = vld [vmem:[%s8243_s3 + $0x18] sm:$0xff]  }
  0xac   : > { %5328 = vmatprep.subr.bf16.mxu1 %v8258_v5  ;;  %v5775_v31 = vld [vmem:[%s8243_s3 + $0x10] sm:$0xff]  }
  0xad   : > { %v613_v34 = vmul.f32 %v6364_v33, %v6364_v33 }
  0xae   : > { %5329 = vmatpush3.bf16.msra.mxu1 %v5771_v27 }
  0xaf   : > { %620 = vadd.xlane.f32.xlu0 %v612_v32  ;;  %622 = vadd.xlane.f32.xlu1 %v613_v34  ;;  %v5776_v32 = vld [vmem:[%s8243_s3 + $0x8] sm:$0xff]   ;;  %v4874_v34 = vld [vmem:[%s8255_s15] ss:$0 sm:$0xff] }
  0xb0   : > { %5330 = vmatprep.subr.bf16.mxu1 %v8258_v5 }
 0x130   : > { %v615_v42 = vpop.xlane.xlu1 %614 }
 0x131   : > { %v624_v43 = vmul.f32 0.03125, %v615_v42 }
 0x133   : > { %v629_v44 = vadd.f32 1e-05, %v624_v43 }
 0x134   : > { %v619_v45 = vpop.xlane.xlu1 %618  ;;  %v617_v46 = vpop.xlane.xlu0 %616 }
 0x135   : > { %5994 = vrsqrt.f32 %v629_v44  ;;  %v626_v47 = vmul.f32 0.03125, %v619_v45  ;;  %v625_v48 = vmul.f32 0.03125, %v617_v46 }
 0x137   : > { %v630_v49 = vadd.f32 1e-05, %v625_v48  ;;  %v631_v50 = vadd.f32 1e-05, %v626_v47 }
 0x138   : > { %v623_v51 = vpop.xlane.xlu1 %622  ;;  %v621_v52 = vpop.xlane.xlu0 %620 }
 0x139   : > { %v627_v53 = vmul.f32 0.03125, %v621_v52  ;;  %5996 = vrsqrt.f32 %v630_v49  ;;  %v628_v54 = vmul.f32 0.03125, %v623_v51 }
 0x13a   : > { %5998 = vrsqrt.f32 %v631_v50 }
 0x13b   : > { %v632_v55 = vadd.f32 1e-05, %v627_v53  ;;  %v633_v56 = vadd.f32 1e-05, %v628_v54 }
 0x13d   : > { %6000 = vrsqrt.f32 %v632_v55 }
 0x13e   : > { %6002 = vrsqrt.f32 %v633_v56 }
 0x142   : > { %v5995_v57 = vpop.eup %5994 }
 0x143   : > { %v639_v58 = vmul.f32 %v5995_v57, %v6345_v20 }
 0x145   : > { %v648_v62 = vmul.f32 %v4872_v59, %v639_v58 }
 0x146   : > { %v5997_v60 = vpop.eup %5996 }
 0x147   : > { %v640_v61 = vmul.f32 %v5997_v60, %v605_v28  ;;  %v5999_v63 = vpop.eup %5998  ;;  %v657_v10 = vadd.f32 %v4873_v6, %v648_v62  ;;  %v5772_v28 = vld [vmem:[%s8243_s3 + $0x28] sm:$0xff]  }
 0x148   : > { %v641_v12 = vmul.f32 %v5999_v63, %v6348_v21  ;;  %5331 = vmatpush3.bf16.msra.mxu1 %v5772_v28 }
 0x149   : > { %v649_v8 = vmul.f32 %v4872_v59, %v640_v61  ;;  %5332 = vmatprep.subr.bf16.mxu1 %v8258_v5 }
 0x14a   : > { %v6001_v9 = vpop.eup %6000  ;;  %v650_v18 = vmul.f32 %v4872_v59, %v641_v12 }
 0x14b   : > { %v658_v11 = vadd.f32 %v4873_v6, %v649_v8  ;;  %v642_v14 = vmul.f32 %v6001_v9, %v6358_v29  ;;  %v6003_v17 = vpop.eup %6002  ;;  %v5773_v29 = vld [vmem:[%s8243_s3 + $0x20] sm:$0xff]  }
 0x14c   : > { %v643_v20 = vmul.f32 %v6003_v17, %v6364_v33  ;;  %v659_v22 = vadd.f32 %v4873_v6, %v650_v18  ;;  %5333 = vmatpush3.bf16.msra.mxu1 %v5773_v29  ;;  %v5777_v33 = vld [vmem:[%s8243_s3] sm:$0xff]  }
 0x14d   : > { %v662_v15 = vpack.c.bf16 %v658_v11, %v657_v10  ;;  %v651_v16 = vmul.f32 %v4872_v59, %v642_v14  ;;  %5334 = vmatprep.subr.bf16.mxu1 %v8258_v5 }
 0x14e   : > { %v652_v24 = vmul.f32 %v4872_v59, %v643_v20 }
 0x14f   : > { %5315 = vmatmul.mubr.bf16.vlgmr.msra.gmra.mxu0 %v662_v15  ;;  %v660_v19 = vadd.f32 %v4873_v6, %v651_v16 }
 0x150   : > { %5318 = vmatprep.mubr.msk.bf16.mxu0 %vm6209_vm1, %v8258_v5  ;;  %v661_v21 = vadd.f32 %v4873_v6, %v652_v24  ;;  %5335 = vmatpush3.bf16.msra.mxu1 %v5774_v30 }
 0x151   : > { %v663_v23 = vpack.c.bf16 %v660_v19, %v659_v22  ;;  %5336 = vmatprep.subr.bf16.mxu1 %v8258_v5 }
 0x152   : > { %v664_v25 = vpack.c.bf16 %v661_v21, %v661_v21  ;;  %v4888_v21 = vld [vmem:[%s8254_s14 + $0x2] ss:$0 sm:$0xff] }
 0x154   : > { %5337 = vmatpush3.bf16.msra.mxu1 %v5775_v31 }
 0x155   : > { %5338 = vmatprep.subr.bf16.mxu1 %v8258_v5 }
 0x157   : > { %5319 = vmatmul.mubr.bf16.gmra.mxu0 %v663_v23 }
 0x158   : > { %5322 = vmatprep.mubr.msk.bf16.mxu0 %vm6209_vm1, %v8258_v5  ;;  %5339 = vmatpush3.bf16.msra.mxu1 %v5776_v32 }
 0x159   : > { %5340 = vmatprep.subr.bf16.mxu1 %v8258_v5 }
 0x15c   : > { %5341 = vmatpush3.bf16.msra.mxu1 %v5777_v33 }
 0x15f   : > { %5323 = vmatmul.mubr.bf16.gmra.mxu0 %v664_v25 }
 0x20f   : > { %v767_v35 = vpop.f32.mrf.mxu0 }
 0x210   : > { %v768_v36 = vadd.f32 %v4874_v34, %v767_v35 }
 0x211   : > { %v5316_v37 = vpop.f32.mrf.mxu0 }
 0x212   : > { %v4883_v38 = vmul.f32 -1.442695, %v768_v36 }
 0x213   : > { %v770_v39 = vpop.f32.mrf.mxu0 }
 0x214   : > { %6004 = vpow2.f32 %v4883_v38  ;;  %v771_v40 = vadd.f32 %v4874_v34, %v770_v39 }
 0x215   : > { %v5317_v41 = vpop.f32.mrf.mxu0 }
 0x216   : > { %v4884_v42 = vmul.f32 -1.442695, %v771_v40 }
 0x217   : > { %v775_v43 = vpop.f32.mrf.mxu0 }
 0x218   : > { %6006 = vpow2.f32 %v4884_v42  ;;  %v776_v44 = vadd.f32 %v4874_v34, %v775_v43 }
 0x219   : > { %v5320_v45 = vpop.f32.mrf.mxu0 }
 0x21a   : > { %v4885_v46 = vmul.f32 -1.442695, %v776_v44 }
 0x21b   : > { %v778_v47 = vpop.f32.mrf.mxu0 }
 0x21c   : > { %6008 = vpow2.f32 %v4885_v46  ;;  %v779_v48 = vadd.f32 %v4874_v34, %v778_v47 }
 0x21d   : > { %v5321_v49 = vpop.f32.mrf.mxu0 }
 0x21e   : > { %v4886_v50 = vmul.f32 -1.442695, %v779_v48  ;;  %v5778_v49 = vld [vmem:[%s8244_s4 + $0xe0] ss:$16 sps:$4 sm:$0xff]  }
 0x21f   : > { %v783_v51 = vpop.f32.mrf.mxu0 }
 0x220   : > { %6010 = vpow2.f32 %v4886_v50  ;;  %v784_v52 = vadd.f32 %v4874_v34, %v783_v51  ;;  %v5781_v50 = vld [vmem:[%s8244_s4 + $0xe8] ss:$16 sps:$4 sm:$0xff]  }
 0x221   : > { %v6005_v53 = vpop.eup %6004  ;;  %v5324_v54 = vpop.f32.mrf.mxu0 }
 0x222   : > { %v804_v55 = vadd.f32 1.0, %v6005_v53  ;;  %v4887_v56 = vmul.f32 -1.442695, %v784_v52 }
 0x223   : > { %v786_v57 = vpop.f32.mrf.mxu0 }
 0x224   : > { %6012 = vpow2.f32 %v4887_v56 }
 0x225   : > { %v6007_v58 = vpop.eup %6006  ;;  %v5325_v59 = vpop.f32.mrf.mxu0  ;;  %6014 = vrcp.f32 %v804_v55 }
 0x226   : > { %v805_v60 = vadd.f32 1.0, %v6007_v58 }
 0x228   : > { %6016 = vrcp.f32 %v805_v60 }
 0x229   : > { %v6009_v61 = vpop.eup %6008 }
 0x22a   : > { %v806_v62 = vadd.f32 1.0, %v6009_v61 }
 0x22c   : > { %6018 = vrcp.f32 %v806_v62 }
 0x22d   : > { %v6011_v63 = vpop.eup %6010 }
 0x22e   : > { %v807_v6 = vadd.f32 1.0, %v6011_v63 }
 0x230   : > { %6020 = vrcp.f32 %v807_v6 }
 0x231   : > { %v6013_v8 = vpop.eup %6012 }
 0x232   : > { %v6015_v9 = vpop.eup %6014  ;;  %v808_v10 = vadd.f32 1.0, %v6013_v8 }
 0x233   : > { %v819_v12 = vmul.f32 %v6015_v9, %v768_v36 }
 0x234   : > { %6022 = vrcp.f32 %v808_v10 }
 0x235   : > { %v6017_v11 = vpop.eup %6016 }
 0x236   : > { %v820_v14 = vmul.f32 %v6017_v11, %v771_v40 }
 0x238   : > { %v824_v15 = vpack.c.bf16 %v820_v14, %v819_v12 }
 0x239   : > { %v6019_v16 = vpop.eup %6018 }
 0x23a   : > { %5343 = vmatmul.mubr.bf16.vlgmr.msra.gmra.mxu1 %v824_v15  ;;  %v821_v18 = vmul.f32 %v6019_v16, %v776_v44 }
 0x23b   : > { %5346 = vmatprep.mubr.msk.bf16.mxu1 %vm6209_vm1, %v8258_v5 }
 0x23d   : > { %v6021_v17 = vpop.eup %6020 }
 0x23e   : > { %v822_v19 = vmul.f32 %v6021_v17, %v779_v48 }
 0x240   : > { %v825_v20 = vpack.c.bf16 %v822_v19, %v821_v18  ;;  %v5786_v18 = vld [vmem:[%s8244_s4 + $0xc4] ss:$16 sps:$4 sm:$0xff]   ;;  %v5789_v19 = vld [vmem:[%s8244_s4 + $0xcc] ss:$16 sps:$4 sm:$0xff]  }
 0x241   : > { %v6023_v22 = vpop.eup %6022 }
 0x242   : > { %5347 = vmatmul.mubr.bf16.gmra.mxu1 %v825_v20  ;;  %v823_v23 = vmul.f32 %v6023_v22, %v784_v52  ;;  %v5784_v20 = vld [vmem:[%s8244_s4 + $0xc0] ss:$16 sps:$4 sm:$0xff]   ;;  %v5787_v22 = vld [vmem:[%s8244_s4 + $0xc8] ss:$16 sps:$4 sm:$0xff]  }
 0x243   : > { %5350 = vmatprep.mubr.msk.bf16.mxu1 %vm6209_vm1, %v8258_v5 }
 0x244   : > { %v826_v24 = vpack.c.bf16 %v823_v23, %v823_v23 }
 0x24a   : > { %5351 = vmatmul.mubr.bf16.gmra.mxu1 %v826_v24 }
 0x2fa   : > { %v929_v25 = vpop.f32.mrf.mxu1 }
 0x2fb   : > { %v930_v26 = vadd.f32 %v4888_v21, %v929_v25  ;;  %v5795_v25 = vld [vmem:[%s8244_s4 + $0xac] ss:$16 sps:$4 sm:$0xff]  }
 0x2fc   : > { %v5344_v27 = vpop.f32.mrf.mxu1 }
 0x2fd   : > { %v951_v28 = vmul.f32 0.5, %v930_v26  ;;  %v5790_v26 = vld [vmem:[%s8244_s4 + $0xa0] ss:$16 sps:$4 sm:$0xff]   ;;  %v5793_v27 = vld [vmem:[%s8244_s4 + $0xa8] ss:$16 sps:$4 sm:$0xff]  }
 0x2fe   : > { %v932_v29 = vpop.f32.mrf.mxu1 }
 0x2ff   : > { %v6455_v30 = vadd.f32 %v951_v28, %v6317_v0  ;;  %v933_v31 = vadd.f32 %v4888_v21, %v932_v29  ;;  %v5798_v28 = vld [vmem:[%s8244_s4 + $0x84] ss:$16 sps:$4 sm:$0xff]   ;;  %v5801_v29 = vld [vmem:[%s8244_s4 + $0x8c] ss:$16 sps:$4 sm:$0xff]  }
 0x300   : > { %v5345_v32 = vpop.f32.mrf.mxu1 }
 0x301   : > { %8291 = vst [vmem:[#allocation3_spill] sm:$0xff] %v6455_v30  ;;  %v952_v33 = vmul.f32 0.5, %v933_v31  ;;  %963 = vadd.xlane.f32.xlu0 %v6455_v30  ;;  %v5796_v31 = vld [vmem:[%s8244_s4 + $0x80] ss:$16 sps:$4 sm:$0xff]   ;;  %v5799_v32 = vld [vmem:[%s8244_s4 + $0x88] ss:$16 sps:$4 sm:$0xff]  }
 0x302   : > { %v937_v34 = vpop.f32.mrf.mxu1 }
 0x303   : > { %v6459_v35 = vadd.f32 %v952_v33, %v6323_v2  ;;  %v938_v36 = vadd.f32 %v4888_v21, %v937_v34  ;;  %v5804_v33 = vld [vmem:[%s8244_s4 + $0x64] ss:$16 sps:$4 sm:$0xff]   ;;  %v5807_v34 = vld [vmem:[%s8244_s4 + $0x6c] ss:$16 sps:$4 sm:$0xff]  }
 0x304   : > { %v5348_v37 = vpop.f32.mrf.mxu1 }
 0x305   : > { %8292 = vst [vmem:[#allocation4_spill] sm:$0xff] %v6459_v35  ;;  %v953_v38 = vmul.f32 0.5, %v938_v36  ;;  %965 = vadd.xlane.f32.xlu1 %v6459_v35  ;;  %v5802_v36 = vld [vmem:[%s8244_s4 + $0x60] ss:$16 sps:$4 sm:$0xff]   ;;  %v5805_v37 = vld [vmem:[%s8244_s4 + $0x68] ss:$16 sps:$4 sm:$0xff]  }
 0x306   : > { %v940_v39 = vpop.f32.mrf.mxu1 }
 0x307   : > { %v6463_v40 = vadd.f32 %v953_v38, %v6319_v1  ;;  %v941_v0 = vadd.f32 %v4888_v21, %v940_v39  ;;  %v5810_v38 = vld [vmem:[%s8244_s4 + $0x44] ss:$16 sps:$4 sm:$0xff]   ;;  %v5813_v39 = vld [vmem:[%s8244_s4 + $0x4c] ss:$16 sps:$4 sm:$0xff]  }
 0x308   : > { %v5349_v41 = vpop.f32.mrf.mxu1 }
 0x309   : > { %8293 = vst [vmem:[#allocation5_spill] sm:$0xff] %v6463_v40  ;;  %v954_v42 = vmul.f32 0.5, %v941_v0  ;;  %967 = vadd.xlane.f32.xlu0 %v6463_v40  ;;  %v5808_v0 = vld [vmem:[%s8244_s4 + $0x40] ss:$16 sps:$4 sm:$0xff]   ;;  %v5811_v41 = vld [vmem:[%s8244_s4 + $0x48] ss:$16 sps:$4 sm:$0xff]  }
 0x30a   : > { %v945_v43 = vpop.f32.mrf.mxu1 }
 0x30b   : > { %v6467_v44 = vadd.f32 %v954_v42, %v6325_v3  ;;  %v946_v2 = vadd.f32 %v4888_v21, %v945_v43  ;;  %v5780_v3 = vld [vmem:[%s8244_s4 + $0xe4] ss:$16 sps:$4 sm:$0xff]   ;;  %v5819_v43 = vld [vmem:[%s8244_s4 + $0x2c] ss:$16 sps:$4 sm:$0xff]  }
 0x30c   : > { %v5352_v45 = vpop.f32.mrf.mxu1  ;;  %1258 = vmatprep.subr.bf16.mxu0 %v5780_v3  ;;  %v5792_v21 = vld [vmem:[%s8244_s4 + $0xa4] ss:$16 sps:$4 sm:$0xff]  }
 0x30d   : > { %8294 = vst [vmem:[#allocation6_spill] sm:$0xff] %v6467_v44  ;;  %v955_v46 = vmul.f32 0.5, %v946_v2  ;;  %969 = vadd.xlane.f32.xlu1 %v6467_v44  ;;  %1259 = vmatpush1.bf16.msra.mxu0 %v5778_v49  ;;  %v5816_v42 = vld [vmem:[%s8244_s4 + $0x24] ss:$16 sps:$4 sm:$0xff]   ;;  %v5814_v2 = vld [vmem:[%s8244_s4 + $0x20] ss:$16 sps:$4 sm:$0xff]  }
 0x30e   : > { %v948_v47 = vpop.f32.mrf.mxu1  ;;  %1260 = vmatprep.subr.bf16.mxu0 %v5786_v18  ;;  %v5817_v45 = vld [vmem:[%s8244_s4 + $0x28] ss:$16 sps:$4 sm:$0xff]   ;;  %v5828_v3 = vld [vmem:[%s8245_s5 + $0xe4] ss:$16 sps:$4 sm:$0xff]  }
 0x30f   : > { %v6471_v48 = vadd.f32 %v955_v46, %v6327_v4  ;;  %v5783_v4 = vld [vmem:[%s8244_s4 + $0xec] ss:$16 sps:$4 sm:$0xff]   ;;  %v5822_v46 = vld [vmem:[%s8244_s4 + $0x4] ss:$16 sps:$4 sm:$0xff]   ;;  %v5823_v49 = vld [vmem:[%s8244_s4 + $0x8] ss:$16 sps:$4 sm:$0xff]  }
 0x310   : > { %v5353_v1 = vpop.f32.mrf.mxu1  ;;  %1319 = vmatprep.subr.bf16.mxu1 %v5783_v4  ;;  %v5825_v47 = vld [vmem:[%s8244_s4 + $0xc] ss:$16 sps:$4 sm:$0xff]   ;;  %v6210_v4 = vmov 0  }
 0x311   : > { %8295 = vst [vmem:[#allocation7_spill] sm:$0xff] %v6471_v48  ;;  %971 = vadd.xlane.f32.xlu0 %v6471_v48  ;;  %1320 = vmatpush1.bf16.msra.mxu1 %v5781_v50  ;;  %v5820_v1 = vld [vmem:[%s8244_s4] ss:$16 sps:$4 sm:$0xff]   ;;  %v5831_v50 = vld [vmem:[%s8245_s5 + $0xec] ss:$16 sps:$4 sm:$0xff]  }
 0x312   : > { %1321 = vmatprep.subr.bf16.mxu1 %v5789_v19  ;;  %1261 = vmatpush1.bf16.msra.mxu0 %v5784_v20  ;;  %v4898_v20 = vld [vmem:[%s8254_s14 + $0x4] ss:$0 sm:$0xff] }
 0x313   : > { %1262 = vmatprep.subr.bf16.mxu0 %v5792_v21  ;;  %1290 = vmatprep.mubr.bf16.mxu0 %v6210_v4 }
 0x314   : > { %1351 = vmatprep.mubr.bf16.mxu1 %v6210_v4 }
 0x315   : > { %1322 = vmatpush1.bf16.msra.mxu1 %v5787_v22 }
 0x316   : > { %1323 = vmatprep.subr.bf16.mxu1 %v5795_v25  ;;  %1263 = vmatpush1.bf16.msra.mxu0 %v5790_v26  ;;  %v5826_v26 = vld [vmem:[%s8245_s5 + $0xe0] ss:$16 sps:$4 sm:$0xff]  }
 0x317   : > { %1264 = vmatprep.subr.bf16.mxu0 %v5798_v28 }
 0x319   : > { %1324 = vmatpush1.bf16.msra.mxu1 %v5793_v27  ;;  %v5829_v27 = vld [vmem:[%s8245_s5 + $0xe8] ss:$16 sps:$4 sm:$0xff]  }
 0x31a   : > { %1325 = vmatprep.subr.bf16.mxu1 %v5801_v29  ;;  %1265 = vmatpush1.bf16.msra.mxu0 %v5796_v31 }
 0x31b   : > { %1266 = vmatprep.subr.bf16.mxu0 %v5804_v33  ;;  %v5832_v33 = vld [vmem:[%s8245_s5 + $0xc0] ss:$16 sps:$4 sm:$0xff]  }
 0x31d   : > { %1326 = vmatpush1.bf16.msra.mxu1 %v5799_v32 }
 0x31e   : > { %1327 = vmatprep.subr.bf16.mxu1 %v5807_v34  ;;  %1267 = vmatpush1.bf16.msra.mxu0 %v5802_v36  ;;  %v5835_v34 = vld [vmem:[%s8245_s5 + $0xc8] ss:$16 sps:$4 sm:$0xff]  }
 0x31f   : > { %1268 = vmatprep.subr.bf16.mxu0 %v5810_v38 }
 0x321   : > { %1328 = vmatpush1.bf16.msra.mxu1 %v5805_v37  ;;  %v5843_v37 = vld [vmem:[%s8245_s5 + $0xac] ss:$16 sps:$4 sm:$0xff]  }
 0x322   : > { %1329 = vmatprep.subr.bf16.mxu1 %v5813_v39  ;;  %1269 = vmatpush1.bf16.msra.mxu0 %v5808_v0 }
 0x323   : > { %1270 = vmatprep.subr.bf16.mxu0 %v5816_v42  ;;  %v5838_v42 = vld [vmem:[%s8245_s5 + $0xa0] ss:$16 sps:$4 sm:$0xff]  }
 0x325   : > { %1330 = vmatpush1.bf16.msra.mxu1 %v5811_v41 }
 0x326   : > { %1331 = vmatprep.subr.bf16.mxu1 %v5819_v43  ;;  %1271 = vmatpush1.bf16.msra.mxu0 %v5814_v2  ;;  %v5841_v43 = vld [vmem:[%s8245_s5 + $0xa8] ss:$16 sps:$4 sm:$0xff]  }
 0x327   : > { %1272 = vmatprep.subr.bf16.mxu0 %v5822_v46  ;;  %v5849_v46 = vld [vmem:[%s8245_s5 + $0x8c] ss:$16 sps:$4 sm:$0xff]  }
 0x329   : > { %1332 = vmatpush1.bf16.msra.mxu1 %v5817_v45 }
 0x32a   : > { %1333 = vmatprep.subr.bf16.mxu1 %v5825_v47  ;;  %1273 = vmatpush1.bf16.msra.mxu0 %v5820_v1  ;;  %v5844_v47 = vld [vmem:[%s8245_s5 + $0x80] ss:$16 sps:$4 sm:$0xff]   ;;  %v5847_v1 = vld [vmem:[%s8245_s5 + $0x88] ss:$16 sps:$4 sm:$0xff]  }
 0x32b   : > { %1595 = vmatprep.subr.bf16.mxu0 %v5828_v3  ;;  %v5855_v3 = vld [vmem:[%s8245_s5 + $0x6c] ss:$16 sps:$4 sm:$0xff]  }
 0x32d   : > { %1334 = vmatpush1.bf16.msra.mxu1 %v5823_v49  ;;  %v5852_v49 = vld [vmem:[%s8245_s5 + $0x64] ss:$16 sps:$4 sm:$0xff]  }
 0x32e   : > { %1656 = vmatprep.subr.bf16.mxu1 %v5831_v50 }
 0x38a   : > { %v964_v51 = vpop.xlane.xlu0 %963 }
 0x38b   : > { %v973_v52 = vmul.f32 0.03125, %v964_v51 }
 0x38d   : > { %v978_v53 = vsub.f32 %v6455_v30, %v973_v52 }
 0x38e   : > { %v966_v54 = vpop.xlane.xlu1 %965 }
 0x38f   : > { %v974_v55 = vmul.f32 0.03125, %v966_v54  ;;  %v6488_v56 = vmul.f32 %v6340_v13, %v978_v53 }
 0x391   : > { %v979_v57 = vsub.f32 %v6459_v35, %v974_v55  ;;  %v988_v58 = vmul.f32 %v6488_v56, %v6488_v56 }
 0x392   : > { %v968_v59 = vpop.xlane.xlu0 %967 }
 0x393   : > { %v975_v60 = vmul.f32 0.03125, %v968_v59  ;;  %993 = vadd.xlane.f32.xlu1 %v988_v58  ;;  %v6494_v61 = vmul.f32 %v6340_v13, %v979_v57 }
 0x395   : > { %v980_v62 = vsub.f32 %v6463_v40, %v975_v60  ;;  %v989_v63 = vmul.f32 %v6494_v61, %v6494_v61 }
 0x396   : > { %v970_v6 = vpop.xlane.xlu1 %969 }
 0x397   : > { %v976_v8 = vmul.f32 0.03125, %v970_v6  ;;  %995 = vadd.xlane.f32.xlu0 %v989_v63  ;;  %v6500_v9 = vmul.f32 %v6340_v13, %v980_v62 }
 0x399   : > { %v981_v10 = vsub.f32 %v6467_v44, %v976_v8  ;;  %v990_v11 = vmul.f32 %v6500_v9, %v6500_v9 }
 0x39a   : > { %v972_v12 = vpop.xlane.xlu0 %971 }
 0x39b   : > { %v977_v14 = vmul.f32 0.03125, %v972_v12  ;;  %997 = vadd.xlane.f32.xlu1 %v990_v11  ;;  %v6506_v15 = vmul.f32 %v6340_v13, %v981_v10 }
 0x39d   : > { %v982_v16 = vsub.f32 %v6471_v48, %v977_v14  ;;  %v991_v17 = vmul.f32 %v6506_v15, %v6506_v15 }
 0x39f   : > { %999 = vadd.xlane.f32.xlu0 %v991_v17  ;;  %v6524_v23 = vmul.f32 %v6340_v13, %v982_v16  ;;  %v4897_v16 = vld [vmem:[%s8254_s14 + $0x3] ss:$0 sm:$0xff] }
 0x3a1   : > { %v992_v24 = vmul.f32 %v6524_v23, %v6524_v23 }
 0x3a3   : > { %1001 = vadd.xlane.f32.xlu1 %v992_v24 }
 0x41c   : > { %v994_v51 = vpop.xlane.xlu1 %993 }
 0x41d   : > { %v1003_v52 = vmul.f32 0.03125, %v994_v51  ;;  %v5850_v51 = vld [vmem:[%s8245_s5 + $0x60] ss:$16 sps:$4 sm:$0xff]  }
 0x41f   : > { %v1008_v53 = vadd.f32 1e-05, %v1003_v52  ;;  %v5853_v52 = vld [vmem:[%s8245_s5 + $0x68] ss:$16 sps:$4 sm:$0xff]  }
 0x420   : > { %v996_v54 = vpop.xlane.xlu0 %995 }
 0x421   : > { %6024 = vrsqrt.f32 %v1008_v53  ;;  %v1004_v55 = vmul.f32 0.03125, %v996_v54  ;;  %v5858_v54 = vld [vmem:[%s8245_s5 + $0x44] ss:$16 sps:$4 sm:$0xff]  }
 0x423   : > { %v1009_v57 = vadd.f32 1e-05, %v1004_v55  ;;  %v5861_v55 = vld [vmem:[%s8245_s5 + $0x4c] ss:$16 sps:$4 sm:$0xff]  }
 0x424   : > { %v998_v58 = vpop.xlane.xlu1 %997 }
 0x425   : > { %6026 = vrsqrt.f32 %v1009_v57  ;;  %v1005_v59 = vmul.f32 0.03125, %v998_v58  ;;  %v5856_v57 = vld [vmem:[%s8245_s5 + $0x40] ss:$16 sps:$4 sm:$0xff]   ;;  %v5859_v58 = vld [vmem:[%s8245_s5 + $0x48] ss:$16 sps:$4 sm:$0xff]  }
 0x427   : > { %v1010_v60 = vadd.f32 1e-05, %v1005_v59  ;;  %v5864_v59 = vld [vmem:[%s8245_s5 + $0x24] ss:$16 sps:$4 sm:$0xff]  }
 0x428   : > { %v1000_v62 = vpop.xlane.xlu0 %999 }
 0x429   : > { %6028 = vrsqrt.f32 %v1010_v60  ;;  %v1006_v63 = vmul.f32 0.03125, %v1000_v62  ;;  %v5867_v60 = vld [vmem:[%s8245_s5 + $0x2c] ss:$16 sps:$4 sm:$0xff]   ;;  %v5862_v62 = vld [vmem:[%s8245_s5 + $0x20] ss:$16 sps:$4 sm:$0xff]  }
 0x42b   : > { %v1011_v6 = vadd.f32 1e-05, %v1006_v63  ;;  %v5865_v63 = vld [vmem:[%s8245_s5 + $0x28] ss:$16 sps:$4 sm:$0xff]  }
 0x42c   : > { %v1002_v8 = vpop.xlane.xlu1 %1001 }
 0x42d   : > { %6030 = vrsqrt.f32 %v1011_v6  ;;  %v1007_v10 = vmul.f32 0.03125, %v1002_v8  ;;  %v5870_v6 = vld [vmem:[%s8245_s5 + $0x4] ss:$16 sps:$4 sm:$0xff]   ;;  %v5873_v8 = vld [vmem:[%s8245_s5 + $0xc] ss:$16 sps:$4 sm:$0xff]  }
 0x42e   : > { %v6025_v11 = vpop.eup %6024 }
 0x42f   : > { %v1018_v12 = vmul.f32 %v6025_v11, %v6488_v56  ;;  %v1012_v14 = vadd.f32 1e-05, %v1007_v10  ;;  %v5868_v10 = vld [vmem:[%s8245_s5] ss:$16 sps:$4 sm:$0xff]   ;;  %v5871_v11 = vld [vmem:[%s8245_s5 + $0x8] ss:$16 sps:$4 sm:$0xff]  }
 0x431   : > { %6032 = vrsqrt.f32 %v1012_v14  ;;  %v1027_v18 = vmul.f32 %v4897_v16, %v1018_v12  ;;  %v5876_v12 = vld [vmem:[%s8246_s6 + $0xe4] ss:$16 sps:$4 sm:$0xff]   ;;  %v5879_v14 = vld [vmem:[%s8246_s6 + $0xec] ss:$16 sps:$4 sm:$0xff]  }
 0x432   : > { %v6027_v17 = vpop.eup %6026 }
 0x433   : > { %v1019_v19 = vmul.f32 %v6027_v17, %v6494_v61  ;;  %v1036_v25 = vadd.f32 %v4898_v20, %v1027_v18  ;;  %v5834_v61 = vld [vmem:[%s8245_s5 + $0xc4] ss:$16 sps:$4 sm:$0xff]   ;;  %v5877_v17 = vld [vmem:[%s8246_s6 + $0xe8] ss:$16 sps:$4 sm:$0xff]  }
 0x434   : > { %v5882_v18 = vld [vmem:[%s8246_s6 + $0xc4] ss:$16 sps:$4 sm:$0xff]  }
 0x435   : > { %v1028_v22 = vmul.f32 %v4897_v16, %v1019_v19  ;;  %v5885_v19 = vld [vmem:[%s8246_s6 + $0xcc] ss:$16 sps:$4 sm:$0xff]  }
 0x436   : > { %v6029_v24 = vpop.eup %6028 }
 0x437   : > { %v1020_v21 = vmul.f32 %v6029_v24, %v6500_v9  ;;  %v1037_v56 = vadd.f32 %v4898_v20, %v1028_v22  ;;  %v5837_v9 = vld [vmem:[%s8245_s5 + $0xcc] ss:$16 sps:$4 sm:$0xff]   ;;  %v5883_v22 = vld [vmem:[%s8246_s6 + $0xc8] ss:$16 sps:$4 sm:$0xff]   ;;  %v5888_v24 = vld [vmem:[%s8246_s6 + $0xa4] ss:$16 sps:$4 sm:$0xff]  }
 0x439   : > { %v6623_v28 = vpack.c.bf16 %v1037_v56, %v1036_v25  ;;  %v1029_v31 = vmul.f32 %v4897_v16, %v1020_v21  ;;  %v5891_v21 = vld [vmem:[%s8246_s6 + $0xac] ss:$16 sps:$4 sm:$0xff]   ;;  %v5886_v25 = vld [vmem:[%s8246_s6 + $0xa0] ss:$16 sps:$4 sm:$0xff]   ;;  %v5889_v56 = vld [vmem:[%s8246_s6 + $0xa8] ss:$16 sps:$4 sm:$0xff]  }
 0x43a   : > { %v6031_v29 = vpop.eup %6030 }
 0x43b   : > { %v1021_v32 = vmul.f32 %v6031_v29, %v6506_v15  ;;  %1291 = vmatmul.mubr.bf16.vlgmr.msra.gmra.mxu0 %v6623_v28  ;;  %1352 = vmatmul.mubr.bf16.vlgmr.msra.gmra.mxu1 %v6623_v28  ;;  %v5840_v15 = vld [vmem:[%s8245_s5 + $0xa4] ss:$16 sps:$4 sm:$0xff]   ;;  %v1038_v0 = vadd.f32 %v4898_v20, %v1029_v31  ;;  %v5903_v31 = vld [vmem:[%s8246_s6 + $0x6c] ss:$16 sps:$4 sm:$0xff]  }
 0x43c   : > { %1596 = vmatpush1.bf16.msra.mxu0 %v5826_v26  ;;  %1657 = vmatpush1.bf16.msra.mxu1 %v5829_v27  ;;  %v5894_v26 = vld [vmem:[%s8246_s6 + $0x84] ss:$16 sps:$4 sm:$0xff]   ;;  %v5897_v27 = vld [vmem:[%s8246_s6 + $0x8c] ss:$16 sps:$4 sm:$0xff]  }
 0x43d   : > { %v1030_v36 = vmul.f32 %v4897_v16, %v1021_v32  ;;  %1597 = vmatprep.subr.bf16.mxu0 %v5834_v61  ;;  %1658 = vmatprep.subr.bf16.mxu1 %v5837_v9  ;;  %v5892_v61 = vld [vmem:[%s8246_s6 + $0x80] ss:$16 sps:$4 sm:$0xff]   ;;  %v5895_v9 = vld [vmem:[%s8246_s6 + $0x88] ss:$16 sps:$4 sm:$0xff]   ;;  %v5900_v29 = vld [vmem:[%s8246_s6 + $0x64] ss:$16 sps:$4 sm:$0xff]  }
 0x43e   : > { %v6033_v38 = vpop.eup %6032  ;;  %1300 = vmatprep.mubr.bf16.mxu0 %v6210_v4  ;;  %1361 = vmatprep.mubr.bf16.mxu1 %v6210_v4  ;;  %v5898_v32 = vld [vmem:[%s8246_s6 + $0x60] ss:$16 sps:$4 sm:$0xff]  }
 0x43f   : > { %v1022_v39 = vmul.f32 %v6033_v38, %v6524_v23  ;;  %v1039_v41 = vadd.f32 %v4898_v20, %v1030_v36  ;;  %v5846_v23 = vld [vmem:[%s8245_s5 + $0x84] ss:$16 sps:$4 sm:$0xff]   ;;  %v5909_v36 = vld [vmem:[%s8246_s6 + $0x4c] ss:$16 sps:$4 sm:$0xff]  }
 0x440   : > { %1598 = vmatpush1.bf16.msra.mxu0 %v5832_v33  ;;  %1659 = vmatpush1.bf16.msra.mxu1 %v5835_v34  ;;  %v5901_v33 = vld [vmem:[%s8246_s6 + $0x68] ss:$16 sps:$4 sm:$0xff]   ;;  %v5906_v34 = vld [vmem:[%s8246_s6 + $0x44] ss:$16 sps:$4 sm:$0xff]  }
 0x441   : > { %v1031_v2 = vmul.f32 %v4897_v16, %v1022_v39  ;;  %1599 = vmatprep.subr.bf16.mxu0 %v5840_v15  ;;  %1660 = vmatprep.subr.bf16.mxu1 %v5843_v37  ;;  %v6655_v45 = vpack.c.bf16 %v1039_v41, %v1038_v0  ;;  %v5874_v16 = vld [vmem:[%s8246_s6 + $0xe0] ss:$16 sps:$4 sm:$0xff]   ;;  %v5907_v37 = vld [vmem:[%s8246_s6 + $0x48] ss:$16 sps:$4 sm:$0xff]   ;;  %v5912_v38 = vld [vmem:[%s8246_s6 + $0x24] ss:$16 sps:$4 sm:$0xff]  }
 0x442   : > { %v5904_v15 = vld [vmem:[%s8246_s6 + $0x40] ss:$16 sps:$4 sm:$0xff]   ;;  %v5915_v39 = vld [vmem:[%s8246_s6 + $0x2c] ss:$16 sps:$4 sm:$0xff]   ;;  %v5913_v41 = vld [vmem:[%s8246_s6 + $0x28] ss:$16 sps:$4 sm:$0xff]  }
 0x443   : > { %1301 = vmatmul.mubr.bf16.gmra.mxu0 %v6655_v45  ;;  %1362 = vmatmul.mubr.bf16.gmra.mxu1 %v6655_v45  ;;  %v1040_v50 = vadd.f32 %v4898_v20, %v1031_v2  ;;  %v5880_v20 = vld [vmem:[%s8246_s6 + $0xc0] ss:$16 sps:$4 sm:$0xff]  }
 0x444   : > { %1600 = vmatpush1.bf16.msra.mxu0 %v5838_v42  ;;  %1661 = vmatpush1.bf16.msra.mxu1 %v5841_v43  ;;  %v5910_v0 = vld [vmem:[%s8246_s6 + $0x20] ss:$16 sps:$4 sm:$0xff]   ;;  %v5918_v42 = vld [vmem:[%s8246_s6 + $0x4] ss:$16 sps:$4 sm:$0xff]   ;;  %v5921_v43 = vld [vmem:[%s8246_s6 + $0xc] ss:$16 sps:$4 sm:$0xff]  }
 0x445   : > { %1601 = vmatprep.subr.bf16.mxu0 %v5846_v23  ;;  %1662 = vmatprep.subr.bf16.mxu1 %v5849_v46  ;;  %v6685_v53 = vpack.c.bf16 %v1040_v50, %v1040_v50  ;;  %v5916_v2 = vld [vmem:[%s8246_s6] ss:$16 sps:$4 sm:$0xff]   ;;  %v5919_v23 = vld [vmem:[%s8246_s6 + $0x8] ss:$16 sps:$4 sm:$0xff]  }
 0x446   : > { %1310 = vmatprep.mubr.bf16.mxu0 %v6210_v4  ;;  %1371 = vmatprep.mubr.bf16.mxu1 %v6210_v4 }
 0x448   : > { %1602 = vmatpush1.bf16.msra.mxu0 %v5844_v47  ;;  %1663 = vmatpush1.bf16.msra.mxu1 %v5847_v1 }
 0x449   : > { %1603 = vmatprep.subr.bf16.mxu0 %v5852_v49  ;;  %1664 = vmatprep.subr.bf16.mxu1 %v5855_v3 }
 0x44b   : > { %1311 = vmatmul.mubr.bf16.gmra.mxu0 %v6685_v53  ;;  %1372 = vmatmul.mubr.bf16.gmra.mxu1 %v6685_v53 }
 0x44c   : > { %1604 = vmatpush1.bf16.msra.mxu0 %v5850_v51  ;;  %1665 = vmatpush1.bf16.msra.mxu1 %v5853_v52 }
 0x44d   : > { %1605 = vmatprep.subr.bf16.mxu0 %v5858_v54  ;;  %1666 = vmatprep.subr.bf16.mxu1 %v5861_v55 }
 0x44e   : > { %1627 = vmatprep.mubr.bf16.mxu0 %v6210_v4  ;;  %1688 = vmatprep.mubr.bf16.mxu1 %v6210_v4 }
 0x450   : > { %1606 = vmatpush1.bf16.msra.mxu0 %v5856_v57  ;;  %1667 = vmatpush1.bf16.msra.mxu1 %v5859_v58 }
 0x451   : > { %1607 = vmatprep.subr.bf16.mxu0 %v5864_v59  ;;  %1668 = vmatprep.subr.bf16.mxu1 %v5867_v60 }
 0x454   : > { %1608 = vmatpush1.bf16.msra.mxu0 %v5862_v62  ;;  %1669 = vmatpush1.bf16.msra.mxu1 %v5865_v63 }
 0x455   : > { %1609 = vmatprep.subr.bf16.mxu0 %v5870_v6  ;;  %1670 = vmatprep.subr.bf16.mxu1 %v5873_v8 }
 0x458   : > { %1610 = vmatpush1.bf16.msra.mxu0 %v5868_v10  ;;  %1671 = vmatpush1.bf16.msra.mxu1 %v5871_v11 }
 0x459   : > { %1932 = vmatprep.subr.bf16.mxu0 %v5876_v12  ;;  %1993 = vmatprep.subr.bf16.mxu1 %v5879_v14 }
 0x45b   : > { %1628 = vmatmul.mubr.bf16.vlgmr.msra.gmra.mxu0 %v6623_v28  ;;  %1689 = vmatmul.mubr.bf16.vlgmr.msra.gmra.mxu1 %v6623_v28 }
 0x45c   : > { %1933 = vmatpush1.bf16.msra.mxu0 %v5874_v16  ;;  %1994 = vmatpush1.bf16.msra.mxu1 %v5877_v17 }
 0x45d   : > { %1934 = vmatprep.subr.bf16.mxu0 %v5882_v18  ;;  %1995 = vmatprep.subr.bf16.mxu1 %v5885_v19 }
 0x45e   : > { %1637 = vmatprep.mubr.bf16.mxu0 %v6210_v4  ;;  %1698 = vmatprep.mubr.bf16.mxu1 %v6210_v4 }
 0x460   : > { %1935 = vmatpush1.bf16.msra.mxu0 %v5880_v20  ;;  %1996 = vmatpush1.bf16.msra.mxu1 %v5883_v22 }
 0x461   : > { %1936 = vmatprep.subr.bf16.mxu0 %v5888_v24  ;;  %1997 = vmatprep.subr.bf16.mxu1 %v5891_v21 }
 0x463   : > { %1638 = vmatmul.mubr.bf16.gmra.mxu0 %v6655_v45  ;;  %1699 = vmatmul.mubr.bf16.gmra.mxu1 %v6655_v45 }
 0x464   : > { %1937 = vmatpush1.bf16.msra.mxu0 %v5886_v25  ;;  %1998 = vmatpush1.bf16.msra.mxu1 %v5889_v56 }
 0x465   : > { %1938 = vmatprep.subr.bf16.mxu0 %v5894_v26  ;;  %1999 = vmatprep.subr.bf16.mxu1 %v5897_v27 }
 0x466   : > { %1647 = vmatprep.mubr.bf16.mxu0 %v6210_v4  ;;  %1708 = vmatprep.mubr.bf16.mxu1 %v6210_v4 }
 0x468   : > { %1939 = vmatpush1.bf16.msra.mxu0 %v5892_v61  ;;  %2000 = vmatpush1.bf16.msra.mxu1 %v5895_v9 }
 0x469   : > { %1940 = vmatprep.subr.bf16.mxu0 %v5900_v29  ;;  %2001 = vmatprep.subr.bf16.mxu1 %v5903_v31 }
 0x46b   : > { %1648 = vmatmul.mubr.bf16.gmra.mxu0 %v6685_v53  ;;  %1709 = vmatmul.mubr.bf16.gmra.mxu1 %v6685_v53 }
 0x46c   : > { %1941 = vmatpush1.bf16.msra.mxu0 %v5898_v32  ;;  %2002 = vmatpush1.bf16.msra.mxu1 %v5901_v33 }
 0x46d   : > { %1942 = vmatprep.subr.bf16.mxu0 %v5906_v34  ;;  %2003 = vmatprep.subr.bf16.mxu1 %v5909_v36  ;;  %v6944_v34 = vld [vmem:[%s8256_s16 + $0x1] ss:$4 sm:$0xf] }
 0x46e   : > { %1964 = vmatprep.mubr.bf16.mxu0 %v6210_v4  ;;  %2025 = vmatprep.mubr.bf16.mxu1 %v6210_v4 }
 0x470   : > { %1943 = vmatpush1.bf16.msra.mxu0 %v5904_v15  ;;  %2004 = vmatpush1.bf16.msra.mxu1 %v5907_v37 }
 0x471   : > { %1944 = vmatprep.subr.bf16.mxu0 %v5912_v38  ;;  %2005 = vmatprep.subr.bf16.mxu1 %v5915_v39 }
 0x474   : > { %1945 = vmatpush1.bf16.msra.mxu0 %v5910_v0  ;;  %2006 = vmatpush1.bf16.msra.mxu1 %v5913_v41 }
 0x475   : > { %1946 = vmatprep.subr.bf16.mxu0 %v5918_v42  ;;  %2007 = vmatprep.subr.bf16.mxu1 %v5921_v43 }
 0x478   : > { %1947 = vmatpush1.bf16.msra.mxu0 %v5916_v2  ;;  %2008 = vmatpush1.bf16.msra.mxu1 %v5919_v23 }
 0x479   : > { %5354 = vmatprep.subr.bf16.mxu0 %v8258_v5  ;;  %5372 = vmatprep.subr.bf16.mxu1 %v8258_v5 }
 0x47b   : > { %1965 = vmatmul.mubr.bf16.vlgmr.msra.gmra.mxu0 %v6623_v28  ;;  %2026 = vmatmul.mubr.bf16.vlgmr.msra.gmra.mxu1 %v6623_v28  ;;  %v6852_v28 = vshrl.u32 %v564_v7, 7  ;;  %v6875_v7 = vld [vmem:[%s8256_s16] ss:$4 sm:$0xf] }
 0x47c   : > { %1974 = vmatprep.mubr.bf16.mxu0 %v6210_v4  ;;  %2035 = vmatprep.mubr.bf16.mxu1 %v6210_v4 }
 0x47d   : > { %8296 = vst [vmem:[#allocation8_spill] sm:$0xff] %v6852_v28  ;;  %v6855_v46 = vsub.s32 1, %v6852_v28  ;;  %v6867_v47 = vsub.s32 0, %v6852_v28  ;;  %v6870_v1 = vsub.s32 2, %v6852_v28  ;;  %v6947_v36 = vsub.s32 3, %v6852_v28 }
 0x47f   : > { %v6879_v50 = vrot.slane %v6875_v7, %v6867_v47  ;;  %v6883_v51 = vrot.slane %v6875_v7, %v6870_v1  ;;  %8302 = vst [vmem:[#allocation14_spill] sm:$0xff] %v6947_v36  ;;  %v1426_v15 = vrot.slane %v6944_v34, %v6870_v1  ;;  %v1430_v37 = vrot.slane %v6944_v34, %v6947_v36 }
 0x480   : > { %v1418_v8 = vrot.slane %v6944_v34, %v6867_v47 }
 0x483   : > { %1975 = vmatmul.mubr.bf16.gmra.mxu0 %v6655_v45  ;;  %2036 = vmatmul.mubr.bf16.gmra.mxu1 %v6655_v45 }
 0x484   : > { %1984 = vmatprep.mubr.bf16.mxu0 %v6210_v4  ;;  %2045 = vmatprep.mubr.bf16.mxu1 %v6210_v4  ;;  %v6860_v4 = vld [vmem:[%s8256_s16 + $0x2] ss:$4 sm:$0xf] }
 0x485   : > { %v6864_v45 = vrot.slane %v6860_v4, %v6855_v46 }
 0x48b   : > { %1985 = vmatmul.mubr.bf16.gmra.mxu0 %v6685_v53  ;;  %2046 = vmatmul.mubr.bf16.gmra.mxu1 %v6685_v53 }
 0x48c   : > { %5360 = vmatprep.mubr.msk.bf16.mxu0 %vm6209_vm1, %v8258_v5  ;;  %5378 = vmatprep.mubr.msk.bf16.mxu1 %vm6209_vm1, %v8258_v5 }
 0x4fb   : > { %v1292_v49 = vpop.f32.mrf.mxu0  ;;  %v1353_v3 = vpop.f32.mrf.mxu1 }
 0x4fc   : > { %v6890_v57 = vadd.f32 %v1292_v49, %v6879_v50  ;;  %v6893_v58 = vadd.f32 %v1353_v3, %v6883_v51 }
 0x4fd   : > { %v6885_v52 = vpop.f32.mrf.mxu0  ;;  %v6887_v53 = vpop.f32.mrf.mxu1 }
 0x4fe   : > { %8297 = vst [vmem:[#allocation9_spill] sm:$0xff] %v6887_v53 }
 0x4ff   : > { %v1296_v54 = vpop.f32.mrf.mxu0  ;;  %v1357_v55 = vpop.f32.mrf.mxu1 }
 0x500   : > { %v6896_v59 = vadd.f32 %v1296_v54, %v6879_v50  ;;  %v6899_v60 = vadd.f32 %v1357_v55, %v6883_v51 }
 0x501   : > { %v6901_v62 = vpop.f32.mrf.mxu0  ;;  %v6903_v63 = vpop.f32.mrf.mxu1 }
 0x502   : > { %8298 = vst [vmem:[#allocation10_spill] sm:$0xff] %v6903_v63  ;;  %v8309_v53 = vpack.c.bf16 %v6896_v59, %v6890_v57 }
 0x503   : > { %v1302_v10 = vpop.f32.mrf.mxu0  ;;  %v1363_v11 = vpop.f32.mrf.mxu1 }
 0x504   : > { %v6914_v18 = vadd.f32 %v1302_v10, %v6879_v50  ;;  %v6917_v19 = vadd.f32 %v1363_v11, %v6883_v51 }
 0x505   : > { %v6909_v12 = vpop.f32.mrf.mxu0  ;;  %v6911_v14 = vpop.f32.mrf.mxu1 }
 0x506   : > { %8299 = vst [vmem:[#allocation11_spill] sm:$0xff] %v6911_v14 }
 0x507   : > { %v1306_v16 = vpop.f32.mrf.mxu0  ;;  %v1367_v17 = vpop.f32.mrf.mxu1 }
 0x508   : > { %v6920_v20 = vadd.f32 %v1306_v16, %v6879_v50  ;;  %v6923_v22 = vadd.f32 %v1367_v17, %v6883_v51 }
 0x509   : > { %v6925_v24 = vpop.f32.mrf.mxu0  ;;  %v6927_v21 = vpop.f32.mrf.mxu1 }
 0x50a   : > { %8300 = vst [vmem:[#allocation12_spill] sm:$0xff] %v6927_v21 }
 0x50b   : > { %v6933_v26 = vpop.f32.mrf.mxu0  ;;  %v6935_v27 = vpop.f32.mrf.mxu1 }
 0x50d   : > { %v6937_v61 = vpop.f32.mrf.mxu0  ;;  %v6939_v9 = vpop.f32.mrf.mxu1 }
 0x50e   : > { %8301 = vst [vmem:[#allocation13_spill] sm:$0xff] %v6939_v9 }
 0x50f   : > { %v1316_v29 = vpop.f32.mrf.mxu0  ;;  %v1377_v31 = vpop.f32.mrf.mxu1 }
 0x511   : > { %v1317_v32 = vpop.f32.mrf.mxu0  ;;  %v1378_v33 = vpop.f32.mrf.mxu1 }
 0x51b   : > { %v1629_v38 = vpop.f32.mrf.mxu0  ;;  %v1690_v39 = vpop.f32.mrf.mxu1 }
 0x51c   : > { %v6953_v0 = vadd.f32 %v1690_v39, %v1426_v15 }
 0x51d   : > { %v6955_v41 = vpop.f32.mrf.mxu0  ;;  %v1692_v42 = vpop.f32.mrf.mxu1 }
 0x51e   : > { %v6957_v43 = vadd.f32 %v1692_v42, %v1430_v37 }
 0x51f   : > { %v1633_v2 = vpop.f32.mrf.mxu0  ;;  %v1694_v23 = vpop.f32.mrf.mxu1 }
 0x520   : > { %8303 = vst [vmem:[#allocation15_spill] sm:$0xff] %v6957_v43  ;;  %v6959_v49 = vadd.f32 %v1694_v23, %v1426_v15 }
 0x521   : > { %v6961_v3 = vpop.f32.mrf.mxu0  ;;  %v1696_v54 = vpop.f32.mrf.mxu1 }
 0x522   : > { %v6965_v10 = vadd.f32 %v1696_v54, %v1430_v37 }
 0x523   : > { %v1639_v11 = vpop.f32.mrf.mxu0  ;;  %v1700_v16 = vpop.f32.mrf.mxu1 }
 0x524   : > { %8304 = vst [vmem:[#allocation16_spill] sm:$0xff] %v6965_v10  ;;  %v6969_v29 = vadd.f32 %v1700_v16, %v1426_v15  ;;  %v1640_v9 = vadd.f32 %v1639_v11, %v1418_v8 }
 0x525   : > { %v6971_v31 = vpop.f32.mrf.mxu0  ;;  %v1702_v32 = vpop.f32.mrf.mxu1 }
 0x526   : > { %v6973_v33 = vadd.f32 %v1702_v32, %v1430_v37 }
 0x527   : > { %v1643_v39 = vpop.f32.mrf.mxu0  ;;  %v1704_v42 = vpop.f32.mrf.mxu1 }
 0x528   : > { %8305 = vst [vmem:[#allocation17_spill] sm:$0xff] %v6973_v33  ;;  %v6975_v23 = vadd.f32 %v1704_v42, %v1426_v15  ;;  %v1644_v30 = vadd.f32 %v1643_v39, %v1418_v8 }
 0x529   : > { %v6977_v56 = vpop.f32.mrf.mxu0  ;;  %v1706_v54 = vpop.f32.mrf.mxu1 }
 0x52a   : > { %v6983_v16 = vadd.f32 %v1706_v54, %v1430_v37  ;;  %v8306_v54 = vmov 0.0   ;;  %v2070_v14 = vpack.c.bf16 %v1644_v30, %v1640_v9 }
 0x52b   : > { %v1649_v55 = vpop.f32.mrf.mxu0  ;;  %v1710_v25 = vpop.f32.mrf.mxu1 }
 0x52c   : > { %v1650_v6 = vadd.f32 %v1649_v55, %v1418_v8  ;;  %v6987_v5 = vadd.f32 %v1710_v25, %v1426_v15  ;;  %v1763_v25 = vrot.slane %v6860_v4, %v6870_v1  ;;  %v1634_v15 = vadd.f32 %v1633_v2, %v1418_v8 }
 0x52d   : > { %v1651_v42 = vpop.f32.mrf.mxu0  ;;  %v1712_v28 = vpop.f32.mrf.mxu1  ;;  %v7010_v2 = vrot.slane %v6944_v34, %v6855_v46 }
 0x52e   : > { %v2074_v48 = vpack.c.bf16 %v1650_v6, %v1650_v6  ;;  %v6989_v13 = vadd.f32 %v1712_v28, %v1430_v37  ;;  %v1767_v28 = vrot.slane %v6860_v4, %v6947_v36 }
 0x52f   : > { %v1653_v44 = vpop.f32.mrf.mxu0  ;;  %v1714_v40 = vpop.f32.mrf.mxu1 }
 0x530   : > { %5355 = vmatpush3.bf16.xpose.msra.mxu0 %v2074_v48 }
 0x531   : > { %v1654_v35 = vpop.f32.mrf.mxu0  ;;  %v1715_v17 = vpop.f32.mrf.mxu1  ;;  %5356 = vmatprep.subr.bf16.mxu0 %v8306_v54 }
 0x532   : > { %v1630_v35 = vadd.f32 %v1629_v38, %v1418_v8  ;;  %v1652_v17 = vadd.f32 %v1651_v42, %v7010_v2 }
 0x534   : > { %v2066_v55 = vpack.c.bf16 %v1634_v15, %v1630_v35  ;;  %v2075_v32 = vpack.c.bf16 %v1652_v17, %v1652_v17  ;;  %v1646_v17 = vadd.f32 %v6977_v56, %v7010_v2 }
 0x538   : > { %5357 = vmatpush3.bf16.xpose.msra.mxu0 %v2070_v14 }
 0x539   : > { %5358 = vmatprep.subr.bf16.mxu0 %v8306_v54 }
 0x53b   : > { %v6997_v44 = vpop.f32.mrf.mxu0  ;;  %v2027_v40 = vpop.f32.mrf.mxu1 }
 0x53c   : > { %v6999_v48 = vadd.f32 %v2027_v40, %v1763_v25 }
 0x53d   : > { %v1968_v6 = vpop.f32.mrf.mxu0  ;;  %v2029_v37 = vpop.f32.mrf.mxu1 }
 0x53e   : > { %v7002_v30 = vadd.f32 %v1968_v6, %v6864_v45  ;;  %v7004_v14 = vadd.f32 %v2029_v37, %v1767_v28  ;;  %v8310_v37 = vpack.c.bf16 %v6920_v20, %v6914_v18 }
 0x53f   : > { %v7006_v1 = vpop.f32.mrf.mxu0  ;;  %v2031_v9 = vpop.f32.mrf.mxu1 }
 0x540   : > { %8307 = vst [vmem:[#allocation18_spill] sm:$0xff] %v7004_v14  ;;  %v7012_v11 = vadd.f32 %v2031_v9, %v1763_v25  ;;  %5359 = vmatpush3.bf16.xpose.msra.mxu0 %v2066_v55 }
 0x541   : > { %v1972_v8 = vpop.f32.mrf.mxu0  ;;  %v2033_v38 = vpop.f32.mrf.mxu1  ;;  %5390 = vmatprep.subr.bf16.mxu0 %v8306_v54 }
 0x542   : > { %v7019_v15 = vadd.f32 %v1972_v8, %v6864_v45  ;;  %v7021_v40 = vadd.f32 %v2033_v38, %v1767_v28 }
 0x543   : > { %v1976_v35 = vpop.f32.mrf.mxu0  ;;  %v2037_v34 = vpop.f32.mrf.mxu1 }
 0x544   : > { %8308 = vst [vmem:[#allocation19_spill] sm:$0xff] %v7021_v40  ;;  %v7027_v55 = vadd.f32 %v2037_v34, %v1763_v25 }
 0x545   : > { %v1978_v9 = vpop.f32.mrf.mxu0  ;;  %v2039_v42 = vpop.f32.mrf.mxu1 }
 0x546   : > { %v7030_v39 = vadd.f32 %v1978_v9, %v6864_v45  ;;  %v7032_v8 = vadd.f32 %v2039_v42, %v1767_v28  ;;  %v1755_v42 = vrot.slane %v6860_v4, %v6867_v47 }
 0x547   : > { %v1980_v38 = vpop.f32.mrf.mxu0  ;;  %v2041_v21 = vpop.f32.mrf.mxu1  ;;  %5361 = vmatmul.mubr.bf16.vlgmr.msra.gmra.mxu0 %v8309_v53 }
 0x548   : > { %v7037_v6 = vadd.f32 %v2041_v21, %v1763_v25  ;;  %5391 = vmatpush3.bf16.xpose.msra.mxu0 %v2075_v32  ;;  %5364 = vmatprep.mubr.msk.bf16.mxu0 %vm6209_vm1, %v8306_v54  ;;  %v1642_v21 = vadd.f32 %v6971_v31, %v7010_v2  ;;  %v1981_v31 = vadd.f32 %v1980_v38, %v1755_v42 }
 0x549   : > { %v1982_v34 = vpop.f32.mrf.mxu0  ;;  %v2043_v9 = vpop.f32.mrf.mxu1  ;;  %5392 = vmatprep.subr.bf16.mxu0 %v8306_v54 }
 0x54a   : > { %v7049_v53 = vadd.f32 %v1982_v34, %v6864_v45  ;;  %v7051_v59 = vadd.f32 %v2043_v9, %v1767_v28  ;;  %v2071_v40 = vpack.c.bf16 %v1646_v17, %v1642_v21 }
 0x54b   : > { %v1986_v32 = vpop.f32.mrf.mxu0  ;;  %v2047_v56 = vpop.f32.mrf.mxu1 }
 0x54c   : > { %v1987_v4 = vadd.f32 %v1986_v32, %v1755_v42  ;;  %v2048_v47 = vadd.f32 %v2047_v56, %v1763_v25 }
 0x54d   : > { %v1988_v57 = vpop.f32.mrf.mxu0  ;;  %v2049_v34 = vpop.f32.mrf.mxu1 }
 0x54e   : > { %v2086_v63 = vpack.c.bf16 %v1987_v4, %v1987_v4  ;;  %v2088_v9 = vpack.c.bf16 %v2048_v47, %v2048_v47  ;;  %v1989_v43 = vadd.f32 %v1988_v57, %v6864_v45  ;;  %v2050_v10 = vadd.f32 %v2049_v34, %v1767_v28 }
 0x54f   : > { %v1990_v36 = vpop.f32.mrf.mxu0  ;;  %v2051_v33 = vpop.f32.mrf.mxu1  ;;  %5365 = vmatmul.mubr.bf16.gmra.mxu0 %v8310_v37  ;;  %v1313_v45 = vadd.f32 %v6933_v26, %v6879_v50  ;;  %v1632_v26 = vadd.f32 %v6955_v41, %v7010_v2 }
 0x550   : > { %v2233_v14 = vsel %vm2231_vm2, %v2086_v63, 0  ;;  %v7065_v25 = vsel %vm2231_vm2, %v2088_v9, 0  ;;  %v2087_v17 = vpack.c.bf16 %v1989_v43, %v1989_v43  ;;  %v2089_v21 = vpack.c.bf16 %v2050_v10, %v2050_v10  ;;  %5393 = vmatpush3.bf16.xpose.msra.mxu0 %v2071_v40  ;;  %5368 = vmatprep.mubr.msk.bf16.mxu0 %vm6209_vm1, %v8306_v54 }
 0x551   : > { %v1977_v36 = vadd.f32 %v1976_v35, %v1755_v42  ;;  %v1991_v33 = vpop.f32.mrf.mxu0  ;;  %v2052_v28 = vpop.f32.mrf.mxu1  ;;  %5373 = vmatpush3.bf16.msra.mxu1 %v2233_v14  ;;  %5394 = vmatprep.subr.bf16.mxu0 %v8306_v54  ;;  %v1636_v63 = vadd.f32 %v6961_v3, %v7010_v2  ;;  %v1971_v43 = vadd.f32 %v7006_v1, %v1755_v42 }
 0x552   : > { %v7075_v18 = vsel %vm2231_vm2, %v2087_v17, 0  ;;  %v7078_v20 = vsel %vm2231_vm2, %v2089_v21, 0  ;;  %5374 = vmatprep.subr.bf16.mxu1 %v8306_v54  ;;  %v2062_v10 = vpack.c.bf16 %v1313_v45, %v1313_v45  ;;  %v1967_v14 = vadd.f32 %v6997_v44, %v1755_v42 }
 0x553   : > { %v2082_v50 = vpack.c.bf16 %v1981_v31, %v1977_v36  ;;  %v2067_v40 = vpack.c.bf16 %v1636_v63, %v1632_v26  ;;  %v1085_v3 = vrot.slane %v6875_v7, %v6855_v46 }
 0x554   : > { %v2078_v35 = vpack.c.bf16 %v1971_v43, %v1967_v14 }
 0x555   : > { %5375 = vmatpush3.bf16.msra.mxu1 %v2082_v50  ;;  %v1299_v1 = vadd.f32 %v6901_v62, %v1085_v3  ;;  %v1295_v41 = vadd.f32 %v6885_v52, %v1085_v3  ;;  %v1309_v46 = vadd.f32 %v6925_v24, %v1085_v3  ;;  %v1305_v7 = vadd.f32 %v6909_v12, %v1085_v3  ;;  %v7110_v52 = vld [vmem:[%s7107_s21] ss:$0 sm:$0xff] }
 0x556   : > { %5376 = vmatprep.subr.bf16.mxu1 %v8306_v54  ;;  %v1315_v62 = vadd.f32 %v6937_v61, %v1085_v3 }
 0x557   : > { %5369 = vmatmul.mubr.bf16.gmra.mxu0 %v2062_v10  ;;  %v2055_v44 = vpack.c.bf16 %v1299_v1, %v1295_v41  ;;  %v2059_v2 = vpack.c.bf16 %v1309_v46, %v1305_v7 }
 0x558   : > { %5395 = vmatpush3.bf16.xpose.msra.mxu0 %v2067_v40  ;;  %5396 = vmatprep.mubr.msk.bf16.mxu0 %vm6209_vm1, %v8306_v54  ;;  %v2063_v37 = vpack.c.bf16 %v1315_v62, %v1315_v62 }
 0x559   : > { %5377 = vmatpush3.bf16.msra.mxu1 %v2078_v35  ;;  %5426 = vmatprep.subr.bf16.mxu0 %v8306_v54 }
 0x55a   : > { %5408 = vmatprep.subr.bf16.mxu1 %v8306_v54 }
 0x55f   : > { %5397 = vmatmul.mubr.bf16.vlgmr.msra.gmra.mxu0 %v2055_v44 }
 0x560   : > { %5400 = vmatprep.mubr.msk.bf16.mxu0 %vm6209_vm1, %v8306_v54 }
 0x567   : > { %5401 = vmatmul.mubr.bf16.gmra.mxu0 %v2059_v2 }
 0x568   : > { %5404 = vmatprep.mubr.msk.bf16.mxu0 %vm6209_vm1, %v8306_v54 }
 0x56f   : > { %5405 = vmatmul.mubr.bf16.gmra.mxu0 %v2063_v37 }
 0x570   : > { %5442 = vmatprep.mubr.msk.bf16.mxu0 %vm6209_vm1, %v8306_v54 }
 0x607   : > { %v2125_v12 = vpop.f32.mrf.mxu0 }
 0x608   : > { %v2147_v24 = vmul.f32 0.35355338, %v2125_v12 }
 0x609   : > { %v5362_v38 = vpop.f32.mrf.mxu0 }
 0x60a   : > { %v7113_v42 = vadd.f32 %v7110_v52, %v2147_v24 }
 0x60b   : > { %v2128_v61 = vpop.f32.mrf.mxu0 }
 0x60c   : > { %v2148_v57 = vmul.f32 0.35355338, %v2128_v61  ;;  %v2164_v32 = vsel %vm2163_vm3, %v7113_v42, -inf }
 0x60d   : > { %2165 = vmax.xlane.f32.xlu0 %v2164_v32  ;;  %v5363_v56 = vpop.f32.mrf.mxu0 }
 0x60e   : > { %v2159_v4 = vadd.f32 %v7110_v52, %v2148_v57 }
 0x60f   : > { %v2133_v47 = vpop.f32.mrf.mxu0 }
 0x610   : > { %v2149_v34 = vmul.f32 0.35355338, %v2133_v47  ;;  %v2167_v9 = vsel %vm2163_vm3, %v2159_v4, -inf }
 0x611   : > { %2168 = vmax.xlane.f32.xlu1 %v2167_v9  ;;  %v5366_v31 = vpop.f32.mrf.mxu0 }
 0x612   : > { %v2160_v17 = vadd.f32 %v7110_v52, %v2149_v34 }
 0x613   : > { %v2136_v21 = vpop.f32.mrf.mxu0 }
 0x614   : > { %v2150_v45 = vmul.f32 0.35355338, %v2136_v21  ;;  %v2170_v36 = vsel %vm2163_vm3, %v2160_v17, -inf }
 0x615   : > { %2171 = vmax.xlane.f32.xlu0 %v2170_v36  ;;  %v5367_v33 = vpop.f32.mrf.mxu0 }
 0x616   : > { %v2161_v28 = vadd.f32 %v7110_v52, %v2150_v45 }
 0x617   : > { %v2141_v63 = vpop.f32.mrf.mxu0 }
 0x618   : > { %v2151_v43 = vmul.f32 0.35355338, %v2141_v63  ;;  %v2173_v50 = vsel %vm2163_vm3, %v2161_v28, -inf }
 0x619   : > { %2174 = vmax.xlane.f32.xlu1 %v2173_v50  ;;  %v5370_v26 = vpop.f32.mrf.mxu0 }
 0x61a   : > { %v2162_v10 = vadd.f32 %v7110_v52, %v2151_v43 }
 0x61b   : > { %v2144_v14 = vpop.f32.mrf.mxu0 }
 0x61c   : > { %v2176_v40 = vsel %vm2163_vm3, %v2162_v10, -inf }
 0x61d   : > { %2177 = vmax.xlane.f32.xlu0 %v2176_v40  ;;  %v5371_v3 = vpop.f32.mrf.mxu0 }
 0x61f   : > { %v2344_v35 = vpop.f32.mrf.mxu0 }
 0x620   : > { %v2366_v1 = vmul.f32 0.35355338, %v2344_v35 }
 0x621   : > { %v5398_v41 = vpop.f32.mrf.mxu0 }
 0x622   : > { %v2371_v44 = vadd.f32 %v7110_v52, %v2366_v1 }
 0x623   : > { %v2347_v46 = vpop.f32.mrf.mxu0 }
 0x624   : > { %v2367_v7 = vmul.f32 0.35355338, %v2347_v46  ;;  %v2376_v2 = vsel %vm2163_vm3, %v2371_v44, -inf }
 0x625   : > { %2377 = vmax.xlane.f32.xlu1 %v2376_v2  ;;  %v5399_v62 = vpop.f32.mrf.mxu0 }
 0x626   : > { %v2372_v37 = vadd.f32 %v7110_v52, %v2367_v7 }
 0x627   : > { %v2352_v12 = vpop.f32.mrf.mxu0 }
 0x628   : > { %v2368_v24 = vmul.f32 0.35355338, %v2352_v12  ;;  %v2379_v38 = vsel %vm2163_vm3, %v2372_v37, -inf }
 0x629   : > { %2380 = vmax.xlane.f32.xlu0 %v2379_v38  ;;  %v5402_v61 = vpop.f32.mrf.mxu0 }
 0x62a   : > { %v2373_v57 = vadd.f32 %v7110_v52, %v2368_v24 }
 0x62b   : > { %v2355_v32 = vpop.f32.mrf.mxu0 }
 0x62c   : > { %v2369_v56 = vmul.f32 0.35355338, %v2355_v32  ;;  %v2382_v47 = vsel %vm2163_vm3, %v2373_v57, -inf }
 0x62d   : > { %2383 = vmax.xlane.f32.xlu1 %v2382_v47  ;;  %v5403_v34 = vpop.f32.mrf.mxu0 }
 0x62e   : > { %v2374_v9 = vadd.f32 %v7110_v52, %v2369_v56 }
 0x62f   : > { %v2360_v31 = vpop.f32.mrf.mxu0 }
 0x630   : > { %v2370_v21 = vmul.f32 0.35355338, %v2360_v31  ;;  %v2385_v45 = vsel %vm2163_vm3, %v2374_v9, -inf }
 0x631   : > { %2386 = vmax.xlane.f32.xlu0 %v2385_v45  ;;  %v5406_v36 = vpop.f32.mrf.mxu0 }
 0x632   : > { %v2375_v33 = vadd.f32 %v7110_v52, %v2370_v21 }
 0x633   : > { %v2363_v63 = vpop.f32.mrf.mxu0 }
 0x634   : > { %v2388_v43 = vsel %vm2163_vm3, %v2375_v33, -inf }
 0x635   : > { %2389 = vmax.xlane.f32.xlu1 %v2388_v43  ;;  %v5407_v50 = vpop.f32.mrf.mxu0 }
 0x696   : > { %v2166_v26 = vpop.xlane.xlu0 %2165 }
 0x697   : > { %v2179_v14 = vsub.f32 %v7113_v42, %v2166_v26 }
 0x699   : > { %v2184_v40 = vmul.f32 1.442695, %v2179_v14 }
 0x69a   : > { %v2169_v3 = vpop.xlane.xlu1 %2168 }
 0x69b   : > { %6034 = vpow2.f32 %v2184_v40  ;;  %v2180_v35 = vsub.f32 %v2159_v4, %v2169_v3 }
 0x69d   : > { %v2186_v1 = vmul.f32 1.442695, %v2180_v35 }
 0x69e   : > { %v2172_v41 = vpop.xlane.xlu0 %2171 }
 0x69f   : > { %6036 = vpow2.f32 %v2186_v1  ;;  %v2181_v46 = vsub.f32 %v2160_v17, %v2172_v41 }
 0x6a1   : > { %v2188_v7 = vmul.f32 1.442695, %v2181_v46 }
 0x6a2   : > { %v2175_v2 = vpop.xlane.xlu1 %2174 }
 0x6a3   : > { %6038 = vpow2.f32 %v2188_v7  ;;  %v2182_v62 = vsub.f32 %v2161_v28, %v2175_v2 }
 0x6a5   : > { %v2190_v12 = vmul.f32 1.442695, %v2182_v62 }
 0x6a6   : > { %v2178_v24 = vpop.xlane.xlu0 %2177 }
 0x6a7   : > { %6040 = vpow2.f32 %v2190_v12  ;;  %v2183_v38 = vsub.f32 %v2162_v10, %v2178_v24 }
 0x6a8   : > { %v7136_v61 = vpop.eup %6034 }
 0x6a9   : > { %v2192_v32 = vmul.f32 1.442695, %v2183_v38  ;;  %v2194_v42 = vsel %vm2163_vm3, %v7136_v61, 0.0 }
 0x6aa   : > { %2195 = vadd.xlane.f32.xlu0 %v2194_v42 }
 0x6ab   : > { %6042 = vpow2.f32 %v2192_v32  ;;  %v5928_v32 = vld [vmem:[%s8247_s7 + $0x78] sm:$0xff]  }
 0x6ac   : > { %v7140_v4 = vpop.eup %6036  ;;  %5427 = vmatpush3.bf16.msra.mxu0 %v5928_v32 }
 0x6ad   : > { %v2197_v17 = vsel %vm2163_vm3, %v7140_v4, 0.0  ;;  %5428 = vmatprep.subr.bf16.mxu0 %v8306_v54 }
 0x6ae   : > { %v2378_v56 = vpop.xlane.xlu1 %2377  ;;  %2198 = vadd.xlane.f32.xlu1 %v2197_v17 }
 0x6af   : > { %v2391_v28 = vsub.f32 %v2371_v44, %v2378_v56 }
 0x6b0   : > { %v7144_v47 = vpop.eup %6038 }
 0x6b1   : > { %v2396_v34 = vmul.f32 1.442695, %v2391_v28  ;;  %v2200_v10 = vsel %vm2163_vm3, %v7144_v47, 0.0 }
 0x6b2   : > { %v2381_v31 = vpop.xlane.xlu0 %2380  ;;  %2201 = vadd.xlane.f32.xlu0 %v2200_v10 }
 0x6b3   : > { %6044 = vpow2.f32 %v2396_v34  ;;  %v2392_v21 = vsub.f32 %v2372_v37, %v2381_v31 }
 0x6b4   : > { %v6041_v45 = vpop.eup %6040 }
 0x6b5   : > { %v2398_v36 = vmul.f32 1.442695, %v2392_v21  ;;  %v2203_v63 = vsel %vm2163_vm3, %v6041_v45, 0.0 }
 0x6b6   : > { %v2384_v43 = vpop.xlane.xlu1 %2383  ;;  %2204 = vadd.xlane.f32.xlu1 %v2203_v63 }
 0x6b7   : > { %6046 = vpow2.f32 %v2398_v36  ;;  %v2393_v50 = vsub.f32 %v2373_v57, %v2384_v43 }
 0x6b8   : > { %v7149_v26 = vpop.eup %6042 }
 0x6b9   : > { %v2400_v44 = vmul.f32 1.442695, %v2393_v50  ;;  %v2206_v14 = vsel %vm2163_vm3, %v7149_v26, 0.0 }
 0x6ba   : > { %2207 = vadd.xlane.f32.xlu0 %v2206_v14  ;;  %v2387_v40 = vpop.xlane.xlu0 %2386 }
 0x6bb   : > { %6048 = vpow2.f32 %v2400_v44  ;;  %v2394_v3 = vsub.f32 %v2374_v9, %v2387_v40 }
 0x6bd   : > { %v2402_v35 = vmul.f32 1.442695, %v2394_v3 }
 0x6be   : > { %v2390_v37 = vpop.xlane.xlu1 %2389 }
 0x6bf   : > { %6050 = vpow2.f32 %v2402_v35  ;;  %v2395_v1 = vsub.f32 %v2375_v33, %v2390_v37  ;;  %v8313_v35 = vpack.c.bf16 %v7019_v15, %v7002_v30 }
 0x6c0   : > { %v7153_v41 = vpop.eup %6044 }
 0x6c1   : > { %v2404_v46 = vmul.f32 1.442695, %v2395_v1  ;;  %v2406_v57 = vsel %vm2163_vm3, %v7153_v41, 0.0 }
 0x6c2   : > { %2407 = vadd.xlane.f32.xlu1 %v2406_v57 }
 0x6c3   : > { %6052 = vpow2.f32 %v2404_v46 }
 0x6c4   : > { %v7157_v7 = vpop.eup %6046 }
 0x6c5   : > { %v2409_v2 = vsel %vm2163_vm3, %v7157_v7, 0.0 }
 0x6c6   : > { %2410 = vadd.xlane.f32.xlu0 %v2409_v2 }
 0x6c8   : > { %v7161_v62 = vpop.eup %6048 }
 0x6c9   : > { %v2412_v9 = vsel %vm2163_vm3, %v7161_v62, 0.0 }
 0x6ca   : > { %2413 = vadd.xlane.f32.xlu1 %v2412_v9  ;;  %v5923_v9 = vld [vmem:[%s8247_s7 + $0x30] sm:$0xff]  }
 0x6cc   : > { %v7165_v33 = vpop.eup %6050 }
 0x6cd   : > { %v2415_v12 = vsel %vm2163_vm3, %v7165_v33, 0.0 }
 0x6ce   : > { %2416 = vadd.xlane.f32.xlu0 %v2415_v12 }
 0x6d0   : > { %v7169_v24 = vpop.eup %6052 }
 0x6d1   : > { %v2418_v38 = vsel %vm2163_vm3, %v7169_v24, 0.0 }
 0x6d2   : > { %2419 = vadd.xlane.f32.xlu1 %v2418_v38  ;;  %v5924_v38 = vld [vmem:[%s8247_s7 + $0x28] sm:$0xff]  }
 0x733   : > { %v2196_v42 = vpop.xlane.xlu0 %2195 }
 0x734   : > { %6054 = vrcp.f32 %v2196_v42 }
 0x737   : > { %v2199_v17 = vpop.xlane.xlu1 %2198 }
 0x738   : > { %6056 = vrcp.f32 %v2199_v17  ;;  %v5926_v17 = vld [vmem:[%s8247_s7 + $0x18] sm:$0xff]  }
 0x73b   : > { %v2202_v56 = vpop.xlane.xlu0 %2201 }
 0x73c   : > { %6058 = vrcp.f32 %v2202_v56 }
 0x73f   : > { %v2205_v28 = vpop.xlane.xlu1 %2204 }
 0x740   : > { %6060 = vrcp.f32 %v2205_v28  ;;  %v5927_v28 = vld [vmem:[%s8247_s7 + $0x10] sm:$0xff]  }
 0x741   : > { %v6055_v34 = vpop.eup %6054 }
 0x742   : > { %v2210_v21 = vmul.f32 %v6055_v34, %v7136_v61  ;;  %v8312_v61 = vpack.c.bf16 %v7049_v53, %v7030_v39  ;;  %v5930_v34 = vld [vmem:[%s8247_s7 + $0x70] sm:$0xff]  }
 0x743   : > { %v2208_v10 = vpop.xlane.xlu0 %2207  ;;  %5429 = vmatpush3.bf16.msra.mxu0 %v5930_v34 }
 0x744   : > { %6062 = vrcp.f32 %v2208_v10  ;;  %v5931_v10 = vld [vmem:[%s8247_s7] sm:$0xff]   ;;  %5430 = vmatprep.subr.bf16.mxu0 %v8306_v54 }
 0x745   : > { %v6057_v31 = vpop.eup %6056 }
 0x746   : > { %v2212_v36 = vmul.f32 %v6057_v31, %v7140_v4  ;;  %v5932_v31 = vld [vmem:[%s8247_s7 + $0x68] sm:$0xff]  }
 0x747   : > { %5431 = vmatpush3.bf16.msra.mxu0 %v5932_v31 }
 0x748   : > { %v2219_v63 = vpack.c.bf16 %v2212_v36, %v2210_v21  ;;  %5432 = vmatprep.subr.bf16.mxu0 %v8306_v54  ;;  %v5933_v21 = vld [vmem:[%s8247_s7 + $0x60] sm:$0xff]   ;;  %v5934_v36 = vld [vmem:[%s8247_s7 + $0x58] sm:$0xff]  }
 0x749   : > { %v6059_v43 = vpop.eup %6058 }
 0x74a   : > { %5379 = vmatmul.mubr.msk.bf16.vlgmr.msra.gmra.mxu1 %vm2163_vm3, %v2219_v63  ;;  %v2214_v14 = vmul.f32 %v6059_v43, %v7144_v47  ;;  %v5935_v63 = vld [vmem:[%s8247_s7 + $0x50] sm:$0xff]   ;;  %v5936_v43 = vld [vmem:[%s8247_s7 + $0x48] sm:$0xff]  }
 0x74b   : > { %5409 = vmatpush3.bf16.msra.mxu1 %v7075_v18  ;;  %v2408_v50 = vpop.xlane.xlu1 %2407  ;;  %5382 = vmatprep.mubr.msk.bf16.mxu1 %vm6209_vm1, %v8306_v54 }
 0x74c   : > { %5410 = vmatprep.subr.bf16.mxu1 %v8306_v54  ;;  %6064 = vrcp.f32 %v2408_v50  ;;  %5433 = vmatpush3.bf16.msra.mxu0 %v5933_v21  ;;  %v5937_v50 = vld [vmem:[%s8247_s7 + $0x40] sm:$0xff]  }
 0x74d   : > { %v6061_v44 = vpop.eup %6060  ;;  %5434 = vmatprep.subr.bf16.mxu0 %v8306_v54 }
 0x74e   : > { %v2216_v40 = vmul.f32 %v6061_v44, %v6041_v45 }
 0x74f   : > { %5411 = vmatpush3.bf16.msra.mxu1 %v8312_v61  ;;  %v2411_v4 = vpop.xlane.xlu0 %2410 }
 0x750   : > { %6066 = vrcp.f32 %v2411_v4  ;;  %5412 = vmatprep.subr.bf16.mxu1 %v8306_v54  ;;  %v2220_v18 = vpack.c.bf16 %v2216_v40, %v2214_v14  ;;  %5435 = vmatpush3.bf16.msra.mxu0 %v5934_v36 }
 0x751   : > { %v6063_v3 = vpop.eup %6062  ;;  %5436 = vmatprep.subr.bf16.mxu0 %v8306_v54 }
 0x752   : > { %5383 = vmatmul.mubr.msk.bf16.gmra.mxu1 %vm2163_vm3, %v2220_v18  ;;  %v2218_v47 = vmul.f32 %v6063_v3, %v7149_v26  ;;  %v5922_v26 = vld [vmem:[%s8247_s7 + $0x38] sm:$0xff]  }
 0x753   : > { %5413 = vmatpush3.bf16.msra.mxu1 %v8313_v35  ;;  %v2414_v37 = vpop.xlane.xlu1 %2413  ;;  %5386 = vmatprep.mubr.msk.bf16.mxu1 %vm6209_vm1, %v8306_v54  ;;  %v8314_v35 = vpack.c.bf16 %v7037_v6, %v7027_v55 }
 0x754   : > { %5454 = vmatprep.subr.bf16.mxu1 %v8306_v54  ;;  %6068 = vrcp.f32 %v2414_v37  ;;  %v2221_v53 = vpack.c.bf16 %v2218_v47, %v2218_v47  ;;  %5437 = vmatpush3.bf16.msra.mxu0 %v5935_v63 }
 0x755   : > { %5438 = vmatprep.subr.bf16.mxu0 %v8306_v54 }
 0x757   : > { %v2417_v39 = vpop.xlane.xlu0 %2416 }
 0x758   : > { %6070 = vrcp.f32 %v2417_v39  ;;  %5439 = vmatpush3.bf16.msra.mxu0 %v5936_v43 }
 0x759   : > { %v6065_v45 = vpop.eup %6064  ;;  %5440 = vmatprep.subr.bf16.mxu0 %v8306_v54 }
 0x75a   : > { %5387 = vmatmul.mubr.msk.bf16.gmra.mxu1 %vm2163_vm3, %v2221_v53  ;;  %v2422_v15 = vmul.f32 %v6065_v45, %v7153_v41 }
 0x75b   : > { %v2420_v1 = vpop.xlane.xlu1 %2419  ;;  %5414 = vmatprep.mubr.msk.bf16.mxu1 %vm6209_vm1, %v8306_v54 }
 0x75c   : > { %6072 = vrcp.f32 %v2420_v1  ;;  %5441 = vmatpush3.bf16.msra.mxu0 %v5937_v50 }
 0x75d   : > { %v6067_v30 = vpop.eup %6066  ;;  %5482 = vmatprep.subr.bf16.mxu0 %v8306_v54 }
 0x75e   : > { %v2424_v46 = vmul.f32 %v6067_v30, %v7157_v7 }
 0x760   : > { %v2431_v57 = vpack.c.bf16 %v2424_v46, %v2422_v15 }
 0x761   : > { %v6069_v2 = vpop.eup %6068 }
 0x762   : > { %5415 = vmatmul.mubr.msk.bf16.vlgmr.msra.gmra.mxu1 %vm2163_vm3, %v2431_v57  ;;  %v2426_v7 = vmul.f32 %v6069_v2, %v7161_v62  ;;  %v5925_v62 = vld [vmem:[%s8247_s7 + $0x20] sm:$0xff]  }
 0x763   : > { %5418 = vmatprep.mubr.msk.bf16.mxu1 %vm6209_vm1, %v8306_v54  ;;  %5455 = vmatpush3.bf16.msra.mxu1 %v5922_v26 }
 0x764   : > { %5456 = vmatprep.subr.bf16.mxu1 %v8306_v54 }
 0x765   : > { %v6071_v41 = vpop.eup %6070 }
 0x766   : > { %v2428_v12 = vmul.f32 %v6071_v41, %v7165_v33 }
 0x767   : > { %5457 = vmatpush3.bf16.msra.mxu1 %v5923_v9 }
 0x768   : > { %v2432_v32 = vpack.c.bf16 %v2428_v12, %v2426_v7  ;;  %5458 = vmatprep.subr.bf16.mxu1 %v8306_v54  ;;  %v8316_v12 = vpack.c.bf16 %v6975_v23, %v6969_v29  ;;  %v8318_v29 = vpack.c.bf16 %v6899_v60, %v6893_v58  ;;  %v8319_v23 = vpack.c.bf16 %v6923_v22, %v6917_v19 }
 0x769   : > { %v6073_v42 = vpop.eup %6072 }
 0x76a   : > { %5419 = vmatmul.mubr.msk.bf16.gmra.mxu1 %vm2163_vm3, %v2432_v32  ;;  %v2430_v33 = vmul.f32 %v6073_v42, %v7169_v24  ;;  %v5929_v24 = vld [vmem:[%s8247_s7 + $0x8] sm:$0xff]  }
 0x76b   : > { %5422 = vmatprep.mubr.msk.bf16.mxu1 %vm6209_vm1, %v8306_v54  ;;  %5459 = vmatpush3.bf16.msra.mxu1 %v5924_v38 }
 0x76c   : > { %5460 = vmatprep.subr.bf16.mxu1 %v8306_v54  ;;  %v2433_v56 = vpack.c.bf16 %v2430_v33, %v2430_v33  ;;  %v8317_v33 = vpack.c.bf16 %v6959_v49, %v6953_v0  ;;  %v1374_v0 = vadd.f32 %v6935_v27, %v6883_v51 }
 0x76e   : > { %v2064_v49 = vpack.c.bf16 %v1374_v0, %v1374_v0 }
 0x76f   : > { %5461 = vmatpush3.bf16.msra.mxu1 %v5925_v62 }
 0x770   : > { %5462 = vmatprep.subr.bf16.mxu1 %v8306_v54 }
 0x772   : > { %5423 = vmatmul.mubr.msk.bf16.gmra.mxu1 %vm2163_vm3, %v2433_v56 }
 0x773   : > { %5463 = vmatpush3.bf16.msra.mxu1 %v5926_v17  ;;  %5470 = vmatprep.mubr.msk.bf16.mxu1 %vm6209_vm1, %v8306_v54 }
 0x774   : > { %5464 = vmatprep.subr.bf16.mxu1 %v8306_v54 }
 0x777   : > { %5465 = vmatpush3.bf16.msra.mxu1 %v5927_v28 }
 0x778   : > { %5466 = vmatprep.subr.bf16.mxu1 %v8306_v54 }
 0x77b   : > { %5467 = vmatpush3.bf16.msra.mxu1 %v5929_v24 }
 0x77c   : > { %5468 = vmatprep.subr.bf16.mxu1 %v8306_v54 }
 0x77f   : > { %5469 = vmatpush3.bf16.msra.mxu1 %v5931_v10 }
 0x780   : > { %5500 = vmatprep.subr.bf16.mxu1 %v8306_v54 }
 0x80a   : > { %v2269_v44 = vpop.f32.mrf.mxu1 }
 0x80c   : > { %v5380_v14 = vpop.f32.mrf.mxu1 }
 0x80e   : > { %v2272_v40 = vpop.f32.mrf.mxu1 }
 0x80f   : > { %v2291_v61 = vpack.c.bf16 %v2272_v40, %v2269_v44 }
 0x810   : > { %v5381_v4 = vpop.f32.mrf.mxu1 }
 0x811   : > { %5471 = vmatmul.mubr.bf16.vlgmr.msra.gmra.mxu1 %v2291_v61 }
 0x812   : > { %5501 = vmatpush3.bf16.msra.mxu1 %v7065_v25  ;;  %v2277_v18 = vpop.f32.mrf.mxu1  ;;  %5474 = vmatprep.mubr.msk.bf16.mxu1 %vm6209_vm1, %v8306_v54  ;;  %v8315_v25 = vpack.c.bf16 %v7012_v11, %v6999_v48  ;;  %v2076_v48 = vpack.c.bf16 %v6987_v5, %v6987_v5 }
 0x813   : > { %5502 = vmatprep.subr.bf16.mxu1 %v8306_v54 }
 0x814   : > { %v5384_v3 = vpop.f32.mrf.mxu1 }
 0x816   : > { %5503 = vmatpush3.bf16.msra.mxu1 %v8314_v35  ;;  %v2280_v37 = vpop.f32.mrf.mxu1 }
 0x817   : > { %v2292_v47 = vpack.c.bf16 %v2280_v37, %v2277_v18  ;;  %5504 = vmatprep.subr.bf16.mxu1 %v8306_v54 }
 0x818   : > { %v5385_v39 = vpop.f32.mrf.mxu1 }
 0x819   : > { %5475 = vmatmul.mubr.bf16.gmra.mxu1 %v2292_v47 }
 0x81a   : > { %5505 = vmatpush3.bf16.msra.mxu1 %v8315_v25  ;;  %v2285_v53 = vpop.f32.mrf.mxu1  ;;  %5478 = vmatprep.mubr.msk.bf16.mxu1 %vm6209_vm1, %v8306_v54 }
 0x81b   : > { %5546 = vmatprep.subr.bf16.mxu1 %v8306_v54  ;;  %v2293_v6 = vpack.c.bf16 %v2285_v53, %v2285_v53 }
 0x81c   : > { %v5388_v45 = vpop.f32.mrf.mxu1 }
 0x81e   : > { %v2288_v1 = vpop.f32.mrf.mxu1 }
 0x820   : > { %v5389_v55 = vpop.f32.mrf.mxu1 }
 0x821   : > { %5479 = vmatmul.mubr.bf16.gmra.mxu1 %v2293_v6 }
 0x822   : > { %v2480_v30 = vpop.f32.mrf.mxu1  ;;  %5506 = vmatprep.mubr.msk.bf16.mxu1 %vm6209_vm1, %v8306_v54 }
 0x824   : > { %v5416_v15 = vpop.f32.mrf.mxu1 }
 0x826   : > { %v2483_v46 = vpop.f32.mrf.mxu1 }
 0x827   : > { %v2502_v26 = vpack.c.bf16 %v2483_v46, %v2480_v30 }
 0x828   : > { %v5417_v11 = vpop.f32.mrf.mxu1 }
 0x829   : > { %5443 = vmatmul.mubr.bf16.vlgmr.msra.gmra.mxu0 %v2502_v26 }
 0x82a   : > { %5483 = vmatpush3.bf16.xpose.msra.mxu0 %v2076_v48  ;;  %v2488_v57 = vpop.f32.mrf.mxu1  ;;  %5446 = vmatprep.mubr.msk.bf16.mxu0 %vm6209_vm1, %v8306_v54 }
 0x82b   : > { %5484 = vmatprep.subr.bf16.mxu0 %v8306_v54 }
 0x82c   : > { %v5420_v2 = vpop.f32.mrf.mxu1 }
 0x82e   : > { %v2491_v9 = vpop.f32.mrf.mxu1 }
 0x82f   : > { %v2503_v41 = vpack.c.bf16 %v2491_v9, %v2488_v57 }
 0x830   : > { %v5421_v7 = vpop.f32.mrf.mxu1 }
 0x831   : > { %5447 = vmatmul.mubr.bf16.gmra.mxu0 %v2503_v41 }
 0x832   : > { %5485 = vmatpush3.bf16.xpose.msra.mxu0 %v8316_v12  ;;  %v2496_v38 = vpop.f32.mrf.mxu1  ;;  %5450 = vmatprep.mubr.msk.bf16.mxu0 %vm6209_vm1, %v8306_v54 }
 0x833   : > { %5486 = vmatprep.subr.bf16.mxu0 %v8306_v54  ;;  %v2504_v42 = vpack.c.bf16 %v2496_v38, %v2496_v38 }
 0x834   : > { %v5424_v5 = vpop.f32.mrf.mxu1 }
 0x836   : > { %v2499_v32 = vpop.f32.mrf.mxu1 }
 0x838   : > { %v5425_v62 = vpop.f32.mrf.mxu1 }
 0x839   : > { %5451 = vmatmul.mubr.bf16.gmra.mxu0 %v2504_v42 }
 0x83a   : > { %5487 = vmatpush3.bf16.xpose.msra.mxu0 %v8317_v33  ;;  %5488 = vmatprep.mubr.msk.bf16.mxu0 %vm6209_vm1, %v8306_v54 }
 0x83b   : > { %5518 = vmatprep.subr.bf16.mxu0 %v8306_v54 }
 0x841   : > { %5489 = vmatmul.mubr.bf16.vlgmr.msra.gmra.mxu0 %v8318_v29 }
 0x842   : > { %5492 = vmatprep.mubr.msk.bf16.mxu0 %vm6209_vm1, %v8306_v54 }
 0x849   : > { %5493 = vmatmul.mubr.bf16.gmra.mxu0 %v8319_v23 }
 0x84a   : > { %5496 = vmatprep.mubr.msk.bf16.mxu0 %vm6209_vm1, %v8306_v54 }
 0x851   : > { %5497 = vmatmul.mubr.bf16.gmra.mxu0 %v2064_v49 }
 0x852   : > { %5534 = vmatprep.mubr.msk.bf16.mxu0 %vm6209_vm1, %v8306_v54 }
 0x8d1   : > { %v2707_v58 = vpop.f32.mrf.mxu1 }
 0x8d3   : > { %v5472_v60 = vpop.f32.mrf.mxu1 }
 0x8d5   : > { %v2710_v17 = vpop.f32.mrf.mxu1 }
 0x8d7   : > { %v5473_v56 = vpop.f32.mrf.mxu1 }
 0x8d9   : > { %v2715_v28 = vpop.f32.mrf.mxu1 }
 0x8db   : > { %v5476_v24 = vpop.f32.mrf.mxu1 }
 0x8dd   : > { %v2718_v34 = vpop.f32.mrf.mxu1 }
 0x8df   : > { %v5477_v19 = vpop.f32.mrf.mxu1 }
 0x8e1   : > { %v2723_v22 = vpop.f32.mrf.mxu1 }
 0x8e3   : > { %v5480_v10 = vpop.f32.mrf.mxu1 }
 0x8e5   : > { %v2726_v31 = vpop.f32.mrf.mxu1 }
 0x8e7   : > { %v5481_v21 = vpop.f32.mrf.mxu1 }
 0x8e9   : > { %v2603_v36 = vpop.f32.mrf.mxu0 }
 0x8ea   : > { %v7321_v63 = vadd.f32 %v2707_v58, %v2603_v36 }
 0x8eb   : > { %v5444_v51 = vpop.f32.mrf.mxu0 }
 0x8ed   : > { %v2606_v27 = vpop.f32.mrf.mxu0 }
 0x8ee   : > { %v7323_v43 = vadd.f32 %v2710_v17, %v2606_v27 }
 0x8ef   : > { %v5445_v50 = vpop.f32.mrf.mxu0 }
 0x8f1   : > { %v2611_v44 = vpop.f32.mrf.mxu0 }
 0x8f2   : > { %v7325_v14 = vadd.f32 %v2715_v28, %v2611_v44 }
 0x8f3   : > { %v5448_v40 = vpop.f32.mrf.mxu0 }
 0x8f5   : > { %v2614_v61 = vpop.f32.mrf.mxu0 }
 0x8f6   : > { %v7327_v4 = vadd.f32 %v2718_v34, %v2614_v61 }
 0x8f7   : > { %v5449_v18 = vpop.f32.mrf.mxu0 }
 0x8f9   : > { %v2619_v3 = vpop.f32.mrf.mxu0 }
 0x8fa   : > { %v7329_v35 = vadd.f32 %v2723_v22, %v2619_v3 }
 0x8fb   : > { %v5452_v37 = vpop.f32.mrf.mxu0 }
 0x8fd   : > { %v2622_v47 = vpop.f32.mrf.mxu0 }
 0x8ff   : > { %v5453_v39 = vpop.f32.mrf.mxu0 }
 0x900   : > { %v5938_v39 = vld [vmem:[%s8247_s7 + $0xb8] sm:$0xff]  }
 0x901   : > { %v2763_v25 = vpop.f32.mrf.mxu0  ;;  %5519 = vmatpush3.bf16.msra.mxu0 %v5938_v39 }
 0x902   : > { %v2785_v53 = vmul.f32 0.35355338, %v2763_v25  ;;  %v5939_v25 = vld [vmem:[%s8247_s7 + $0xb0] sm:$0xff]   ;;  %5520 = vmatprep.subr.bf16.mxu0 %v8306_v54 }
 0x903   : > { %v5490_v45 = vpop.f32.mrf.mxu0 }
 0x904   : > { %v2790_v1 = vadd.f32 %v7110_v52, %v2785_v53  ;;  %v5940_v53 = vld [vmem:[%s8247_s7 + $0xa8] sm:$0xff]   ;;  %v5941_v45 = vld [vmem:[%s8247_s7 + $0xa0] sm:$0xff]  }
 0x905   : > { %v2766_v6 = vpop.f32.mrf.mxu0  ;;  %5521 = vmatpush3.bf16.msra.mxu0 %v5939_v25 }
 0x906   : > { %v2786_v55 = vmul.f32 0.35355338, %v2766_v6  ;;  %v2795_v30 = vsel %vm2163_vm3, %v2790_v1, -inf  ;;  %5522 = vmatprep.subr.bf16.mxu0 %v8306_v54  ;;  %v5943_v6 = vld [vmem:[%s8247_s7 + $0x90] sm:$0xff]  }
 0x907   : > { %2796 = vmax.xlane.f32.xlu0 %v2795_v30  ;;  %v5491_v15 = vpop.f32.mrf.mxu0 }
 0x908   : > { %v2791_v46 = vadd.f32 %v7110_v52, %v2786_v55 }
 0x909   : > { %v2771_v26 = vpop.f32.mrf.mxu0  ;;  %5523 = vmatpush3.bf16.msra.mxu0 %v5940_v53 }
 0x90a   : > { %v2787_v48 = vmul.f32 0.35355338, %v2771_v26  ;;  %v2798_v11 = vsel %vm2163_vm3, %v2791_v46, -inf  ;;  %5524 = vmatprep.subr.bf16.mxu0 %v8306_v54 }
 0x90b   : > { %2799 = vmax.xlane.f32.xlu1 %v2798_v11  ;;  %v5494_v57 = vpop.f32.mrf.mxu0 }
 0x90c   : > { %v2792_v2 = vadd.f32 %v7110_v52, %v2787_v48 }
 0x90d   : > { %v2774_v9 = vpop.f32.mrf.mxu0  ;;  %5525 = vmatpush3.bf16.msra.mxu0 %v5941_v45 }
 0x90e   : > { %v2788_v41 = vmul.f32 0.35355338, %v2774_v9  ;;  %v2801_v7 = vsel %vm2163_vm3, %v2792_v2, -inf  ;;  %5526 = vmatprep.subr.bf16.mxu0 %v8306_v54 }
 0x90f   : > { %2802 = vmax.xlane.f32.xlu0 %v2801_v7  ;;  %v5495_v12 = vpop.f32.mrf.mxu0 }
 0x910   : > { %v2793_v38 = vadd.f32 %v7110_v52, %v2788_v41  ;;  %v2077_v41 = vpack.c.bf16 %v6989_v13, %v6989_v13 }
 0x911   : > { %v2779_v5 = vpop.f32.mrf.mxu0 }
 0x912   : > { %v2789_v32 = vmul.f32 0.35355338, %v2779_v5  ;;  %v2804_v42 = vsel %vm2163_vm3, %v2793_v38, -inf }
 0x913   : > { %2805 = vmax.xlane.f32.xlu1 %v2804_v42  ;;  %v5498_v62 = vpop.f32.mrf.mxu0 }
 0x914   : > { %v2794_v33 = vadd.f32 %v7110_v52, %v2789_v32  ;;  %v8320_v62 = vld [vmem:[#allocation17_spill] sm:$0xff] }
 0x915   : > { %v2782_v29 = vpop.f32.mrf.mxu0 }
 0x916   : > { %v2807_v23 = vsel %vm2163_vm3, %v2794_v33, -inf }
 0x917   : > { %2808 = vmax.xlane.f32.xlu0 %v2807_v23  ;;  %v5499_v0 = vpop.f32.mrf.mxu0  ;;  %v6198_v23 = vld [vmem:[%s8256_s16] ss:$4 sm:$0xf] }
 0x918   : > { %v8322_v0 = vld [vmem:[#allocation14_spill] sm:$0xff] }
 0x990   : > { %v2797_v49 = vpop.xlane.xlu0 %2796 }
 0x991   : > { %v2810_v58 = vsub.f32 %v2790_v1, %v2797_v49  ;;  %v5942_v1 = vld [vmem:[%s8247_s7 + $0x98] sm:$0xff]   ;;  %v1093_v49 = vrot.slane %v6198_v23, %v8322_v0 }
 0x992   : > { %5527 = vmatpush3.bf16.msra.mxu0 %v5942_v1 }
 0x993   : > { %v2815_v60 = vmul.f32 1.442695, %v2810_v58  ;;  %5528 = vmatprep.subr.bf16.mxu0 %v8306_v54  ;;  %v8323_v58 = vld [vmem:[#allocation16_spill] sm:$0xff] }
 0x994   : > { %v2800_v17 = vpop.xlane.xlu1 %2799 }
 0x995   : > { %6074 = vpow2.f32 %v2815_v60  ;;  %v2811_v56 = vsub.f32 %v2791_v46, %v2800_v17  ;;  %v8324_v60 = vld [vmem:[#allocation15_spill] sm:$0xff] }
 0x996   : > { %5529 = vmatpush3.bf16.msra.mxu0 %v5943_v6  ;;  %v8325_v17 = vpack.c.bf16 %v8323_v58, %v8324_v60 }
 0x997   : > { %v2817_v28 = vmul.f32 1.442695, %v2811_v56  ;;  %5530 = vmatprep.subr.bf16.mxu0 %v8306_v54 }
 0x998   : > { %v2803_v24 = vpop.xlane.xlu0 %2802 }
 0x999   : > { %6076 = vpow2.f32 %v2817_v28  ;;  %v2812_v34 = vsub.f32 %v2792_v2, %v2803_v24  ;;  %v8327_v28 = vld [vmem:[#allocation9_spill] sm:$0xff] }
 0x99a   : > { %v1356_v24 = vadd.f32 %v8327_v28, %v1093_v49 }
 0x99b   : > { %v2819_v19 = vmul.f32 1.442695, %v2812_v34 }
 0x99c   : > { %v2806_v22 = vpop.xlane.xlu1 %2805 }
 0x99d   : > { %6078 = vpow2.f32 %v2819_v19  ;;  %v2813_v10 = vsub.f32 %v2793_v38, %v2806_v22  ;;  %v8328_v19 = vld [vmem:[#allocation12_spill] sm:$0xff] }
 0x99e   : > { %v1370_v22 = vadd.f32 %v8328_v19, %v1093_v49 }
 0x99f   : > { %v2821_v52 = vmul.f32 1.442695, %v2813_v10  ;;  %v8329_v10 = vld [vmem:[#allocation11_spill] sm:$0xff] }
 0x9a0   : > { %v2809_v31 = vpop.xlane.xlu0 %2808 }
 0x9a1   : > { %6080 = vpow2.f32 %v2821_v52  ;;  %v2814_v21 = vsub.f32 %v2794_v33, %v2809_v31  ;;  %v8321_v33 = vpack.c.bf16 %v6983_v16, %v8320_v62  ;;  %v8326_v16 = vld [vmem:[#allocation10_spill] sm:$0xff]  ;;  %v1366_v52 = vadd.f32 %v8329_v10, %v1093_v49 }
 0x9a2   : > { %v6075_v36 = vpop.eup %6074  ;;  %v1360_v56 = vadd.f32 %v8326_v16, %v1093_v49  ;;  %v8330_v31 = vpack.c.bf16 %v7051_v59, %v7032_v8  ;;  %v5944_v8 = vld [vmem:[%s8247_s7 + $0x88] sm:$0xff]   ;;  %v5945_v59 = vld [vmem:[%s8247_s7 + $0x80] sm:$0xff]  }
 0x9a3   : > { %v2823_v51 = vmul.f32 1.442695, %v2814_v21  ;;  %v2825_v27 = vsel %vm2163_vm3, %v6075_v36, 0.0  ;;  %v2061_v21 = vpack.c.bf16 %v1370_v22, %v1366_v52  ;;  %5531 = vmatpush3.bf16.msra.mxu0 %v5944_v8 }
 0x9a4   : > { %2826 = vadd.xlane.f32.xlu1 %v2825_v27  ;;  %v2057_v34 = vpack.c.bf16 %v1360_v56, %v1356_v24  ;;  %v8334_v27 = vld [vmem:[#allocation13_spill] sm:$0xff]  ;;  %5532 = vmatprep.subr.bf16.mxu0 %v8306_v54 }
 0x9a5   : > { %6082 = vpow2.f32 %v2823_v51  ;;  %v8332_v51 = vld [vmem:[#allocation18_spill] sm:$0xff] }
 0x9a6   : > { %v6077_v50 = vpop.eup %6076 }
 0x9a7   : > { %v2828_v44 = vsel %vm2163_vm3, %v6077_v50, 0.0  ;;  %5533 = vmatpush3.bf16.msra.mxu0 %v5945_v59 }
 0x9a8   : > { %2829 = vadd.xlane.f32.xlu0 %v2828_v44  ;;  %5582 = vmatprep.subr.bf16.mxu0 %v8306_v54 }
 0x9aa   : > { %v6079_v40 = vpop.eup %6078 }
 0x9ab   : > { %v2831_v61 = vsel %vm2163_vm3, %v6079_v40, 0.0 }
 0x9ac   : > { %2832 = vadd.xlane.f32.xlu1 %v2831_v61 }
 0x9ae   : > { %v6081_v18 = vpop.eup %6080 }
 0x9af   : > { %v2834_v3 = vsel %vm2163_vm3, %v6081_v18, 0.0 }
 0x9b0   : > { %2835 = vadd.xlane.f32.xlu0 %v2834_v3 }
 0x9b2   : > { %v6083_v37 = vpop.eup %6082 }
 0x9b3   : > { %v2837_v47 = vsel %vm2163_vm3, %v6083_v37, 0.0 }
 0x9b4   : > { %2838 = vadd.xlane.f32.xlu1 %v2837_v47 }
 0xa2d   : > { %v2827_v55 = vpop.xlane.xlu1 %2826 }
 0xa2e   : > { %6084 = vrcp.f32 %v2827_v55 }
 0xa31   : > { %v2830_v30 = vpop.xlane.xlu0 %2829 }
 0xa32   : > { %6086 = vrcp.f32 %v2830_v30 }
 0xa35   : > { %v2833_v15 = vpop.xlane.xlu1 %2832 }
 0xa36   : > { %6088 = vrcp.f32 %v2833_v15 }
 0xa39   : > { %v2836_v46 = vpop.xlane.xlu0 %2835 }
 0xa3a   : > { %6090 = vrcp.f32 %v2836_v46 }
 0xa3b   : > { %v6085_v26 = vpop.eup %6084 }
 0xa3c   : > { %v2841_v57 = vmul.f32 %v6085_v26, %v6075_v36  ;;  %v8331_v36 = vld [vmem:[#allocation19_spill] sm:$0xff] }
 0xa3d   : > { %v2839_v48 = vpop.xlane.xlu1 %2838 }
 0xa3e   : > { %6092 = vrcp.f32 %v2839_v48 }
 0xa3f   : > { %v6087_v11 = vpop.eup %6086 }
 0xa40   : > { %v2843_v2 = vmul.f32 %v6087_v11, %v6077_v50  ;;  %v1376_v50 = vadd.f32 %v8334_v27, %v1093_v49  ;;  %v6199_v11 = vld [vmem:[%s7107_s21] ss:$0 sm:$0xff] }
 0xa42   : > { %v2850_v9 = vpack.c.bf16 %v2843_v2, %v2841_v57  ;;  %v2065_v44 = vpack.c.bf16 %v1376_v50, %v1376_v50 }
 0xa43   : > { %v6089_v7 = vpop.eup %6088 }
 0xa44   : > { %5507 = vmatmul.mubr.msk.bf16.vlgmr.msra.gmra.mxu1 %vm2163_vm3, %v2850_v9  ;;  %v2845_v38 = vmul.f32 %v6089_v7, %v6079_v40 }
 0xa45   : > { %5547 = vmatpush3.bf16.xpose.msra.mxu1 %v2077_v41  ;;  %5510 = vmatprep.mubr.msk.bf16.mxu1 %vm6209_vm1, %v8306_v54 }
 0xa46   : > { %5548 = vmatprep.subr.bf16.mxu1 %v8306_v54 }
 0xa47   : > { %v6091_v12 = vpop.eup %6090 }
 0xa48   : > { %v2847_v5 = vmul.f32 %v6091_v12, %v6081_v18 }
 0xa4a   : > { %v2851_v32 = vpack.c.bf16 %v2847_v5, %v2845_v38 }
 0xa4b   : > { %v6093_v42 = vpop.eup %6092 }
 0xa4c   : > { %5511 = vmatmul.mubr.msk.bf16.gmra.mxu1 %vm2163_vm3, %v2851_v32  ;;  %v2849_v13 = vmul.f32 %v6093_v42, %v6083_v37 }
 0xa4d   : > { %5549 = vmatpush3.bf16.xpose.msra.mxu1 %v8321_v33  ;;  %5514 = vmatprep.mubr.msk.bf16.mxu1 %vm6209_vm1, %v8306_v54 }
 0xa4e   : > { %5550 = vmatprep.subr.bf16.mxu1 %v8306_v54  ;;  %v2852_v29 = vpack.c.bf16 %v2849_v13, %v2849_v13 }
 0xa54   : > { %5515 = vmatmul.mubr.msk.bf16.gmra.mxu1 %vm2163_vm3, %v2852_v29 }
 0xa55   : > { %5551 = vmatpush3.bf16.xpose.msra.mxu1 %v8325_v17  ;;  %5552 = vmatprep.mubr.msk.bf16.mxu1 %vm6209_vm1, %v8306_v54 }
 0xa56   : > { %5564 = vmatprep.subr.bf16.mxu1 %v8306_v54 }
 0xa5c   : > { %5553 = vmatmul.mubr.bf16.vlgmr.msra.gmra.mxu1 %v2057_v34 }
 0xa5d   : > { %5565 = vmatpush3.bf16.msra.mxu1 %v7078_v20  ;;  %5556 = vmatprep.mubr.msk.bf16.mxu1 %vm6209_vm1, %v8306_v54  ;;  %v8333_v20 = vpack.c.bf16 %v8331_v36, %v8332_v51 }
 0xa5e   : > { %5566 = vmatprep.subr.bf16.mxu1 %v8306_v54 }
 0xa61   : > { %5567 = vmatpush3.bf16.msra.mxu1 %v8330_v31 }
 0xa62   : > { %5568 = vmatprep.subr.bf16.mxu1 %v8306_v54 }
 0xa64   : > { %5557 = vmatmul.mubr.bf16.gmra.mxu1 %v2061_v21 }
 0xa65   : > { %5569 = vmatpush3.bf16.msra.mxu1 %v8333_v20  ;;  %5560 = vmatprep.mubr.msk.bf16.mxu1 %vm6209_vm1, %v8306_v54 }
 0xa66   : > { %5610 = vmatprep.subr.bf16.mxu1 %v8306_v54 }
 0xa6c   : > { %5561 = vmatmul.mubr.bf16.gmra.mxu1 %v2065_v44 }
 0xa6d   : > { %5570 = vmatprep.mubr.msk.bf16.mxu1 %vm6209_vm1, %v8306_v54 }
 0xb04   : > { %v2899_v40 = vpop.f32.mrf.mxu1 }
 0xb06   : > { %v5508_v61 = vpop.f32.mrf.mxu1 }
 0xb08   : > { %v2902_v18 = vpop.f32.mrf.mxu1 }
 0xb09   : > { %v2921_v3 = vpack.c.bf16 %v2902_v18, %v2899_v40 }
 0xb0a   : > { %v5509_v37 = vpop.f32.mrf.mxu1 }
 0xb0b   : > { %5535 = vmatmul.mubr.bf16.vlgmr.msra.gmra.mxu0 %v2921_v3 }
 0xb0c   : > { %v2907_v47 = vpop.f32.mrf.mxu1  ;;  %5538 = vmatprep.mubr.msk.bf16.mxu0 %vm6209_vm1, %v8306_v54 }
 0xb0e   : > { %v5512_v39 = vpop.f32.mrf.mxu1 }
 0xb10   : > { %v2910_v25 = vpop.f32.mrf.mxu1 }
 0xb11   : > { %v2922_v53 = vpack.c.bf16 %v2910_v25, %v2907_v47 }
 0xb12   : > { %v5513_v45 = vpop.f32.mrf.mxu1 }
 0xb13   : > { %5539 = vmatmul.mubr.bf16.gmra.mxu0 %v2922_v53 }
 0xb14   : > { %v2915_v1 = vpop.f32.mrf.mxu1  ;;  %5542 = vmatprep.mubr.msk.bf16.mxu0 %vm6209_vm1, %v8306_v54 }
 0xb15   : > { %v2923_v30 = vpack.c.bf16 %v2915_v1, %v2915_v1 }
 0xb16   : > { %v5516_v6 = vpop.f32.mrf.mxu1 }
 0xb18   : > { %v2918_v55 = vpop.f32.mrf.mxu1 }
 0xb1a   : > { %v5517_v15 = vpop.f32.mrf.mxu1 }
 0xb1b   : > { %5543 = vmatmul.mubr.bf16.gmra.mxu0 %v2923_v30 }
 0xb1c   : > { %v3083_v46 = vpop.f32.mrf.mxu1  ;;  %5598 = vmatprep.mubr.msk.bf16.mxu0 %vm6209_vm1, %v8306_v54 }
 0xb1d   : > { %v3105_v26 = vmul.f32 0.35355338, %v3083_v46 }
 0xb1e   : > { %v5554_v48 = vpop.f32.mrf.mxu1 }
 0xb1f   : > { %v3110_v57 = vadd.f32 %v6199_v11, %v3105_v26 }
 0xb20   : > { %v3086_v2 = vpop.f32.mrf.mxu1 }
 0xb21   : > { %v3106_v9 = vmul.f32 0.35355338, %v3086_v2  ;;  %v3115_v41 = vsel %vm2163_vm3, %v3110_v57, -inf }
 0xb22   : > { %3116 = vmax.xlane.f32.xlu0 %v3115_v41  ;;  %v5555_v7 = vpop.f32.mrf.mxu1 }
 0xb23   : > { %v3111_v12 = vadd.f32 %v6199_v11, %v3106_v9 }
 0xb24   : > { %v3091_v38 = vpop.f32.mrf.mxu1 }
 0xb25   : > { %v3107_v5 = vmul.f32 0.35355338, %v3091_v38  ;;  %v3118_v32 = vsel %vm2163_vm3, %v3111_v12, -inf }
 0xb26   : > { %3119 = vmax.xlane.f32.xlu1 %v3118_v32  ;;  %v5558_v42 = vpop.f32.mrf.mxu1 }
 0xb27   : > { %v3112_v62 = vadd.f32 %v6199_v11, %v3107_v5 }
 0xb28   : > { %v3094_v33 = vpop.f32.mrf.mxu1 }
 0xb29   : > { %v3108_v13 = vmul.f32 0.35355338, %v3094_v33  ;;  %v3121_v29 = vsel %vm2163_vm3, %v3112_v62, -inf }
 0xb2a   : > { %3122 = vmax.xlane.f32.xlu0 %v3121_v29  ;;  %v5559_v23 = vpop.f32.mrf.mxu1 }
 0xb2b   : > { %v3113_v0 = vadd.f32 %v6199_v11, %v3108_v13 }
 0xb2c   : > { %v3099_v49 = vpop.f32.mrf.mxu1 }
 0xb2d   : > { %v3124_v58 = vsel %vm2163_vm3, %v3113_v0, -inf  ;;  %v3109_v44 = vmul.f32 0.35355338, %v3099_v49 }
 0xb2e   : > { %3125 = vmax.xlane.f32.xlu1 %v3124_v58  ;;  %v5562_v60 = vpop.f32.mrf.mxu1  ;;  %v5946_v58 = vld [vmem:[%s8247_s7 + $0xf8] sm:$0xff]  }
 0xb2f   : > { %v3114_v61 = vadd.f32 %v6199_v11, %v3109_v44  ;;  %5583 = vmatpush3.bf16.msra.mxu0 %v5946_v58  ;;  %v5947_v60 = vld [vmem:[%s8247_s7 + $0xf0] sm:$0xff]  }
 0xb30   : > { %v3102_v17 = vpop.f32.mrf.mxu1  ;;  %5584 = vmatprep.subr.bf16.mxu0 %v8306_v54 }
 0xb31   : > { %v3127_v37 = vsel %vm2163_vm3, %v3114_v61, -inf  ;;  %v5948_v17 = vld [vmem:[%s8247_s7 + $0xe8] sm:$0xff]  }
 0xb32   : > { %v5563_v16 = vpop.f32.mrf.mxu1 }
 0xb33   : > { %5585 = vmatpush3.bf16.msra.mxu0 %v5947_v60  ;;  %v5949_v16 = vld [vmem:[%s8247_s7 + $0xe0] sm:$0xff]  }
 0xb34   : > { %5586 = vmatprep.subr.bf16.mxu0 %v8306_v54 }
 0xb37   : > { %5587 = vmatpush3.bf16.msra.mxu0 %v5948_v17 }
 0xb38   : > { %5588 = vmatprep.subr.bf16.mxu0 %v8306_v54 }
 0xb3b   : > { %5589 = vmatpush3.bf16.msra.mxu0 %v5949_v16 }
 0xb3c   : > { %5590 = vmatprep.subr.bf16.mxu0 %v8306_v54 }
 0xbab   : > { %v3117_v56 = vpop.xlane.xlu0 %3116 }
 0xbac   : > { %v3130_v28 = vsub.f32 %v3110_v57, %v3117_v56  ;;  %v5950_v56 = vld [vmem:[%s8247_s7 + $0xd8] sm:$0xff]  }
 0xbad   : > { %5591 = vmatpush3.bf16.msra.mxu0 %v5950_v56 }
 0xbae   : > { %v3135_v24 = vmul.f32 1.442695, %v3130_v28  ;;  %v5951_v28 = vld [vmem:[%s8247_s7 + $0xd0] sm:$0xff]   ;;  %5592 = vmatprep.subr.bf16.mxu0 %v8306_v54 }
 0xbaf   : > { %v3120_v34 = vpop.xlane.xlu1 %3119 }
 0xbb0   : > { %6094 = vpow2.f32 %v3135_v24  ;;  %v3131_v19 = vsub.f32 %v3111_v12, %v3120_v34  ;;  %v5952_v24 = vld [vmem:[%s8247_s7 + $0xc8] sm:$0xff]   ;;  %v5953_v34 = vld [vmem:[%s8247_s7 + $0xc0] sm:$0xff]  }
 0xbb1   : > { %5593 = vmatpush3.bf16.msra.mxu0 %v5951_v28 }
 0xbb2   : > { %v3137_v22 = vmul.f32 1.442695, %v3131_v19  ;;  %5594 = vmatprep.subr.bf16.mxu0 %v8306_v54 }
 0xbb3   : > { %v3123_v10 = vpop.xlane.xlu0 %3122 }
 0xbb4   : > { %6096 = vpow2.f32 %v3137_v22  ;;  %v3132_v52 = vsub.f32 %v3112_v62, %v3123_v10 }
 0xbb5   : > { %5595 = vmatpush3.bf16.msra.mxu0 %v5952_v24 }
 0xbb6   : > { %v3139_v31 = vmul.f32 1.442695, %v3132_v52  ;;  %5596 = vmatprep.subr.bf16.mxu0 %v8306_v54 }
 0xbb7   : > { %v3126_v21 = vpop.xlane.xlu1 %3125 }
 0xbb8   : > { %6098 = vpow2.f32 %v3139_v31  ;;  %v3133_v36 = vsub.f32 %v3113_v0, %v3126_v21 }
 0xbb9   : > { %5597 = vmatpush3.bf16.msra.mxu0 %v5953_v34 }
 0xbba   : > { %v3141_v51 = vmul.f32 1.442695, %v3133_v36  ;;  %5638 = vmatprep.subr.bf16.mxu0 %v8306_v54 }
 0xbbc   : > { %6100 = vpow2.f32 %v3141_v51 }
 0xbbd   : > { %v6095_v20 = vpop.eup %6094 }
 0xbbe   : > { %v3145_v27 = vsel %vm2163_vm3, %v6095_v20, 0.0 }
 0xbbf   : > { %3146 = vadd.xlane.f32.xlu0 %v3145_v27 }
 0xbc1   : > { %v6097_v50 = vpop.eup %6096 }
 0xbc2   : > { %v3148_v8 = vsel %vm2163_vm3, %v6097_v50, 0.0 }
 0xbc3   : > { %3149 = vadd.xlane.f32.xlu1 %v3148_v8 }
 0xbc5   : > { %v6099_v59 = vpop.eup %6098 }
 0xbc6   : > { %v3151_v40 = vsel %vm2163_vm3, %v6099_v59, 0.0 }
 0xbc7   : > { %3152 = vadd.xlane.f32.xlu0 %v3151_v40 }
 0xbc9   : > { %v6101_v18 = vpop.eup %6100 }
 0xbca   : > { %v3154_v3 = vsel %vm2163_vm3, %v6101_v18, 0.0 }
 0xbcb   : > { %3155 = vadd.xlane.f32.xlu1 %v3154_v3  ;;  %3128 = vmax.xlane.f32.xlu0 %v3127_v37  ;;  %v3022_v47 = vpop.f32.mrf.mxu0 }
 0xbcc   : > { %v7440_v39 = vadd.f32 %v3022_v47, %v7321_v63 }
 0xbcd   : > { %v5536_v25 = vpop.f32.mrf.mxu0 }
 0xbcf   : > { %v3025_v53 = vpop.f32.mrf.mxu0 }
 0xbd0   : > { %v7443_v45 = vadd.f32 %v3025_v53, %v7323_v43 }
 0xbd1   : > { %v5537_v1 = vpop.f32.mrf.mxu0 }
 0xbd2   : > { %v5042_v1 = vld [vmem:[%s8254_s14 + $0x5] ss:$0 sm:$0xff] }
 0xbd3   : > { %v3030_v6 = vpop.f32.mrf.mxu0 }
 0xbd4   : > { %v7446_v55 = vadd.f32 %v3030_v6, %v7325_v14  ;;  %v8335_v6 = vld [vmem:[#allocation3_spill] sm:$0xff] }
 0xbd5   : > { %v5540_v30 = vpop.f32.mrf.mxu0 }
 0xbd7   : > { %v3033_v15 = vpop.f32.mrf.mxu0 }
 0xbd8   : > { %v7449_v46 = vadd.f32 %v3033_v15, %v7327_v4 }
 0xbd9   : > { %v5541_v26 = vpop.f32.mrf.mxu0 }
 0xbdb   : > { %v3038_v48 = vpop.f32.mrf.mxu0 }
 0xbdc   : > { %v7452_v63 = vadd.f32 %v3038_v48, %v7329_v35 }
 0xbdd   : > { %v5544_v11 = vpop.f32.mrf.mxu0 }
 0xbdf   : > { %v3041_v57 = vpop.f32.mrf.mxu0 }
 0xbe0   : > { %v8337_v57 = vld [vmem:[#allocation4_spill] sm:$0xff] }
 0xbe1   : > { %v5545_v2 = vpop.f32.mrf.mxu0 }
 0xc48   : > { %v3147_v43 = vpop.xlane.xlu0 %3146 }
 0xc49   : > { %6102 = vrcp.f32 %v3147_v43 }
 0xc4c   : > { %v3150_v9 = vpop.xlane.xlu1 %3149 }
 0xc4d   : > { %6104 = vrcp.f32 %v3150_v9 }
 0xc50   : > { %v3153_v41 = vpop.xlane.xlu0 %3152 }
 0xc51   : > { %6106 = vrcp.f32 %v3153_v41 }
 0xc54   : > { %v3156_v14 = vpop.xlane.xlu1 %3155  ;;  %v3129_v7 = vpop.xlane.xlu0 %3128 }
 0xc55   : > { %6108 = vrcp.f32 %v3156_v14  ;;  %v3134_v12 = vsub.f32 %v3114_v61, %v3129_v7  ;;  %v8339_v14 = vld [vmem:[#allocation5_spill] sm:$0xff] }
 0xc56   : > { %v6103_v38 = vpop.eup %6102 }
 0xc57   : > { %v3143_v4 = vmul.f32 1.442695, %v3134_v12  ;;  %v3161_v32 = vmul.f32 %v6103_v38, %v6095_v20 }
 0xc59   : > { %6110 = vpow2.f32 %v3143_v4 }
 0xc5a   : > { %v6105_v5 = vpop.eup %6104 }
 0xc5b   : > { %v3163_v35 = vmul.f32 %v6105_v5, %v6097_v50  ;;  %v8341_v5 = vld [vmem:[#allocation6_spill] sm:$0xff] }
 0xc5d   : > { %v3170_v42 = vpack.c.bf16 %v3163_v35, %v3161_v32 }
 0xc5e   : > { %v6107_v62 = vpop.eup %6106 }
 0xc5f   : > { %5571 = vmatmul.mubr.msk.bf16.vlgmr.msra.gmra.mxu1 %vm2163_vm3, %v3170_v42  ;;  %v3165_v13 = vmul.f32 %v6107_v62, %v6099_v59  ;;  %v5955_v42 = vld [vmem:[%s8249_s9 + $0x38] sm:$0xff]  }
 0xc60   : > { %5574 = vmatprep.mubr.msk.bf16.mxu1 %vm6209_vm1, %v8306_v54 }
 0xc62   : > { %v6109_v33 = vpop.eup %6108 }
 0xc63   : > { %v3167_v29 = vmul.f32 %v6109_v33, %v6101_v18 }
 0xc65   : > { %v3171_v23 = vpack.c.bf16 %v3167_v29, %v3165_v13 }
 0xc66   : > { %v6111_v0 = vpop.eup %6110 }
 0xc67   : > { %5575 = vmatmul.mubr.msk.bf16.gmra.mxu1 %vm2163_vm3, %v3171_v23  ;;  %v3157_v49 = vsel %vm2163_vm3, %v6111_v0, 0.0  ;;  %v8343_v23 = vld [vmem:[#allocation2_spill] sm:$0xff] }
 0xc68   : > { %3158 = vadd.xlane.f32.xlu1 %v3157_v49  ;;  %5578 = vmatprep.mubr.msk.bf16.mxu1 %vm6209_vm1, %v8306_v54 }
 0xcf1   : > { %v3159_v19 = vpop.xlane.xlu1 %3158 }
 0xcf2   : > { %6112 = vrcp.f32 %v3159_v19 }
 0xcff   : > { %v6113_v22 = vpop.eup %6112 }
 0xd00   : > { %v3169_v10 = vmul.f32 %v6113_v22, %v6111_v0 }
 0xd02   : > { %v3172_v52 = vpack.c.bf16 %v3169_v10, %v3169_v10 }
 0xd04   : > { %5579 = vmatmul.mubr.msk.bf16.gmra.mxu1 %vm2163_vm3, %v3172_v52 }
 0xd05   : > { %5626 = vmatprep.mubr.msk.bf16.mxu1 %vm6209_vm1, %v8306_v54 }
 0xd1f   : > { %v3219_v31 = vpop.f32.mrf.mxu1 }
 0xd21   : > { %v5572_v21 = vpop.f32.mrf.mxu1 }
 0xd23   : > { %v3222_v36 = vpop.f32.mrf.mxu1 }
 0xd24   : > { %v3241_v51 = vpack.c.bf16 %v3222_v36, %v3219_v31 }
 0xd25   : > { %v5573_v20 = vpop.f32.mrf.mxu1 }
 0xd26   : > { %5599 = vmatmul.mubr.bf16.vlgmr.msra.gmra.mxu0 %v3241_v51  ;;  %v8344_v20 = vld [vmem:[#allocation7_spill] sm:$0xff] }
 0xd27   : > { %v3227_v27 = vpop.f32.mrf.mxu1  ;;  %5602 = vmatprep.mubr.msk.bf16.mxu0 %vm6209_vm1, %v8306_v54  ;;  %5639 = vmatpush3.bf16.msra.mxu0 %v5955_v42 }
 0xd28   : > { %5640 = vmatprep.subr.bf16.mxu0 %v8306_v54 }
 0xd29   : > { %v5576_v50 = vpop.f32.mrf.mxu1 }
 0xd2b   : > { %v3230_v44 = vpop.f32.mrf.mxu1 }
 0xd2c   : > { %v3242_v8 = vpack.c.bf16 %v3230_v44, %v3227_v27  ;;  %v5956_v44 = vld [vmem:[%s8248_s8 + $0x30] sm:$0xff]  }
 0xd2d   : > { %v5577_v59 = vpop.f32.mrf.mxu1 }
 0xd2e   : > { %5603 = vmatmul.mubr.bf16.gmra.mxu0 %v3242_v8  ;;  %v5957_v8 = vld [vmem:[%s8249_s9 + $0x30] sm:$0xff]  }
 0xd2f   : > { %5606 = vmatprep.mubr.msk.bf16.mxu0 %vm6209_vm1, %v8306_v54  ;;  %5641 = vmatpush3.bf16.msra.mxu0 %v5957_v8 }
 0xd30   : > { %5642 = vmatprep.subr.bf16.mxu0 %v8306_v54 }
 0xdc4   : > { %v3235_v40 = vpop.f32.mrf.mxu1 }
 0xdc5   : > { %v3243_v61 = vpack.c.bf16 %v3235_v40, %v3235_v40 }
 0xdc6   : > { %v5580_v18 = vpop.f32.mrf.mxu1 }
 0xdc7   : > { %5607 = vmatmul.mubr.bf16.gmra.mxu0 %v3243_v61  ;;  %v5959_v61 = vld [vmem:[%s8249_s9 + $0x28] sm:$0xff]   ;;  %v5960_v18 = vld [vmem:[%s8248_s8 + $0x20] sm:$0xff]  }
 0xdc8   : > { %v3238_v3 = vpop.f32.mrf.mxu1  ;;  %5654 = vmatprep.mubr.msk.bf16.mxu0 %vm6209_vm1, %v8306_v54  ;;  %5643 = vmatpush3.bf16.msra.mxu0 %v5959_v61 }
 0xdc9   : > { %5644 = vmatprep.subr.bf16.mxu0 %v8306_v54  ;;  %v5961_v3 = vld [vmem:[%s8249_s9 + $0x20] sm:$0xff]  }
 0xdca   : > { %v5581_v37 = vpop.f32.mrf.mxu1 }
 0xdcb   : > { %v5962_v37 = vld [vmem:[%s8248_s8 + $0x18] sm:$0xff]  }
 0xdcc   : > { %5645 = vmatpush3.bf16.msra.mxu0 %v5961_v3 }
 0xdcd   : > { %5646 = vmatprep.subr.bf16.mxu0 %v8306_v54 }
 0xde6   : > { %v3342_v47 = vpop.f32.mrf.mxu0 }
 0xde7   : > { %v3364_v25 = vadd.f32 %v3342_v47, %v7440_v39  ;;  %v5963_v47 = vld [vmem:[%s8249_s9 + $0x18] sm:$0xff]  }
 0xde8   : > { %v5600_v53 = vpop.f32.mrf.mxu0  ;;  %5647 = vmatpush3.bf16.msra.mxu0 %v5963_v47  ;;  %v7655_v47 = vrot.slane %v8306_v54, 1 }
 0xde9   : > { %v3369_v30 = vadd.f32 %v3364_v25, %v8335_v6  ;;  %5648 = vmatprep.subr.bf16.mxu0 %v8306_v54  ;;  %v5964_v25 = vld [vmem:[%s8248_s8 + $0x10] sm:$0xff]   ;;  %v5967_v6 = vld [vmem:[%s8249_s9 + $0x8] sm:$0xff]  }
 0xdea   : > { %v3345_v15 = vpop.f32.mrf.mxu0  ;;  %v5965_v53 = vld [vmem:[%s8249_s9 + $0x10] sm:$0xff]  }
 0xdeb   : > { %v3365_v26 = vadd.f32 %v3345_v15, %v7443_v45  ;;  %v7508_v48 = vadd.f32 %v5042_v1, %v3369_v30  ;;  %v5968_v30 = vld [vmem:[%s8248_s8] sm:$0xff]  }
 0xdec   : > { %v5601_v11 = vpop.f32.mrf.mxu0  ;;  %5649 = vmatpush3.bf16.msra.mxu0 %v5965_v53  ;;  %v5969_v15 = vld [vmem:[%s8249_s9] sm:$0xff]  }
 0xded   : > { %8336 = vst [vmem:[#allocation17_spill] sm:$0xff] %v7508_v48  ;;  %v3370_v2 = vadd.f32 %v3365_v26, %v8337_v57  ;;  %3386 = vadd.xlane.f32.xlu0 %v7508_v48  ;;  %5650 = vmatprep.subr.bf16.mxu0 %v8306_v54  ;;  %v7660_v53 = vld [vmem:[%s8250_s10 + $0x7] ss:$0 sm:$0xff] }
 0xdee   : > { %v3350_v43 = vpop.f32.mrf.mxu0 }
 0xdef   : > { %v3366_v39 = vadd.f32 %v3350_v43, %v7446_v55  ;;  %v7513_v9 = vadd.f32 %v5042_v1, %v3370_v2  ;;  %v5954_v55 = vld [vmem:[%s8248_s8 + $0x38] sm:$0xff]  }
 0xdf0   : > { %v5604_v41 = vpop.f32.mrf.mxu0  ;;  %5611 = vmatpush3.bf16.msra.mxu1 %v5954_v55  ;;  %5651 = vmatpush3.bf16.msra.mxu0 %v5967_v6  ;;  %v7623_v55 = vld [vmem:[%s8254_s14 + $0x6] ss:$0 sm:$0xff] }
 0xdf1   : > { %8338 = vst [vmem:[#allocation14_spill] sm:$0xff] %v7513_v9  ;;  %v3371_v7 = vadd.f32 %v3366_v39, %v8339_v14  ;;  %3388 = vadd.xlane.f32.xlu1 %v7513_v9  ;;  %5612 = vmatprep.subr.bf16.mxu1 %v8306_v54 }
 0xdf2   : > { %v3353_v12 = vpop.f32.mrf.mxu0  ;;  %5652 = vmatprep.subr.bf16.mxu0 %v8306_v54 }
 0xdf3   : > { %v3367_v45 = vadd.f32 %v3353_v12, %v7449_v46  ;;  %v7518_v4 = vadd.f32 %v5042_v1, %v3371_v7 }
 0xdf4   : > { %v5605_v38 = vpop.f32.mrf.mxu0  ;;  %5613 = vmatpush3.bf16.msra.mxu1 %v5956_v44  ;;  %5653 = vmatpush3.bf16.msra.mxu0 %v5969_v15 }
 0xdf5   : > { %8340 = vst [vmem:[#allocation16_spill] sm:$0xff] %v7518_v4  ;;  %v3372_v32 = vadd.f32 %v3367_v45, %v8341_v5  ;;  %3390 = vadd.xlane.f32.xlu0 %v7518_v4  ;;  %5614 = vmatprep.subr.bf16.mxu1 %v8306_v54 }
 0xdf6   : > { %5694 = vmatprep.subr.bf16.mxu0 %v8306_v54 }
 0xdf7   : > { %v7522_v35 = vadd.f32 %v5042_v1, %v3372_v32 }
 0xdf9   : > { %8342 = vst [vmem:[#allocation15_spill] sm:$0xff] %v7522_v35  ;;  %3392 = vadd.xlane.f32.xlu1 %v7522_v35 }
 0xe76   : > { %v3387_v46 = vpop.xlane.xlu0 %3386 }
 0xe77   : > { %v3396_v62 = vmul.f32 0.03125, %v3387_v46 }
 0xe79   : > { %v3401_v33 = vsub.f32 %v7508_v48, %v3396_v62 }
 0xe7a   : > { %v3389_v13 = vpop.xlane.xlu1 %3388 }
 0xe7b   : > { %v3397_v29 = vmul.f32 0.03125, %v3389_v13  ;;  %v7535_v0 = vmul.f32 %v8343_v23, %v3401_v33  ;;  %v7630_v33 = vld [vmem:[%s8254_s14 + $0x7] ss:$0 sm:$0xff] }
 0xe7c   : > { %8345 = vst [vmem:[#allocation10_spill] sm:$0xff] %v7630_v33 }
 0xe7d   : > { %v3402_v49 = vsub.f32 %v7513_v9, %v3397_v29  ;;  %v3411_v58 = vmul.f32 %v7535_v0, %v7535_v0 }
 0xe7e   : > { %v3391_v60 = vpop.xlane.xlu0 %3390 }
 0xe7f   : > { %v3398_v17 = vmul.f32 0.03125, %v3391_v60  ;;  %3416 = vadd.xlane.f32.xlu0 %v3411_v58  ;;  %v7541_v16 = vmul.f32 %v8343_v23, %v3402_v49 }
 0xe81   : > { %v3403_v56 = vsub.f32 %v7518_v4, %v3398_v17  ;;  %v3412_v28 = vmul.f32 %v7541_v16, %v7541_v16 }
 0xe82   : > { %v3393_v24 = vpop.xlane.xlu1 %3392 }
 0xe83   : > { %v3399_v34 = vmul.f32 0.03125, %v3393_v24  ;;  %3418 = vadd.xlane.f32.xlu1 %v3412_v28  ;;  %v7547_v19 = vmul.f32 %v8343_v23, %v3403_v56 }
 0xe85   : > { %v3404_v22 = vsub.f32 %v7522_v35, %v3399_v34  ;;  %v3413_v10 = vmul.f32 %v7547_v19, %v7547_v19 }
 0xe87   : > { %3420 = vadd.xlane.f32.xlu0 %v3413_v10  ;;  %v3358_v52 = vpop.f32.mrf.mxu0  ;;  %v7553_v31 = vmul.f32 %v8343_v23, %v3404_v22  ;;  %v5054_v22 = vld [vmem:[%s8254_s14 + $0x9] ss:$0 sm:$0xff] }
 0xe88   : > { %v3368_v21 = vadd.f32 %v3358_v52, %v7452_v63  ;;  %v5958_v63 = vld [vmem:[%s8248_s8 + $0x28] sm:$0xff]  }
 0xe89   : > { %v5608_v36 = vpop.f32.mrf.mxu0  ;;  %v3414_v51 = vmul.f32 %v7553_v31, %v7553_v31  ;;  %5615 = vmatpush3.bf16.msra.mxu1 %v5958_v63 }
 0xe8a   : > { %v3373_v27 = vadd.f32 %v3368_v21, %v8344_v20  ;;  %5616 = vmatprep.subr.bf16.mxu1 %v8306_v54 }
 0xe8b   : > { %3422 = vadd.xlane.f32.xlu1 %v3414_v51  ;;  %v3361_v50 = vpop.f32.mrf.mxu0 }
 0xe8c   : > { %v7565_v59 = vadd.f32 %v5042_v1, %v3373_v27  ;;  %v5966_v1 = vld [vmem:[%s8248_s8 + $0x8] sm:$0xff]  }
 0xe8d   : > { %v5609_v40 = vpop.f32.mrf.mxu0  ;;  %5617 = vmatpush3.bf16.msra.mxu1 %v5960_v18 }
 0xe8e   : > { %3394 = vadd.xlane.f32.xlu0 %v7565_v59  ;;  %5618 = vmatprep.subr.bf16.mxu1 %v8306_v54 }
 0xe91   : > { %5619 = vmatpush3.bf16.msra.mxu1 %v5962_v37 }
 0xe92   : > { %4090 = vadd.xlane.f32.xlu0 %v8306_v54  ;;  %5620 = vmatprep.subr.bf16.mxu1 %v8306_v54 }
 0xe95   : > { %5621 = vmatpush3.bf16.msra.mxu1 %v5964_v25 }
 0xe96   : > { %5622 = vmatprep.subr.bf16.mxu1 %v8306_v54 }
 0xe99   : > { %5623 = vmatpush3.bf16.msra.mxu1 %v5966_v1  ;;  %v7665_v1 = vld [vmem:[%s8250_s10] ss:$0 sm:$0xff] }
 0xe9a   : > { %5624 = vmatprep.subr.bf16.mxu1 %v8306_v54 }
 0xe9d   : > { %5625 = vmatpush3.bf16.msra.mxu1 %v5968_v30 }
 0xe9e   : > { %5666 = vmatprep.subr.bf16.mxu1 %v8306_v54 }
 0xf08   : > { %v3417_v26 = vpop.xlane.xlu0 %3416 }
 0xf09   : > { %v3426_v11 = vmul.f32 0.03125, %v3417_v26 }
 0xf0b   : > { %v3431_v57 = vadd.f32 1e-05, %v3426_v11  ;;  %v7668_v11 = vmul.f32 0.0, %v7660_v53 }
 0xf0c   : > { %v3419_v2 = vpop.xlane.xlu1 %3418 }
 0xf0d   : > { %6114 = vrsqrt.f32 %v3431_v57  ;;  %v3427_v43 = vmul.f32 0.03125, %v3419_v2  ;;  %v3802_v57 = vmul.f32 %v7665_v1, %v7655_v47  ;;  %v7673_v2 = vrot.slane %v8306_v54, 2 }
 0xf0f   : > { %v3432_v39 = vadd.f32 1e-05, %v3427_v43  ;;  %v7678_v43 = vld [vmem:[%s8250_s10 + $0x1] ss:$0 sm:$0xff] }
 0xf10   : > { %v3421_v41 = vpop.xlane.xlu0 %3420 }
 0xf11   : > { %6116 = vrsqrt.f32 %v3432_v39  ;;  %v3428_v14 = vmul.f32 0.03125, %v3421_v41  ;;  %v3807_v41 = vadd.f32 %v3802_v57, %v7668_v11 }
 0xf13   : > { %v3433_v7 = vadd.f32 1e-05, %v3428_v14  ;;  %v3828_v14 = vmul.f32 %v7678_v43, %v7673_v2 }
 0xf14   : > { %v3423_v12 = vpop.xlane.xlu1 %3422 }
 0xf15   : > { %6118 = vrsqrt.f32 %v3433_v7  ;;  %v3429_v45 = vmul.f32 0.03125, %v3423_v12  ;;  %v7684_v7 = vrot.slane %v8306_v54, 3 }
 0xf17   : > { %v3434_v38 = vadd.f32 1e-05, %v3429_v45  ;;  %v7689_v45 = vld [vmem:[%s8250_s10 + $0x2] ss:$0 sm:$0xff] }
 0xf19   : > { %6120 = vrsqrt.f32 %v3434_v38 }
 0xf1a   : > { %v6115_v5 = vpop.eup %6114 }
 0xf1b   : > { %v3441_v32 = vmul.f32 %v6115_v5, %v7535_v0  ;;  %v3833_v5 = vadd.f32 %v3828_v14, %v3807_v41 }
 0xf1d   : > { %v3450_v46 = vmul.f32 %v7623_v55, %v3441_v32  ;;  %v3854_v32 = vmul.f32 %v7689_v45, %v7684_v7 }
 0xf1e   : > { %v6117_v42 = vpop.eup %6116 }
 0xf1f   : > { %v3442_v62 = vmul.f32 %v6117_v42, %v7541_v16  ;;  %v3459_v0 = vadd.f32 %v7630_v33, %v3450_v46  ;;  %v7694_v42 = vrot.slane %v8306_v54, 4 }
 0xf21   : > { %v3451_v13 = vmul.f32 %v7623_v55, %v3442_v62  ;;  %v7699_v62 = vld [vmem:[%s8250_s10 + $0x3] ss:$0 sm:$0xff] }
 0xf22   : > { %v6119_v29 = vpop.eup %6118 }
 0xf23   : > { %v3460_v49 = vadd.f32 %v7630_v33, %v3451_v13  ;;  %v3443_v58 = vmul.f32 %v6119_v29, %v7547_v19  ;;  %v3859_v29 = vadd.f32 %v3854_v32, %v3833_v5 }
 0xf25   : > { %v3464_v60 = vpack.c.bf16 %v3460_v49, %v3459_v0  ;;  %v3452_v56 = vmul.f32 %v7623_v55, %v3443_v58  ;;  %v3880_v0 = vmul.f32 %v7699_v62, %v7694_v42  ;;  %v7704_v49 = vrot.slane %v8306_v54, 5 }
 0xf26   : > { %v6121_v17 = vpop.eup %6120 }
 0xf27   : > { %5627 = vmatmul.mubr.bf16.vlgmr.msra.gmra.mxu1 %v3464_v60  ;;  %5655 = vmatmul.mubr.bf16.vlgmr.msra.gmra.mxu0 %v3464_v60  ;;  %v3444_v16 = vmul.f32 %v6121_v17, %v7553_v31  ;;  %v3461_v24 = vadd.f32 %v7630_v33, %v3452_v56  ;;  %v7709_v60 = vld [vmem:[%s8250_s10 + $0x4] ss:$0 sm:$0xff]  ;;  %v5045_v17 = vld [vmem:[%s8254_s14 + $0x8] ss:$0 sm:$0xff] }
 0xf28   : > { %5630 = vmatprep.mubr.msk.bf16.mxu1 %vm6209_vm1, %v8306_v54  ;;  %5658 = vmatprep.mubr.msk.bf16.mxu0 %vm6209_vm1, %v8306_v54  ;;  %v3906_v56 = vmul.f32 %v7709_v60, %v7704_v49 }
 0xf29   : > { %v3453_v28 = vmul.f32 %v7623_v55, %v3444_v16  ;;  %v3885_v16 = vadd.f32 %v3880_v0, %v3859_v29 }
 0xf2b   : > { %v3462_v34 = vadd.f32 %v7630_v33, %v3453_v28  ;;  %v7717_v28 = vrot.slane %v8306_v54, 6 }
 0xf2d   : > { %v3465_v19 = vpack.c.bf16 %v3462_v34, %v3461_v24  ;;  %v7722_v24 = vld [vmem:[%s8250_s10 + $0x5] ss:$0 sm:$0xff] }
 0xf2f   : > { %5631 = vmatmul.mubr.bf16.gmra.mxu1 %v3465_v19  ;;  %5659 = vmatmul.mubr.bf16.gmra.mxu0 %v3465_v19 }
 0xf30   : > { %5634 = vmatprep.mubr.msk.bf16.mxu1 %vm6209_vm1, %v8306_v54  ;;  %5662 = vmatprep.mubr.msk.bf16.mxu0 %vm6209_vm1, %v8306_v54 }
 0xfe7   : > { %v3570_v10 = vpop.f32.mrf.mxu1  ;;  %v3695_v52 = vpop.f32.mrf.mxu0 }
 0xfe8   : > { %v3696_v31 = vadd.f32 %v5054_v22, %v3695_v52  ;;  %v3571_v34 = vadd.f32 %v5045_v17, %v3570_v10  ;;  %v3932_v52 = vmul.f32 %v7722_v24, %v7717_v28 }
 0xfe9   : > { %v5628_v21 = vpop.f32.mrf.mxu1  ;;  %v5656_v36 = vpop.f32.mrf.mxu0 }
 0xfea   : > { %v5063_v51 = vmul.f32 -1.442695, %v3696_v31  ;;  %v7727_v31 = vrot.slane %v8306_v54, 7  ;;  %v7734_v36 = vld [vmem:[%s8250_s10 + $0x6] ss:$0 sm:$0xff] }
 0xfeb   : > { %v3573_v20 = vpop.f32.mrf.mxu1  ;;  %v3698_v27 = vpop.f32.mrf.mxu0 }
 0xfec   : > { %6122 = vpow2.f32 %v5063_v51  ;;  %v3699_v50 = vadd.f32 %v5054_v22, %v3698_v27  ;;  %v8346_v51 = vld [vmem:[#allocation8_spill] sm:$0xff]  ;;  %v3574_v10 = vadd.f32 %v5045_v17, %v3573_v20 }
 0xfed   : > { %v5629_v44 = vpop.f32.mrf.mxu1  ;;  %v5657_v8 = vpop.f32.mrf.mxu0  ;;  %vm3787_vm4 = vcmp.lt.s32.totalorder %v8346_v51, 7  ;;  %vm3813_vm5 = vcmp.lt.s32.totalorder %v8346_v51, 6  ;;  %vm3839_vm6 = vcmp.lt.s32.totalorder %v8346_v51, 5  ;;  %vm3865_vm7 = vcmp.lt.s32.totalorder %v8346_v51, 4 }
 0xfee   : > { %v5064_v40 = vmul.f32 -1.442695, %v3699_v50  ;;  %vm3891_vm8 = vcmp.lt.s32.totalorder %v8346_v51, 3  ;;  %vm3917_vm9 = vcmp.lt.s32.totalorder %v8346_v51, 2  ;;  %vm3943_vm10 = vcmp.lt.s32.totalorder %v8346_v51, 1 }
 0xfef   : > { %v7652_v63 = vpop.f32.mrf.mxu1  ;;  %v3703_v61 = vpop.f32.mrf.mxu0 }
 0xff0   : > { %6124 = vpow2.f32 %v5064_v40  ;;  %v3704_v18 = vadd.f32 %v5054_v22, %v3703_v61  ;;  %v3911_v22 = vadd.f32 %v3906_v56, %v3885_v16  ;;  %v3958_v61 = vmul.f32 %v7734_v36, %v7727_v31 }
 0xff1   : > { %v5632_v3 = vpop.f32.mrf.mxu1  ;;  %v5660_v37 = vpop.f32.mrf.mxu0 }
 0xff2   : > { %v5065_v25 = vmul.f32 -1.442695, %v3704_v18  ;;  %v3937_v40 = vadd.f32 %v3932_v52, %v3911_v22 }
 0xff3   : > { %v3581_v6 = vpop.f32.mrf.mxu1  ;;  %v3706_v30 = vpop.f32.mrf.mxu0 }
 0xff4   : > { %6126 = vpow2.f32 %v5065_v25  ;;  %v7754_v25 = vadd.s32 16, %v8346_v51  ;;  %v3963_v5 = vadd.f32 %v3958_v61, %v3937_v40  ;;  %v7805_v40 = vld [vmem:[%s8250_s10 + $0x9] ss:$0 sm:$0xff] }
 0xff5   : > { %v5633_v15 = vpop.f32.mrf.mxu1  ;;  %v5661_v26 = vpop.f32.mrf.mxu0 }
 0xff6   : > { %vm3754_vm11 = vcmp.lt.s32.totalorder %v7754_v25, 22 }
 0xff9   : > { %v6123_v39 = vpop.eup %6122 }
 0xffa   : > { %v3732_v12 = vadd.f32 1.0, %v6123_v39 }
 0xffc   : > { %6128 = vrcp.f32 %v3732_v12 }
 0xffd   : > { %v6125_v38 = vpop.eup %6124 }
 0xffe   : > { %v3733_v46 = vadd.f32 1.0, %v6125_v38 }
0x1000   : > { %6130 = vrcp.f32 %v3733_v46  ;;  %v3579_v46 = vadd.f32 %v5045_v17, %v7652_v63 }
0x1001   : > { %v6127_v13 = vpop.eup %6126 }
0x1002   : > { %v3734_v58 = vadd.f32 1.0, %v6127_v13 }
0x1004   : > { %6132 = vrcp.f32 %v3734_v58 }
0x1009   : > { %v6129_v19 = vpop.eup %6128 }
0x100a   : > { %v7729_v21 = vmul.f32 %v6129_v19, %v3571_v34  ;;  %v7786_v19 = vld [vmem:[%s8250_s10 + $0x8] ss:$0 sm:$0xff] }
0x100c   : > { %v3782_v27 = vrot.slane %v7729_v21, 1  ;;  %v3808_v50 = vrot.slane %v7729_v21, 2  ;;  %v3834_v44 = vrot.slane %v7729_v21, 3  ;;  %v3860_v37 = vrot.slane %v7729_v21, 4 }
0x100d   : > { %v6131_v8 = vpop.eup %6130  ;;  %v3777_v6 = vmul.f32 %v7660_v53, %v7729_v21  ;;  %v3886_v26 = vrot.slane %v7729_v21, 5  ;;  %v3912_v41 = vrot.slane %v7729_v21, 6  ;;  %v3938_v34 = vrot.slane %v7729_v21, 7 }
0x100e   : > { %v7744_v18 = vmul.f32 %v6131_v8, %v3574_v10  ;;  %v3792_v3 = vsel %vm3787_vm4, %v7655_v47, %v3782_v27  ;;  %v3818_v20 = vsel %vm3813_vm5, %v7673_v2, %v3808_v50  ;;  %v3844_v15 = vsel %vm3839_vm6, %v7684_v7, %v3834_v44 }
0x100f   : > { %v3798_v30 = vmul.f32 %v7665_v1, %v3792_v3  ;;  %v3824_v39 = vmul.f32 %v7678_v43, %v3818_v20  ;;  %v3870_v38 = vsel %vm3865_vm7, %v7694_v42, %v3860_v37  ;;  %v3850_v0 = vmul.f32 %v7689_v45, %v3844_v15 }
0x1010   : > { %v8280_v14 = vrot.slane %v7744_v18, 1  ;;  %v8279_v12 = vrot.slane %v7744_v18, 2  ;;  %v8278_v29 = vrot.slane %v7744_v18, 3  ;;  %v8277_v58 = vrot.slane %v7744_v18, 4 }
0x1011   : > { %v3803_v57 = vadd.f32 %v3798_v30, %v3777_v6  ;;  %v6133_v32 = vpop.eup %6132  ;;  %v8276_v16 = vrot.slane %v7744_v18, 5  ;;  %v3896_v56 = vsel %vm3891_vm8, %v7704_v49, %v3886_v26  ;;  %v3876_v17 = vmul.f32 %v7699_v62, %v3870_v38 }
0x1012   : > { %v8275_v22 = vrot.slane %v7744_v18, 6  ;;  %v3922_v52 = vsel %vm3917_vm9, %v7717_v28, %v3912_v41  ;;  %v3749_v10 = vmul.f32 %v6133_v32, %v3579_v46  ;;  %v3791_v21 = vsel %vm3787_vm4, %v3782_v27, %v8280_v14  ;;  %v7877_v14 = vld [vmem:[%s8250_s10 + $0xe] ss:$0 sm:$0xff] }
0x1013   : > { %v3829_v13 = vadd.f32 %v3824_v39, %v3803_v57  ;;  %v3817_v8 = vsel %vm3813_vm5, %v3808_v50, %v8279_v12  ;;  %v3843_v61 = vsel %vm3839_vm6, %v3834_v44, %v8278_v29  ;;  %v3902_v30 = vmul.f32 %v7709_v60, %v3896_v56 }
0x1014   : > { %v3973_v27 = vmul.f32 %v7786_v19, %v3792_v3  ;;  %v3869_v50 = vsel %vm3865_vm7, %v3860_v37, %v8277_v58  ;;  %v3895_v57 = vsel %vm3891_vm8, %v3886_v26, %v8276_v16  ;;  %v3928_v39 = vmul.f32 %v7722_v24, %v3922_v52  ;;  %v7828_v3 = vld [vmem:[%s8250_s10 + $0xa] ss:$0 sm:$0xff]  ;;  %v7856_v58 = vld [vmem:[%s8250_s10 + $0xc] ss:$0 sm:$0xff] }
0x1015   : > { %v3855_v63 = vadd.f32 %v3850_v0, %v3829_v13  ;;  %v3948_v44 = vsel %vm3943_vm10, %v7727_v31, %v3938_v34  ;;  %v3921_v37 = vsel %vm3917_vm9, %v3912_v41, %v8275_v22  ;;  %v3988_v26 = vmul.f32 %v7805_v40, %v3818_v20 }
0x1016   : > { %v3978_v46 = vadd.f32 %v3973_v27, %v3963_v5  ;;  %v7837_v13 = vsel %vm3754_vm11, %v3749_v10, 0.0  ;;  %v3825_v0 = vmul.f32 %v7678_v43, %v3817_v8  ;;  %v3954_v41 = vmul.f32 %v7734_v36, %v3948_v44 }
0x1017   : > { %v3881_v6 = vadd.f32 %v3876_v17, %v3855_v63  ;;  %v3851_v63 = vmul.f32 %v7689_v45, %v3843_v61  ;;  %v8282_v17 = vrot.slane %v7744_v18, 7  ;;  %v4003_v20 = vmul.f32 %v7828_v3, %v3844_v15  ;;  %v7862_v15 = vld [vmem:[%s8250_s10 + $0xd] ss:$0 sm:$0xff] }
0x1018   : > { %v3993_v5 = vadd.f32 %v3988_v26, %v3978_v46  ;;  %v3877_v10 = vmul.f32 %v7699_v62, %v3869_v50  ;;  %v3903_v27 = vmul.f32 %v7709_v60, %v3895_v57  ;;  %v3929_v22 = vmul.f32 %v7722_v24, %v3921_v37 }
0x1019   : > { %v3907_v32 = vadd.f32 %v3902_v30, %v3881_v6  ;;  %v7845_v6 = vld [vmem:[%s8250_s10 + $0xb] ss:$0 sm:$0xff]  ;;  %v3969_v16 = vmul.f32 %v7786_v19, %v3791_v21  ;;  %v3784_v46 = vrot.slane %v7837_v13, 1  ;;  %v3947_v26 = vsel %vm3943_vm10, %v3938_v34, %v8282_v17 }
0x101a   : > { %v3984_v12 = vmul.f32 %v7805_v40, %v3817_v8  ;;  %v8347_v35 = vrot.slane %v7744_v18, 1  ;;  %v3999_v8 = vmul.f32 %v7828_v3, %v3843_v61  ;;  %v4048_v17 = vmul.f32 %v7862_v15, %v3922_v52 }
0x101b   : > { %v3933_v30 = vadd.f32 %v3928_v39, %v3907_v32  ;;  %v4008_v39 = vadd.f32 %v4003_v20, %v3993_v5  ;;  %v4018_v32 = vmul.f32 %v7845_v6, %v3870_v38  ;;  %v4033_v20 = vmul.f32 %v7856_v58, %v3896_v56 }
0x101c   : > { %v3790_v34 = vsel %vm3787_vm4, %v8347_v35, %v3784_v46  ;;  %v4014_v9 = vmul.f32 %v7845_v6, %v3869_v50  ;;  %v4063_v48 = vmul.f32 %v7877_v14, %v3948_v44  ;;  %v3779_v52 = vmul.f32 %v7660_v53, %v7837_v13 }
0x101d   : > { %v3959_v29 = vadd.f32 %v3954_v41, %v3933_v30  ;;  %v3778_v30 = vmul.f32 %v7660_v53, %v7744_v18  ;;  %v3799_v41 = vmul.f32 %v7665_v1, %v3791_v21  ;;  %v4023_v5 = vadd.f32 %v4018_v32, %v4008_v39 }
0x101e   : > { %v3800_v56 = vmul.f32 %v7665_v1, %v3790_v34  ;;  %v3836_v39 = vrot.slane %v7837_v13, 3  ;;  %v3955_v32 = vmul.f32 %v7734_v36, %v3947_v26  ;;  %v8348_v50 = vrot.slane %v7744_v18, 2 }
0x101f   : > { %v3974_v38 = vadd.f32 %v3969_v16, %v3959_v29  ;;  %v3804_v4 = vadd.f32 %v3799_v41, %v3778_v30  ;;  %v3810_v29 = vrot.slane %v7837_v13, 2  ;;  %v4038_v21 = vadd.f32 %v4033_v20, %v4023_v5  ;;  %v7898_v41 = vld [vmem:[%s8254_s14 + $0xa] ss:$0 sm:$0xff] }
0x1020   : > { %v3862_v30 = vrot.slane %v7837_v13, 4  ;;  %v3888_v44 = vrot.slane %v7837_v13, 5  ;;  %v3805_v53 = vadd.f32 %v3800_v56, %v3779_v52  ;;  %v8349_v5 = vrot.slane %v7744_v18, 3 }
0x1021   : > { %v3989_v16 = vadd.f32 %v3984_v12, %v3974_v38  ;;  %v3830_v35 = vadd.f32 %v3825_v0, %v3804_v4  ;;  %v4053_v61 = vadd.f32 %v4048_v17, %v4038_v21  ;;  %v4029_v12 = vmul.f32 %v7856_v58, %v3895_v57 }
0x1022   : > { %v3816_v4 = vsel %vm3813_vm5, %v8348_v50, %v3810_v29  ;;  %v3842_v57 = vsel %vm3839_vm6, %v8349_v5, %v3836_v39  ;;  %v4044_v20 = vmul.f32 %v7862_v15, %v3921_v37  ;;  %v8351_v37 = vrot.slane %v7744_v18, 5 }
0x1023   : > { %v4004_v33 = vadd.f32 %v3999_v8, %v3989_v16  ;;  %v3856_v38 = vadd.f32 %v3851_v63, %v3830_v35  ;;  %v4068_v17 = vadd.f32 %v4063_v48, %v4053_v61  ;;  %v4059_v8 = vmul.f32 %v7877_v14, %v3947_v26 }
0x1024   : > { %v3970_v16 = vmul.f32 %v7786_v19, %v3790_v34  ;;  %v8350_v48 = vrot.slane %v7744_v18, 4  ;;  %v3852_v61 = vmul.f32 %v7689_v45, %v3842_v57  ;;  %v3914_v26 = vrot.slane %v7837_v13, 6 }
0x1025   : > { %v4019_v0 = vadd.f32 %v4014_v9, %v4004_v33  ;;  %v3882_v63 = vadd.f32 %v3877_v10, %v3856_v38  ;;  %v7913_v35 = vadd.f32 %v7898_v41, %v4068_v17  ;;  %v3826_v9 = vmul.f32 %v7678_v43, %v3816_v4 }
0x1026   : > { %v3868_v33 = vsel %vm3865_vm7, %v8350_v48, %v3862_v30  ;;  %v3894_v10 = vsel %vm3891_vm8, %v8351_v37, %v3888_v44  ;;  %v3789_v52 = vsel %vm3787_vm4, %v3784_v46, %v7655_v47  ;;  %v3815_v38 = vsel %vm3813_vm5, %v3810_v29, %v7673_v2 }
0x1027   : > { %v4034_v21 = vadd.f32 %v4029_v12, %v4019_v0  ;;  %v3908_v56 = vadd.f32 %v3903_v27, %v3882_v63  ;;  %v3831_v12 = vadd.f32 %v3826_v9, %v3805_v53  ;;  %v3878_v50 = vmul.f32 %v7699_v62, %v3868_v33 }
0x1028   : > { %v3940_v0 = vrot.slane %v7837_v13, 7  ;;  %v3801_v17 = vmul.f32 %v7665_v1, %v3789_v52  ;;  %v3904_v63 = vmul.f32 %v7709_v60, %v3894_v10  ;;  %v3841_v46 = vsel %vm3839_vm6, %v3836_v39, %v7684_v7 }
0x1029   : > { %v4049_v34 = vadd.f32 %v4044_v20, %v4034_v21  ;;  %v3934_v27 = vadd.f32 %v3929_v22, %v3908_v56  ;;  %v3857_v20 = vadd.f32 %v3852_v61, %v3831_v12  ;;  %v8352_v21 = vrot.slane %v7744_v18, 6 }
0x102a   : > { %v3806_v29 = vadd.f32 %v3801_v17, %v7668_v11  ;;  %v3827_v13 = vmul.f32 %v7678_v43, %v3815_v38  ;;  %v3867_v39 = vsel %vm3865_vm7, %v3862_v30, %v7694_v42  ;;  %v8353_v48 = vrot.slane %v7744_v18, 7 }
0x102b   : > { %v4064_v5 = vadd.f32 %v4059_v8, %v4049_v34  ;;  %v3960_v53 = vadd.f32 %v3955_v32, %v3934_v27  ;;  %v3920_v22 = vsel %vm3917_vm9, %v8352_v21, %v3914_v26  ;;  %v3985_v8 = vmul.f32 %v7805_v40, %v3816_v4 }
0x102c   : > { %v3883_v9 = vadd.f32 %v3878_v50, %v3857_v20  ;;  %v3946_v56 = vsel %vm3943_vm10, %v8353_v48, %v3940_v0  ;;  %v3832_v61 = vadd.f32 %v3827_v13, %v3806_v29  ;;  %v3853_v11 = vmul.f32 %v7689_v45, %v3841_v46 }
0x102d   : > { %v7946_v1 = vadd.f32 %v7898_v41, %v4064_v5  ;;  %v3975_v32 = vadd.f32 %v3970_v16, %v3960_v53  ;;  %v3930_v4 = vmul.f32 %v7722_v24, %v3920_v22  ;;  %v3893_v30 = vsel %vm3891_vm8, %v3888_v44, %v7704_v49 }
0x102e   : > { %v3909_v37 = vadd.f32 %v3904_v63, %v3883_v9  ;;  %v4000_v18 = vmul.f32 %v7828_v3, %v3842_v57  ;;  %v3858_v34 = vadd.f32 %v3853_v11, %v3832_v61  ;;  %v3879_v12 = vmul.f32 %v7699_v62, %v3867_v39 }
0x102f   : > { %4084 = vadd.xlane.f32.xlu1 %v7946_v1  ;;  %v4105_v43 = vmul.f32 %v7946_v1, %v7946_v1  ;;  %v3990_v16 = vadd.f32 %v3985_v8, %v3975_v32  ;;  %v3956_v45 = vmul.f32 %v7734_v36, %v3946_v56  ;;  %v3919_v50 = vsel %vm3917_vm9, %v3914_v26, %v7717_v28 }
0x1030   : > { %v3935_v27 = vadd.f32 %v3930_v4, %v3909_v37  ;;  %v4015_v5 = vmul.f32 %v7845_v6, %v3868_v33  ;;  %v3884_v63 = vadd.f32 %v3879_v12, %v3858_v34  ;;  %v3905_v44 = vmul.f32 %v7709_v60, %v3893_v30 }
0x1031   : > { %4110 = vadd.xlane.f32.xlu0 %v4105_v43  ;;  %v4005_v17 = vadd.f32 %v4000_v18, %v3990_v16  ;;  %v3971_v57 = vmul.f32 %v7786_v19, %v3789_v52  ;;  %v3945_v62 = vsel %vm3943_vm10, %v3940_v0, %v7727_v31  ;;  %v4030_v21 = vmul.f32 %v7856_v58, %v3894_v10 }
0x1032   : > { %v3961_v20 = vadd.f32 %v3956_v45, %v3935_v27  ;;  %v3910_v29 = vadd.f32 %v3905_v44, %v3884_v63  ;;  %v3931_v13 = vmul.f32 %v7722_v24, %v3919_v50  ;;  %v3972_v33 = vmul.f32 %v7786_v19, %v7655_v47  ;;  %v5973_v63 = vld [vmem:[%s8251_s11 + $0x20] sm:$0xff]   ;;  %v5974_v44 = vld [vmem:[%s8251_s11 + $0x18] sm:$0xff]  }
0x1033   : > { %v4020_v53 = vadd.f32 %v4015_v5, %v4005_v17  ;;  %v3986_v8 = vmul.f32 %v7805_v40, %v3815_v38  ;;  %v4045_v9 = vmul.f32 %v7862_v15, %v3920_v22  ;;  %v3957_v32 = vmul.f32 %v7734_v36, %v3945_v62  ;;  %v5970_v17 = vld [vmem:[%s8251_s11 + $0x38] sm:$0xff]   ;;  %v5972_v5 = vld [vmem:[%s8251_s11 + $0x28] sm:$0xff]  }
0x1034   : > { %v3976_v26 = vadd.f32 %v3971_v57, %v3961_v20  ;;  %v3936_v52 = vadd.f32 %v3931_v13, %v3910_v29  ;;  %v4001_v0 = vmul.f32 %v7828_v3, %v3841_v46  ;;  %v4060_v10 = vmul.f32 %v7877_v14, %v3946_v56  ;;  %5667 = vmatpush3.bf16.msra.mxu1 %v5970_v17  ;;  %v5975_v20 = vld [vmem:[%s8251_s11 + $0x10] sm:$0xff]   ;;  %v5976_v57 = vld [vmem:[%s8251_s11 + $0x8] sm:$0xff]  }
0x1035   : > { %v4035_v60 = vadd.f32 %v4030_v21, %v4020_v53  ;;  %v3987_v24 = vmul.f32 %v7805_v40, %v7673_v2  ;;  %v4016_v47 = vmul.f32 %v7845_v6, %v3867_v39  ;;  %v4002_v22 = vmul.f32 %v7828_v3, %v7684_v7  ;;  %5668 = vmatprep.subr.bf16.mxu1 %v8306_v54 }
0x1036   : > { %v3991_v51 = vadd.f32 %v3986_v8, %v3976_v26  ;;  %v3962_v61 = vadd.f32 %v3957_v32, %v3936_v52  ;;  %v4031_v36 = vmul.f32 %v7856_v58, %v3893_v30  ;;  %v4017_v56 = vmul.f32 %v7845_v6, %v7694_v42  ;;  %v3395_v6 = vpop.xlane.xlu0 %3394 }
0x1037   : > { %v4050_v48 = vadd.f32 %v4045_v9, %v4035_v60  ;;  %v4046_v2 = vmul.f32 %v7862_v15, %v3919_v50  ;;  %v4032_v7 = vmul.f32 %v7856_v58, %v7704_v49  ;;  %v4061_v30 = vmul.f32 %v7877_v14, %v3945_v62  ;;  %v5977_v62 = vld [vmem:[%s8251_s11] sm:$0xff]  }
0x1038   : > { %v4006_v11 = vadd.f32 %v4001_v0, %v3991_v51  ;;  %v3977_v38 = vadd.f32 %v3972_v33, %v3962_v61  ;;  %v4047_v16 = vmul.f32 %v7862_v15, %v7717_v28  ;;  %v4062_v34 = vmul.f32 %v7877_v14, %v7727_v31 }
0x1039   : > { %v4065_v19 = vadd.f32 %v4060_v10, %v4050_v48  ;;  %v3400_v49 = vmul.f32 0.03125, %v3395_v6 }
0x103a   : > { %v4021_v43 = vadd.f32 %v4016_v47, %v4006_v11  ;;  %v3992_v4 = vadd.f32 %v3987_v24, %v3977_v38  ;;  %v4091_v53 = vpop.xlane.xlu0 %4090 }
0x103b   : > { %v7992_v46 = vadd.f32 %v7898_v41, %v4065_v19  ;;  %v3405_v15 = vsub.f32 %v7565_v59, %v3400_v49 }
0x103c   : > { %v4036_v37 = vadd.f32 %v4031_v36, %v4021_v43  ;;  %v4007_v39 = vadd.f32 %v4002_v22, %v3992_v4 }
0x103d   : > { %4086 = vadd.xlane.f32.xlu0 %v7992_v46  ;;  %v4106_v40 = vmul.f32 %v7992_v46, %v7992_v46  ;;  %v8020_v14 = vmul.f32 %v8343_v23, %v3405_v15 }
0x103e   : > { %v4051_v3 = vadd.f32 %v4046_v2, %v4036_v37  ;;  %v4022_v42 = vadd.f32 %v4017_v56, %v4007_v39 }
0x103f   : > { %4112 = vadd.xlane.f32.xlu1 %v4106_v40  ;;  %v3415_v25 = vmul.f32 %v8020_v14, %v8020_v14 }
0x1040   : > { %v4066_v18 = vadd.f32 %v4061_v30, %v4051_v3  ;;  %v4037_v12 = vadd.f32 %v4032_v7, %v4022_v42 }
0x1041   : > { %4092 = vadd.xlane.f32.xlu0 %v8306_v54 }
0x1042   : > { %v8009_v45 = vadd.f32 %v7898_v41, %v4066_v18  ;;  %v4052_v58 = vadd.f32 %v4047_v16, %v4037_v12 }
0x1044   : > { %v4081_v27 = vsel %vm3754_vm11, %v8009_v45, 0.0  ;;  %v4067_v28 = vadd.f32 %v4062_v34, %v4052_v58 }
0x1045   : > { %4088 = vadd.xlane.f32.xlu1 %v4081_v27  ;;  %4118 = vadd.xlane.f32.xlu0 %v8306_v54  ;;  %v4107_v50 = vmul.f32 %v4081_v27, %v4081_v27 }
0x1046   : > { %v8017_v31 = vadd.f32 %v7898_v41, %v4067_v28  ;;  %v5971_v41 = vld [vmem:[%s8251_s11 + $0x30] sm:$0xff]   ;;  %v8354_v28 = vld [vmem:[#allocation10_spill] sm:$0xff] }
0x1047   : > { %5669 = vmatpush3.bf16.msra.mxu1 %v5971_v41 }
0x1048   : > { %5670 = vmatprep.subr.bf16.mxu1 %v8306_v54 }
0x1049   : > { %4114 = vadd.xlane.f32.xlu1 %v4107_v50 }
0x104b   : > { %5671 = vmatpush3.bf16.msra.mxu1 %v5972_v5  ;;  %v5084_v5 = vld [vmem:[%s8254_s14 + $0xb] ss:$0 sm:$0xff] }
0x104c   : > { %5672 = vmatprep.subr.bf16.mxu1 %v8306_v54 }
0x104d   : > { %4116 = vadd.xlane.f32.xlu1 %v8306_v54 }
0x104f   : > { %5673 = vmatpush3.bf16.msra.mxu1 %v5973_v63 }
0x1050   : > { %5674 = vmatprep.subr.bf16.mxu1 %v8306_v54 }
0x1051   : > { %3424 = vadd.xlane.f32.xlu1 %v3415_v25 }
0x1053   : > { %5675 = vmatpush3.bf16.msra.mxu1 %v5974_v44 }
0x1054   : > { %5676 = vmatprep.subr.bf16.mxu1 %v8306_v54 }
0x1057   : > { %5677 = vmatpush3.bf16.msra.mxu1 %v5975_v20 }
0x1058   : > { %5678 = vmatprep.subr.bf16.mxu1 %v8306_v54 }
0x105b   : > { %5679 = vmatpush3.bf16.msra.mxu1 %v5976_v57 }
0x105c   : > { %5680 = vmatprep.subr.bf16.mxu1 %v8306_v54 }
0x105f   : > { %5681 = vmatpush3.bf16.msra.mxu1 %v5977_v62 }
0x1060   : > { %5722 = vmatprep.subr.bf16.mxu1 %v8306_v54 }
0x10b8   : > { %v4085_v21 = vpop.xlane.xlu1 %4084 }
0x10ba   : > { %v4111_v29 = vpop.xlane.xlu0 %4110 }
0x10c6   : > { %v4087_v26 = vpop.xlane.xlu0 %4086 }
0x10c7   : > { %v4094_v33 = vadd.f32 %v4087_v26, %v4085_v21 }
0x10c8   : > { %v4113_v13 = vpop.xlane.xlu1 %4112 }
0x10c9   : > { %v4120_v51 = vadd.f32 %v4113_v13, %v4111_v29 }
0x10ca   : > { %v4093_v9 = vpop.xlane.xlu0 %4092 }
0x10ce   : > { %v4089_v8 = vpop.xlane.xlu1 %4088  ;;  %v4119_v24 = vpop.xlane.xlu0 %4118 }
0x10cf   : > { %v4095_v60 = vadd.f32 %v4094_v33, %v4089_v8 }
0x10d1   : > { %v4096_v52 = vadd.f32 %v4095_v60, %v4091_v53 }
0x10d2   : > { %v4115_v32 = vpop.xlane.xlu1 %4114 }
0x10d3   : > { %v4097_v0 = vadd.f32 %v4096_v52, %v4093_v9  ;;  %v4121_v10 = vadd.f32 %v4120_v51, %v4115_v32 }
0x10d5   : > { %v4098_v48 = vrot.slane %v4097_v0, 4 }
0x10d6   : > { %v4117_v61 = vpop.xlane.xlu1 %4116 }
0x10d7   : > { %v4099_v11 = vadd.f32 %v4098_v48, %v4097_v0  ;;  %v4122_v47 = vadd.f32 %v4121_v10, %v4117_v61 }
0x10d9   : > { %v4100_v19 = vrot.slane %v4099_v11, 2  ;;  %v4123_v38 = vadd.f32 %v4122_v47, %v4119_v24 }
0x10da   : > { %v3425_v22 = vpop.xlane.xlu1 %3424 }
0x10db   : > { %v4101_v43 = vadd.f32 %v4100_v19, %v4099_v11  ;;  %v4124_v36 = vrot.slane %v4123_v38, 4  ;;  %v3430_v4 = vmul.f32 0.03125, %v3425_v22 }
0x10dd   : > { %v4102_v56 = vrot.slane %v4101_v43, 1  ;;  %v4125_v37 = vadd.f32 %v4124_v36, %v4123_v38  ;;  %v3435_v2 = vadd.f32 1e-05, %v3430_v4 }
0x10df   : > { %v4103_v40 = vadd.f32 %v4102_v56, %v4101_v43  ;;  %v4126_v39 = vrot.slane %v4125_v37, 2  ;;  %6134 = vrsqrt.f32 %v3435_v2 }
0x10e1   : > { %v4127_v7 = vadd.f32 %v4126_v39, %v4125_v37  ;;  %v4104_v3 = vmul.f32 0.0014204546, %v4103_v40 }
0x10e3   : > { %v4128_v30 = vrot.slane %v4127_v7, 1  ;;  %v4131_v6 = vmul.f32 %v4104_v3, %v4104_v3  ;;  %v4134_v25 = vsub.f32 %v7946_v1, %v4104_v3  ;;  %v4135_v17 = vsub.f32 %v7992_v46, %v4104_v3  ;;  %v5085_v1 = vld [vmem:[%s8254_s14 + $0xc] ss:$0 sm:$0xff] }
0x10e4   : > { %v4137_v41 = vsub.f32 %v8017_v31, %v4104_v3  ;;  %v4138_v63 = vsub.f32 %v7913_v35, %v4104_v3 }
0x10e5   : > { %v4129_v16 = vadd.f32 %v4128_v30, %v4127_v7 }
0x10e7   : > { %v4130_v42 = vmul.f32 0.0014204546, %v4129_v16 }
0x10e9   : > { %v4132_v18 = vsub.f32 %v4130_v42, %v4131_v6 }
0x10eb   : > { %v4133_v34 = vmax.f32 %v4132_v18, 0.0 }
0x10ec   : > { %v6135_v12 = vpop.eup %6134 }
0x10ed   : > { %v4139_v49 = vadd.f32 1e-05, %v4133_v34  ;;  %v3445_v58 = vmul.f32 %v6135_v12, %v8020_v14  ;;  %v4136_v14 = vsub.f32 %v8009_v45, %v4104_v3 }
0x10ef   : > { %6136 = vrsqrt.f32 %v4139_v49  ;;  %v3454_v27 = vmul.f32 %v7623_v55, %v3445_v58 }
0x10f1   : > { %v3463_v15 = vadd.f32 %v8354_v28, %v3454_v27 }
0x10f3   : > { %v3466_v50 = vpack.c.bf16 %v3463_v15, %v3463_v15  ;;  %v5091_v15 = vld [vmem:[%s8254_s14 + $0xd] ss:$0 sm:$0xff] }
0x10f5   : > { %5635 = vmatmul.mubr.bf16.gmra.mxu1 %v3466_v50  ;;  %5663 = vmatmul.mubr.bf16.gmra.mxu0 %v3466_v50 }
0x10f6   : > { %5682 = vmatprep.mubr.msk.bf16.mxu1 %vm6209_vm1, %v8306_v54  ;;  %5710 = vmatprep.mubr.msk.bf16.mxu0 %vm6209_vm1, %v8306_v54 }
0x10fc   : > { %v6137_v55 = vpop.eup %6136 }
0x10fd   : > { %v4141_v44 = vmul.f32 %v6137_v55, %v4134_v25  ;;  %v4142_v20 = vmul.f32 %v6137_v55, %v4135_v17  ;;  %v4143_v57 = vmul.f32 %v6137_v55, %v4136_v14  ;;  %v4144_v62 = vmul.f32 %v6137_v55, %v4137_v41  ;;  %v8355_v14 = vld [vmem:[#allocation17_spill] sm:$0xff] }
0x10fe   : > { %v4145_v46 = vmul.f32 %v6137_v55, %v4138_v63 }
0x10ff   : > { %v4151_v53 = vmul.f32 %v5084_v5, %v4141_v44  ;;  %v4152_v45 = vmul.f32 %v5084_v5, %v4142_v20  ;;  %v4153_v21 = vmul.f32 %v5084_v5, %v4143_v57  ;;  %v4154_v31 = vmul.f32 %v5084_v5, %v4144_v62  ;;  %v8356_v44 = vld [vmem:[#allocation14_spill] sm:$0xff] }
0x1100   : > { %v4155_v8 = vmul.f32 %v5084_v5, %v4145_v46  ;;  %v8357_v46 = vld [vmem:[#allocation16_spill] sm:$0xff] }
0x1101   : > { %v4161_v29 = vadd.f32 %v5085_v1, %v4151_v53  ;;  %v4162_v13 = vadd.f32 %v5085_v1, %v4152_v45  ;;  %v4163_v26 = vadd.f32 %v5085_v1, %v4153_v21  ;;  %v4164_v33 = vadd.f32 %v5085_v1, %v4154_v31 }
0x1102   : > { %v4165_v32 = vadd.f32 %v5085_v1, %v4155_v8 }
0x1103   : > { %v5086_v60 = vmul.f32 -1.442695, %v4161_v29  ;;  %v5087_v35 = vmul.f32 -1.442695, %v4162_v13  ;;  %v5088_v9 = vmul.f32 -1.442695, %v4163_v26 }
0x1104   : > { %v5089_v52 = vmul.f32 -1.442695, %v4164_v33  ;;  %v5090_v51 = vmul.f32 -1.442695, %v4165_v32 }
0x1105   : > { %6138 = vpow2.f32 %v5086_v60 }
0x1106   : > { %6140 = vpow2.f32 %v5087_v35 }
0x1107   : > { %6142 = vpow2.f32 %v5088_v9 }
0x1108   : > { %6144 = vpow2.f32 %v5089_v52  ;;  %v5978_v52 = vld [vmem:[%s8252_s12 + $0x38] sm:$0xff]  }
0x1109   : > { %6146 = vpow2.f32 %v5090_v51  ;;  %5695 = vmatpush3.bf16.msra.mxu0 %v5978_v52 }
0x110a   : > { %5696 = vmatprep.subr.bf16.mxu0 %v8306_v54 }
0x1112   : > { %v6139_v0 = vpop.eup %6138 }
0x1113   : > { %v6141_v48 = vpop.eup %6140  ;;  %v4181_v10 = vadd.f32 1.0, %v6139_v0 }
0x1114   : > { %v6143_v61 = vpop.eup %6142  ;;  %v4182_v24 = vadd.f32 1.0, %v6141_v48 }
0x1115   : > { %v6145_v11 = vpop.eup %6144  ;;  %6148 = vrcp.f32 %v4181_v10  ;;  %v4183_v47 = vadd.f32 1.0, %v6143_v61 }
0x1116   : > { %6150 = vrcp.f32 %v4182_v24  ;;  %v4184_v19 = vadd.f32 1.0, %v6145_v11  ;;  %v6147_v38 = vpop.eup %6146 }
0x1117   : > { %6152 = vrcp.f32 %v4183_v47  ;;  %v4185_v22 = vadd.f32 1.0, %v6147_v38 }
0x1118   : > { %6154 = vrcp.f32 %v4184_v19 }
0x1119   : > { %6156 = vrcp.f32 %v4185_v22 }
0x1122   : > { %v6149_v43 = vpop.eup %6148 }
0x1123   : > { %v6151_v36 = vpop.eup %6150  ;;  %v4196_v4 = vmul.f32 %v6149_v43, %v4161_v29  ;;  %v8358_v29 = vld [vmem:[#allocation15_spill] sm:$0xff] }
0x1124   : > { %v4197_v56 = vmul.f32 %v6151_v36, %v4162_v13  ;;  %v6153_v37 = vpop.eup %6152 }
0x1125   : > { %v6155_v40 = vpop.eup %6154  ;;  %v4198_v39 = vmul.f32 %v6153_v37, %v4163_v26 }
0x1126   : > { %v4201_v2 = vpack.c.bf16 %v4197_v56, %v4196_v4  ;;  %v4199_v7 = vmul.f32 %v6155_v40, %v4164_v33  ;;  %v6157_v30 = vpop.eup %6156 }
0x1127   : > { %v4200_v16 = vmul.f32 %v6157_v30, %v4165_v32 }
0x1128   : > { %5683 = vmatmul.mubr.bf16.vlgmr.msra.gmra.mxu1 %v4201_v2  ;;  %v4202_v3 = vpack.c.bf16 %v4199_v7, %v4198_v39 }
0x1129   : > { %5686 = vmatprep.mubr.msk.bf16.mxu1 %vm6209_vm1, %v8306_v54  ;;  %v4203_v42 = vpack.c.bf16 %v4200_v16, %v4200_v16 }
0x1130   : > { %5687 = vmatmul.mubr.bf16.gmra.mxu1 %v4202_v3 }
0x1131   : > { %5690 = vmatprep.mubr.msk.bf16.mxu1 %vm6209_vm1, %v8306_v54 }
0x1138   : > { %5691 = vmatmul.mubr.bf16.gmra.mxu1 %v4203_v42  ;;  %v5979_v42 = vld [vmem:[%s8252_s12 + $0x30] sm:$0xff]  }
0x1139   : > { %5738 = vmatprep.mubr.msk.bf16.mxu1 %vm6209_vm1, %v8306_v54  ;;  %5697 = vmatpush3.bf16.msra.mxu0 %v5979_v42 }
0x113a   : > { %5698 = vmatprep.subr.bf16.mxu0 %v8306_v54 }
0x11b5   : > { %v3586_v6 = vpop.f32.mrf.mxu1  ;;  %v3711_v18 = vpop.f32.mrf.mxu0 }
0x11b6   : > { %v5980_v6 = vld [vmem:[%s8252_s12 + $0x28] sm:$0xff]   ;;  %v5981_v18 = vld [vmem:[%s8252_s12 + $0x20] sm:$0xff]  }
0x11b7   : > { %v5636_v34 = vpop.f32.mrf.mxu1  ;;  %v5664_v12 = vpop.f32.mrf.mxu0  ;;  %5699 = vmatpush3.bf16.msra.mxu0 %v5980_v6 }
0x11b8   : > { %5700 = vmatprep.subr.bf16.mxu0 %v8306_v54  ;;  %v5982_v34 = vld [vmem:[%s8252_s12 + $0x18] sm:$0xff]   ;;  %v5983_v12 = vld [vmem:[%s8252_s12 + $0x10] sm:$0xff]  }
0x11b9   : > { %v3589_v49 = vpop.f32.mrf.mxu1  ;;  %v3714_v58 = vpop.f32.mrf.mxu0 }
0x11ba   : > { %v5984_v49 = vld [vmem:[%s8252_s12 + $0x8] sm:$0xff]   ;;  %v5985_v58 = vld [vmem:[%s8252_s12] sm:$0xff]  }
0x11bb   : > { %v5637_v27 = vpop.f32.mrf.mxu1  ;;  %v5665_v28 = vpop.f32.mrf.mxu0  ;;  %5701 = vmatpush3.bf16.msra.mxu0 %v5981_v18 }
0x11bc   : > { %5702 = vmatprep.subr.bf16.mxu0 %v8306_v54 }
0x11bf   : > { %5703 = vmatpush3.bf16.msra.mxu0 %v5982_v34 }
0x11c0   : > { %5704 = vmatprep.subr.bf16.mxu0 %v8306_v54 }
0x11c3   : > { %5705 = vmatpush3.bf16.msra.mxu0 %v5983_v12 }
0x11c4   : > { %5706 = vmatprep.subr.bf16.mxu0 %v8306_v54 }
0x11c7   : > { %5707 = vmatpush3.bf16.msra.mxu0 %v5984_v49 }
0x11c8   : > { %5708 = vmatprep.subr.bf16.mxu0 %v8306_v54 }
0x11cb   : > { %5709 = vmatpush3.bf16.msra.mxu0 %v5985_v58 }
0x11e8   : > { %v4307_v50 = vpop.f32.mrf.mxu1 }
0x11e9   : > { %v4308_v25 = vadd.f32 %v5091_v15, %v4307_v50 }
0x11ea   : > { %v5684_v17 = vpop.f32.mrf.mxu1 }
0x11eb   : > { %v8085_v41 = vadd.f32 %v4308_v25, %v8355_v14 }
0x11ec   : > { %v4310_v55 = vpop.f32.mrf.mxu1 }
0x11ed   : > { %v4311_v5 = vadd.f32 %v5091_v15, %v4310_v55  ;;  %4338 = vadd.xlane.f32.xlu0 %v8085_v41 }
0x11ee   : > { %v5685_v63 = vpop.f32.mrf.mxu1 }
0x11ef   : > { %v8089_v20 = vadd.f32 %v4311_v5, %v8356_v44 }
0x11f0   : > { %v4315_v57 = vpop.f32.mrf.mxu1 }
0x11f1   : > { %v4316_v62 = vadd.f32 %v5091_v15, %v4315_v57  ;;  %4340 = vadd.xlane.f32.xlu1 %v8089_v20 }
0x11f2   : > { %v5688_v1 = vpop.f32.mrf.mxu1 }
0x11f3   : > { %v8093_v53 = vadd.f32 %v4316_v62, %v8357_v46 }
0x11f4   : > { %v4318_v45 = vpop.f32.mrf.mxu1 }
0x11f5   : > { %v4319_v21 = vadd.f32 %v5091_v15, %v4318_v45  ;;  %4342 = vadd.xlane.f32.xlu0 %v8093_v53 }
0x11f6   : > { %v5689_v31 = vpop.f32.mrf.mxu1 }
0x11f7   : > { %v8097_v13 = vadd.f32 %v4319_v21, %v8358_v29  ;;  %v5100_v31 = vld [vmem:[%s8254_s14 + $0xe] ss:$0 sm:$0xff] }
0x11f8   : > { %v4323_v26 = vpop.f32.mrf.mxu1 }
0x11f9   : > { %v4324_v33 = vadd.f32 %v5091_v15, %v4323_v26  ;;  %4344 = vadd.xlane.f32.xlu1 %v8097_v13 }
0x11fa   : > { %v5692_v8 = vpop.f32.mrf.mxu1 }
0x11fb   : > { %v8101_v60 = vadd.f32 %v4324_v33, %v7565_v59  ;;  %v5101_v8 = vld [vmem:[%s8254_s14 + $0xf] ss:$0 sm:$0xff] }
0x11fc   : > { %v4326_v35 = vpop.f32.mrf.mxu1 }
0x11fd   : > { %4346 = vadd.xlane.f32.xlu0 %v8101_v60 }
0x11fe   : > { %v5693_v9 = vpop.f32.mrf.mxu1 }
0x1276   : > { %v4339_v32 = vpop.xlane.xlu0 %4338 }
0x1277   : > { %v4348_v51 = vmul.f32 0.03125, %v4339_v32 }
0x1279   : > { %v4353_v0 = vsub.f32 %v8085_v41, %v4348_v51 }
0x127a   : > { %v4341_v48 = vpop.xlane.xlu1 %4340 }
0x127b   : > { %v4349_v10 = vmul.f32 0.03125, %v4341_v48  ;;  %v8110_v59 = vmul.f32 %v8343_v23, %v4353_v0 }
0x127d   : > { %v4354_v61 = vsub.f32 %v8089_v20, %v4349_v10  ;;  %v4363_v24 = vmul.f32 %v8110_v59, %v8110_v59 }
0x127e   : > { %v4343_v11 = vpop.xlane.xlu0 %4342 }
0x127f   : > { %v4350_v47 = vmul.f32 0.03125, %v4343_v11  ;;  %4368 = vadd.xlane.f32.xlu1 %v4363_v24  ;;  %v8116_v19 = vmul.f32 %v8343_v23, %v4354_v61 }
0x1281   : > { %v4355_v38 = vsub.f32 %v8093_v53, %v4350_v47  ;;  %v4364_v22 = vmul.f32 %v8116_v19, %v8116_v19 }
0x1282   : > { %v4345_v43 = vpop.xlane.xlu1 %4344 }
0x1283   : > { %v4351_v36 = vmul.f32 0.03125, %v4345_v43  ;;  %4370 = vadd.xlane.f32.xlu0 %v4364_v22  ;;  %v8122_v4 = vmul.f32 %v8343_v23, %v4355_v38 }
0x1285   : > { %v4356_v56 = vsub.f32 %v8097_v13, %v4351_v36  ;;  %v4365_v37 = vmul.f32 %v8122_v4, %v8122_v4 }
0x1286   : > { %v4347_v2 = vpop.xlane.xlu0 %4346 }
0x1287   : > { %v4352_v40 = vmul.f32 0.03125, %v4347_v2  ;;  %4372 = vadd.xlane.f32.xlu1 %v4365_v37  ;;  %v4361_v39 = vmul.f32 %v8343_v23, %v4356_v56  ;;  %v5987_v56 = vld [vmem:[%s8253_s13 + $0x30] sm:$0xff]   ;;  %v5988_v37 = vld [vmem:[%s8253_s13 + $0x28] sm:$0xff]   ;;  %v5989_v2 = vld [vmem:[%s8253_s13 + $0x20] sm:$0xff]  }
0x1289   : > { %v4357_v7 = vsub.f32 %v8101_v60, %v4352_v40  ;;  %v4366_v3 = vmul.f32 %v4361_v39, %v4361_v39  ;;  %v5990_v40 = vld [vmem:[%s8253_s13 + $0x18] sm:$0xff]  }
0x128b   : > { %4374 = vadd.xlane.f32.xlu0 %v4366_v3  ;;  %v8130_v30 = vmul.f32 %v8343_v23, %v4357_v7  ;;  %v5992_v7 = vld [vmem:[%s8253_s13 + $0x8] sm:$0xff]   ;;  %v5993_v3 = vld [vmem:[%s8253_s13] sm:$0xff]  }
0x128d   : > { %v4367_v16 = vmul.f32 %v8130_v30, %v8130_v30 }
0x128f   : > { %4376 = vadd.xlane.f32.xlu1 %v4367_v16 }
0x1308   : > { %v4369_v27 = vpop.xlane.xlu1 %4368 }
0x1309   : > { %v4378_v28 = vmul.f32 0.03125, %v4369_v27 }
0x130b   : > { %v4383_v15 = vadd.f32 1e-05, %v4378_v28 }
0x130c   : > { %v4371_v50 = vpop.xlane.xlu0 %4370 }
0x130d   : > { %6158 = vrsqrt.f32 %v4383_v15  ;;  %v4379_v25 = vmul.f32 0.03125, %v4371_v50 }
0x130f   : > { %v4384_v17 = vadd.f32 1e-05, %v4379_v25 }
0x1310   : > { %v4373_v14 = vpop.xlane.xlu1 %4372 }
0x1311   : > { %6160 = vrsqrt.f32 %v4384_v17  ;;  %v4380_v55 = vmul.f32 0.03125, %v4373_v14 }
0x1313   : > { %v4385_v5 = vadd.f32 1e-05, %v4380_v55 }
0x1314   : > { %v4375_v63 = vpop.xlane.xlu0 %4374 }
0x1315   : > { %6162 = vrsqrt.f32 %v4385_v5  ;;  %v4381_v44 = vmul.f32 0.03125, %v4375_v63 }
0x1317   : > { %v4386_v57 = vadd.f32 1e-05, %v4381_v44 }
0x1318   : > { %v4377_v62 = vpop.xlane.xlu1 %4376 }
0x1319   : > { %6164 = vrsqrt.f32 %v4386_v57  ;;  %v4382_v1 = vmul.f32 0.03125, %v4377_v62 }
0x131a   : > { %v6159_v46 = vpop.eup %6158 }
0x131b   : > { %v4393_v45 = vmul.f32 %v6159_v46, %v8110_v59  ;;  %v4387_v21 = vadd.f32 1e-05, %v4382_v1 }
0x131d   : > { %6166 = vrsqrt.f32 %v4387_v21  ;;  %v4402_v26 = vmul.f32 %v5100_v31, %v4393_v45 }
0x131e   : > { %v6161_v29 = vpop.eup %6160 }
0x131f   : > { %v4394_v33 = vmul.f32 %v6161_v29, %v8116_v19  ;;  %v4411_v52 = vadd.f32 %v5101_v8, %v4402_v26 }
0x1321   : > { %v4403_v35 = vmul.f32 %v5100_v31, %v4394_v33 }
0x1322   : > { %v6163_v9 = vpop.eup %6162 }
0x1323   : > { %v4412_v32 = vadd.f32 %v5101_v8, %v4403_v35  ;;  %v4395_v51 = vmul.f32 %v6163_v9, %v8122_v4  ;;  %v5986_v4 = vld [vmem:[%s8253_s13 + $0x38] sm:$0xff]  }
0x1324   : > { %5723 = vmatpush3.bf16.msra.mxu1 %v5986_v4 }
0x1325   : > { %v4416_v0 = vpack.c.bf16 %v4412_v32, %v4411_v52  ;;  %v4404_v59 = vmul.f32 %v5100_v31, %v4395_v51  ;;  %5724 = vmatprep.subr.bf16.mxu1 %v8306_v54 }
0x1326   : > { %v6165_v48 = vpop.eup %6164 }
0x1327   : > { %5711 = vmatmul.mubr.bf16.vlgmr.msra.gmra.mxu0 %v4416_v0  ;;  %v4396_v10 = vmul.f32 %v6165_v48, %v4361_v39  ;;  %v4413_v11 = vadd.f32 %v5101_v8, %v4404_v59  ;;  %v5991_v39 = vld [vmem:[%s8253_s13 + $0x10] sm:$0xff]  }
0x1328   : > { %5714 = vmatprep.mubr.msk.bf16.mxu0 %vm6209_vm1, %v8306_v54  ;;  %5725 = vmatpush3.bf16.msra.mxu1 %v5987_v56 }
0x1329   : > { %v4405_v61 = vmul.f32 %v5100_v31, %v4396_v10  ;;  %5726 = vmatprep.subr.bf16.mxu1 %v8306_v54 }
0x132a   : > { %v6167_v24 = vpop.eup %6166 }
0x132b   : > { %v4414_v47 = vadd.f32 %v5101_v8, %v4405_v61  ;;  %v4397_v19 = vmul.f32 %v6167_v24, %v8130_v30  ;;  %v5102_v30 = vld [vmem:[%s8255_s15 + $0x1] ss:$0 sm:$0xff] }
0x132c   : > { %5727 = vmatpush3.bf16.msra.mxu1 %v5988_v37 }
0x132d   : > { %v4417_v38 = vpack.c.bf16 %v4414_v47, %v4413_v11  ;;  %v4406_v22 = vmul.f32 %v5100_v31, %v4397_v19  ;;  %5728 = vmatprep.subr.bf16.mxu1 %v8306_v54 }
0x132f   : > { %5715 = vmatmul.mubr.bf16.gmra.mxu0 %v4417_v38  ;;  %v4415_v43 = vadd.f32 %v5101_v8, %v4406_v22  ;;  %v5116_v22 = vld [vmem:[%s8254_s14 + $0x10] ss:$0 sm:$0xff] }
0x1330   : > { %5718 = vmatprep.mubr.msk.bf16.mxu0 %vm6209_vm1, %v8306_v54  ;;  %5729 = vmatpush3.bf16.msra.mxu1 %v5989_v2 }
0x1331   : > { %v4418_v36 = vpack.c.bf16 %v4415_v43, %v4415_v43  ;;  %5730 = vmatprep.subr.bf16.mxu1 %v8306_v54 }
0x1334   : > { %5731 = vmatpush3.bf16.msra.mxu1 %v5990_v40 }
0x1335   : > { %5732 = vmatprep.subr.bf16.mxu1 %v8306_v54 }
0x1337   : > { %5719 = vmatmul.mubr.bf16.gmra.mxu0 %v4418_v36 }
0x1338   : > { %5733 = vmatpush3.bf16.msra.mxu1 %v5991_v39 }
0x1339   : > { %5734 = vmatprep.subr.bf16.mxu1 %v8306_v54 }
0x133c   : > { %5735 = vmatpush3.bf16.msra.mxu1 %v5992_v7 }
0x133d   : > { %5736 = vmatprep.subr.bf16.mxu1 %v8306_v54 }
0x1340   : > { %5737 = vmatpush3.bf16.msra.mxu1 %v5993_v3 }
0x13e7   : > { %v4521_v16 = vpop.f32.mrf.mxu0 }
0x13e8   : > { %v4522_v42 = vadd.f32 %v5102_v30, %v4521_v16 }
0x13e9   : > { %v5712_v6 = vpop.f32.mrf.mxu0 }
0x13ea   : > { %v5111_v18 = vmul.f32 -1.442695, %v4522_v42 }
0x13eb   : > { %v4524_v34 = vpop.f32.mrf.mxu0 }
0x13ec   : > { %6168 = vpow2.f32 %v5111_v18  ;;  %v4525_v12 = vadd.f32 %v5102_v30, %v4524_v34 }
0x13ed   : > { %v5713_v49 = vpop.f32.mrf.mxu0 }
0x13ee   : > { %v5112_v58 = vmul.f32 -1.442695, %v4525_v12 }
0x13ef   : > { %v4529_v27 = vpop.f32.mrf.mxu0 }
0x13f0   : > { %6170 = vpow2.f32 %v5112_v58  ;;  %v4530_v28 = vadd.f32 %v5102_v30, %v4529_v27 }
0x13f1   : > { %v5716_v15 = vpop.f32.mrf.mxu0 }
0x13f2   : > { %v5113_v50 = vmul.f32 -1.442695, %v4530_v28 }
0x13f3   : > { %v4532_v25 = vpop.f32.mrf.mxu0 }
0x13f4   : > { %6172 = vpow2.f32 %v5113_v50  ;;  %v4533_v17 = vadd.f32 %v5102_v30, %v4532_v25 }
0x13f5   : > { %v5717_v14 = vpop.f32.mrf.mxu0 }
0x13f6   : > { %v5114_v55 = vmul.f32 -1.442695, %v4533_v17 }
0x13f7   : > { %v4537_v5 = vpop.f32.mrf.mxu0 }
0x13f8   : > { %6174 = vpow2.f32 %v5114_v55  ;;  %v4538_v63 = vadd.f32 %v5102_v30, %v4537_v5 }
0x13f9   : > { %v6169_v44 = vpop.eup %6168  ;;  %v5720_v57 = vpop.f32.mrf.mxu0 }
0x13fa   : > { %v4558_v62 = vadd.f32 1.0, %v6169_v44  ;;  %v5115_v1 = vmul.f32 -1.442695, %v4538_v63 }
0x13fb   : > { %v4540_v46 = vpop.f32.mrf.mxu0 }
0x13fc   : > { %6176 = vpow2.f32 %v5115_v1 }
0x13fd   : > { %v6171_v45 = vpop.eup %6170  ;;  %v5721_v21 = vpop.f32.mrf.mxu0  ;;  %6178 = vrcp.f32 %v4558_v62 }
0x13fe   : > { %v4559_v31 = vadd.f32 1.0, %v6171_v45 }
0x1400   : > { %6180 = vrcp.f32 %v4559_v31 }
0x1401   : > { %v6173_v29 = vpop.eup %6172 }
0x1402   : > { %v4560_v26 = vadd.f32 1.0, %v6173_v29 }
0x1404   : > { %6182 = vrcp.f32 %v4560_v26 }
0x1405   : > { %v6175_v33 = vpop.eup %6174 }
0x1406   : > { %v4561_v8 = vadd.f32 1.0, %v6175_v33 }
0x1408   : > { %6184 = vrcp.f32 %v4561_v8 }
0x1409   : > { %v6177_v35 = vpop.eup %6176 }
0x140a   : > { %v6179_v9 = vpop.eup %6178  ;;  %v4562_v52 = vadd.f32 1.0, %v6177_v35 }
0x140b   : > { %v4573_v51 = vmul.f32 %v6179_v9, %v4522_v42 }
0x140c   : > { %6186 = vrcp.f32 %v4562_v52 }
0x140d   : > { %v6181_v32 = vpop.eup %6180 }
0x140e   : > { %v4574_v0 = vmul.f32 %v6181_v32, %v4525_v12 }
0x1410   : > { %v4578_v48 = vpack.c.bf16 %v4574_v0, %v4573_v51 }
0x1411   : > { %v6183_v10 = vpop.eup %6182 }
0x1412   : > { %5739 = vmatmul.mubr.bf16.vlgmr.msra.gmra.mxu1 %v4578_v48  ;;  %v4575_v61 = vmul.f32 %v6183_v10, %v4530_v28 }
0x1413   : > { %5742 = vmatprep.mubr.msk.bf16.mxu1 %vm6209_vm1, %v8306_v54 }
0x1415   : > { %v6185_v59 = vpop.eup %6184 }
0x1416   : > { %v4576_v24 = vmul.f32 %v6185_v59, %v4533_v17 }
0x1418   : > { %v4579_v11 = vpack.c.bf16 %v4576_v24, %v4575_v61 }
0x1419   : > { %v6187_v47 = vpop.eup %6186 }
0x141a   : > { %5743 = vmatmul.mubr.bf16.gmra.mxu1 %v4579_v11  ;;  %v4577_v19 = vmul.f32 %v6187_v47, %v4538_v63 }
0x141b   : > { %5746 = vmatprep.mubr.msk.bf16.mxu1 %vm6209_vm1, %v8306_v54 }
0x141c   : > { %v4580_v38 = vpack.c.bf16 %v4577_v19, %v4577_v19 }
0x1422   : > { %5747 = vmatmul.mubr.bf16.gmra.mxu1 %v4580_v38 }
0x14d2   : > { %v4683_v43 = vpop.f32.mrf.mxu1 }
0x14d3   : > { %v4684_v36 = vadd.f32 %v5116_v22, %v4683_v43 }
0x14d4   : > { %v5740_v4 = vpop.f32.mrf.mxu1 }
0x14d5   : > { %v4705_v56 = vmul.f32 0.5, %v4684_v36 }
0x14d6   : > { %v4686_v37 = vpop.f32.mrf.mxu1 }
0x14d7   : > { %v4687_v2 = vadd.f32 %v5116_v22, %v4686_v37  ;;  %v4710_v40 = vadd.f32 %v4705_v56, %v8085_v41  ;;  %v5125_v56 = vld [vmem:[%s8254_s14 + $0x11] ss:$0 sm:$0xff] }
0x14d8   : > { %v5741_v39 = vpop.f32.mrf.mxu1 }
0x14d9   : > { %v4706_v7 = vmul.f32 0.5, %v4687_v2  ;;  %4717 = vadd.xlane.f32.xlu0 %v4710_v40 }
0x14da   : > { %v4691_v3 = vpop.f32.mrf.mxu1 }
0x14db   : > { %v4692_v54 = vadd.f32 %v5116_v22, %v4691_v3  ;;  %v4711_v30 = vadd.f32 %v4706_v7, %v8089_v20 }
0x14dc   : > { %v5744_v16 = vpop.f32.mrf.mxu1 }
0x14dd   : > { %v4707_v42 = vmul.f32 0.5, %v4692_v54  ;;  %4719 = vadd.xlane.f32.xlu1 %v4711_v30 }
0x14de   : > { %v4694_v6 = vpop.f32.mrf.mxu1 }
0x14df   : > { %v4695_v18 = vadd.f32 %v5116_v22, %v4694_v6  ;;  %v4712_v34 = vadd.f32 %v4707_v42, %v8093_v53 }
0x14e0   : > { %v5745_v12 = vpop.f32.mrf.mxu1 }
0x14e1   : > { %v4708_v49 = vmul.f32 0.5, %v4695_v18  ;;  %4721 = vadd.xlane.f32.xlu0 %v4712_v34 }
0x14e2   : > { %v4699_v58 = vpop.f32.mrf.mxu1 }
0x14e3   : > { %v4700_v27 = vadd.f32 %v5116_v22, %v4699_v58  ;;  %v4713_v41 = vadd.f32 %v4708_v49, %v8097_v13 }
0x14e4   : > { %v5748_v28 = vpop.f32.mrf.mxu1 }
0x14e5   : > { %v4709_v15 = vmul.f32 0.5, %v4700_v27  ;;  %4723 = vadd.xlane.f32.xlu1 %v4713_v41 }
0x14e6   : > { %v4702_v50 = vpop.f32.mrf.mxu1 }
0x14e7   : > { %v4714_v20 = vadd.f32 %v4709_v15, %v8101_v60 }
0x14e8   : > { %v5749_v25 = vpop.f32.mrf.mxu1 }
0x14e9   : > { %4725 = vadd.xlane.f32.xlu0 %v4714_v20 }
0x1562   : > { %v4718_v17 = vpop.xlane.xlu0 %4717 }
0x1563   : > { %v4727_v14 = vmul.f32 0.03125, %v4718_v17 }
0x1565   : > { %v4732_v55 = vsub.f32 %v4710_v40, %v4727_v14  ;;  %v5126_v40 = vld [vmem:[%s8254_s14 + $0x12] ss:$0 sm:$0xff] }
0x1566   : > { %v4720_v5 = vpop.xlane.xlu1 %4719 }
0x1567   : > { %v4728_v53 = vmul.f32 0.03125, %v4720_v5  ;;  %v4737_v63 = vmul.f32 %v8343_v23, %v4732_v55 }
0x1569   : > { %v4733_v44 = vsub.f32 %v4711_v30, %v4728_v53  ;;  %v4742_v57 = vmul.f32 %v4737_v63, %v4737_v63 }
0x156a   : > { %v4722_v62 = vpop.xlane.xlu0 %4721 }
0x156b   : > { %v4729_v1 = vmul.f32 0.03125, %v4722_v62  ;;  %4747 = vadd.xlane.f32.xlu1 %v4742_v57  ;;  %v4738_v13 = vmul.f32 %v8343_v23, %v4733_v44 }
0x156d   : > { %v4734_v46 = vsub.f32 %v4712_v34, %v4729_v1  ;;  %v4743_v45 = vmul.f32 %v4738_v13, %v4738_v13 }
0x156e   : > { %v4724_v21 = vpop.xlane.xlu1 %4723 }
0x156f   : > { %v4730_v60 = vmul.f32 0.03125, %v4724_v21  ;;  %4749 = vadd.xlane.f32.xlu0 %v4743_v45  ;;  %v4739_v31 = vmul.f32 %v8343_v23, %v4734_v46 }
0x1571   : > { %v4735_v29 = vsub.f32 %v4713_v41, %v4730_v60  ;;  %v4744_v26 = vmul.f32 %v4739_v31, %v4739_v31 }
0x1572   : > { %v4726_v33 = vpop.xlane.xlu0 %4725 }
0x1573   : > { %v4740_v8 = vmul.f32 %v8343_v23, %v4735_v29  ;;  %v4731_v35 = vmul.f32 0.03125, %v4726_v33  ;;  %4751 = vadd.xlane.f32.xlu1 %v4744_v26 }
0x1575   : > { %v4736_v9 = vsub.f32 %v4714_v20, %v4731_v35  ;;  %v4745_v52 = vmul.f32 %v4740_v8, %v4740_v8 }
0x1577   : > { %v4741_v32 = vmul.f32 %v8343_v23, %v4736_v9  ;;  %4753 = vadd.xlane.f32.xlu0 %v4745_v52 }
0x1579   : > { %v4746_v51 = vmul.f32 %v4741_v32, %v4741_v32 }
0x157b   : > { %4755 = vadd.xlane.f32.xlu1 %v4746_v51 }
0x15f4   : > { %v4748_v0 = vpop.xlane.xlu1 %4747 }
0x15f5   : > { %v4757_v48 = vmul.f32 0.03125, %v4748_v0 }
0x15f7   : > { %v4762_v10 = vadd.f32 1e-05, %v4757_v48 }
0x15f8   : > { %v4750_v59 = vpop.xlane.xlu0 %4749 }
0x15f9   : > { %6188 = vrsqrt.f32 %v4762_v10  ;;  %v4758_v61 = vmul.f32 0.03125, %v4750_v59 }
0x15fb   : > { %v4763_v24 = vadd.f32 1e-05, %v4758_v61 }
0x15fc   : > { %v4752_v11 = vpop.xlane.xlu1 %4751 }
0x15fd   : > { %6190 = vrsqrt.f32 %v4763_v24  ;;  %v4759_v47 = vmul.f32 0.03125, %v4752_v11 }
0x15ff   : > { %v4764_v19 = vadd.f32 1e-05, %v4759_v47 }
0x1600   : > { %v4754_v38 = vpop.xlane.xlu0 %4753 }
0x1601   : > { %6192 = vrsqrt.f32 %v4764_v19  ;;  %v4760_v22 = vmul.f32 0.03125, %v4754_v38 }
0x1603   : > { %v4765_v43 = vadd.f32 1e-05, %v4760_v22 }
0x1604   : > { %v4756_v23 = vpop.xlane.xlu1 %4755 }
0x1605   : > { %6194 = vrsqrt.f32 %v4765_v43  ;;  %v4761_v36 = vmul.f32 0.03125, %v4756_v23 }
0x1606   : > { %v6189_v4 = vpop.eup %6188 }
0x1607   : > { %v4772_v37 = vmul.f32 %v6189_v4, %v4737_v63  ;;  %v4766_v2 = vadd.f32 1e-05, %v4761_v36 }
0x1609   : > { %v4781_v39 = vmul.f32 %v5125_v56, %v4772_v37  ;;  %6196 = vrsqrt.f32 %v4766_v2 }
0x160a   : > { %v6191_v7 = vpop.eup %6190 }
0x160b   : > { %v4790_v3 = vadd.f32 %v5126_v40, %v4781_v39  ;;  %v4773_v54 = vmul.f32 %v6191_v7, %v4738_v13 }
0x160d   : > { %4795 = vst [vmem:[%s562_s18] sm:$0xff] %v4790_v3  ;;  %v4782_v30 = vmul.f32 %v5125_v56, %v4773_v54 }
0x160e   : > { %v6193_v16 = vpop.eup %6192 }
0x160f   : > { %v4791_v42 = vadd.f32 %v5126_v40, %v4782_v30  ;;  %v4774_v6 = vmul.f32 %v6193_v16, %v4739_v31 }
0x1611   : > { %4796 = vst [vmem:[%s562_s18 + $0x8] sm:$0xff] %v4791_v42  ;;  %v4783_v18 = vmul.f32 %v5125_v56, %v4774_v6 }
0x1612   : > { %v6195_v34 = vpop.eup %6194 }
0x1613   : > { %v4792_v12 = vadd.f32 %v5126_v40, %v4783_v18  ;;  %v4775_v49 = vmul.f32 %v6195_v34, %v4740_v8 }
0x1615   : > { %4797 = vst [vmem:[%s562_s18 + $0x10] sm:$0xff] %v4792_v12  ;;  %v4784_v58 = vmul.f32 %v5125_v56, %v4775_v49 }
0x1616   : > { %v6197_v27 = vpop.eup %6196 }
0x1617   : > { %v4793_v41 = vadd.f32 %v5126_v40, %v4784_v58  ;;  %v4776_v28 = vmul.f32 %v6197_v27, %v4741_v32 }
0x1619   : > { %4798 = vst [vmem:[%s562_s18 + $0x18] sm:$0xff] %v4793_v41  ;;  %v4785_v15 = vmul.f32 %v5125_v56, %v4776_v28 }
0x161b   : > { %v4794_v50 = vadd.f32 %v5126_v40, %v4785_v15 }
0x161d   : > { %4799 = vst [vmem:[%s562_s18 + $0x20] sm:$0xff] %v4794_v50 }
0x161e PF: > { %s27_s24 = sadd.s32 1, %s6206_s24  }
0x161f   : > { %p24_p4 = scmp.ge.s32.totalorder %s27_s24, 4  }
0x1621   :  { %26 = sbr.rel (!%p24_p4) target bundleno = 3 (0x3), region = 123 }

// kernel: fwd.2
= control target key start
LH: loop header
LB: loop body
LE: loop exit
PB: predicated region body
PF: predicated region fallthrough
CT: control target
= control target key end

     0   :  { %s9327_s0 = inlined_call_operand.vmem [shape: f32[2,40,128], index: 0, kind: input, shape index: {}]   ;;  %s9328_s1 = inlined_call_operand.vmem [shape: f32[2,1,40], index: 1, kind: input, shape index: {}]   ;;  %s9329_s2 = inlined_call_operand.vmem [shape: bf16[128,128], index: 2, kind: input, shape index: {}]   ;;  %s9330_s3 = inlined_call_operand.vmem [shape: bf16[128,128], index: 3, kind: input, shape index: {}]   ;;  %s9331_s4 = inlined_call_operand.vmem [shape: bf16[128,512], index: 4, kind: input, shape index: {}]   ;;  %s9332_s5 = inlined_call_operand.hbm [shape: bf16[128,512], index: 5, kind: input, shape index: {}]   ;;  %s9333_s6 = inlined_call_operand.hbm [shape: bf16[128,512], index: 6, kind: input, shape index: {}]   ;;  %s9334_s7 = inlined_call_operand.hbm [shape: bf16[512,128], index: 7, kind: input, shape index: {}]   ;;  %s9335_s8 = inlined_call_operand.hbm [shape: bf16[128,128], index: 8, kind: input, shape index: {}]   ;;  %s9336_s9 = inlined_call_operand.hbm [shape: bf16[128,128], index: 9, kind: input, shape index: {}]   ;;  %s9337_s10 = inlined_call_operand.hbm [shape: f32[31,128], index: 10, kind: input, shape index: {}]   ;;  %s9338_s11 = inlined_call_operand.hbm [shape: bf16[128,128], index: 11, kind: input, shape index: {}]   ;;  %s9339_s12 = inlined_call_operand.hbm [shape: bf16[128,128], index: 12, kind: input, shape index: {}]   ;;  %s9340_s13 = inlined_call_operand.hbm [shape: bf16[128,128], index: 13, kind: input, shape index: {}]   ;;  %s9341_s14 = inlined_call_operand.hbm [shape: f32[19,128], index: 14, kind: input, shape index: {}]   ;;  %s9342_s15 = inlined_call_operand.hbm [shape: f32[2,128], index: 15, kind: input, shape index: {}]   ;;  %s9343_s16 = inlined_call_operand.hbm [shape: f32[3,512], index: 16, kind: input, shape index: {}]   ;;  %s9344_s17 = inlined_call_operand.vmem [shape: f32[2,40,128], index: 17, kind: output, shape index: {}]  }
   0x1   :  { %9426 = sst [smem:[#allocation67_spill]] %s9327_s0 }
   0x2   :  { %9427 = sst [smem:[#allocation68_spill]] %s9328_s1 }
   0x3   :  { %9428 = sst [smem:[#allocation69_spill]] %s9333_s6 }
   0x4   :  { %9429 = sst [smem:[#allocation70_spill]] %s9335_s8 }
   0x5   :  { %22 = vsyncpa [#allocation3], 0 }
   0x6   :  { %23 = vsyncpa [#allocation5], 0 }
   0x7   :  { %24 = vsyncpa [#allocation8], 0 }
   0x8   :  { %25 = vsyncpa [#allocation11], 0 }
   0x9   :  { %26 = vsyncpa [#allocation14], 0 }
   0xa   :  { %27 = vsyncpa [#allocation17], 0 }
   0xb   :  { %28 = vsyncpa [#allocation20], 0  ;;  %s7354_s24 = smov 0  }
   0xc LB: > { %s7360_s25 = sadd.s32 4294967295, %s7241_s24   ;;  %p5394_p0 = scmp.ge.s32.totalorder %s7241_s24, 1  ;;  %s7241_s24 = sphi %s7354_s24, %s34_s24  }
   0xd   : > { %p432_p1 = scmp.lt.s32.totalorder %s7241_s24, 3  ;;  %p6402_p2 = scmp.eq.s32.totalorder %s7360_s25, 0 }
   0xe   : > { %s7243_s27 = smov [#allocation4]   ;;  %s7244_s0 = smov [#allocation7]  }
   0xf   : > { %p7365_p3 = pnand %p5394_p0, %p432_p1  ;;  %s466_s28 = sshll.u32 %s7243_s27, 4  ;;  %s467_s28 = int_to_ptr.vmem [resolvable:$true] %s466_s28 }
  0x10   : > { %s492_s30 = sshll.u32 %s7244_s0, 4  ;;  %s7245_s18 = smov [#allocation10]   ;;  %s7377_s30 = int_to_ptr.vmem [resolvable:$true] %s492_s30 }
  0x11   : > { %p6365_p4 = pneg %p7365_p3  ;;  %s518_s19 = sshll.u32 %s7245_s18, 4  ;;  %s7379_s19 = int_to_ptr.vmem [resolvable:$true] %s518_s19 }
  0x12   : > { %s6906_s20 = scalar_lea.vmem %s467_s28, 4096  ;;  %p6914_p10 = scmp.lt.s32.totalorder %s467_s28, %s467_s28 }
  0x13   : > { %p7373_p5 = pnand %p6402_p2, %p6365_p4  ;;  %p6907_p7 = scmp.ne.s32.totalorder %s467_s28, %s6906_s20 }
  0x14   : > { %p6915_p11 = scmp.lt.s32.totalorder %s6906_s20, %s6906_s20 }
  0x15   : > { %p7383_p6 = pneg %p7373_p5 }
  0x16   : > { %p6916_p12 = por %p6915_p11, %p6914_p10 }
  0x17   : > { %p6909_p8 = pnand %p6907_p7, %p7383_p6 }
  0x19   : > { %p6910_p9 = pneg %p6909_p8 }
  0x1b   : > { %p6917_p13 = pnand %p6916_p12, %p6910_p9 }
  0x1d   : > { %6920 = shalt.err (!%p6917_p13)
}
  0x1e   : > { %s9345_s21 = smov 256   ;;  %s9346_s22 = smov 16  }
  0x1f   : > { %s9433_s6 = sld [smem:[#allocation69_spill]]  ;;  %s6932_s0 = scalar_lea.vmem %s7377_s30, 1024 }
  0x20   : > { %p6933_p0 = scmp.ne.s32.totalorder %s7377_s30, %s6932_s0  ;;  %p6940_p7 = scmp.lt.s32.totalorder %s7377_s30, %s7377_s30 }
  0x21   : > { %p6941_p8 = scmp.lt.s32.totalorder %s6932_s0, %s6932_s0 }
  0x22   : > { %p6935_p1 = pnand %p6933_p0, %p7383_p6 }
  0x23   : > { %p6942_p9 = por %p6941_p8, %p6940_p7 }
  0x24   : > { %p6936_p4 = pneg %p6935_p1 }
  0x25   : > { %6371 = dma.hbm_to_vmem [thread:$0]  (!%p7373_p5), %s9433_s6, 4096, %s467_s28, [#allocation5], %s9345_s21, %s9345_s21, %s9346_s22  }
  0x26   : > { %p6943_p10 = pnand %p6942_p9, %p6936_p4 }
  0x28   : > { %6946 = shalt.err (!%p6943_p10)
}
  0x29   : > { %s9347_s18 = smov 64   ;;  %s9349_s20 = smov 4  }
  0x2a   : > { %s9434_s8 = sld [smem:[#allocation70_spill]]  ;;  %s6958_s27 = scalar_lea.vmem %s7379_s19, 512 }
  0x2b   : > { %p6959_p11 = scmp.ne.s32.totalorder %s7379_s19, %s6958_s27  ;;  %p6966_p0 = scmp.lt.s32.totalorder %s7379_s19, %s7379_s19 }
  0x2c   : > { %p6967_p1 = scmp.lt.s32.totalorder %s6958_s27, %s6958_s27 }
  0x2d   : > { %p6961_p12 = pnand %p6959_p11, %p7383_p6 }
  0x2e   : > { %p6968_p4 = por %p6967_p1, %p6966_p0 }
  0x2f   : > { %p6962_p13 = pneg %p6961_p12 }
  0x30   : > { %6377 = dma.hbm_to_vmem [thread:$0]  (!%p7373_p5), %s9434_s8, 1024, %s7377_s30, [#allocation8], %s9347_s18, %s9347_s18, %s9349_s20  }
  0x31   : > { %p6969_p7 = pnand %p6968_p4, %p6962_p13 }
  0x33   : > { %6972 = shalt.err (!%p6969_p7)
}
  0x34   : > { %s7250_s0 = smov 128   ;;  %s7251_s21 = smov 8  }
  0x35   : > { %6383 = dma.hbm_to_vmem [thread:$0]  (!%p7373_p5), %s9337_s10, 512, %s7379_s19, [#allocation11], %s7250_s0, %s7250_s0, %s7251_s21  }
  0x36   : > { %s7252_s23 = smov [#allocation13]   ;;  %s7253_s18 = smov [#allocation16]  }
  0x37   : > { %s544_s22 = sshll.u32 %s7252_s23, 4  ;;  %s570_s27 = sshll.u32 %s7253_s18, 4  ;;  %s545_s22 = int_to_ptr.vmem [resolvable:$true] %s544_s22  ;;  %s571_s27 = int_to_ptr.vmem [resolvable:$true] %s570_s27 }
  0x38   : > { %s6984_s20 = scalar_lea.vmem %s545_s22, 1024  ;;  %p6992_p11 = scmp.lt.s32.totalorder %s545_s22, %s545_s22 }
  0x39   : > { %p6985_p8 = scmp.ne.s32.totalorder %s545_s22, %s6984_s20  ;;  %p6993_p12 = scmp.lt.s32.totalorder %s6984_s20, %s6984_s20 }
  0x3b   : > { %p6987_p9 = pnand %p6985_p8, %p7383_p6  ;;  %p6994_p13 = por %p6993_p12, %p6992_p11 }
  0x3d   : > { %p6988_p10 = pneg %p6987_p9 }
  0x3f   : > { %p6995_p0 = pnand %p6994_p13, %p6988_p10 }
  0x41   : > { %6998 = shalt.err (!%p6995_p0)
}
  0x42   : > { %s9435_s30 = smov 4   ;;  %s9436_s19 = smov 64  }
  0x43   : > { %6389 = dma.hbm_to_vmem [thread:$0]  (!%p7373_p5), %s9339_s12, 1024, %s545_s22, [#allocation14], %s9436_s19, %s9436_s19, %s9435_s30  }
  0x44   : > { %s7010_s18 = scalar_lea.vmem %s571_s27, 384  ;;  %p7018_p8 = scmp.lt.s32.totalorder %s571_s27, %s571_s27 }
  0x45   : > { %p7011_p1 = scmp.ne.s32.totalorder %s571_s27, %s7010_s18  ;;  %p7019_p9 = scmp.lt.s32.totalorder %s7010_s18, %s7010_s18 }
  0x47   : > { %p7013_p4 = pnand %p7011_p1, %p7383_p6  ;;  %p7020_p11 = por %p7019_p9, %p7018_p8 }
  0x49   : > { %p7014_p7 = pneg %p7013_p4 }
  0x4b   : > { %p7021_p10 = pnand %p7020_p11, %p7014_p7 }
  0x4d   : > { %7024 = shalt.err (!%p7021_p10)
}
  0x4e   : > { %6395 = dma.hbm_to_vmem [thread:$0]  (!%p7373_p5), %s9341_s14, 384, %s571_s27, [#allocation17], %s7250_s0, %s7250_s0, %s7251_s21  }
  0x4f   : > { %s7254_s22 = smov [#allocation2]   ;;  %s7255_s23 = smov [#allocation6]  }
  0x50   : > { %s453_s28 = sshll.u32 %s7254_s22, 4  ;;  %s479_s8 = sshll.u32 %s7255_s23, 4  ;;  %s454_s28 = int_to_ptr.vmem [resolvable:$true] %s453_s28  ;;  %s480_s8 = int_to_ptr.vmem [resolvable:$true] %s479_s8 }
  0x51   : > { %s7036_s18 = scalar_lea.vmem %s454_s28, 4096  ;;  %p7044_p1 = scmp.lt.s32.totalorder %s454_s28, %s454_s28 }
  0x52   : > { %p7037_p12 = scmp.ne.s32.totalorder %s454_s28, %s7036_s18  ;;  %p7045_p4 = scmp.lt.s32.totalorder %s7036_s18, %s7036_s18 }
  0x54   : > { %p7039_p13 = pnand %p7037_p12, %p7383_p6  ;;  %p7046_p7 = por %p7045_p4, %p7044_p1 }
  0x56   : > { %p7040_p0 = pneg %p7039_p13 }
  0x58   : > { %p7047_p8 = pnand %p7046_p7, %p7040_p0 }
  0x5a   : > { %7050 = shalt.err (!%p7047_p8)
}
  0x5b   : > { %s9437_s6 = smov 16   ;;  %s9438_s21 = smov 256  }
  0x5c   : > { %6368 = dma.hbm_to_vmem [thread:$0]  (!%p7373_p5), %s9332_s5, 4096, %s454_s28, [#allocation3], %s9438_s21, %s9438_s21, %s9437_s6  }
  0x5d   : > { %s7062_s20 = scalar_lea.vmem %s480_s8, 4096  ;;  %p7070_p12 = scmp.lt.s32.totalorder %s480_s8, %s480_s8 }
  0x5e   : > { %p7063_p9 = scmp.ne.s32.totalorder %s480_s8, %s7062_s20  ;;  %p7071_p13 = scmp.lt.s32.totalorder %s7062_s20, %s7062_s20 }
  0x60   : > { %p7065_p11 = pnand %p7063_p9, %p7383_p6  ;;  %p7072_p1 = por %p7071_p13, %p7070_p12 }
  0x62   : > { %p7066_p10 = pneg %p7065_p11 }
  0x64   : > { %p7073_p0 = pnand %p7072_p1, %p7066_p10 }
  0x66   : > { %7076 = shalt.err (!%p7073_p0)
}
  0x67   : > { %6374 = dma.hbm_to_vmem [thread:$0]  (!%p7373_p5), %s9334_s7, 4096, %s480_s8, [#allocation5], %s9436_s19, %s9436_s19, %s9435_s30  }
  0x68   : > { %s7256_s28 = smov [#allocation9]   ;;  %s7257_s6 = smov [#allocation12]  }
  0x69   : > { %s505_s18 = sshll.u32 %s7256_s28, 4  ;;  %s531_s21 = sshll.u32 %s7257_s6, 4  ;;  %s506_s18 = int_to_ptr.vmem [resolvable:$true] %s505_s18  ;;  %s532_s21 = int_to_ptr.vmem [resolvable:$true] %s531_s21 }
  0x6a   : > { %s7088_s0 = scalar_lea.vmem %s506_s18, 1024  ;;  %p7096_p9 = scmp.lt.s32.totalorder %s506_s18, %s506_s18 }
  0x6b   : > { %p7089_p4 = scmp.ne.s32.totalorder %s506_s18, %s7088_s0  ;;  %p7097_p11 = scmp.lt.s32.totalorder %s7088_s0, %s7088_s0 }
  0x6d   : > { %p7091_p7 = pnand %p7089_p4, %p7383_p6  ;;  %p7098_p10 = por %p7097_p11, %p7096_p9 }
  0x6f   : > { %p7092_p8 = pneg %p7091_p7 }
  0x71   : > { %p7099_p12 = pnand %p7098_p10, %p7092_p8 }
  0x73   : > { %7102 = shalt.err (!%p7099_p12)
}
  0x74   : > { %6380 = dma.hbm_to_vmem [thread:$0]  (!%p7373_p5), %s9336_s9, 1024, %s506_s18, [#allocation8], %s9436_s19, %s9436_s19, %s9435_s30  }
  0x75   : > { %s7114_s20 = scalar_lea.vmem %s532_s21, 1024  ;;  %p7122_p4 = scmp.lt.s32.totalorder %s532_s21, %s532_s21 }
  0x76   : > { %p7115_p13 = scmp.ne.s32.totalorder %s532_s21, %s7114_s20  ;;  %p7123_p7 = scmp.lt.s32.totalorder %s7114_s20, %s7114_s20 }
  0x78   : > { %p7117_p1 = pnand %p7115_p13, %p7383_p6  ;;  %p7124_p9 = por %p7123_p7, %p7122_p4 }
  0x7a   : > { %p7118_p0 = pneg %p7117_p1 }
  0x7c   : > { %p7125_p8 = pnand %p7124_p9, %p7118_p0 }
  0x7e   : > { %7128 = shalt.err (!%p7125_p8)
}
  0x7f   : > { %6386 = dma.hbm_to_vmem [thread:$0]  (!%p7373_p5), %s9338_s11, 1024, %s532_s21, [#allocation11], %s9436_s19, %s9436_s19, %s9435_s30  }
  0x80   : > { %s7258_s28 = smov [#allocation15]   ;;  %s7259_s6 = smov [#allocation18]  }
  0x81   : > { %s557_s18 = sshll.u32 %s7258_s28, 4  ;;  %s584_s0 = sshll.u32 %s7259_s6, 4  ;;  %s558_s18 = int_to_ptr.vmem [resolvable:$true] %s557_s18  ;;  %s585_s0 = int_to_ptr.vmem [resolvable:$true] %s584_s0 }
  0x82   : > { %s7140_s8 = scalar_lea.vmem %s558_s18, 1024  ;;  %p7148_p13 = scmp.lt.s32.totalorder %s558_s18, %s558_s18 }
  0x83   : > { %p7141_p11 = scmp.ne.s32.totalorder %s558_s18, %s7140_s8  ;;  %p7149_p1 = scmp.lt.s32.totalorder %s7140_s8, %s7140_s8 }
  0x85   : > { %p7143_p10 = pnand %p7141_p11, %p7383_p6  ;;  %p7150_p0 = por %p7149_p1, %p7148_p13 }
  0x87   : > { %p7144_p12 = pneg %p7143_p10 }
  0x89   : > { %p7151_p4 = pnand %p7150_p0, %p7144_p12 }
  0x8b   : > { %7154 = shalt.err (!%p7151_p4)
}
  0x8c   : > { %6392 = dma.hbm_to_vmem [thread:$0]  (!%p7373_p5), %s9340_s13, 1024, %s558_s18, [#allocation14], %s9436_s19, %s9436_s19, %s9435_s30  }
  0x8d   : > { %s7166_s20 = scalar_lea.vmem %s585_s0, 32  ;;  %p7174_p11 = scmp.lt.s32.totalorder %s585_s0, %s585_s0 }
  0x8e   : > { %p7167_p7 = scmp.ne.s32.totalorder %s585_s0, %s7166_s20  ;;  %p7175_p10 = scmp.lt.s32.totalorder %s7166_s20, %s7166_s20 }
  0x90   : > { %p7169_p9 = pnand %p7167_p7, %p7383_p6  ;;  %p7176_p13 = por %p7175_p10, %p7174_p11 }
  0x92   : > { %p7170_p8 = pneg %p7169_p9 }
  0x94   : > { %p7177_p12 = pnand %p7176_p13, %p7170_p8 }
  0x96   : > { %7180 = shalt.err (!%p7177_p12)
}
  0x97   : > { %6398 = dma.hbm_to_vmem [thread:$0]  (!%p7373_p5), %s9342_s15, 32, %s585_s0, [#allocation17]  }
  0x98   : > { %s7260_s28 = smov [#allocation19]  }
  0x99   : > { %s595_s6 = sshll.u32 %s7260_s28, 4  ;;  %s596_s6 = int_to_ptr.vmem [resolvable:$true] %s595_s6 }
  0x9a   : > { %s7192_s30 = scalar_lea.vmem %s596_s6, 256  ;;  %p7200_p7 = scmp.lt.s32.totalorder %s596_s6, %s596_s6 }
  0x9b   : > { %p7193_p1 = scmp.ne.s32.totalorder %s596_s6, %s7192_s30  ;;  %p7201_p9 = scmp.lt.s32.totalorder %s7192_s30, %s7192_s30 }
  0x9d   : > { %p7195_p0 = pnand %p7193_p1, %p7383_p6  ;;  %p7202_p11 = por %p7201_p9, %p7200_p7 }
  0x9f   : > { %p7196_p4 = pneg %p7195_p0 }
  0xa1   : > { %p7203_p8 = pnand %p7202_p11, %p7196_p4 }
  0xa3   : > { %7206 = shalt.err (!%p7203_p8)
}
  0xa4   : > { %6401 = dma.hbm_to_vmem [thread:$0]  (!%p7373_p5), %s9343_s16, 256, %s596_s6, [#allocation20]  }
  0xa5   : > { %622 = sbr.rel (%p7365_p3) target bundleno = 5878 (0x16f6), region = 88 }
  0xaa   : > { %7212 = dma.done.wait (%p6402_p2), [#allocation3], 4096  }
  0xab   : > { %7214 = vsyncadd (%p6402_p2), [#allocation3], 4294963200 }
  0xac   : > { %7216 = dma.done.wait (%p6402_p2), [#allocation5], 8192  }
  0xad   : > { %7218 = vsyncadd (%p6402_p2), [#allocation5], 4294959104 }
  0xae   : > { %7220 = dma.done.wait (%p6402_p2), [#allocation8], 2048  }
  0xaf   : > { %7222 = vsyncadd (%p6402_p2), [#allocation8], 4294965248 }
  0xb0   : > { %7224 = dma.done.wait (%p6402_p2), [#allocation11], 1536  }
  0xb1   : > { %7226 = vsyncadd (%p6402_p2), [#allocation11], 4294965760 }
  0xb2   : > { %7228 = dma.done.wait (%p6402_p2), [#allocation14], 2048  }
  0xb3   : > { %7230 = vsyncadd (%p6402_p2), [#allocation14], 4294965248 }
  0xb4   : > { %7232 = dma.done.wait (%p6402_p2), [#allocation17], 416  }
  0xb5   : > { %7234 = vsyncadd (%p6402_p2), [#allocation17], 4294966880 }
  0xb6   : > { %7236 = dma.done.wait (%p6402_p2), [#allocation20], 256  }
  0xb7   : > { %7238 = vsyncadd (%p6402_p2), [#allocation20], 4294967040  ;;  %p721_p3 = scmp.lt.s32.totalorder %s7360_s25, 1  ;;  %s9439_s0 = sld [smem:[#allocation67_spill]]  ;;  %v9351_v5 = vmov 0.0   ;;  %v6455_v6 = vld [vmem:[%s9329_s2 + $0x38] sm:$0xff]   ;;  %v735_v7 = vlaneseq }
  0xb8   : > { %5864 = vmatprep.subr.bf16.mxu0 %v9351_v5  ;;  %5892 = vmatprep.subr.bf16.mxu1 %v9351_v5  ;;  %v6456_v35 = vld [vmem:[%s9329_s2 + $0x30] sm:$0xff]   ;;  %v6457_v36 = vld [vmem:[%s9329_s2 + $0x28] sm:$0xff]   ;;  %v6458_v37 = vld [vmem:[%s9329_s2 + $0x20] sm:$0xff]   ;;  %vm7262_vm1 = vmmov 0   ;;  %vm2402_vm2 = vcmask 1043456   ;;  %s9461_s21 = sld [smem:[#allocation68_spill]] }
  0xb9   : > { %s9587_s25 = smov (!%p721_p3, %s7360_s25), 1  ;;  %5865 = vmatpush3.bf16.msra.mxu0 %v6455_v6  ;;  %v736_v8 = vand.u32 127, %v735_v7  ;;  %v6459_v38 = vld [vmem:[%s9329_s2 + $0x18] sm:$0xff]   ;;  %5880 = vmatprep.mubr.msk.bf16.mxu0 %vm7262_vm1, %v9351_v5  ;;  %v6460_v39 = vld [vmem:[%s9329_s2 + $0x10] sm:$0xff]   ;;  %v6461_v40 = vld [vmem:[%s9329_s2 + $0x8] sm:$0xff]   ;;  %vm2334_vm3 = vcmask 326656  }
  0xba   : > { %s6316_s26 = smul.u32 40, %s9587_s25  ;;  %5866 = vmatprep.subr.bf16.mxu0 %v9351_v5  ;;  %5908 = vmatprep.mubr.msk.bf16.mxu1 %vm7262_vm1, %v9351_v5  ;;  %v6462_v41 = vld [vmem:[%s9329_s2] sm:$0xff]  }
  0xbb   : > { %vm737_vm0 = vcmp.lt.s32.totalorder %v736_v8, 32  ;;  %v5424_v59 = vld [vmem:[#allocation16] ss:$0 sm:$0xff]  ;;  %v5425_v6 = vld [vmem:[#allocation16 + $0x1] ss:$0 sm:$0xff] }
  0xbc   : > { %v7574_v13 = vsel %vm737_vm0, 1.0, %v9351_v5  ;;  %s733_s23 = scalar_lea.vmem %s9344_s17, %s6316_s26 }
  0xbd   : > { %s725_s8 = scalar_lea.vmem %s9439_s0, %s6316_s26  ;;  %9440 = vst [vmem:[#allocation28_spill] sm:$0xff] %v7574_v13  ;;  %5867 = vmatpush3.bf16.msra.mxu0 %v6456_v35 }
  0xbe   : > { %v7551_v0 = vld [vmem:[%s725_s8] sm:$0xff]  ;;  %v7553_v1 = vld [vmem:[%s725_s8 + $0x10] sm:$0xff]  ;;  %v7557_v2 = vld [vmem:[%s725_s8 + $0x8] sm:$0xff]  ;;  %5868 = vmatprep.subr.bf16.mxu0 %v9351_v5  ;;  %s8122_s27 = scalar_lea.vmem %s9461_s21, %s9587_s25 }
  0xbf   : > { %755 = vadd.xlane.f32.xlu0 %v7551_v0  ;;  %759 = vadd.xlane.f32.xlu1 %v7553_v1  ;;  %v7559_v3 = vld [vmem:[%s725_s8 + $0x18] sm:$0xff]  ;;  %v7561_v4 = vld [vmem:[%s725_s8 + $0x20] sm:$0xff] }
  0xc1   : > { %5869 = vmatpush3.bf16.msra.mxu0 %v6457_v36 }
  0xc2   : > { %5870 = vmatprep.subr.bf16.mxu0 %v9351_v5 }
  0xc3   : > { %757 = vadd.xlane.f32.xlu0 %v7557_v2  ;;  %761 = vadd.xlane.f32.xlu1 %v7559_v3 }
  0xc5   : > { %5871 = vmatpush3.bf16.msra.mxu0 %v6458_v37 }
  0xc6   : > { %5872 = vmatprep.subr.bf16.mxu0 %v9351_v5 }
  0xc7   : > { %763 = vadd.xlane.f32.xlu0 %v7561_v4 }
  0xc9   : > { %5873 = vmatpush3.bf16.msra.mxu0 %v6459_v38 }
  0xca   : > { %5874 = vmatprep.subr.bf16.mxu0 %v9351_v5 }
  0xcd   : > { %5875 = vmatpush3.bf16.msra.mxu0 %v6460_v39 }
  0xce   : > { %5876 = vmatprep.subr.bf16.mxu0 %v9351_v5 }
  0xd1   : > { %5877 = vmatpush3.bf16.msra.mxu0 %v6461_v40 }
  0xd2   : > { %5878 = vmatprep.subr.bf16.mxu0 %v9351_v5 }
  0xd5   : > { %5879 = vmatpush3.bf16.msra.mxu0 %v6462_v41 }
 0x148   : > { %v756_v9 = vpop.xlane.xlu0 %755  ;;  %v760_v10 = vpop.xlane.xlu1 %759 }
 0x149   : > { %v765_v11 = vmul.f32 0.03125, %v756_v9  ;;  %v767_v12 = vmul.f32 0.03125, %v760_v10 }
 0x14b   : > { %v770_v14 = vsub.f32 %v7551_v0, %v765_v11  ;;  %v772_v15 = vsub.f32 %v7553_v1, %v767_v12 }
 0x14c   : > { %v758_v16 = vpop.xlane.xlu0 %757  ;;  %v762_v17 = vpop.xlane.xlu1 %761 }
 0x14d   : > { %v766_v18 = vmul.f32 0.03125, %v758_v16  ;;  %v768_v19 = vmul.f32 0.03125, %v762_v17  ;;  %v7579_v20 = vmul.f32 %v7574_v13, %v770_v14  ;;  %v7582_v21 = vmul.f32 %v7574_v13, %v772_v15 }
 0x14f   : > { %v771_v22 = vsub.f32 %v7557_v2, %v766_v18  ;;  %v773_v23 = vsub.f32 %v7559_v3, %v768_v19  ;;  %v780_v24 = vmul.f32 %v7579_v20, %v7579_v20  ;;  %v782_v27 = vmul.f32 %v7582_v21, %v7582_v21 }
 0x150   : > { %v764_v25 = vpop.xlane.xlu0 %763 }
 0x151   : > { %v769_v26 = vmul.f32 0.03125, %v764_v25  ;;  %785 = vadd.xlane.f32.xlu1 %v780_v24  ;;  %v776_v28 = vmul.f32 %v7574_v13, %v771_v22  ;;  %v7592_v29 = vmul.f32 %v7574_v13, %v773_v23 }
 0x153   : > { %v774_v30 = vsub.f32 %v7561_v4, %v769_v26  ;;  %v781_v31 = vmul.f32 %v776_v28, %v776_v28  ;;  %v783_v32 = vmul.f32 %v7592_v29, %v7592_v29  ;;  %v6463_v26 = vld [vmem:[%s9330_s3 + $0x38] sm:$0xff]  }
 0x154   : > { %5893 = vmatpush3.bf16.msra.mxu1 %v6463_v26 }
 0x155   : > { %789 = vadd.xlane.f32.xlu1 %v782_v27  ;;  %787 = vadd.xlane.f32.xlu0 %v781_v31  ;;  %v7598_v33 = vmul.f32 %v7574_v13, %v774_v30  ;;  %v6464_v27 = vld [vmem:[%s9330_s3 + $0x30] sm:$0xff]   ;;  %v6467_v30 = vld [vmem:[%s9330_s3 + $0x18] sm:$0xff]  }
 0x156   : > { %5894 = vmatprep.subr.bf16.mxu1 %v9351_v5  ;;  %v6468_v31 = vld [vmem:[%s9330_s3 + $0x10] sm:$0xff]  }
 0x157   : > { %v784_v34 = vmul.f32 %v7598_v33, %v7598_v33 }
 0x158   : > { %5895 = vmatpush3.bf16.msra.mxu1 %v6464_v27 }
 0x159   : > { %791 = vadd.xlane.f32.xlu0 %v783_v32  ;;  %793 = vadd.xlane.f32.xlu1 %v784_v34  ;;  %v6469_v32 = vld [vmem:[%s9330_s3 + $0x8] sm:$0xff]   ;;  %v5426_v34 = vld [vmem:[#allocation18] ss:$0 sm:$0xff] }
 0x15a   : > { %5896 = vmatprep.subr.bf16.mxu1 %v9351_v5 }
 0x1da   : > { %v786_v42 = vpop.xlane.xlu1 %785 }
 0x1db   : > { %v795_v43 = vmul.f32 0.03125, %v786_v42 }
 0x1dd   : > { %v800_v44 = vadd.f32 1e-05, %v795_v43 }
 0x1de   : > { %v790_v45 = vpop.xlane.xlu1 %789  ;;  %v788_v46 = vpop.xlane.xlu0 %787 }
 0x1df   : > { %6687 = vrsqrt.f32 %v800_v44  ;;  %v797_v47 = vmul.f32 0.03125, %v790_v45  ;;  %v796_v48 = vmul.f32 0.03125, %v788_v46 }
 0x1e1   : > { %v801_v49 = vadd.f32 1e-05, %v796_v48  ;;  %v802_v50 = vadd.f32 1e-05, %v797_v47 }
 0x1e2   : > { %v794_v51 = vpop.xlane.xlu1 %793  ;;  %v792_v52 = vpop.xlane.xlu0 %791 }
 0x1e3   : > { %v798_v53 = vmul.f32 0.03125, %v792_v52  ;;  %6689 = vrsqrt.f32 %v801_v49  ;;  %v799_v54 = vmul.f32 0.03125, %v794_v51 }
 0x1e4   : > { %6691 = vrsqrt.f32 %v802_v50 }
 0x1e5   : > { %v803_v55 = vadd.f32 1e-05, %v798_v53  ;;  %v804_v56 = vadd.f32 1e-05, %v799_v54 }
 0x1e7   : > { %6693 = vrsqrt.f32 %v803_v55 }
 0x1e8   : > { %6695 = vrsqrt.f32 %v804_v56 }
 0x1ec   : > { %v6688_v57 = vpop.eup %6687 }
 0x1ed   : > { %v810_v58 = vmul.f32 %v6688_v57, %v7579_v20 }
 0x1ef   : > { %v819_v62 = vmul.f32 %v5424_v59, %v810_v58 }
 0x1f0   : > { %v6690_v60 = vpop.eup %6689 }
 0x1f1   : > { %v811_v61 = vmul.f32 %v6690_v60, %v776_v28  ;;  %v6692_v63 = vpop.eup %6691  ;;  %v828_v10 = vadd.f32 %v5425_v6, %v819_v62  ;;  %v6465_v28 = vld [vmem:[%s9330_s3 + $0x28] sm:$0xff]  }
 0x1f2   : > { %v812_v12 = vmul.f32 %v6692_v63, %v7582_v21  ;;  %5897 = vmatpush3.bf16.msra.mxu1 %v6465_v28 }
 0x1f3   : > { %v820_v8 = vmul.f32 %v5424_v59, %v811_v61  ;;  %5898 = vmatprep.subr.bf16.mxu1 %v9351_v5 }
 0x1f4   : > { %v6694_v9 = vpop.eup %6693  ;;  %v821_v18 = vmul.f32 %v5424_v59, %v812_v12 }
 0x1f5   : > { %v829_v11 = vadd.f32 %v5425_v6, %v820_v8  ;;  %v813_v14 = vmul.f32 %v6694_v9, %v7592_v29  ;;  %v6696_v17 = vpop.eup %6695  ;;  %v6466_v29 = vld [vmem:[%s9330_s3 + $0x20] sm:$0xff]  }
 0x1f6   : > { %v814_v20 = vmul.f32 %v6696_v17, %v7598_v33  ;;  %v830_v22 = vadd.f32 %v5425_v6, %v821_v18  ;;  %5899 = vmatpush3.bf16.msra.mxu1 %v6466_v29  ;;  %v6470_v33 = vld [vmem:[%s9330_s3] sm:$0xff]  }
 0x1f7   : > { %v833_v15 = vpack.c.bf16 %v829_v11, %v828_v10  ;;  %v822_v16 = vmul.f32 %v5424_v59, %v813_v14  ;;  %5900 = vmatprep.subr.bf16.mxu1 %v9351_v5 }
 0x1f8   : > { %v823_v24 = vmul.f32 %v5424_v59, %v814_v20 }
 0x1f9   : > { %5881 = vmatmul.mubr.bf16.vlgmr.msra.gmra.mxu0 %v833_v15  ;;  %v831_v19 = vadd.f32 %v5425_v6, %v822_v16 }
 0x1fa   : > { %5884 = vmatprep.mubr.msk.bf16.mxu0 %vm7262_vm1, %v9351_v5  ;;  %v832_v21 = vadd.f32 %v5425_v6, %v823_v24  ;;  %5901 = vmatpush3.bf16.msra.mxu1 %v6467_v30 }
 0x1fb   : > { %v834_v23 = vpack.c.bf16 %v831_v19, %v830_v22  ;;  %5902 = vmatprep.subr.bf16.mxu1 %v9351_v5 }
 0x1fc   : > { %v835_v25 = vpack.c.bf16 %v832_v21, %v832_v21  ;;  %v5440_v21 = vld [vmem:[#allocation16 + $0x2] ss:$0 sm:$0xff] }
 0x1fe   : > { %5903 = vmatpush3.bf16.msra.mxu1 %v6468_v31 }
 0x1ff   : > { %5904 = vmatprep.subr.bf16.mxu1 %v9351_v5 }
 0x201   : > { %5885 = vmatmul.mubr.bf16.gmra.mxu0 %v834_v23 }
 0x202   : > { %5888 = vmatprep.mubr.msk.bf16.mxu0 %vm7262_vm1, %v9351_v5  ;;  %5905 = vmatpush3.bf16.msra.mxu1 %v6469_v32 }
 0x203   : > { %5906 = vmatprep.subr.bf16.mxu1 %v9351_v5 }
 0x206   : > { %5907 = vmatpush3.bf16.msra.mxu1 %v6470_v33 }
 0x209   : > { %5889 = vmatmul.mubr.bf16.gmra.mxu0 %v835_v25 }
 0x2b9   : > { %v938_v35 = vpop.f32.mrf.mxu0 }
 0x2ba   : > { %v939_v36 = vadd.f32 %v5426_v34, %v938_v35 }
 0x2bb   : > { %v5882_v37 = vpop.f32.mrf.mxu0 }
 0x2bc   : > { %v5435_v38 = vmul.f32 -1.442695, %v939_v36 }
 0x2bd   : > { %v941_v39 = vpop.f32.mrf.mxu0 }
 0x2be   : > { %6697 = vpow2.f32 %v5435_v38  ;;  %v942_v40 = vadd.f32 %v5426_v34, %v941_v39 }
 0x2bf   : > { %v5883_v41 = vpop.f32.mrf.mxu0 }
 0x2c0   : > { %v5436_v42 = vmul.f32 -1.442695, %v942_v40 }
 0x2c1   : > { %v946_v43 = vpop.f32.mrf.mxu0 }
 0x2c2   : > { %6699 = vpow2.f32 %v5436_v42  ;;  %v947_v44 = vadd.f32 %v5426_v34, %v946_v43 }
 0x2c3   : > { %v5886_v45 = vpop.f32.mrf.mxu0 }
 0x2c4   : > { %v5437_v46 = vmul.f32 -1.442695, %v947_v44 }
 0x2c5   : > { %v949_v47 = vpop.f32.mrf.mxu0 }
 0x2c6   : > { %6701 = vpow2.f32 %v5437_v46  ;;  %v950_v48 = vadd.f32 %v5426_v34, %v949_v47 }
 0x2c7   : > { %v5887_v49 = vpop.f32.mrf.mxu0 }
 0x2c8   : > { %v5438_v50 = vmul.f32 -1.442695, %v950_v48  ;;  %v6471_v49 = vld [vmem:[%s9331_s4 + $0xe0] ss:$16 sps:$4 sm:$0xff]  }
 0x2c9   : > { %v954_v51 = vpop.f32.mrf.mxu0 }
 0x2ca   : > { %6703 = vpow2.f32 %v5438_v50  ;;  %v955_v52 = vadd.f32 %v5426_v34, %v954_v51  ;;  %v6474_v50 = vld [vmem:[%s9331_s4 + $0xe8] ss:$16 sps:$4 sm:$0xff]  }
 0x2cb   : > { %v6698_v53 = vpop.eup %6697  ;;  %v5890_v54 = vpop.f32.mrf.mxu0 }
 0x2cc   : > { %v975_v55 = vadd.f32 1.0, %v6698_v53  ;;  %v5439_v56 = vmul.f32 -1.442695, %v955_v52 }
 0x2cd   : > { %v957_v57 = vpop.f32.mrf.mxu0 }
 0x2ce   : > { %6705 = vpow2.f32 %v5439_v56 }
 0x2cf   : > { %v6700_v58 = vpop.eup %6699  ;;  %v5891_v59 = vpop.f32.mrf.mxu0  ;;  %6707 = vrcp.f32 %v975_v55 }
 0x2d0   : > { %v976_v60 = vadd.f32 1.0, %v6700_v58 }
 0x2d2   : > { %6709 = vrcp.f32 %v976_v60 }
 0x2d3   : > { %v6702_v61 = vpop.eup %6701 }
 0x2d4   : > { %v977_v62 = vadd.f32 1.0, %v6702_v61 }
 0x2d6   : > { %6711 = vrcp.f32 %v977_v62 }
 0x2d7   : > { %v6704_v63 = vpop.eup %6703 }
 0x2d8   : > { %v978_v6 = vadd.f32 1.0, %v6704_v63 }
 0x2da   : > { %6713 = vrcp.f32 %v978_v6 }
 0x2db   : > { %v6706_v8 = vpop.eup %6705 }
 0x2dc   : > { %v6708_v9 = vpop.eup %6707  ;;  %v979_v10 = vadd.f32 1.0, %v6706_v8 }
 0x2dd   : > { %v990_v12 = vmul.f32 %v6708_v9, %v939_v36 }
 0x2de   : > { %6715 = vrcp.f32 %v979_v10 }
 0x2df   : > { %v6710_v11 = vpop.eup %6709 }
 0x2e0   : > { %v991_v14 = vmul.f32 %v6710_v11, %v942_v40 }
 0x2e2   : > { %v995_v15 = vpack.c.bf16 %v991_v14, %v990_v12 }
 0x2e3   : > { %v6712_v16 = vpop.eup %6711 }
 0x2e4   : > { %5909 = vmatmul.mubr.bf16.vlgmr.msra.gmra.mxu1 %v995_v15  ;;  %v992_v18 = vmul.f32 %v6712_v16, %v947_v44 }
 0x2e5   : > { %5912 = vmatprep.mubr.msk.bf16.mxu1 %vm7262_vm1, %v9351_v5 }
 0x2e7   : > { %v6714_v17 = vpop.eup %6713 }
 0x2e8   : > { %v993_v19 = vmul.f32 %v6714_v17, %v950_v48 }
 0x2ea   : > { %v996_v20 = vpack.c.bf16 %v993_v19, %v992_v18  ;;  %v6479_v18 = vld [vmem:[%s9331_s4 + $0xc4] ss:$16 sps:$4 sm:$0xff]   ;;  %v6482_v19 = vld [vmem:[%s9331_s4 + $0xcc] ss:$16 sps:$4 sm:$0xff]  }
 0x2eb   : > { %v6716_v22 = vpop.eup %6715 }
 0x2ec   : > { %5913 = vmatmul.mubr.bf16.gmra.mxu1 %v996_v20  ;;  %v994_v23 = vmul.f32 %v6716_v22, %v955_v52  ;;  %v6477_v20 = vld [vmem:[%s9331_s4 + $0xc0] ss:$16 sps:$4 sm:$0xff]   ;;  %v6480_v22 = vld [vmem:[%s9331_s4 + $0xc8] ss:$16 sps:$4 sm:$0xff]  }
 0x2ed   : > { %5916 = vmatprep.mubr.msk.bf16.mxu1 %vm7262_vm1, %v9351_v5 }
 0x2ee   : > { %v997_v24 = vpack.c.bf16 %v994_v23, %v994_v23 }
 0x2f4   : > { %5917 = vmatmul.mubr.bf16.gmra.mxu1 %v997_v24 }
 0x3a4   : > { %v1100_v25 = vpop.f32.mrf.mxu1 }
 0x3a5   : > { %v1101_v26 = vadd.f32 %v5440_v21, %v1100_v25  ;;  %v6488_v25 = vld [vmem:[%s9331_s4 + $0xac] ss:$16 sps:$4 sm:$0xff]  }
 0x3a6   : > { %v5910_v27 = vpop.f32.mrf.mxu1 }
 0x3a7   : > { %v1122_v28 = vmul.f32 0.5, %v1101_v26  ;;  %v6483_v26 = vld [vmem:[%s9331_s4 + $0xa0] ss:$16 sps:$4 sm:$0xff]   ;;  %v6486_v27 = vld [vmem:[%s9331_s4 + $0xa8] ss:$16 sps:$4 sm:$0xff]  }
 0x3a8   : > { %v1103_v29 = vpop.f32.mrf.mxu1 }
 0x3a9   : > { %v7677_v30 = vadd.f32 %v1122_v28, %v7551_v0  ;;  %v1104_v31 = vadd.f32 %v5440_v21, %v1103_v29  ;;  %v6491_v28 = vld [vmem:[%s9331_s4 + $0x84] ss:$16 sps:$4 sm:$0xff]   ;;  %v6494_v29 = vld [vmem:[%s9331_s4 + $0x8c] ss:$16 sps:$4 sm:$0xff]  }
 0x3aa   : > { %v5911_v32 = vpop.f32.mrf.mxu1 }
 0x3ab   : > { %9441 = vst [vmem:[#allocation29_spill] sm:$0xff] %v7677_v30  ;;  %v1123_v33 = vmul.f32 0.5, %v1104_v31  ;;  %1134 = vadd.xlane.f32.xlu0 %v7677_v30  ;;  %v6489_v31 = vld [vmem:[%s9331_s4 + $0x80] ss:$16 sps:$4 sm:$0xff]   ;;  %v6492_v32 = vld [vmem:[%s9331_s4 + $0x88] ss:$16 sps:$4 sm:$0xff]  }
 0x3ac   : > { %v1108_v34 = vpop.f32.mrf.mxu1 }
 0x3ad   : > { %v7681_v35 = vadd.f32 %v1123_v33, %v7557_v2  ;;  %v1109_v36 = vadd.f32 %v5440_v21, %v1108_v34  ;;  %v6497_v33 = vld [vmem:[%s9331_s4 + $0x64] ss:$16 sps:$4 sm:$0xff]   ;;  %v6500_v34 = vld [vmem:[%s9331_s4 + $0x6c] ss:$16 sps:$4 sm:$0xff]  }
 0x3ae   : > { %v5914_v37 = vpop.f32.mrf.mxu1 }
 0x3af   : > { %9442 = vst [vmem:[#allocation30_spill] sm:$0xff] %v7681_v35  ;;  %v1124_v38 = vmul.f32 0.5, %v1109_v36  ;;  %1136 = vadd.xlane.f32.xlu1 %v7681_v35  ;;  %v6495_v36 = vld [vmem:[%s9331_s4 + $0x60] ss:$16 sps:$4 sm:$0xff]   ;;  %v6498_v37 = vld [vmem:[%s9331_s4 + $0x68] ss:$16 sps:$4 sm:$0xff]  }
 0x3b0   : > { %v1111_v39 = vpop.f32.mrf.mxu1 }
 0x3b1   : > { %v7685_v40 = vadd.f32 %v1124_v38, %v7553_v1  ;;  %v1112_v0 = vadd.f32 %v5440_v21, %v1111_v39  ;;  %v6503_v38 = vld [vmem:[%s9331_s4 + $0x44] ss:$16 sps:$4 sm:$0xff]   ;;  %v6506_v39 = vld [vmem:[%s9331_s4 + $0x4c] ss:$16 sps:$4 sm:$0xff]  }
 0x3b2   : > { %v5915_v41 = vpop.f32.mrf.mxu1 }
 0x3b3   : > { %9443 = vst [vmem:[#allocation31_spill] sm:$0xff] %v7685_v40  ;;  %v1125_v42 = vmul.f32 0.5, %v1112_v0  ;;  %1138 = vadd.xlane.f32.xlu0 %v7685_v40  ;;  %v6501_v0 = vld [vmem:[%s9331_s4 + $0x40] ss:$16 sps:$4 sm:$0xff]   ;;  %v6504_v41 = vld [vmem:[%s9331_s4 + $0x48] ss:$16 sps:$4 sm:$0xff]  }
 0x3b4   : > { %v1116_v43 = vpop.f32.mrf.mxu1 }
 0x3b5   : > { %v7689_v44 = vadd.f32 %v1125_v42, %v7559_v3  ;;  %v1117_v2 = vadd.f32 %v5440_v21, %v1116_v43  ;;  %v6473_v3 = vld [vmem:[%s9331_s4 + $0xe4] ss:$16 sps:$4 sm:$0xff]   ;;  %v6512_v43 = vld [vmem:[%s9331_s4 + $0x2c] ss:$16 sps:$4 sm:$0xff]  }
 0x3b6   : > { %v5918_v45 = vpop.f32.mrf.mxu1  ;;  %1429 = vmatprep.subr.bf16.mxu0 %v6473_v3  ;;  %v6485_v21 = vld [vmem:[%s9331_s4 + $0xa4] ss:$16 sps:$4 sm:$0xff]  }
 0x3b7   : > { %9444 = vst [vmem:[#allocation32_spill] sm:$0xff] %v7689_v44  ;;  %v1126_v46 = vmul.f32 0.5, %v1117_v2  ;;  %1140 = vadd.xlane.f32.xlu1 %v7689_v44  ;;  %1430 = vmatpush1.bf16.msra.mxu0 %v6471_v49  ;;  %v6509_v42 = vld [vmem:[%s9331_s4 + $0x24] ss:$16 sps:$4 sm:$0xff]   ;;  %v6507_v2 = vld [vmem:[%s9331_s4 + $0x20] ss:$16 sps:$4 sm:$0xff]  }
 0x3b8   : > { %v1119_v47 = vpop.f32.mrf.mxu1  ;;  %1431 = vmatprep.subr.bf16.mxu0 %v6479_v18  ;;  %v6510_v45 = vld [vmem:[%s9331_s4 + $0x28] ss:$16 sps:$4 sm:$0xff]   ;;  %v6521_v3 = vld [vmem:[#allocation2 + $0xe4] ss:$16 sps:$4 sm:$0xff]  }
 0x3b9   : > { %v7693_v48 = vadd.f32 %v1126_v46, %v7561_v4  ;;  %v6476_v4 = vld [vmem:[%s9331_s4 + $0xec] ss:$16 sps:$4 sm:$0xff]   ;;  %v6515_v46 = vld [vmem:[%s9331_s4 + $0x4] ss:$16 sps:$4 sm:$0xff]   ;;  %v6516_v49 = vld [vmem:[%s9331_s4 + $0x8] ss:$16 sps:$4 sm:$0xff]  }
 0x3ba   : > { %v5919_v1 = vpop.f32.mrf.mxu1  ;;  %1490 = vmatprep.subr.bf16.mxu1 %v6476_v4  ;;  %v6518_v47 = vld [vmem:[%s9331_s4 + $0xc] ss:$16 sps:$4 sm:$0xff]   ;;  %v7263_v4 = vmov 0  }
 0x3bb   : > { %9445 = vst [vmem:[#allocation33_spill] sm:$0xff] %v7693_v48  ;;  %1142 = vadd.xlane.f32.xlu0 %v7693_v48  ;;  %1491 = vmatpush1.bf16.msra.mxu1 %v6474_v50  ;;  %v6513_v1 = vld [vmem:[%s9331_s4] ss:$16 sps:$4 sm:$0xff]   ;;  %v6524_v50 = vld [vmem:[#allocation2 + $0xec] ss:$16 sps:$4 sm:$0xff]  }
 0x3bc   : > { %1492 = vmatprep.subr.bf16.mxu1 %v6482_v19  ;;  %1432 = vmatpush1.bf16.msra.mxu0 %v6477_v20  ;;  %v5450_v20 = vld [vmem:[#allocation16 + $0x4] ss:$0 sm:$0xff] }
 0x3bd   : > { %1433 = vmatprep.subr.bf16.mxu0 %v6485_v21  ;;  %1461 = vmatprep.mubr.bf16.mxu0 %v7263_v4 }
 0x3be   : > { %1522 = vmatprep.mubr.bf16.mxu1 %v7263_v4 }
 0x3bf   : > { %1493 = vmatpush1.bf16.msra.mxu1 %v6480_v22 }
 0x3c0   : > { %1494 = vmatprep.subr.bf16.mxu1 %v6488_v25  ;;  %1434 = vmatpush1.bf16.msra.mxu0 %v6483_v26 }
 0x3c1   : > { %1435 = vmatprep.subr.bf16.mxu0 %v6491_v28  ;;  %v6522_v28 = vld [vmem:[#allocation2 + $0xe8] ss:$16 sps:$4 sm:$0xff]  }
 0x3c3   : > { %1495 = vmatpush1.bf16.msra.mxu1 %v6486_v27  ;;  %v6519_v27 = vld [vmem:[#allocation2 + $0xe0] ss:$16 sps:$4 sm:$0xff]  }
 0x3c4   : > { %1496 = vmatprep.subr.bf16.mxu1 %v6494_v29  ;;  %1436 = vmatpush1.bf16.msra.mxu0 %v6489_v31  ;;  %v6527_v31 = vld [vmem:[#allocation2 + $0xc4] ss:$16 sps:$4 sm:$0xff]  }
 0x3c5   : > { %1437 = vmatprep.subr.bf16.mxu0 %v6497_v33 }
 0x3c7   : > { %1497 = vmatpush1.bf16.msra.mxu1 %v6492_v32 }
 0x3c8   : > { %1498 = vmatprep.subr.bf16.mxu1 %v6500_v34  ;;  %1438 = vmatpush1.bf16.msra.mxu0 %v6495_v36 }
 0x3c9   : > { %1439 = vmatprep.subr.bf16.mxu0 %v6503_v38  ;;  %v6536_v38 = vld [vmem:[#allocation2 + $0xac] ss:$16 sps:$4 sm:$0xff]  }
 0x3cb   : > { %1499 = vmatpush1.bf16.msra.mxu1 %v6498_v37  ;;  %v6533_v37 = vld [vmem:[#allocation2 + $0xa4] ss:$16 sps:$4 sm:$0xff]  }
 0x3cc   : > { %1500 = vmatprep.subr.bf16.mxu1 %v6506_v39  ;;  %1440 = vmatpush1.bf16.msra.mxu0 %v6501_v0 }
 0x3cd   : > { %1441 = vmatprep.subr.bf16.mxu0 %v6509_v42  ;;  %v6531_v42 = vld [vmem:[#allocation2 + $0xa0] ss:$16 sps:$4 sm:$0xff]  }
 0x3cf   : > { %1501 = vmatpush1.bf16.msra.mxu1 %v6504_v41 }
 0x3d0   : > { %1502 = vmatprep.subr.bf16.mxu1 %v6512_v43  ;;  %1442 = vmatpush1.bf16.msra.mxu0 %v6507_v2  ;;  %v6534_v43 = vld [vmem:[#allocation2 + $0xa8] ss:$16 sps:$4 sm:$0xff]  }
 0x3d1   : > { %1443 = vmatprep.subr.bf16.mxu0 %v6515_v46  ;;  %v6539_v46 = vld [vmem:[#allocation2 + $0x84] ss:$16 sps:$4 sm:$0xff]  }
 0x3d3   : > { %1503 = vmatpush1.bf16.msra.mxu1 %v6510_v45 }
 0x3d4   : > { %1504 = vmatprep.subr.bf16.mxu1 %v6518_v47  ;;  %1444 = vmatpush1.bf16.msra.mxu0 %v6513_v1  ;;  %v6542_v47 = vld [vmem:[#allocation2 + $0x8c] ss:$16 sps:$4 sm:$0xff]   ;;  %v6540_v1 = vld [vmem:[#allocation2 + $0x88] ss:$16 sps:$4 sm:$0xff]  }
 0x3d5   : > { %1766 = vmatprep.subr.bf16.mxu0 %v6521_v3  ;;  %v6548_v3 = vld [vmem:[#allocation2 + $0x6c] ss:$16 sps:$4 sm:$0xff]  }
 0x3d7   : > { %1505 = vmatpush1.bf16.msra.mxu1 %v6516_v49  ;;  %v6545_v49 = vld [vmem:[#allocation2 + $0x64] ss:$16 sps:$4 sm:$0xff]  }
 0x3d8   : > { %1827 = vmatprep.subr.bf16.mxu1 %v6524_v50 }
 0x434   : > { %v1135_v51 = vpop.xlane.xlu0 %1134 }
 0x435   : > { %v1144_v52 = vmul.f32 0.03125, %v1135_v51 }
 0x437   : > { %v1149_v53 = vsub.f32 %v7677_v30, %v1144_v52 }
 0x438   : > { %v1137_v54 = vpop.xlane.xlu1 %1136 }
 0x439   : > { %v1145_v55 = vmul.f32 0.03125, %v1137_v54  ;;  %v7710_v56 = vmul.f32 %v7574_v13, %v1149_v53 }
 0x43b   : > { %v1150_v57 = vsub.f32 %v7681_v35, %v1145_v55  ;;  %v1159_v58 = vmul.f32 %v7710_v56, %v7710_v56 }
 0x43c   : > { %v1139_v59 = vpop.xlane.xlu0 %1138 }
 0x43d   : > { %v1146_v60 = vmul.f32 0.03125, %v1139_v59  ;;  %1164 = vadd.xlane.f32.xlu1 %v1159_v58  ;;  %v7716_v61 = vmul.f32 %v7574_v13, %v1150_v57 }
 0x43f   : > { %v1151_v62 = vsub.f32 %v7685_v40, %v1146_v60  ;;  %v1160_v63 = vmul.f32 %v7716_v61, %v7716_v61 }
 0x440   : > { %v1141_v6 = vpop.xlane.xlu1 %1140 }
 0x441   : > { %v1147_v8 = vmul.f32 0.03125, %v1141_v6  ;;  %1166 = vadd.xlane.f32.xlu0 %v1160_v63  ;;  %v7722_v9 = vmul.f32 %v7574_v13, %v1151_v62 }
 0x443   : > { %v1152_v10 = vsub.f32 %v7689_v44, %v1147_v8  ;;  %v1161_v11 = vmul.f32 %v7722_v9, %v7722_v9 }
 0x444   : > { %v1143_v12 = vpop.xlane.xlu0 %1142 }
 0x445   : > { %v1148_v14 = vmul.f32 0.03125, %v1143_v12  ;;  %1168 = vadd.xlane.f32.xlu1 %v1161_v11  ;;  %v7728_v15 = vmul.f32 %v7574_v13, %v1152_v10 }
 0x447   : > { %v1153_v16 = vsub.f32 %v7693_v48, %v1148_v14  ;;  %v1162_v17 = vmul.f32 %v7728_v15, %v7728_v15 }
 0x449   : > { %1170 = vadd.xlane.f32.xlu0 %v1162_v17  ;;  %v7746_v23 = vmul.f32 %v7574_v13, %v1153_v16  ;;  %v5449_v16 = vld [vmem:[#allocation16 + $0x3] ss:$0 sm:$0xff] }
 0x44b   : > { %v1163_v24 = vmul.f32 %v7746_v23, %v7746_v23 }
 0x44d   : > { %1172 = vadd.xlane.f32.xlu1 %v1163_v24 }
 0x4c6   : > { %v1165_v51 = vpop.xlane.xlu1 %1164 }
 0x4c7   : > { %v1174_v52 = vmul.f32 0.03125, %v1165_v51  ;;  %v6543_v51 = vld [vmem:[#allocation2 + $0x60] ss:$16 sps:$4 sm:$0xff]  }
 0x4c9   : > { %v1179_v53 = vadd.f32 1e-05, %v1174_v52  ;;  %v6546_v52 = vld [vmem:[#allocation2 + $0x68] ss:$16 sps:$4 sm:$0xff]  }
 0x4ca   : > { %v1167_v54 = vpop.xlane.xlu0 %1166 }
 0x4cb   : > { %6717 = vrsqrt.f32 %v1179_v53  ;;  %v1175_v55 = vmul.f32 0.03125, %v1167_v54  ;;  %v6551_v54 = vld [vmem:[#allocation2 + $0x44] ss:$16 sps:$4 sm:$0xff]  }
 0x4cd   : > { %v1180_v57 = vadd.f32 1e-05, %v1175_v55  ;;  %v6554_v55 = vld [vmem:[#allocation2 + $0x4c] ss:$16 sps:$4 sm:$0xff]  }
 0x4ce   : > { %v1169_v58 = vpop.xlane.xlu1 %1168 }
 0x4cf   : > { %6719 = vrsqrt.f32 %v1180_v57  ;;  %v1176_v59 = vmul.f32 0.03125, %v1169_v58  ;;  %v6549_v57 = vld [vmem:[#allocation2 + $0x40] ss:$16 sps:$4 sm:$0xff]   ;;  %v6552_v58 = vld [vmem:[#allocation2 + $0x48] ss:$16 sps:$4 sm:$0xff]  }
 0x4d1   : > { %v1181_v60 = vadd.f32 1e-05, %v1176_v59  ;;  %v6557_v59 = vld [vmem:[#allocation2 + $0x24] ss:$16 sps:$4 sm:$0xff]  }
 0x4d2   : > { %v1171_v62 = vpop.xlane.xlu0 %1170 }
 0x4d3   : > { %6721 = vrsqrt.f32 %v1181_v60  ;;  %v1177_v63 = vmul.f32 0.03125, %v1171_v62  ;;  %v6560_v60 = vld [vmem:[#allocation2 + $0x2c] ss:$16 sps:$4 sm:$0xff]   ;;  %v6555_v62 = vld [vmem:[#allocation2 + $0x20] ss:$16 sps:$4 sm:$0xff]  }
 0x4d5   : > { %v1182_v6 = vadd.f32 1e-05, %v1177_v63  ;;  %v6558_v63 = vld [vmem:[#allocation2 + $0x28] ss:$16 sps:$4 sm:$0xff]  }
 0x4d6   : > { %v1173_v8 = vpop.xlane.xlu1 %1172 }
 0x4d7   : > { %6723 = vrsqrt.f32 %v1182_v6  ;;  %v1178_v10 = vmul.f32 0.03125, %v1173_v8  ;;  %v6563_v6 = vld [vmem:[#allocation2 + $0x4] ss:$16 sps:$4 sm:$0xff]   ;;  %v6566_v8 = vld [vmem:[#allocation2 + $0xc] ss:$16 sps:$4 sm:$0xff]  }
 0x4d8   : > { %v6718_v11 = vpop.eup %6717 }
 0x4d9   : > { %v1189_v12 = vmul.f32 %v6718_v11, %v7710_v56  ;;  %v1183_v14 = vadd.f32 1e-05, %v1178_v10  ;;  %v6530_v56 = vld [vmem:[#allocation2 + $0xcc] ss:$16 sps:$4 sm:$0xff]   ;;  %v6561_v10 = vld [vmem:[#allocation2] ss:$16 sps:$4 sm:$0xff]  }
 0x4da   : > { %v6564_v11 = vld [vmem:[#allocation2 + $0x8] ss:$16 sps:$4 sm:$0xff]  }
 0x4db   : > { %6725 = vrsqrt.f32 %v1183_v14  ;;  %v1198_v18 = vmul.f32 %v5449_v16, %v1189_v12  ;;  %v6569_v12 = vld [vmem:[#allocation4 + $0xe4] ss:$16 sps:$4 sm:$0xff]   ;;  %v6572_v14 = vld [vmem:[#allocation4 + $0xec] ss:$16 sps:$4 sm:$0xff]  }
 0x4dc   : > { %v6720_v17 = vpop.eup %6719 }
 0x4dd   : > { %v1190_v19 = vmul.f32 %v6720_v17, %v7716_v61  ;;  %v1207_v25 = vadd.f32 %v5450_v20, %v1198_v18  ;;  %v6525_v61 = vld [vmem:[#allocation2 + $0xc0] ss:$16 sps:$4 sm:$0xff]   ;;  %v6570_v17 = vld [vmem:[#allocation4 + $0xe8] ss:$16 sps:$4 sm:$0xff]   ;;  %v6575_v18 = vld [vmem:[#allocation4 + $0xc4] ss:$16 sps:$4 sm:$0xff]  }
 0x4df   : > { %v1199_v22 = vmul.f32 %v5449_v16, %v1190_v19  ;;  %v6578_v19 = vld [vmem:[#allocation4 + $0xcc] ss:$16 sps:$4 sm:$0xff]  }
 0x4e0   : > { %v6722_v24 = vpop.eup %6721 }
 0x4e1   : > { %v1191_v21 = vmul.f32 %v6722_v24, %v7722_v9  ;;  %v1208_v26 = vadd.f32 %v5450_v20, %v1199_v22  ;;  %v6528_v9 = vld [vmem:[#allocation2 + $0xc8] ss:$16 sps:$4 sm:$0xff]   ;;  %v6581_v24 = vld [vmem:[#allocation4 + $0xa4] ss:$16 sps:$4 sm:$0xff]  }
 0x4e2   : > { %v6576_v22 = vld [vmem:[#allocation4 + $0xc8] ss:$16 sps:$4 sm:$0xff]  }
 0x4e3   : > { %v7827_v29 = vpack.c.bf16 %v1208_v26, %v1207_v25  ;;  %v1200_v33 = vmul.f32 %v5449_v16, %v1191_v21  ;;  %v6584_v21 = vld [vmem:[#allocation4 + $0xac] ss:$16 sps:$4 sm:$0xff]   ;;  %v6579_v25 = vld [vmem:[#allocation4 + $0xa0] ss:$16 sps:$4 sm:$0xff]   ;;  %v6582_v26 = vld [vmem:[#allocation4 + $0xa8] ss:$16 sps:$4 sm:$0xff]  }
 0x4e4   : > { %v6724_v32 = vpop.eup %6723 }
 0x4e5   : > { %v1192_v34 = vmul.f32 %v6724_v32, %v7728_v15  ;;  %1462 = vmatmul.mubr.bf16.vlgmr.msra.gmra.mxu0 %v7827_v29  ;;  %1523 = vmatmul.mubr.bf16.vlgmr.msra.gmra.mxu1 %v7827_v29  ;;  %v1209_v0 = vadd.f32 %v5450_v20, %v1200_v33  ;;  %v6593_v32 = vld [vmem:[#allocation4 + $0x64] ss:$16 sps:$4 sm:$0xff]   ;;  %v6596_v33 = vld [vmem:[#allocation4 + $0x6c] ss:$16 sps:$4 sm:$0xff]  }
 0x4e6   : > { %1767 = vmatpush1.bf16.msra.mxu0 %v6519_v27  ;;  %1828 = vmatpush1.bf16.msra.mxu1 %v6522_v28  ;;  %v6587_v27 = vld [vmem:[#allocation4 + $0x84] ss:$16 sps:$4 sm:$0xff]   ;;  %v6590_v28 = vld [vmem:[#allocation4 + $0x8c] ss:$16 sps:$4 sm:$0xff]  }
 0x4e7   : > { %v1201_v36 = vmul.f32 %v5449_v16, %v1192_v34  ;;  %1768 = vmatprep.subr.bf16.mxu0 %v6527_v31  ;;  %1829 = vmatprep.subr.bf16.mxu1 %v6530_v56  ;;  %v6585_v31 = vld [vmem:[#allocation4 + $0x80] ss:$16 sps:$4 sm:$0xff]   ;;  %v6588_v56 = vld [vmem:[#allocation4 + $0x88] ss:$16 sps:$4 sm:$0xff]  }
 0x4e8   : > { %v6726_v39 = vpop.eup %6725  ;;  %1471 = vmatprep.mubr.bf16.mxu0 %v7263_v4  ;;  %1532 = vmatprep.mubr.bf16.mxu1 %v7263_v4  ;;  %v6591_v34 = vld [vmem:[#allocation4 + $0x60] ss:$16 sps:$4 sm:$0xff]  }
 0x4e9   : > { %v1193_v15 = vmul.f32 %v6726_v39, %v7746_v23  ;;  %v1210_v41 = vadd.f32 %v5450_v20, %v1201_v36  ;;  %v6537_v23 = vld [vmem:[#allocation2 + $0x80] ss:$16 sps:$4 sm:$0xff]   ;;  %v6602_v36 = vld [vmem:[#allocation4 + $0x4c] ss:$16 sps:$4 sm:$0xff]   ;;  %v6605_v39 = vld [vmem:[#allocation4 + $0x24] ss:$16 sps:$4 sm:$0xff]  }
 0x4ea   : > { %1769 = vmatpush1.bf16.msra.mxu0 %v6525_v61  ;;  %1830 = vmatpush1.bf16.msra.mxu1 %v6528_v9  ;;  %v6594_v61 = vld [vmem:[#allocation4 + $0x68] ss:$16 sps:$4 sm:$0xff]   ;;  %v6599_v9 = vld [vmem:[#allocation4 + $0x44] ss:$16 sps:$4 sm:$0xff]  }
 0x4eb   : > { %v1202_v2 = vmul.f32 %v5449_v16, %v1193_v15  ;;  %1770 = vmatprep.subr.bf16.mxu0 %v6533_v37  ;;  %1831 = vmatprep.subr.bf16.mxu1 %v6536_v38  ;;  %v7835_v45 = vpack.c.bf16 %v1210_v41, %v1209_v0  ;;  %v6567_v16 = vld [vmem:[#allocation4 + $0xe0] ss:$16 sps:$4 sm:$0xff]   ;;  %v6600_v38 = vld [vmem:[#allocation4 + $0x48] ss:$16 sps:$4 sm:$0xff]   ;;  %v6608_v15 = vld [vmem:[#allocation4 + $0x2c] ss:$16 sps:$4 sm:$0xff]  }
 0x4ec   : > { %v6597_v37 = vld [vmem:[#allocation4 + $0x40] ss:$16 sps:$4 sm:$0xff]   ;;  %v6606_v41 = vld [vmem:[#allocation4 + $0x28] ss:$16 sps:$4 sm:$0xff]  }
 0x4ed   : > { %1472 = vmatmul.mubr.bf16.gmra.mxu0 %v7835_v45  ;;  %1533 = vmatmul.mubr.bf16.gmra.mxu1 %v7835_v45  ;;  %v1211_v50 = vadd.f32 %v5450_v20, %v1202_v2  ;;  %v6573_v20 = vld [vmem:[#allocation4 + $0xc0] ss:$16 sps:$4 sm:$0xff]  }
 0x4ee   : > { %1771 = vmatpush1.bf16.msra.mxu0 %v6531_v42  ;;  %1832 = vmatpush1.bf16.msra.mxu1 %v6534_v43  ;;  %v6603_v0 = vld [vmem:[#allocation4 + $0x20] ss:$16 sps:$4 sm:$0xff]   ;;  %v6611_v42 = vld [vmem:[#allocation4 + $0x4] ss:$16 sps:$4 sm:$0xff]   ;;  %v6614_v43 = vld [vmem:[#allocation4 + $0xc] ss:$16 sps:$4 sm:$0xff]  }
 0x4ef   : > { %1772 = vmatprep.subr.bf16.mxu0 %v6539_v46  ;;  %1833 = vmatprep.subr.bf16.mxu1 %v6542_v47  ;;  %v7841_v53 = vpack.c.bf16 %v1211_v50, %v1211_v50  ;;  %v6609_v2 = vld [vmem:[#allocation4] ss:$16 sps:$4 sm:$0xff]   ;;  %v6612_v46 = vld [vmem:[#allocation4 + $0x8] ss:$16 sps:$4 sm:$0xff]  }
 0x4f0   : > { %1481 = vmatprep.mubr.bf16.mxu0 %v7263_v4  ;;  %1542 = vmatprep.mubr.bf16.mxu1 %v7263_v4 }
 0x4f2   : > { %1773 = vmatpush1.bf16.msra.mxu0 %v6537_v23  ;;  %1834 = vmatpush1.bf16.msra.mxu1 %v6540_v1 }
 0x4f3   : > { %1774 = vmatprep.subr.bf16.mxu0 %v6545_v49  ;;  %1835 = vmatprep.subr.bf16.mxu1 %v6548_v3  ;;  %v7893_v49 = vld [vmem:[#allocation19] ss:$4 sm:$0xf] }
 0x4f5   : > { %1482 = vmatmul.mubr.bf16.gmra.mxu0 %v7841_v53  ;;  %1543 = vmatmul.mubr.bf16.gmra.mxu1 %v7841_v53 }
 0x4f6   : > { %1775 = vmatpush1.bf16.msra.mxu0 %v6543_v51  ;;  %1836 = vmatpush1.bf16.msra.mxu1 %v6546_v52 }
 0x4f7   : > { %1776 = vmatprep.subr.bf16.mxu0 %v6551_v54  ;;  %1837 = vmatprep.subr.bf16.mxu1 %v6554_v55 }
 0x4f8   : > { %1798 = vmatprep.mubr.bf16.mxu0 %v7263_v4  ;;  %1859 = vmatprep.mubr.bf16.mxu1 %v7263_v4 }
 0x4fa   : > { %1777 = vmatpush1.bf16.msra.mxu0 %v6549_v57  ;;  %1838 = vmatpush1.bf16.msra.mxu1 %v6552_v58 }
 0x4fb   : > { %1778 = vmatprep.subr.bf16.mxu0 %v6557_v59  ;;  %1839 = vmatprep.subr.bf16.mxu1 %v6560_v60 }
 0x4fe   : > { %1779 = vmatpush1.bf16.msra.mxu0 %v6555_v62  ;;  %1840 = vmatpush1.bf16.msra.mxu1 %v6558_v63 }
 0x4ff   : > { %1780 = vmatprep.subr.bf16.mxu0 %v6563_v6  ;;  %1841 = vmatprep.subr.bf16.mxu1 %v6566_v8 }
 0x502   : > { %1781 = vmatpush1.bf16.msra.mxu0 %v6561_v10  ;;  %1842 = vmatpush1.bf16.msra.mxu1 %v6564_v11 }
 0x503   : > { %2103 = vmatprep.subr.bf16.mxu0 %v6569_v12  ;;  %2164 = vmatprep.subr.bf16.mxu1 %v6572_v14 }
 0x505   : > { %1799 = vmatmul.mubr.bf16.vlgmr.msra.gmra.mxu0 %v7827_v29  ;;  %1860 = vmatmul.mubr.bf16.vlgmr.msra.gmra.mxu1 %v7827_v29 }
 0x506   : > { %2104 = vmatpush1.bf16.msra.mxu0 %v6567_v16  ;;  %2165 = vmatpush1.bf16.msra.mxu1 %v6570_v17 }
 0x507   : > { %2105 = vmatprep.subr.bf16.mxu0 %v6575_v18  ;;  %2166 = vmatprep.subr.bf16.mxu1 %v6578_v19 }
 0x508   : > { %1808 = vmatprep.mubr.bf16.mxu0 %v7263_v4  ;;  %1869 = vmatprep.mubr.bf16.mxu1 %v7263_v4 }
 0x50a   : > { %2106 = vmatpush1.bf16.msra.mxu0 %v6573_v20  ;;  %2167 = vmatpush1.bf16.msra.mxu1 %v6576_v22 }
 0x50b   : > { %2107 = vmatprep.subr.bf16.mxu0 %v6581_v24  ;;  %2168 = vmatprep.subr.bf16.mxu1 %v6584_v21 }
 0x50d   : > { %1809 = vmatmul.mubr.bf16.gmra.mxu0 %v7835_v45  ;;  %1870 = vmatmul.mubr.bf16.gmra.mxu1 %v7835_v45 }
 0x50e   : > { %2108 = vmatpush1.bf16.msra.mxu0 %v6579_v25  ;;  %2169 = vmatpush1.bf16.msra.mxu1 %v6582_v26 }
 0x50f   : > { %2109 = vmatprep.subr.bf16.mxu0 %v6587_v27  ;;  %2170 = vmatprep.subr.bf16.mxu1 %v6590_v28 }
 0x510   : > { %1818 = vmatprep.mubr.bf16.mxu0 %v7263_v4  ;;  %1879 = vmatprep.mubr.bf16.mxu1 %v7263_v4 }
 0x512   : > { %2110 = vmatpush1.bf16.msra.mxu0 %v6585_v31  ;;  %2171 = vmatpush1.bf16.msra.mxu1 %v6588_v56 }
 0x513   : > { %2111 = vmatprep.subr.bf16.mxu0 %v6593_v32  ;;  %2172 = vmatprep.subr.bf16.mxu1 %v6596_v33 }
 0x515   : > { %1819 = vmatmul.mubr.bf16.gmra.mxu0 %v7841_v53  ;;  %1880 = vmatmul.mubr.bf16.gmra.mxu1 %v7841_v53 }
 0x516   : > { %2112 = vmatpush1.bf16.msra.mxu0 %v6591_v34  ;;  %2173 = vmatpush1.bf16.msra.mxu1 %v6594_v61 }
 0x517   : > { %2113 = vmatprep.subr.bf16.mxu0 %v6599_v9  ;;  %2174 = vmatprep.subr.bf16.mxu1 %v6602_v36  ;;  %v7959_v9 = vld [vmem:[#allocation19 + $0x1] ss:$4 sm:$0xf] }
 0x518   : > { %2135 = vmatprep.mubr.bf16.mxu0 %v7263_v4  ;;  %2196 = vmatprep.mubr.bf16.mxu1 %v7263_v4 }
 0x51a   : > { %2114 = vmatpush1.bf16.msra.mxu0 %v6597_v37  ;;  %2175 = vmatpush1.bf16.msra.mxu1 %v6600_v38 }
 0x51b   : > { %2115 = vmatprep.subr.bf16.mxu0 %v6605_v39  ;;  %2176 = vmatprep.subr.bf16.mxu1 %v6608_v15 }
 0x51e   : > { %2116 = vmatpush1.bf16.msra.mxu0 %v6603_v0  ;;  %2177 = vmatpush1.bf16.msra.mxu1 %v6606_v41 }
 0x51f   : > { %2117 = vmatprep.subr.bf16.mxu0 %v6611_v42  ;;  %2178 = vmatprep.subr.bf16.mxu1 %v6614_v43 }
 0x522   : > { %2118 = vmatpush1.bf16.msra.mxu0 %v6609_v2  ;;  %2179 = vmatpush1.bf16.msra.mxu1 %v6612_v46 }
 0x523   : > { %5920 = vmatprep.subr.bf16.mxu0 %v9351_v5  ;;  %5938 = vmatprep.subr.bf16.mxu1 %v9351_v5 }
 0x525   : > { %2136 = vmatmul.mubr.bf16.vlgmr.msra.gmra.mxu0 %v7827_v29  ;;  %2197 = vmatmul.mubr.bf16.vlgmr.msra.gmra.mxu1 %v7827_v29  ;;  %v7876_v29 = vshrl.u32 %v735_v7, 7 }
 0x526   : > { %2145 = vmatprep.mubr.bf16.mxu0 %v7263_v4  ;;  %2206 = vmatprep.mubr.bf16.mxu1 %v7263_v4 }
 0x527   : > { %9446 = vst [vmem:[#allocation34_spill] sm:$0xff] %v7876_v29  ;;  %v7879_v47 = vsub.s32 1, %v7876_v29  ;;  %v7888_v23 = vsub.s32 0, %v7876_v29  ;;  %v7891_v1 = vsub.s32 2, %v7876_v29  ;;  %v7962_v36 = vsub.s32 3, %v7876_v29 }
 0x529   : > { %v7897_v50 = vrot.slane %v7893_v49, %v7888_v23  ;;  %v7901_v51 = vrot.slane %v7893_v49, %v7891_v1  ;;  %9452 = vst [vmem:[#allocation40_spill] sm:$0xff] %v7962_v36  ;;  %v1597_v37 = vrot.slane %v7959_v9, %v7891_v1  ;;  %v1601_v38 = vrot.slane %v7959_v9, %v7962_v36 }
 0x52a   : > { %v1589_v8 = vrot.slane %v7959_v9, %v7888_v23 }
 0x52d   : > { %2146 = vmatmul.mubr.bf16.gmra.mxu0 %v7835_v45  ;;  %2207 = vmatmul.mubr.bf16.gmra.mxu1 %v7835_v45  ;;  %v7881_v45 = vld [vmem:[#allocation19 + $0x2] ss:$4 sm:$0xf] }
 0x52e   : > { %2155 = vmatprep.mubr.bf16.mxu0 %v7263_v4  ;;  %2216 = vmatprep.mubr.bf16.mxu1 %v7263_v4  ;;  %v7885_v4 = vrot.slane %v7881_v45, %v7879_v47 }
 0x535   : > { %2156 = vmatmul.mubr.bf16.gmra.mxu0 %v7841_v53  ;;  %2217 = vmatmul.mubr.bf16.gmra.mxu1 %v7841_v53 }
 0x536   : > { %5926 = vmatprep.mubr.msk.bf16.mxu0 %vm7262_vm1, %v9351_v5  ;;  %5944 = vmatprep.mubr.msk.bf16.mxu1 %vm7262_vm1, %v9351_v5 }
 0x5a5   : > { %v1463_v3 = vpop.f32.mrf.mxu0  ;;  %v1524_v7 = vpop.f32.mrf.mxu1 }
 0x5a6   : > { %v7908_v57 = vadd.f32 %v1463_v3, %v7897_v50  ;;  %v7911_v58 = vadd.f32 %v1524_v7, %v7901_v51 }
 0x5a7   : > { %v7903_v52 = vpop.f32.mrf.mxu0  ;;  %v7905_v53 = vpop.f32.mrf.mxu1 }
 0x5a8   : > { %9447 = vst [vmem:[#allocation35_spill] sm:$0xff] %v7905_v53 }
 0x5a9   : > { %v1467_v54 = vpop.f32.mrf.mxu0  ;;  %v1528_v55 = vpop.f32.mrf.mxu1 }
 0x5aa   : > { %v7914_v59 = vadd.f32 %v1467_v54, %v7897_v50  ;;  %v7917_v60 = vadd.f32 %v1528_v55, %v7901_v51 }
 0x5ab   : > { %v7919_v62 = vpop.f32.mrf.mxu0  ;;  %v7921_v63 = vpop.f32.mrf.mxu1 }
 0x5ac   : > { %9448 = vst [vmem:[#allocation36_spill] sm:$0xff] %v7921_v63  ;;  %v9459_v53 = vpack.c.bf16 %v7914_v59, %v7908_v57 }
 0x5ad   : > { %v1473_v10 = vpop.f32.mrf.mxu0  ;;  %v1534_v11 = vpop.f32.mrf.mxu1 }
 0x5ae   : > { %v7932_v18 = vadd.f32 %v1473_v10, %v7897_v50  ;;  %v7935_v19 = vadd.f32 %v1534_v11, %v7901_v51 }
 0x5af   : > { %v7927_v12 = vpop.f32.mrf.mxu0  ;;  %v7929_v14 = vpop.f32.mrf.mxu1 }
 0x5b0   : > { %9449 = vst [vmem:[#allocation37_spill] sm:$0xff] %v7929_v14 }
 0x5b1   : > { %v1477_v16 = vpop.f32.mrf.mxu0  ;;  %v1538_v17 = vpop.f32.mrf.mxu1 }
 0x5b2   : > { %v7938_v20 = vadd.f32 %v1477_v16, %v7897_v50  ;;  %v7941_v22 = vadd.f32 %v1538_v17, %v7901_v51 }
 0x5b3   : > { %v7943_v24 = vpop.f32.mrf.mxu0  ;;  %v7945_v21 = vpop.f32.mrf.mxu1 }
 0x5b4   : > { %9450 = vst [vmem:[#allocation38_spill] sm:$0xff] %v7945_v21 }
 0x5b5   : > { %v7951_v27 = vpop.f32.mrf.mxu0  ;;  %v7953_v28 = vpop.f32.mrf.mxu1 }
 0x5b7   : > { %v7955_v31 = vpop.f32.mrf.mxu0  ;;  %v7957_v56 = vpop.f32.mrf.mxu1 }
 0x5b8   : > { %9451 = vst [vmem:[#allocation39_spill] sm:$0xff] %v7957_v56 }
 0x5b9   : > { %v1487_v32 = vpop.f32.mrf.mxu0  ;;  %v1548_v33 = vpop.f32.mrf.mxu1 }
 0x5bb   : > { %v1488_v34 = vpop.f32.mrf.mxu0  ;;  %v1549_v61 = vpop.f32.mrf.mxu1 }
 0x5c5   : > { %v1800_v39 = vpop.f32.mrf.mxu0  ;;  %v1861_v15 = vpop.f32.mrf.mxu1 }
 0x5c6   : > { %v7968_v0 = vadd.f32 %v1861_v15, %v1597_v37 }
 0x5c7   : > { %v7970_v41 = vpop.f32.mrf.mxu0  ;;  %v1863_v42 = vpop.f32.mrf.mxu1 }
 0x5c8   : > { %v7972_v43 = vadd.f32 %v1863_v42, %v1601_v38 }
 0x5c9   : > { %v1804_v2 = vpop.f32.mrf.mxu0  ;;  %v1865_v46 = vpop.f32.mrf.mxu1 }
 0x5ca   : > { %9453 = vst [vmem:[#allocation41_spill] sm:$0xff] %v7972_v43  ;;  %v7974_v3 = vadd.f32 %v1865_v46, %v1597_v37 }
 0x5cb   : > { %v7976_v7 = vpop.f32.mrf.mxu0  ;;  %v1867_v54 = vpop.f32.mrf.mxu1 }
 0x5cc   : > { %v7980_v10 = vadd.f32 %v1867_v54, %v1601_v38 }
 0x5cd   : > { %v1810_v11 = vpop.f32.mrf.mxu0  ;;  %v1871_v16 = vpop.f32.mrf.mxu1 }
 0x5ce   : > { %9454 = vst [vmem:[#allocation42_spill] sm:$0xff] %v7980_v10  ;;  %v7984_v32 = vadd.f32 %v1871_v16, %v1597_v37  ;;  %v1811_v56 = vadd.f32 %v1810_v11, %v1589_v8 }
 0x5cf   : > { %v7986_v33 = vpop.f32.mrf.mxu0  ;;  %v1873_v34 = vpop.f32.mrf.mxu1 }
 0x5d0   : > { %v7988_v61 = vadd.f32 %v1873_v34, %v1601_v38 }
 0x5d1   : > { %v1814_v15 = vpop.f32.mrf.mxu0  ;;  %v1875_v42 = vpop.f32.mrf.mxu1 }
 0x5d2   : > { %9455 = vst [vmem:[#allocation43_spill] sm:$0xff] %v7988_v61  ;;  %v7990_v46 = vadd.f32 %v1875_v42, %v1597_v37  ;;  %v1815_v30 = vadd.f32 %v1814_v15, %v1589_v8 }
 0x5d3   : > { %v7992_v26 = vpop.f32.mrf.mxu0  ;;  %v1877_v54 = vpop.f32.mrf.mxu1 }
 0x5d4   : > { %v7998_v16 = vadd.f32 %v1877_v54, %v1601_v38  ;;  %v9456_v54 = vmov 0.0   ;;  %v2241_v14 = vpack.c.bf16 %v1815_v30, %v1811_v56 }
 0x5d5   : > { %v1820_v55 = vpop.f32.mrf.mxu0  ;;  %v1881_v25 = vpop.f32.mrf.mxu1 }
 0x5d6   : > { %v1821_v6 = vadd.f32 %v1820_v55, %v1589_v8  ;;  %v8002_v5 = vadd.f32 %v1881_v25, %v1597_v37  ;;  %v1934_v25 = vrot.slane %v7881_v45, %v7891_v1  ;;  %v1805_v37 = vadd.f32 %v1804_v2, %v1589_v8 }
 0x5d7   : > { %v1822_v42 = vpop.f32.mrf.mxu0  ;;  %v1883_v29 = vpop.f32.mrf.mxu1  ;;  %v8025_v2 = vrot.slane %v7959_v9, %v7879_v47 }
 0x5d8   : > { %v2245_v48 = vpack.c.bf16 %v1821_v6, %v1821_v6  ;;  %v8004_v13 = vadd.f32 %v1883_v29, %v1601_v38  ;;  %v1938_v29 = vrot.slane %v7881_v45, %v7962_v36 }
 0x5d9   : > { %v1824_v44 = vpop.f32.mrf.mxu0  ;;  %v1885_v40 = vpop.f32.mrf.mxu1 }
 0x5da   : > { %5921 = vmatpush3.bf16.xpose.msra.mxu0 %v2245_v48 }
 0x5db   : > { %v1825_v35 = vpop.f32.mrf.mxu0  ;;  %v1886_v17 = vpop.f32.mrf.mxu1  ;;  %5922 = vmatprep.subr.bf16.mxu0 %v9456_v54 }
 0x5dc   : > { %v1801_v35 = vadd.f32 %v1800_v39, %v1589_v8  ;;  %v1823_v17 = vadd.f32 %v1822_v42, %v8025_v2 }
 0x5de   : > { %v2237_v55 = vpack.c.bf16 %v1805_v37, %v1801_v35  ;;  %v2246_v34 = vpack.c.bf16 %v1823_v17, %v1823_v17  ;;  %v1817_v17 = vadd.f32 %v7992_v26, %v8025_v2 }
 0x5e2   : > { %5923 = vmatpush3.bf16.xpose.msra.mxu0 %v2241_v14 }
 0x5e3   : > { %5924 = vmatprep.subr.bf16.mxu0 %v9456_v54 }
 0x5e5   : > { %v8012_v44 = vpop.f32.mrf.mxu0  ;;  %v2198_v40 = vpop.f32.mrf.mxu1 }
 0x5e6   : > { %v8014_v48 = vadd.f32 %v2198_v40, %v1934_v25 }
 0x5e7   : > { %v2139_v6 = vpop.f32.mrf.mxu0  ;;  %v2200_v38 = vpop.f32.mrf.mxu1 }
 0x5e8   : > { %v8017_v30 = vadd.f32 %v2139_v6, %v7885_v4  ;;  %v8019_v14 = vadd.f32 %v2200_v38, %v1938_v29  ;;  %v9460_v38 = vpack.c.bf16 %v7938_v20, %v7932_v18 }
 0x5e9   : > { %v8021_v1 = vpop.f32.mrf.mxu0  ;;  %v2202_v56 = vpop.f32.mrf.mxu1 }
 0x5ea   : > { %9457 = vst [vmem:[#allocation44_spill] sm:$0xff] %v8019_v14  ;;  %v8027_v11 = vadd.f32 %v2202_v56, %v1934_v25  ;;  %5925 = vmatpush3.bf16.xpose.msra.mxu0 %v2237_v55 }
 0x5eb   : > { %v2143_v8 = vpop.f32.mrf.mxu0  ;;  %v2204_v39 = vpop.f32.mrf.mxu1  ;;  %5956 = vmatprep.subr.bf16.mxu0 %v9456_v54 }
 0x5ec   : > { %v8034_v37 = vadd.f32 %v2143_v8, %v7885_v4  ;;  %v8036_v40 = vadd.f32 %v2204_v39, %v1938_v29 }
 0x5ed   : > { %v2147_v35 = vpop.f32.mrf.mxu0  ;;  %v2208_v9 = vpop.f32.mrf.mxu1 }
 0x5ee   : > { %9458 = vst [vmem:[#allocation45_spill] sm:$0xff] %v8036_v40  ;;  %v8042_v55 = vadd.f32 %v2208_v9, %v1934_v25 }
 0x5ef   : > { %v2149_v56 = vpop.f32.mrf.mxu0  ;;  %v2210_v42 = vpop.f32.mrf.mxu1 }
 0x5f0   : > { %v8045_v15 = vadd.f32 %v2149_v56, %v7885_v4  ;;  %v8047_v8 = vadd.f32 %v2210_v42, %v1938_v29  ;;  %v1926_v42 = vrot.slane %v7881_v45, %v7888_v23 }
 0x5f1   : > { %v2151_v39 = vpop.f32.mrf.mxu0  ;;  %v2212_v21 = vpop.f32.mrf.mxu1  ;;  %5927 = vmatmul.mubr.bf16.vlgmr.msra.gmra.mxu0 %v9459_v53 }
 0x5f2   : > { %v8052_v6 = vadd.f32 %v2212_v21, %v1934_v25  ;;  %5957 = vmatpush3.bf16.xpose.msra.mxu0 %v2246_v34  ;;  %5930 = vmatprep.mubr.msk.bf16.mxu0 %vm7262_vm1, %v9456_v54  ;;  %v1813_v21 = vadd.f32 %v7986_v33, %v8025_v2  ;;  %v2152_v33 = vadd.f32 %v2151_v39, %v1926_v42 }
 0x5f3   : > { %v2153_v9 = vpop.f32.mrf.mxu0  ;;  %v2214_v56 = vpop.f32.mrf.mxu1  ;;  %5958 = vmatprep.subr.bf16.mxu0 %v9456_v54 }
 0x5f4   : > { %v8064_v53 = vadd.f32 %v2153_v9, %v7885_v4  ;;  %v8066_v59 = vadd.f32 %v2214_v56, %v1938_v29  ;;  %v2242_v40 = vpack.c.bf16 %v1817_v17, %v1813_v21 }
 0x5f5   : > { %v2157_v34 = vpop.f32.mrf.mxu0  ;;  %v2218_v26 = vpop.f32.mrf.mxu1 }
 0x5f6   : > { %v2158_v45 = vadd.f32 %v2157_v34, %v1926_v42  ;;  %v2219_v23 = vadd.f32 %v2218_v26, %v1934_v25 }
 0x5f7   : > { %v2159_v57 = vpop.f32.mrf.mxu0  ;;  %v2220_v9 = vpop.f32.mrf.mxu1 }
 0x5f8   : > { %v2257_v63 = vpack.c.bf16 %v2158_v45, %v2158_v45  ;;  %v2259_v56 = vpack.c.bf16 %v2219_v23, %v2219_v23  ;;  %v2160_v43 = vadd.f32 %v2159_v57, %v7885_v4  ;;  %v2221_v10 = vadd.f32 %v2220_v9, %v1938_v29 }
 0x5f9   : > { %v2161_v36 = vpop.f32.mrf.mxu0  ;;  %v2222_v61 = vpop.f32.mrf.mxu1  ;;  %5931 = vmatmul.mubr.bf16.gmra.mxu0 %v9460_v38  ;;  %v1484_v4 = vadd.f32 %v7951_v27, %v7897_v50  ;;  %v1803_v27 = vadd.f32 %v7970_v41, %v8025_v2 }
 0x5fa   : > { %v2404_v14 = vsel %vm2402_vm2, %v2257_v63, 0  ;;  %v8080_v25 = vsel %vm2402_vm2, %v2259_v56, 0  ;;  %v2258_v17 = vpack.c.bf16 %v2160_v43, %v2160_v43  ;;  %v2260_v21 = vpack.c.bf16 %v2221_v10, %v2221_v10  ;;  %5959 = vmatpush3.bf16.xpose.msra.mxu0 %v2242_v40  ;;  %5934 = vmatprep.mubr.msk.bf16.mxu0 %vm7262_vm1, %v9456_v54 }
 0x5fb   : > { %v2148_v36 = vadd.f32 %v2147_v35, %v1926_v42  ;;  %v2162_v61 = vpop.f32.mrf.mxu0  ;;  %v2223_v29 = vpop.f32.mrf.mxu1  ;;  %5939 = vmatpush3.bf16.msra.mxu1 %v2404_v14  ;;  %5960 = vmatprep.subr.bf16.mxu0 %v9456_v54  ;;  %v1807_v63 = vadd.f32 %v7976_v7, %v8025_v2  ;;  %v2142_v43 = vadd.f32 %v8021_v1, %v1926_v42 }
 0x5fc   : > { %v8090_v18 = vsel %vm2402_vm2, %v2258_v17, 0  ;;  %v8093_v20 = vsel %vm2402_vm2, %v2260_v21, 0  ;;  %5940 = vmatprep.subr.bf16.mxu1 %v9456_v54  ;;  %v2233_v10 = vpack.c.bf16 %v1484_v4, %v1484_v4  ;;  %v2138_v14 = vadd.f32 %v8012_v44, %v1926_v42 }
 0x5fd   : > { %v2253_v50 = vpack.c.bf16 %v2152_v33, %v2148_v36  ;;  %v2238_v40 = vpack.c.bf16 %v1807_v63, %v1803_v27  ;;  %v1256_v7 = vrot.slane %v7893_v49, %v7879_v47 }
 0x5fe   : > { %v2249_v35 = vpack.c.bf16 %v2142_v43, %v2138_v14 }
 0x5ff   : > { %5941 = vmatpush3.bf16.msra.mxu1 %v2253_v50  ;;  %v1470_v1 = vadd.f32 %v7919_v62, %v1256_v7  ;;  %v1466_v41 = vadd.f32 %v7903_v52, %v1256_v7  ;;  %v1480_v47 = vadd.f32 %v7943_v24, %v1256_v7  ;;  %v1476_v49 = vadd.f32 %v7927_v12, %v1256_v7  ;;  %v8125_v52 = vld [vmem:[%s8122_s27] ss:$0 sm:$0xff] }
 0x600   : > { %5942 = vmatprep.subr.bf16.mxu1 %v9456_v54  ;;  %v1486_v62 = vadd.f32 %v7955_v31, %v1256_v7 }
 0x601   : > { %5935 = vmatmul.mubr.bf16.gmra.mxu0 %v2233_v10  ;;  %v2226_v44 = vpack.c.bf16 %v1470_v1, %v1466_v41  ;;  %v2230_v2 = vpack.c.bf16 %v1480_v47, %v1476_v49 }
 0x602   : > { %5961 = vmatpush3.bf16.xpose.msra.mxu0 %v2238_v40  ;;  %5962 = vmatprep.mubr.msk.bf16.mxu0 %vm7262_vm1, %v9456_v54  ;;  %v2234_v38 = vpack.c.bf16 %v1486_v62, %v1486_v62 }
 0x603   : > { %5943 = vmatpush3.bf16.msra.mxu1 %v2249_v35  ;;  %5992 = vmatprep.subr.bf16.mxu0 %v9456_v54 }
 0x604   : > { %5974 = vmatprep.subr.bf16.mxu1 %v9456_v54 }
 0x609   : > { %5963 = vmatmul.mubr.bf16.vlgmr.msra.gmra.mxu0 %v2226_v44 }
 0x60a   : > { %5966 = vmatprep.mubr.msk.bf16.mxu0 %vm7262_vm1, %v9456_v54 }
 0x611   : > { %5967 = vmatmul.mubr.bf16.gmra.mxu0 %v2230_v2 }
 0x612   : > { %5970 = vmatprep.mubr.msk.bf16.mxu0 %vm7262_vm1, %v9456_v54 }
 0x619   : > { %5971 = vmatmul.mubr.bf16.gmra.mxu0 %v2234_v38 }
 0x61a   : > { %6008 = vmatprep.mubr.msk.bf16.mxu0 %vm7262_vm1, %v9456_v54 }
 0x6b1   : > { %v2296_v12 = vpop.f32.mrf.mxu0 }
 0x6b2   : > { %v2318_v24 = vmul.f32 0.35355338, %v2296_v12 }
 0x6b3   : > { %v5928_v39 = vpop.f32.mrf.mxu0 }
 0x6b4   : > { %v8128_v42 = vadd.f32 %v8125_v52, %v2318_v24 }
 0x6b5   : > { %v2299_v31 = vpop.f32.mrf.mxu0 }
 0x6b6   : > { %v2319_v57 = vmul.f32 0.35355338, %v2299_v31  ;;  %v2335_v34 = vsel %vm2334_vm3, %v8128_v42, -inf }
 0x6b7   : > { %2336 = vmax.xlane.f32.xlu0 %v2335_v34  ;;  %v5929_v26 = vpop.f32.mrf.mxu0 }
 0x6b8   : > { %v2330_v45 = vadd.f32 %v8125_v52, %v2319_v57 }
 0x6b9   : > { %v2304_v23 = vpop.f32.mrf.mxu0 }
 0x6ba   : > { %v2320_v9 = vmul.f32 0.35355338, %v2304_v23  ;;  %v2338_v56 = vsel %vm2334_vm3, %v2330_v45, -inf }
 0x6bb   : > { %2339 = vmax.xlane.f32.xlu1 %v2338_v56  ;;  %v5932_v33 = vpop.f32.mrf.mxu0 }
 0x6bc   : > { %v2331_v17 = vadd.f32 %v8125_v52, %v2320_v9 }
 0x6bd   : > { %v2307_v21 = vpop.f32.mrf.mxu0 }
 0x6be   : > { %v2321_v4 = vmul.f32 0.35355338, %v2307_v21  ;;  %v2341_v36 = vsel %vm2334_vm3, %v2331_v17, -inf }
 0x6bf   : > { %2342 = vmax.xlane.f32.xlu0 %v2341_v36  ;;  %v5933_v61 = vpop.f32.mrf.mxu0 }
 0x6c0   : > { %v2332_v29 = vadd.f32 %v8125_v52, %v2321_v4 }
 0x6c1   : > { %v2312_v63 = vpop.f32.mrf.mxu0 }
 0x6c2   : > { %v2322_v43 = vmul.f32 0.35355338, %v2312_v63  ;;  %v2344_v50 = vsel %vm2334_vm3, %v2332_v29, -inf }
 0x6c3   : > { %2345 = vmax.xlane.f32.xlu1 %v2344_v50  ;;  %v5936_v27 = vpop.f32.mrf.mxu0 }
 0x6c4   : > { %v2333_v10 = vadd.f32 %v8125_v52, %v2322_v43 }
 0x6c5   : > { %v2315_v14 = vpop.f32.mrf.mxu0 }
 0x6c6   : > { %v2347_v40 = vsel %vm2334_vm3, %v2333_v10, -inf }
 0x6c7   : > { %2348 = vmax.xlane.f32.xlu0 %v2347_v40  ;;  %v5937_v7 = vpop.f32.mrf.mxu0 }
 0x6c9   : > { %v2515_v35 = vpop.f32.mrf.mxu0 }
 0x6ca   : > { %v2537_v1 = vmul.f32 0.35355338, %v2515_v35 }
 0x6cb   : > { %v5964_v41 = vpop.f32.mrf.mxu0 }
 0x6cc   : > { %v2542_v44 = vadd.f32 %v8125_v52, %v2537_v1 }
 0x6cd   : > { %v2518_v47 = vpop.f32.mrf.mxu0 }
 0x6ce   : > { %v2538_v49 = vmul.f32 0.35355338, %v2518_v47  ;;  %v2547_v2 = vsel %vm2334_vm3, %v2542_v44, -inf }
 0x6cf   : > { %2548 = vmax.xlane.f32.xlu1 %v2547_v2  ;;  %v5965_v62 = vpop.f32.mrf.mxu0 }
 0x6d0   : > { %v2543_v38 = vadd.f32 %v8125_v52, %v2538_v49 }
 0x6d1   : > { %v2523_v12 = vpop.f32.mrf.mxu0 }
 0x6d2   : > { %v2539_v24 = vmul.f32 0.35355338, %v2523_v12  ;;  %v2550_v39 = vsel %vm2334_vm3, %v2543_v38, -inf }
 0x6d3   : > { %2551 = vmax.xlane.f32.xlu0 %v2550_v39  ;;  %v5968_v31 = vpop.f32.mrf.mxu0 }
 0x6d4   : > { %v2544_v57 = vadd.f32 %v8125_v52, %v2539_v24 }
 0x6d5   : > { %v2526_v34 = vpop.f32.mrf.mxu0 }
 0x6d6   : > { %v2540_v26 = vmul.f32 0.35355338, %v2526_v34  ;;  %v2553_v23 = vsel %vm2334_vm3, %v2544_v57, -inf }
 0x6d7   : > { %2554 = vmax.xlane.f32.xlu1 %v2553_v23  ;;  %v5969_v9 = vpop.f32.mrf.mxu0 }
 0x6d8   : > { %v2545_v56 = vadd.f32 %v8125_v52, %v2540_v26 }
 0x6d9   : > { %v2531_v33 = vpop.f32.mrf.mxu0 }
 0x6da   : > { %v2541_v21 = vmul.f32 0.35355338, %v2531_v33  ;;  %v2556_v4 = vsel %vm2334_vm3, %v2545_v56, -inf }
 0x6db   : > { %2557 = vmax.xlane.f32.xlu0 %v2556_v4  ;;  %v5972_v36 = vpop.f32.mrf.mxu0 }
 0x6dc   : > { %v2546_v61 = vadd.f32 %v8125_v52, %v2541_v21 }
 0x6dd   : > { %v2534_v63 = vpop.f32.mrf.mxu0 }
 0x6de   : > { %v2559_v43 = vsel %vm2334_vm3, %v2546_v61, -inf }
 0x6df   : > { %2560 = vmax.xlane.f32.xlu1 %v2559_v43  ;;  %v5973_v50 = vpop.f32.mrf.mxu0 }
 0x740   : > { %v2337_v27 = vpop.xlane.xlu0 %2336 }
 0x741   : > { %v2350_v14 = vsub.f32 %v8128_v42, %v2337_v27 }
 0x743   : > { %v2355_v40 = vmul.f32 1.442695, %v2350_v14 }
 0x744   : > { %v2340_v7 = vpop.xlane.xlu1 %2339 }
 0x745   : > { %6727 = vpow2.f32 %v2355_v40  ;;  %v2351_v35 = vsub.f32 %v2330_v45, %v2340_v7 }
 0x747   : > { %v2357_v1 = vmul.f32 1.442695, %v2351_v35 }
 0x748   : > { %v2343_v41 = vpop.xlane.xlu0 %2342 }
 0x749   : > { %6729 = vpow2.f32 %v2357_v1  ;;  %v2352_v47 = vsub.f32 %v2331_v17, %v2343_v41 }
 0x74b   : > { %v2359_v49 = vmul.f32 1.442695, %v2352_v47 }
 0x74c   : > { %v2346_v2 = vpop.xlane.xlu1 %2345 }
 0x74d   : > { %6731 = vpow2.f32 %v2359_v49  ;;  %v2353_v62 = vsub.f32 %v2332_v29, %v2346_v2 }
 0x74f   : > { %v2361_v12 = vmul.f32 1.442695, %v2353_v62 }
 0x750   : > { %v2349_v24 = vpop.xlane.xlu0 %2348 }
 0x751   : > { %6733 = vpow2.f32 %v2361_v12  ;;  %v2354_v39 = vsub.f32 %v2333_v10, %v2349_v24 }
 0x752   : > { %v8151_v31 = vpop.eup %6727 }
 0x753   : > { %v2363_v34 = vmul.f32 1.442695, %v2354_v39  ;;  %v2365_v42 = vsel %vm2334_vm3, %v8151_v31, 0.0 }
 0x754   : > { %2366 = vadd.xlane.f32.xlu0 %v2365_v42 }
 0x755   : > { %6735 = vpow2.f32 %v2363_v34  ;;  %v6621_v34 = vld [vmem:[#allocation6 + $0x78] sm:$0xff]  }
 0x756   : > { %v8155_v45 = vpop.eup %6729  ;;  %5993 = vmatpush3.bf16.msra.mxu0 %v6621_v34 }
 0x757   : > { %v2368_v17 = vsel %vm2334_vm3, %v8155_v45, 0.0  ;;  %5994 = vmatprep.subr.bf16.mxu0 %v9456_v54 }
 0x758   : > { %v2549_v26 = vpop.xlane.xlu1 %2548  ;;  %2369 = vadd.xlane.f32.xlu1 %v2368_v17 }
 0x759   : > { %v2562_v29 = vsub.f32 %v2542_v44, %v2549_v26 }
 0x75a   : > { %v8159_v23 = vpop.eup %6731 }
 0x75b   : > { %v2567_v9 = vmul.f32 1.442695, %v2562_v29  ;;  %v2371_v10 = vsel %vm2334_vm3, %v8159_v23, 0.0 }
 0x75c   : > { %v2552_v33 = vpop.xlane.xlu0 %2551  ;;  %2372 = vadd.xlane.f32.xlu0 %v2371_v10 }
 0x75d   : > { %6737 = vpow2.f32 %v2567_v9  ;;  %v2563_v21 = vsub.f32 %v2543_v38, %v2552_v33 }
 0x75e   : > { %v6734_v4 = vpop.eup %6733 }
 0x75f   : > { %v2569_v36 = vmul.f32 1.442695, %v2563_v21  ;;  %v2374_v63 = vsel %vm2334_vm3, %v6734_v4, 0.0 }
 0x760   : > { %v2555_v43 = vpop.xlane.xlu1 %2554  ;;  %2375 = vadd.xlane.f32.xlu1 %v2374_v63 }
 0x761   : > { %6739 = vpow2.f32 %v2569_v36  ;;  %v2564_v50 = vsub.f32 %v2544_v57, %v2555_v43 }
 0x762   : > { %v8164_v27 = vpop.eup %6735 }
 0x763   : > { %v2571_v44 = vmul.f32 1.442695, %v2564_v50  ;;  %v2377_v14 = vsel %vm2334_vm3, %v8164_v27, 0.0 }
 0x764   : > { %2378 = vadd.xlane.f32.xlu0 %v2377_v14  ;;  %v2558_v40 = vpop.xlane.xlu0 %2557 }
 0x765   : > { %6741 = vpow2.f32 %v2571_v44  ;;  %v2565_v7 = vsub.f32 %v2545_v56, %v2558_v40 }
 0x767   : > { %v2573_v35 = vmul.f32 1.442695, %v2565_v7 }
 0x768   : > { %v2561_v38 = vpop.xlane.xlu1 %2560 }
 0x769   : > { %6743 = vpow2.f32 %v2573_v35  ;;  %v2566_v1 = vsub.f32 %v2546_v61, %v2561_v38  ;;  %v9463_v35 = vpack.c.bf16 %v8034_v37, %v8017_v30 }
 0x76a   : > { %v8168_v41 = vpop.eup %6737 }
 0x76b   : > { %v2575_v47 = vmul.f32 1.442695, %v2566_v1  ;;  %v2577_v57 = vsel %vm2334_vm3, %v8168_v41, 0.0 }
 0x76c   : > { %2578 = vadd.xlane.f32.xlu1 %v2577_v57 }
 0x76d   : > { %6745 = vpow2.f32 %v2575_v47 }
 0x76e   : > { %v8172_v49 = vpop.eup %6739 }
 0x76f   : > { %v2580_v2 = vsel %vm2334_vm3, %v8172_v49, 0.0 }
 0x770   : > { %2581 = vadd.xlane.f32.xlu0 %v2580_v2 }
 0x772   : > { %v8176_v62 = vpop.eup %6741 }
 0x773   : > { %v2583_v56 = vsel %vm2334_vm3, %v8176_v62, 0.0 }
 0x774   : > { %2584 = vadd.xlane.f32.xlu1 %v2583_v56  ;;  %v6616_v56 = vld [vmem:[#allocation6 + $0x30] sm:$0xff]  }
 0x776   : > { %v8180_v61 = vpop.eup %6743 }
 0x777   : > { %v2586_v12 = vsel %vm2334_vm3, %v8180_v61, 0.0 }
 0x778   : > { %2587 = vadd.xlane.f32.xlu0 %v2586_v12 }
 0x77a   : > { %v8184_v24 = vpop.eup %6745 }
 0x77b   : > { %v2589_v39 = vsel %vm2334_vm3, %v8184_v24, 0.0 }
 0x77c   : > { %2590 = vadd.xlane.f32.xlu1 %v2589_v39 }
 0x7dd   : > { %v2367_v42 = vpop.xlane.xlu0 %2366 }
 0x7de   : > { %6747 = vrcp.f32 %v2367_v42 }
 0x7e1   : > { %v2370_v17 = vpop.xlane.xlu1 %2369 }
 0x7e2   : > { %6749 = vrcp.f32 %v2370_v17  ;;  %v6618_v17 = vld [vmem:[#allocation6 + $0x20] sm:$0xff]  }
 0x7e5   : > { %v2373_v26 = vpop.xlane.xlu0 %2372 }
 0x7e6   : > { %6751 = vrcp.f32 %v2373_v26 }
 0x7e9   : > { %v2376_v29 = vpop.xlane.xlu1 %2375 }
 0x7ea   : > { %6753 = vrcp.f32 %v2376_v29  ;;  %v6620_v29 = vld [vmem:[#allocation6 + $0x10] sm:$0xff]  }
 0x7eb   : > { %v6748_v9 = vpop.eup %6747 }
 0x7ec   : > { %v2381_v21 = vmul.f32 %v6748_v9, %v8151_v31  ;;  %v9462_v31 = vpack.c.bf16 %v8064_v53, %v8045_v15  ;;  %v6622_v9 = vld [vmem:[#allocation6 + $0x8] sm:$0xff]  }
 0x7ed   : > { %v2379_v10 = vpop.xlane.xlu0 %2378 }
 0x7ee   : > { %6755 = vrcp.f32 %v2379_v10  ;;  %v6624_v10 = vld [vmem:[#allocation6] sm:$0xff]  }
 0x7ef   : > { %v6750_v33 = vpop.eup %6749 }
 0x7f0   : > { %v2383_v36 = vmul.f32 %v6750_v33, %v8155_v45  ;;  %v6625_v33 = vld [vmem:[#allocation6 + $0x68] sm:$0xff]  }
 0x7f2   : > { %v2390_v63 = vpack.c.bf16 %v2383_v36, %v2381_v21  ;;  %v6626_v21 = vld [vmem:[#allocation6 + $0x60] sm:$0xff]   ;;  %v6627_v36 = vld [vmem:[#allocation6 + $0x58] sm:$0xff]  }
 0x7f3   : > { %v6752_v43 = vpop.eup %6751 }
 0x7f4   : > { %5945 = vmatmul.mubr.msk.bf16.vlgmr.msra.gmra.mxu1 %vm2334_vm3, %v2390_v63  ;;  %v2385_v14 = vmul.f32 %v6752_v43, %v8159_v23  ;;  %v6628_v63 = vld [vmem:[#allocation6 + $0x50] sm:$0xff]   ;;  %v6629_v43 = vld [vmem:[#allocation6 + $0x48] sm:$0xff]  }
 0x7f5   : > { %5975 = vmatpush3.bf16.msra.mxu1 %v8090_v18  ;;  %v2579_v50 = vpop.xlane.xlu1 %2578  ;;  %5948 = vmatprep.mubr.msk.bf16.mxu1 %vm7262_vm1, %v9456_v54 }
 0x7f6   : > { %5976 = vmatprep.subr.bf16.mxu1 %v9456_v54  ;;  %6757 = vrcp.f32 %v2579_v50  ;;  %v6630_v50 = vld [vmem:[#allocation6 + $0x40] sm:$0xff]  }
 0x7f7   : > { %v6754_v44 = vpop.eup %6753 }
 0x7f8   : > { %v2387_v40 = vmul.f32 %v6754_v44, %v6734_v4 }
 0x7f9   : > { %5977 = vmatpush3.bf16.msra.mxu1 %v9462_v31  ;;  %v2582_v45 = vpop.xlane.xlu0 %2581 }
 0x7fa   : > { %6759 = vrcp.f32 %v2582_v45  ;;  %5978 = vmatprep.subr.bf16.mxu1 %v9456_v54  ;;  %v2391_v18 = vpack.c.bf16 %v2387_v40, %v2385_v14 }
 0x7fb   : > { %v6756_v7 = vpop.eup %6755 }
 0x7fc   : > { %5949 = vmatmul.mubr.msk.bf16.gmra.mxu1 %vm2334_vm3, %v2391_v18  ;;  %v2389_v23 = vmul.f32 %v6756_v7, %v8164_v27  ;;  %v6615_v27 = vld [vmem:[#allocation6 + $0x38] sm:$0xff]  }
 0x7fd   : > { %5979 = vmatpush3.bf16.msra.mxu1 %v9463_v35  ;;  %v2585_v38 = vpop.xlane.xlu1 %2584  ;;  %5952 = vmatprep.mubr.msk.bf16.mxu1 %vm7262_vm1, %v9456_v54  ;;  %v9464_v35 = vpack.c.bf16 %v8052_v6, %v8042_v55 }
 0x7fe   : > { %6020 = vmatprep.subr.bf16.mxu1 %v9456_v54  ;;  %6761 = vrcp.f32 %v2585_v38  ;;  %v2392_v53 = vpack.c.bf16 %v2389_v23, %v2389_v23 }
 0x801   : > { %v2588_v15 = vpop.xlane.xlu0 %2587 }
 0x802   : > { %6763 = vrcp.f32 %v2588_v15 }
 0x803   : > { %v6758_v4 = vpop.eup %6757 }
 0x804   : > { %5953 = vmatmul.mubr.msk.bf16.gmra.mxu1 %vm2334_vm3, %v2392_v53  ;;  %v2593_v37 = vmul.f32 %v6758_v4, %v8168_v41  ;;  %v6617_v41 = vld [vmem:[#allocation6 + $0x28] sm:$0xff]  }
 0x805   : > { %v2591_v1 = vpop.xlane.xlu1 %2590  ;;  %5980 = vmatprep.mubr.msk.bf16.mxu1 %vm7262_vm1, %v9456_v54 }
 0x806   : > { %6765 = vrcp.f32 %v2591_v1 }
 0x807   : > { %v6760_v30 = vpop.eup %6759 }
 0x808   : > { %v2595_v47 = vmul.f32 %v6760_v30, %v8172_v49 }
 0x80a   : > { %v2602_v57 = vpack.c.bf16 %v2595_v47, %v2593_v37 }
 0x80b   : > { %v6762_v2 = vpop.eup %6761 }
 0x80c   : > { %5981 = vmatmul.mubr.msk.bf16.vlgmr.msra.gmra.mxu1 %vm2334_vm3, %v2602_v57  ;;  %v2597_v39 = vmul.f32 %v6762_v2, %v8176_v62  ;;  %v6619_v62 = vld [vmem:[#allocation6 + $0x18] sm:$0xff]  }
 0x80d   : > { %5984 = vmatprep.mubr.msk.bf16.mxu1 %vm7262_vm1, %v9456_v54  ;;  %6021 = vmatpush3.bf16.msra.mxu1 %v6615_v27 }
 0x80e   : > { %6022 = vmatprep.subr.bf16.mxu1 %v9456_v54 }
 0x80f   : > { %v6764_v12 = vpop.eup %6763 }
 0x810   : > { %v2599_v34 = vmul.f32 %v6764_v12, %v8180_v61 }
 0x811   : > { %6023 = vmatpush3.bf16.msra.mxu1 %v6616_v56 }
 0x812   : > { %v2603_v49 = vpack.c.bf16 %v2599_v34, %v2597_v39  ;;  %6024 = vmatprep.subr.bf16.mxu1 %v9456_v54  ;;  %v9466_v34 = vpack.c.bf16 %v7990_v46, %v7984_v32  ;;  %v9468_v32 = vpack.c.bf16 %v7917_v60, %v7911_v58  ;;  %v9469_v46 = vpack.c.bf16 %v7941_v22, %v7935_v19 }
 0x813   : > { %v6766_v42 = vpop.eup %6765 }
 0x814   : > { %5985 = vmatmul.mubr.msk.bf16.gmra.mxu1 %vm2334_vm3, %v2603_v49  ;;  %v2601_v26 = vmul.f32 %v6766_v42, %v8184_v24  ;;  %v6623_v24 = vld [vmem:[#allocation6 + $0x70] sm:$0xff]  }
 0x815   : > { %5988 = vmatprep.mubr.msk.bf16.mxu1 %vm7262_vm1, %v9456_v54  ;;  %6025 = vmatpush3.bf16.msra.mxu1 %v6617_v41 }
 0x816   : > { %6026 = vmatprep.subr.bf16.mxu1 %v9456_v54  ;;  %v2604_v61 = vpack.c.bf16 %v2601_v26, %v2601_v26  ;;  %5995 = vmatpush3.bf16.msra.mxu0 %v6623_v24  ;;  %v9467_v26 = vpack.c.bf16 %v7974_v3, %v7968_v0  ;;  %v1545_v0 = vadd.f32 %v7953_v28, %v7901_v51 }
 0x817   : > { %5996 = vmatprep.subr.bf16.mxu0 %v9456_v54 }
 0x818   : > { %v2235_v3 = vpack.c.bf16 %v1545_v0, %v1545_v0 }
 0x819   : > { %6027 = vmatpush3.bf16.msra.mxu1 %v6618_v17 }
 0x81a   : > { %6028 = vmatprep.subr.bf16.mxu1 %v9456_v54  ;;  %5997 = vmatpush3.bf16.msra.mxu0 %v6625_v33 }
 0x81b   : > { %5998 = vmatprep.subr.bf16.mxu0 %v9456_v54 }
 0x81c   : > { %5989 = vmatmul.mubr.msk.bf16.gmra.mxu1 %vm2334_vm3, %v2604_v61 }
 0x81d   : > { %6029 = vmatpush3.bf16.msra.mxu1 %v6619_v62  ;;  %6036 = vmatprep.mubr.msk.bf16.mxu1 %vm7262_vm1, %v9456_v54 }
 0x81e   : > { %6030 = vmatprep.subr.bf16.mxu1 %v9456_v54  ;;  %5999 = vmatpush3.bf16.msra.mxu0 %v6626_v21 }
 0x81f   : > { %6000 = vmatprep.subr.bf16.mxu0 %v9456_v54 }
 0x821   : > { %6031 = vmatpush3.bf16.msra.mxu1 %v6620_v29 }
 0x822   : > { %6032 = vmatprep.subr.bf16.mxu1 %v9456_v54  ;;  %6001 = vmatpush3.bf16.msra.mxu0 %v6627_v36 }
 0x823   : > { %6002 = vmatprep.subr.bf16.mxu0 %v9456_v54 }
 0x825   : > { %6033 = vmatpush3.bf16.msra.mxu1 %v6622_v9 }
 0x826   : > { %6034 = vmatprep.subr.bf16.mxu1 %v9456_v54  ;;  %6003 = vmatpush3.bf16.msra.mxu0 %v6628_v63 }
 0x827   : > { %6004 = vmatprep.subr.bf16.mxu0 %v9456_v54 }
 0x829   : > { %6035 = vmatpush3.bf16.msra.mxu1 %v6624_v10 }
 0x82a   : > { %6066 = vmatprep.subr.bf16.mxu1 %v9456_v54  ;;  %6005 = vmatpush3.bf16.msra.mxu0 %v6629_v43 }
 0x82b   : > { %6006 = vmatprep.subr.bf16.mxu0 %v9456_v54 }
 0x82e   : > { %6007 = vmatpush3.bf16.msra.mxu0 %v6630_v50 }
 0x82f   : > { %6048 = vmatprep.subr.bf16.mxu0 %v9456_v54 }
 0x8b4   : > { %v2440_v44 = vpop.f32.mrf.mxu1 }
 0x8b6   : > { %v5946_v14 = vpop.f32.mrf.mxu1 }
 0x8b8   : > { %v2443_v40 = vpop.f32.mrf.mxu1 }
 0x8b9   : > { %v2462_v31 = vpack.c.bf16 %v2443_v40, %v2440_v44 }
 0x8ba   : > { %v5947_v45 = vpop.f32.mrf.mxu1 }
 0x8bb   : > { %6037 = vmatmul.mubr.bf16.vlgmr.msra.gmra.mxu1 %v2462_v31 }
 0x8bc   : > { %6067 = vmatpush3.bf16.msra.mxu1 %v8080_v25  ;;  %v2448_v18 = vpop.f32.mrf.mxu1  ;;  %6040 = vmatprep.mubr.msk.bf16.mxu1 %vm7262_vm1, %v9456_v54  ;;  %v9465_v25 = vpack.c.bf16 %v8027_v11, %v8014_v48  ;;  %v2247_v48 = vpack.c.bf16 %v8002_v5, %v8002_v5 }
 0x8bd   : > { %6068 = vmatprep.subr.bf16.mxu1 %v9456_v54 }
 0x8be   : > { %v5950_v7 = vpop.f32.mrf.mxu1 }
 0x8c0   : > { %6069 = vmatpush3.bf16.msra.mxu1 %v9464_v35  ;;  %v2451_v38 = vpop.f32.mrf.mxu1 }
 0x8c1   : > { %v2463_v23 = vpack.c.bf16 %v2451_v38, %v2448_v18  ;;  %6070 = vmatprep.subr.bf16.mxu1 %v9456_v54 }
 0x8c2   : > { %v5951_v15 = vpop.f32.mrf.mxu1 }
 0x8c3   : > { %6041 = vmatmul.mubr.bf16.gmra.mxu1 %v2463_v23 }
 0x8c4   : > { %6071 = vmatpush3.bf16.msra.mxu1 %v9465_v25  ;;  %v2456_v53 = vpop.f32.mrf.mxu1  ;;  %6044 = vmatprep.mubr.msk.bf16.mxu1 %vm7262_vm1, %v9456_v54 }
 0x8c5   : > { %6112 = vmatprep.subr.bf16.mxu1 %v9456_v54  ;;  %v2464_v6 = vpack.c.bf16 %v2456_v53, %v2456_v53 }
 0x8c6   : > { %v5954_v4 = vpop.f32.mrf.mxu1 }
 0x8c8   : > { %v2459_v1 = vpop.f32.mrf.mxu1 }
 0x8ca   : > { %v5955_v55 = vpop.f32.mrf.mxu1 }
 0x8cb   : > { %6045 = vmatmul.mubr.bf16.gmra.mxu1 %v2464_v6 }
 0x8cc   : > { %v2651_v30 = vpop.f32.mrf.mxu1  ;;  %6072 = vmatprep.mubr.msk.bf16.mxu1 %vm7262_vm1, %v9456_v54 }
 0x8ce   : > { %v5982_v37 = vpop.f32.mrf.mxu1 }
 0x8d0   : > { %v2654_v47 = vpop.f32.mrf.mxu1 }
 0x8d1   : > { %v2673_v27 = vpack.c.bf16 %v2654_v47, %v2651_v30 }
 0x8d2   : > { %v5983_v11 = vpop.f32.mrf.mxu1 }
 0x8d3   : > { %6009 = vmatmul.mubr.bf16.vlgmr.msra.gmra.mxu0 %v2673_v27 }
 0x8d4   : > { %6049 = vmatpush3.bf16.xpose.msra.mxu0 %v2247_v48  ;;  %v2659_v57 = vpop.f32.mrf.mxu1  ;;  %6012 = vmatprep.mubr.msk.bf16.mxu0 %vm7262_vm1, %v9456_v54 }
 0x8d5   : > { %6050 = vmatprep.subr.bf16.mxu0 %v9456_v54 }
 0x8d6   : > { %v5986_v2 = vpop.f32.mrf.mxu1 }
 0x8d8   : > { %v2662_v56 = vpop.f32.mrf.mxu1 }
 0x8d9   : > { %v2674_v12 = vpack.c.bf16 %v2662_v56, %v2659_v57 }
 0x8da   : > { %v5987_v39 = vpop.f32.mrf.mxu1 }
 0x8db   : > { %6013 = vmatmul.mubr.bf16.gmra.mxu0 %v2674_v12 }
 0x8dc   : > { %6051 = vmatpush3.bf16.xpose.msra.mxu0 %v9466_v34  ;;  %v2667_v41 = vpop.f32.mrf.mxu1  ;;  %6016 = vmatprep.mubr.msk.bf16.mxu0 %vm7262_vm1, %v9456_v54 }
 0x8dd   : > { %6052 = vmatprep.subr.bf16.mxu0 %v9456_v54  ;;  %v2675_v42 = vpack.c.bf16 %v2667_v41, %v2667_v41 }
 0x8de   : > { %v5990_v5 = vpop.f32.mrf.mxu1 }
 0x8e0   : > { %v2670_v49 = vpop.f32.mrf.mxu1 }
 0x8e2   : > { %v5991_v17 = vpop.f32.mrf.mxu1 }
 0x8e3   : > { %6017 = vmatmul.mubr.bf16.gmra.mxu0 %v2675_v42 }
 0x8e4   : > { %6053 = vmatpush3.bf16.xpose.msra.mxu0 %v9467_v26  ;;  %6054 = vmatprep.mubr.msk.bf16.mxu0 %vm7262_vm1, %v9456_v54 }
 0x8e5   : > { %6084 = vmatprep.subr.bf16.mxu0 %v9456_v54 }
 0x8eb   : > { %6055 = vmatmul.mubr.bf16.vlgmr.msra.gmra.mxu0 %v9468_v32 }
 0x8ec   : > { %6058 = vmatprep.mubr.msk.bf16.mxu0 %vm7262_vm1, %v9456_v54 }
 0x8f3   : > { %6059 = vmatmul.mubr.bf16.gmra.mxu0 %v9469_v46 }
 0x8f4   : > { %6062 = vmatprep.mubr.msk.bf16.mxu0 %vm7262_vm1, %v9456_v54 }
 0x8fb   : > { %6063 = vmatmul.mubr.bf16.gmra.mxu0 %v2235_v3 }
 0x8fc   : > { %6100 = vmatprep.mubr.msk.bf16.mxu0 %vm7262_vm1, %v9456_v54 }
 0x97b   : > { %v2878_v58 = vpop.f32.mrf.mxu1 }
 0x97d   : > { %v6038_v60 = vpop.f32.mrf.mxu1 }
 0x97f   : > { %v2881_v62 = vpop.f32.mrf.mxu1 }
 0x981   : > { %v6039_v61 = vpop.f32.mrf.mxu1 }
 0x983   : > { %v2886_v29 = vpop.f32.mrf.mxu1 }
 0x985   : > { %v6042_v9 = vpop.f32.mrf.mxu1 }
 0x987   : > { %v2889_v24 = vpop.f32.mrf.mxu1 }
 0x989   : > { %v6043_v19 = vpop.f32.mrf.mxu1 }
 0x98b   : > { %v2894_v22 = vpop.f32.mrf.mxu1 }
 0x98d   : > { %v6046_v10 = vpop.f32.mrf.mxu1 }
 0x98f   : > { %v2897_v33 = vpop.f32.mrf.mxu1 }
 0x991   : > { %v6047_v21 = vpop.f32.mrf.mxu1 }
 0x993   : > { %v2774_v36 = vpop.f32.mrf.mxu0 }
 0x994   : > { %v8288_v63 = vadd.f32 %v2878_v58, %v2774_v36 }
 0x995   : > { %v6010_v51 = vpop.f32.mrf.mxu0 }
 0x997   : > { %v2777_v28 = vpop.f32.mrf.mxu0 }
 0x998   : > { %v8290_v43 = vadd.f32 %v2881_v62, %v2777_v28 }
 0x999   : > { %v6011_v50 = vpop.f32.mrf.mxu0 }
 0x99b   : > { %v2782_v44 = vpop.f32.mrf.mxu0 }
 0x99c   : > { %v8292_v14 = vadd.f32 %v2886_v29, %v2782_v44 }
 0x99d   : > { %v6014_v40 = vpop.f32.mrf.mxu0 }
 0x99f   : > { %v2785_v31 = vpop.f32.mrf.mxu0 }
 0x9a0   : > { %v8294_v45 = vadd.f32 %v2889_v24, %v2785_v31 }
 0x9a1   : > { %v6015_v18 = vpop.f32.mrf.mxu0 }
 0x9a3   : > { %v2790_v7 = vpop.f32.mrf.mxu0 }
 0x9a4   : > { %v8296_v35 = vadd.f32 %v2894_v22, %v2790_v7 }
 0x9a5   : > { %v6018_v38 = vpop.f32.mrf.mxu0 }
 0x9a7   : > { %v2793_v23 = vpop.f32.mrf.mxu0 }
 0x9a9   : > { %v6019_v15 = vpop.f32.mrf.mxu0 }
 0x9aa   : > { %v6631_v15 = vld [vmem:[#allocation6 + $0xb8] sm:$0xff]  }
 0x9ab   : > { %v2934_v25 = vpop.f32.mrf.mxu0  ;;  %6085 = vmatpush3.bf16.msra.mxu0 %v6631_v15 }
 0x9ac   : > { %v2956_v53 = vmul.f32 0.35355338, %v2934_v25  ;;  %v6632_v25 = vld [vmem:[#allocation6 + $0xb0] sm:$0xff]   ;;  %6086 = vmatprep.subr.bf16.mxu0 %v9456_v54 }
 0x9ad   : > { %v6056_v4 = vpop.f32.mrf.mxu0 }
 0x9ae   : > { %v2961_v1 = vadd.f32 %v8125_v52, %v2956_v53  ;;  %v6633_v53 = vld [vmem:[#allocation6 + $0xa8] sm:$0xff]   ;;  %v6634_v4 = vld [vmem:[#allocation6 + $0xa0] sm:$0xff]  }
 0x9af   : > { %v2937_v6 = vpop.f32.mrf.mxu0  ;;  %6087 = vmatpush3.bf16.msra.mxu0 %v6632_v25 }
 0x9b0   : > { %v2957_v55 = vmul.f32 0.35355338, %v2937_v6  ;;  %v2966_v30 = vsel %vm2334_vm3, %v2961_v1, -inf  ;;  %6088 = vmatprep.subr.bf16.mxu0 %v9456_v54  ;;  %v6636_v6 = vld [vmem:[#allocation6 + $0x90] sm:$0xff]  }
 0x9b1   : > { %2967 = vmax.xlane.f32.xlu0 %v2966_v30  ;;  %v6057_v37 = vpop.f32.mrf.mxu0 }
 0x9b2   : > { %v2962_v47 = vadd.f32 %v8125_v52, %v2957_v55 }
 0x9b3   : > { %v2942_v27 = vpop.f32.mrf.mxu0  ;;  %6089 = vmatpush3.bf16.msra.mxu0 %v6633_v53 }
 0x9b4   : > { %v2958_v48 = vmul.f32 0.35355338, %v2942_v27  ;;  %v2969_v11 = vsel %vm2334_vm3, %v2962_v47, -inf  ;;  %6090 = vmatprep.subr.bf16.mxu0 %v9456_v54 }
 0x9b5   : > { %2970 = vmax.xlane.f32.xlu1 %v2969_v11  ;;  %v6060_v57 = vpop.f32.mrf.mxu0 }
 0x9b6   : > { %v2963_v2 = vadd.f32 %v8125_v52, %v2958_v48 }
 0x9b7   : > { %v2945_v56 = vpop.f32.mrf.mxu0  ;;  %6091 = vmatpush3.bf16.msra.mxu0 %v6634_v4 }
 0x9b8   : > { %v2959_v12 = vmul.f32 0.35355338, %v2945_v56  ;;  %v2972_v39 = vsel %vm2334_vm3, %v2963_v2, -inf  ;;  %6092 = vmatprep.subr.bf16.mxu0 %v9456_v54 }
 0x9b9   : > { %2973 = vmax.xlane.f32.xlu0 %v2972_v39  ;;  %v6061_v34 = vpop.f32.mrf.mxu0 }
 0x9ba   : > { %v2964_v41 = vadd.f32 %v8125_v52, %v2959_v12  ;;  %v2248_v12 = vpack.c.bf16 %v8004_v13, %v8004_v13 }
 0x9bb   : > { %v2950_v5 = vpop.f32.mrf.mxu0 }
 0x9bc   : > { %v2960_v49 = vmul.f32 0.35355338, %v2950_v5  ;;  %v2975_v42 = vsel %vm2334_vm3, %v2964_v41, -inf }
 0x9bd   : > { %2976 = vmax.xlane.f32.xlu1 %v2975_v42  ;;  %v6064_v17 = vpop.f32.mrf.mxu0 }
 0x9be   : > { %v2965_v26 = vadd.f32 %v8125_v52, %v2960_v49  ;;  %v9470_v17 = vld [vmem:[#allocation43_spill] sm:$0xff] }
 0x9bf   : > { %v2953_v32 = vpop.f32.mrf.mxu0 }
 0x9c0   : > { %v2978_v46 = vsel %vm2334_vm3, %v2965_v26, -inf }
 0x9c1   : > { %2979 = vmax.xlane.f32.xlu0 %v2978_v46  ;;  %v6065_v0 = vpop.f32.mrf.mxu0  ;;  %v6891_v46 = vld [vmem:[#allocation19] ss:$4 sm:$0xf] }
 0x9c2   : > { %v9472_v0 = vld [vmem:[#allocation40_spill] sm:$0xff] }
 0xa3a   : > { %v2968_v3 = vpop.xlane.xlu0 %2967 }
 0xa3b   : > { %v2981_v58 = vsub.f32 %v2961_v1, %v2968_v3  ;;  %v6635_v1 = vld [vmem:[#allocation6 + $0x98] sm:$0xff]   ;;  %v1264_v3 = vrot.slane %v6891_v46, %v9472_v0 }
 0xa3c   : > { %6093 = vmatpush3.bf16.msra.mxu0 %v6635_v1 }
 0xa3d   : > { %v2986_v60 = vmul.f32 1.442695, %v2981_v58  ;;  %6094 = vmatprep.subr.bf16.mxu0 %v9456_v54  ;;  %v9473_v58 = vld [vmem:[#allocation42_spill] sm:$0xff] }
 0xa3e   : > { %v2971_v62 = vpop.xlane.xlu1 %2970 }
 0xa3f   : > { %6767 = vpow2.f32 %v2986_v60  ;;  %v2982_v61 = vsub.f32 %v2962_v47, %v2971_v62  ;;  %v9474_v60 = vld [vmem:[#allocation41_spill] sm:$0xff] }
 0xa40   : > { %6095 = vmatpush3.bf16.msra.mxu0 %v6636_v6  ;;  %v9475_v62 = vpack.c.bf16 %v9473_v58, %v9474_v60 }
 0xa41   : > { %v2988_v29 = vmul.f32 1.442695, %v2982_v61  ;;  %6096 = vmatprep.subr.bf16.mxu0 %v9456_v54 }
 0xa42   : > { %v2974_v9 = vpop.xlane.xlu0 %2973 }
 0xa43   : > { %6769 = vpow2.f32 %v2988_v29  ;;  %v2983_v24 = vsub.f32 %v2963_v2, %v2974_v9  ;;  %v9477_v29 = vld [vmem:[#allocation35_spill] sm:$0xff] }
 0xa44   : > { %v1527_v9 = vadd.f32 %v9477_v29, %v1264_v3 }
 0xa45   : > { %v2990_v19 = vmul.f32 1.442695, %v2983_v24 }
 0xa46   : > { %v2977_v22 = vpop.xlane.xlu1 %2976 }
 0xa47   : > { %6771 = vpow2.f32 %v2990_v19  ;;  %v2984_v10 = vsub.f32 %v2964_v41, %v2977_v22  ;;  %v9478_v19 = vld [vmem:[#allocation38_spill] sm:$0xff] }
 0xa48   : > { %v1541_v22 = vadd.f32 %v9478_v19, %v1264_v3 }
 0xa49   : > { %v2992_v52 = vmul.f32 1.442695, %v2984_v10  ;;  %v9479_v10 = vld [vmem:[#allocation37_spill] sm:$0xff] }
 0xa4a   : > { %v2980_v33 = vpop.xlane.xlu0 %2979 }
 0xa4b   : > { %6773 = vpow2.f32 %v2992_v52  ;;  %v2985_v21 = vsub.f32 %v2965_v26, %v2980_v33  ;;  %v9471_v26 = vpack.c.bf16 %v7998_v16, %v9470_v17  ;;  %v9476_v16 = vld [vmem:[#allocation36_spill] sm:$0xff]  ;;  %v1537_v52 = vadd.f32 %v9479_v10, %v1264_v3 }
 0xa4c   : > { %v6768_v36 = vpop.eup %6767  ;;  %v1531_v61 = vadd.f32 %v9476_v16, %v1264_v3  ;;  %v9480_v33 = vpack.c.bf16 %v8066_v59, %v8047_v8  ;;  %v6637_v8 = vld [vmem:[#allocation6 + $0x88] sm:$0xff]   ;;  %v6638_v59 = vld [vmem:[#allocation6 + $0x80] sm:$0xff]  }
 0xa4d   : > { %v2994_v51 = vmul.f32 1.442695, %v2985_v21  ;;  %v2996_v28 = vsel %vm2334_vm3, %v6768_v36, 0.0  ;;  %v2232_v21 = vpack.c.bf16 %v1541_v22, %v1537_v52  ;;  %6097 = vmatpush3.bf16.msra.mxu0 %v6637_v8 }
 0xa4e   : > { %2997 = vadd.xlane.f32.xlu1 %v2996_v28  ;;  %v2228_v24 = vpack.c.bf16 %v1531_v61, %v1527_v9  ;;  %v9484_v28 = vld [vmem:[#allocation39_spill] sm:$0xff]  ;;  %6098 = vmatprep.subr.bf16.mxu0 %v9456_v54 }
 0xa4f   : > { %6775 = vpow2.f32 %v2994_v51  ;;  %v9482_v51 = vld [vmem:[#allocation44_spill] sm:$0xff] }
 0xa50   : > { %v6770_v50 = vpop.eup %6769 }
 0xa51   : > { %v2999_v44 = vsel %vm2334_vm3, %v6770_v50, 0.0  ;;  %6099 = vmatpush3.bf16.msra.mxu0 %v6638_v59 }
 0xa52   : > { %3000 = vadd.xlane.f32.xlu0 %v2999_v44  ;;  %6148 = vmatprep.subr.bf16.mxu0 %v9456_v54 }
 0xa54   : > { %v6772_v40 = vpop.eup %6771 }
 0xa55   : > { %v3002_v31 = vsel %vm2334_vm3, %v6772_v40, 0.0 }
 0xa56   : > { %3003 = vadd.xlane.f32.xlu1 %v3002_v31 }
 0xa58   : > { %v6774_v18 = vpop.eup %6773 }
 0xa59   : > { %v3005_v7 = vsel %vm2334_vm3, %v6774_v18, 0.0 }
 0xa5a   : > { %3006 = vadd.xlane.f32.xlu0 %v3005_v7 }
 0xa5c   : > { %v6776_v38 = vpop.eup %6775 }
 0xa5d   : > { %v3008_v23 = vsel %vm2334_vm3, %v6776_v38, 0.0 }
 0xa5e   : > { %3009 = vadd.xlane.f32.xlu1 %v3008_v23 }
 0xad7   : > { %v2998_v55 = vpop.xlane.xlu1 %2997 }
 0xad8   : > { %6777 = vrcp.f32 %v2998_v55 }
 0xadb   : > { %v3001_v30 = vpop.xlane.xlu0 %3000 }
 0xadc   : > { %6779 = vrcp.f32 %v3001_v30 }
 0xadf   : > { %v3004_v37 = vpop.xlane.xlu1 %3003 }
 0xae0   : > { %6781 = vrcp.f32 %v3004_v37 }
 0xae3   : > { %v3007_v47 = vpop.xlane.xlu0 %3006 }
 0xae4   : > { %6783 = vrcp.f32 %v3007_v47 }
 0xae5   : > { %v6778_v27 = vpop.eup %6777 }
 0xae6   : > { %v3012_v57 = vmul.f32 %v6778_v27, %v6768_v36  ;;  %v9481_v36 = vld [vmem:[#allocation45_spill] sm:$0xff] }
 0xae7   : > { %v3010_v48 = vpop.xlane.xlu1 %3009 }
 0xae8   : > { %6785 = vrcp.f32 %v3010_v48 }
 0xae9   : > { %v6780_v11 = vpop.eup %6779 }
 0xaea   : > { %v3014_v2 = vmul.f32 %v6780_v11, %v6770_v50  ;;  %v1547_v50 = vadd.f32 %v9484_v28, %v1264_v3  ;;  %v6892_v11 = vld [vmem:[%s8122_s27] ss:$0 sm:$0xff] }
 0xaec   : > { %v3021_v56 = vpack.c.bf16 %v3014_v2, %v3012_v57  ;;  %v2236_v44 = vpack.c.bf16 %v1547_v50, %v1547_v50 }
 0xaed   : > { %v6782_v39 = vpop.eup %6781 }
 0xaee   : > { %6073 = vmatmul.mubr.msk.bf16.vlgmr.msra.gmra.mxu1 %vm2334_vm3, %v3021_v56  ;;  %v3016_v41 = vmul.f32 %v6782_v39, %v6772_v40 }
 0xaef   : > { %6113 = vmatpush3.bf16.xpose.msra.mxu1 %v2248_v12  ;;  %6076 = vmatprep.mubr.msk.bf16.mxu1 %vm7262_vm1, %v9456_v54 }
 0xaf0   : > { %6114 = vmatprep.subr.bf16.mxu1 %v9456_v54 }
 0xaf1   : > { %v6784_v34 = vpop.eup %6783 }
 0xaf2   : > { %v3018_v5 = vmul.f32 %v6784_v34, %v6774_v18 }
 0xaf4   : > { %v3022_v49 = vpack.c.bf16 %v3018_v5, %v3016_v41 }
 0xaf5   : > { %v6786_v42 = vpop.eup %6785 }
 0xaf6   : > { %6077 = vmatmul.mubr.msk.bf16.gmra.mxu1 %vm2334_vm3, %v3022_v49  ;;  %v3020_v13 = vmul.f32 %v6786_v42, %v6776_v38 }
 0xaf7   : > { %6115 = vmatpush3.bf16.xpose.msra.mxu1 %v9471_v26  ;;  %6080 = vmatprep.mubr.msk.bf16.mxu1 %vm7262_vm1, %v9456_v54 }
 0xaf8   : > { %6116 = vmatprep.subr.bf16.mxu1 %v9456_v54  ;;  %v3023_v32 = vpack.c.bf16 %v3020_v13, %v3020_v13 }
 0xafe   : > { %6081 = vmatmul.mubr.msk.bf16.gmra.mxu1 %vm2334_vm3, %v3023_v32 }
 0xaff   : > { %6117 = vmatpush3.bf16.xpose.msra.mxu1 %v9475_v62  ;;  %6118 = vmatprep.mubr.msk.bf16.mxu1 %vm7262_vm1, %v9456_v54 }
 0xb00   : > { %6130 = vmatprep.subr.bf16.mxu1 %v9456_v54 }
 0xb06   : > { %6119 = vmatmul.mubr.bf16.vlgmr.msra.gmra.mxu1 %v2228_v24 }
 0xb07   : > { %6131 = vmatpush3.bf16.msra.mxu1 %v8093_v20  ;;  %6122 = vmatprep.mubr.msk.bf16.mxu1 %vm7262_vm1, %v9456_v54  ;;  %v9483_v20 = vpack.c.bf16 %v9481_v36, %v9482_v51 }
 0xb08   : > { %6132 = vmatprep.subr.bf16.mxu1 %v9456_v54 }
 0xb0b   : > { %6133 = vmatpush3.bf16.msra.mxu1 %v9480_v33 }
 0xb0c   : > { %6134 = vmatprep.subr.bf16.mxu1 %v9456_v54 }
 0xb0e   : > { %6123 = vmatmul.mubr.bf16.gmra.mxu1 %v2232_v21 }
 0xb0f   : > { %6135 = vmatpush3.bf16.msra.mxu1 %v9483_v20  ;;  %6126 = vmatprep.mubr.msk.bf16.mxu1 %vm7262_vm1, %v9456_v54 }
 0xb10   : > { %6176 = vmatprep.subr.bf16.mxu1 %v9456_v54 }
 0xb16   : > { %6127 = vmatmul.mubr.bf16.gmra.mxu1 %v2236_v44 }
 0xb17   : > { %6136 = vmatprep.mubr.msk.bf16.mxu1 %vm7262_vm1, %v9456_v54 }
 0xbae   : > { %v3070_v40 = vpop.f32.mrf.mxu1 }
 0xbb0   : > { %v6074_v31 = vpop.f32.mrf.mxu1 }
 0xbb2   : > { %v3073_v18 = vpop.f32.mrf.mxu1 }
 0xbb3   : > { %v3092_v7 = vpack.c.bf16 %v3073_v18, %v3070_v40 }
 0xbb4   : > { %v6075_v38 = vpop.f32.mrf.mxu1 }
 0xbb5   : > { %6101 = vmatmul.mubr.bf16.vlgmr.msra.gmra.mxu0 %v3092_v7 }
 0xbb6   : > { %v3078_v23 = vpop.f32.mrf.mxu1  ;;  %6104 = vmatprep.mubr.msk.bf16.mxu0 %vm7262_vm1, %v9456_v54 }
 0xbb8   : > { %v6078_v15 = vpop.f32.mrf.mxu1 }
 0xbba   : > { %v3081_v25 = vpop.f32.mrf.mxu1 }
 0xbbb   : > { %v3093_v53 = vpack.c.bf16 %v3081_v25, %v3078_v23 }
 0xbbc   : > { %v6079_v4 = vpop.f32.mrf.mxu1 }
 0xbbd   : > { %6105 = vmatmul.mubr.bf16.gmra.mxu0 %v3093_v53 }
 0xbbe   : > { %v3086_v1 = vpop.f32.mrf.mxu1  ;;  %6108 = vmatprep.mubr.msk.bf16.mxu0 %vm7262_vm1, %v9456_v54 }
 0xbbf   : > { %v3094_v30 = vpack.c.bf16 %v3086_v1, %v3086_v1 }
 0xbc0   : > { %v6082_v6 = vpop.f32.mrf.mxu1 }
 0xbc2   : > { %v3089_v55 = vpop.f32.mrf.mxu1 }
 0xbc4   : > { %v6083_v37 = vpop.f32.mrf.mxu1 }
 0xbc5   : > { %6109 = vmatmul.mubr.bf16.gmra.mxu0 %v3094_v30 }
 0xbc6   : > { %v3254_v47 = vpop.f32.mrf.mxu1  ;;  %6164 = vmatprep.mubr.msk.bf16.mxu0 %vm7262_vm1, %v9456_v54 }
 0xbc7   : > { %v3276_v27 = vmul.f32 0.35355338, %v3254_v47 }
 0xbc8   : > { %v6120_v48 = vpop.f32.mrf.mxu1 }
 0xbc9   : > { %v3281_v57 = vadd.f32 %v6892_v11, %v3276_v27 }
 0xbca   : > { %v3257_v2 = vpop.f32.mrf.mxu1 }
 0xbcb   : > { %v3277_v56 = vmul.f32 0.35355338, %v3257_v2  ;;  %v3286_v12 = vsel %vm2334_vm3, %v3281_v57, -inf }
 0xbcc   : > { %3287 = vmax.xlane.f32.xlu0 %v3286_v12  ;;  %v6121_v39 = vpop.f32.mrf.mxu1 }
 0xbcd   : > { %v3282_v34 = vadd.f32 %v6892_v11, %v3277_v56 }
 0xbce   : > { %v3262_v41 = vpop.f32.mrf.mxu1 }
 0xbcf   : > { %v3278_v5 = vmul.f32 0.35355338, %v3262_v41  ;;  %v3289_v49 = vsel %vm2334_vm3, %v3282_v34, -inf }
 0xbd0   : > { %3290 = vmax.xlane.f32.xlu1 %v3289_v49  ;;  %v6124_v42 = vpop.f32.mrf.mxu1 }
 0xbd1   : > { %v3283_v17 = vadd.f32 %v6892_v11, %v3278_v5 }
 0xbd2   : > { %v3265_v26 = vpop.f32.mrf.mxu1 }
 0xbd3   : > { %v3279_v13 = vmul.f32 0.35355338, %v3265_v26  ;;  %v3292_v32 = vsel %vm2334_vm3, %v3283_v17, -inf }
 0xbd4   : > { %3293 = vmax.xlane.f32.xlu0 %v3292_v32  ;;  %v6125_v46 = vpop.f32.mrf.mxu1 }
 0xbd5   : > { %v3284_v0 = vadd.f32 %v6892_v11, %v3279_v13 }
 0xbd6   : > { %v3270_v3 = vpop.f32.mrf.mxu1 }
 0xbd7   : > { %v3295_v58 = vsel %vm2334_vm3, %v3284_v0, -inf  ;;  %v3280_v44 = vmul.f32 0.35355338, %v3270_v3 }
 0xbd8   : > { %3296 = vmax.xlane.f32.xlu1 %v3295_v58  ;;  %v6128_v60 = vpop.f32.mrf.mxu1  ;;  %v6639_v58 = vld [vmem:[#allocation6 + $0xf8] sm:$0xff]  }
 0xbd9   : > { %v3285_v31 = vadd.f32 %v6892_v11, %v3280_v44  ;;  %6149 = vmatpush3.bf16.msra.mxu0 %v6639_v58  ;;  %v6640_v60 = vld [vmem:[#allocation6 + $0xf0] sm:$0xff]  }
 0xbda   : > { %v3273_v62 = vpop.f32.mrf.mxu1  ;;  %6150 = vmatprep.subr.bf16.mxu0 %v9456_v54 }
 0xbdb   : > { %v3298_v38 = vsel %vm2334_vm3, %v3285_v31, -inf  ;;  %v6641_v62 = vld [vmem:[#allocation6 + $0xe8] sm:$0xff]  }
 0xbdc   : > { %v6129_v16 = vpop.f32.mrf.mxu1 }
 0xbdd   : > { %6151 = vmatpush3.bf16.msra.mxu0 %v6640_v60  ;;  %v6642_v16 = vld [vmem:[#allocation6 + $0xe0] sm:$0xff]  }
 0xbde   : > { %6152 = vmatprep.subr.bf16.mxu0 %v9456_v54 }
 0xbe1   : > { %6153 = vmatpush3.bf16.msra.mxu0 %v6641_v62 }
 0xbe2   : > { %6154 = vmatprep.subr.bf16.mxu0 %v9456_v54 }
 0xbe5   : > { %6155 = vmatpush3.bf16.msra.mxu0 %v6642_v16 }
 0xbe6   : > { %6156 = vmatprep.subr.bf16.mxu0 %v9456_v54 }
 0xc55   : > { %v3288_v61 = vpop.xlane.xlu0 %3287 }
 0xc56   : > { %v3301_v29 = vsub.f32 %v3281_v57, %v3288_v61  ;;  %v6643_v61 = vld [vmem:[#allocation6 + $0xd8] sm:$0xff]  }
 0xc57   : > { %6157 = vmatpush3.bf16.msra.mxu0 %v6643_v61 }
 0xc58   : > { %v3306_v9 = vmul.f32 1.442695, %v3301_v29  ;;  %v6644_v29 = vld [vmem:[#allocation6 + $0xd0] sm:$0xff]   ;;  %6158 = vmatprep.subr.bf16.mxu0 %v9456_v54 }
 0xc59   : > { %v3291_v24 = vpop.xlane.xlu1 %3290 }
 0xc5a   : > { %6787 = vpow2.f32 %v3306_v9  ;;  %v3302_v19 = vsub.f32 %v3282_v34, %v3291_v24  ;;  %v6645_v9 = vld [vmem:[#allocation6 + $0xc8] sm:$0xff]   ;;  %v6646_v24 = vld [vmem:[#allocation6 + $0xc0] sm:$0xff]  }
 0xc5b   : > { %6159 = vmatpush3.bf16.msra.mxu0 %v6644_v29 }
 0xc5c   : > { %v3308_v22 = vmul.f32 1.442695, %v3302_v19  ;;  %6160 = vmatprep.subr.bf16.mxu0 %v9456_v54 }
 0xc5d   : > { %v3294_v10 = vpop.xlane.xlu0 %3293 }
 0xc5e   : > { %6789 = vpow2.f32 %v3308_v22  ;;  %v3303_v52 = vsub.f32 %v3283_v17, %v3294_v10 }
 0xc5f   : > { %6161 = vmatpush3.bf16.msra.mxu0 %v6645_v9 }
 0xc60   : > { %v3310_v33 = vmul.f32 1.442695, %v3303_v52  ;;  %6162 = vmatprep.subr.bf16.mxu0 %v9456_v54 }
 0xc61   : > { %v3297_v21 = vpop.xlane.xlu1 %3296 }
 0xc62   : > { %6791 = vpow2.f32 %v3310_v33  ;;  %v3304_v36 = vsub.f32 %v3284_v0, %v3297_v21 }
 0xc63   : > { %6163 = vmatpush3.bf16.msra.mxu0 %v6646_v24 }
 0xc64   : > { %v3312_v51 = vmul.f32 1.442695, %v3304_v36  ;;  %6204 = vmatprep.subr.bf16.mxu0 %v9456_v54 }
 0xc66   : > { %6793 = vpow2.f32 %v3312_v51 }
 0xc67   : > { %v6788_v20 = vpop.eup %6787 }
 0xc68   : > { %v3316_v28 = vsel %vm2334_vm3, %v6788_v20, 0.0 }
 0xc69   : > { %3317 = vadd.xlane.f32.xlu0 %v3316_v28 }
 0xc6b   : > { %v6790_v50 = vpop.eup %6789 }
 0xc6c   : > { %v3319_v8 = vsel %vm2334_vm3, %v6790_v50, 0.0 }
 0xc6d   : > { %3320 = vadd.xlane.f32.xlu1 %v3319_v8 }
 0xc6f   : > { %v6792_v59 = vpop.eup %6791 }
 0xc70   : > { %v3322_v40 = vsel %vm2334_vm3, %v6792_v59, 0.0 }
 0xc71   : > { %3323 = vadd.xlane.f32.xlu0 %v3322_v40 }
 0xc73   : > { %v6794_v18 = vpop.eup %6793 }
 0xc74   : > { %v3325_v7 = vsel %vm2334_vm3, %v6794_v18, 0.0 }
 0xc75   : > { %3326 = vadd.xlane.f32.xlu1 %v3325_v7  ;;  %3299 = vmax.xlane.f32.xlu0 %v3298_v38  ;;  %v3193_v23 = vpop.f32.mrf.mxu0 }
 0xc76   : > { %v8380_v15 = vadd.f32 %v3193_v23, %v8288_v63 }
 0xc77   : > { %v6102_v25 = vpop.f32.mrf.mxu0 }
 0xc79   : > { %v3196_v53 = vpop.f32.mrf.mxu0 }
 0xc7a   : > { %v8383_v4 = vadd.f32 %v3196_v53, %v8290_v43 }
 0xc7b   : > { %v6103_v1 = vpop.f32.mrf.mxu0 }
 0xc7c   : > { %v5592_v1 = vld [vmem:[#allocation16 + $0x5] ss:$0 sm:$0xff] }
 0xc7d   : > { %v3201_v6 = vpop.f32.mrf.mxu0 }
 0xc7e   : > { %v8386_v55 = vadd.f32 %v3201_v6, %v8292_v14  ;;  %v9485_v6 = vld [vmem:[#allocation29_spill] sm:$0xff] }
 0xc7f   : > { %v6106_v30 = vpop.f32.mrf.mxu0 }
 0xc81   : > { %v3204_v37 = vpop.f32.mrf.mxu0 }
 0xc82   : > { %v8389_v47 = vadd.f32 %v3204_v37, %v8294_v45 }
 0xc83   : > { %v6107_v27 = vpop.f32.mrf.mxu0 }
 0xc85   : > { %v3209_v48 = vpop.f32.mrf.mxu0 }
 0xc86   : > { %v8392_v63 = vadd.f32 %v3209_v48, %v8296_v35 }
 0xc87   : > { %v6110_v11 = vpop.f32.mrf.mxu0 }
 0xc89   : > { %v3212_v57 = vpop.f32.mrf.mxu0 }
 0xc8a   : > { %v9487_v57 = vld [vmem:[#allocation30_spill] sm:$0xff] }
 0xc8b   : > { %v6111_v2 = vpop.f32.mrf.mxu0 }
 0xcf2   : > { %v3318_v43 = vpop.xlane.xlu0 %3317 }
 0xcf3   : > { %6795 = vrcp.f32 %v3318_v43 }
 0xcf6   : > { %v3321_v56 = vpop.xlane.xlu1 %3320 }
 0xcf7   : > { %6797 = vrcp.f32 %v3321_v56 }
 0xcfa   : > { %v3324_v12 = vpop.xlane.xlu0 %3323 }
 0xcfb   : > { %6799 = vrcp.f32 %v3324_v12 }
 0xcfe   : > { %v3327_v14 = vpop.xlane.xlu1 %3326  ;;  %v3300_v39 = vpop.xlane.xlu0 %3299 }
 0xcff   : > { %6801 = vrcp.f32 %v3327_v14  ;;  %v3305_v34 = vsub.f32 %v3285_v31, %v3300_v39  ;;  %v9489_v14 = vld [vmem:[#allocation31_spill] sm:$0xff] }
 0xd00   : > { %v6796_v41 = vpop.eup %6795 }
 0xd01   : > { %v3314_v45 = vmul.f32 1.442695, %v3305_v34  ;;  %v3332_v49 = vmul.f32 %v6796_v41, %v6788_v20 }
 0xd03   : > { %6803 = vpow2.f32 %v3314_v45 }
 0xd04   : > { %v6798_v5 = vpop.eup %6797 }
 0xd05   : > { %v3334_v35 = vmul.f32 %v6798_v5, %v6790_v50  ;;  %v9491_v5 = vld [vmem:[#allocation32_spill] sm:$0xff] }
 0xd07   : > { %v3341_v42 = vpack.c.bf16 %v3334_v35, %v3332_v49 }
 0xd08   : > { %v6800_v17 = vpop.eup %6799 }
 0xd09   : > { %6137 = vmatmul.mubr.msk.bf16.vlgmr.msra.gmra.mxu1 %vm2334_vm3, %v3341_v42  ;;  %v3336_v13 = vmul.f32 %v6800_v17, %v6792_v59  ;;  %v6648_v42 = vld [vmem:[#allocation9 + $0x38] sm:$0xff]  }
 0xd0a   : > { %6140 = vmatprep.mubr.msk.bf16.mxu1 %vm7262_vm1, %v9456_v54 }
 0xd0c   : > { %v6802_v26 = vpop.eup %6801 }
 0xd0d   : > { %v3338_v32 = vmul.f32 %v6802_v26, %v6794_v18 }
 0xd0f   : > { %v3342_v46 = vpack.c.bf16 %v3338_v32, %v3336_v13 }
 0xd10   : > { %v6804_v0 = vpop.eup %6803 }
 0xd11   : > { %6141 = vmatmul.mubr.msk.bf16.gmra.mxu1 %vm2334_vm3, %v3342_v46  ;;  %v3328_v3 = vsel %vm2334_vm3, %v6804_v0, 0.0  ;;  %v9493_v46 = vld [vmem:[#allocation28_spill] sm:$0xff] }
 0xd12   : > { %3329 = vadd.xlane.f32.xlu1 %v3328_v3  ;;  %6144 = vmatprep.mubr.msk.bf16.mxu1 %vm7262_vm1, %v9456_v54 }
 0xd9b   : > { %v3330_v19 = vpop.xlane.xlu1 %3329 }
 0xd9c   : > { %6805 = vrcp.f32 %v3330_v19 }
 0xda9   : > { %v6806_v22 = vpop.eup %6805 }
 0xdaa   : > { %v3340_v10 = vmul.f32 %v6806_v22, %v6804_v0 }
 0xdac   : > { %v3343_v52 = vpack.c.bf16 %v3340_v10, %v3340_v10 }
 0xdae   : > { %6145 = vmatmul.mubr.msk.bf16.gmra.mxu1 %vm2334_vm3, %v3343_v52 }
 0xdaf   : > { %6192 = vmatprep.mubr.msk.bf16.mxu1 %vm7262_vm1, %v9456_v54 }
 0xdc9   : > { %v3390_v33 = vpop.f32.mrf.mxu1 }
 0xdcb   : > { %v6138_v21 = vpop.f32.mrf.mxu1 }
 0xdcd   : > { %v3393_v36 = vpop.f32.mrf.mxu1 }
 0xdce   : > { %v3412_v51 = vpack.c.bf16 %v3393_v36, %v3390_v33 }
 0xdcf   : > { %v6139_v20 = vpop.f32.mrf.mxu1 }
 0xdd0   : > { %6165 = vmatmul.mubr.bf16.vlgmr.msra.gmra.mxu0 %v3412_v51  ;;  %v9494_v20 = vld [vmem:[#allocation33_spill] sm:$0xff] }
 0xdd1   : > { %v3398_v28 = vpop.f32.mrf.mxu1  ;;  %6168 = vmatprep.mubr.msk.bf16.mxu0 %vm7262_vm1, %v9456_v54  ;;  %6205 = vmatpush3.bf16.msra.mxu0 %v6648_v42 }
 0xdd2   : > { %6206 = vmatprep.subr.bf16.mxu0 %v9456_v54 }
 0xdd3   : > { %v6142_v50 = vpop.f32.mrf.mxu1 }
 0xdd5   : > { %v3401_v44 = vpop.f32.mrf.mxu1 }
 0xdd6   : > { %v3413_v8 = vpack.c.bf16 %v3401_v44, %v3398_v28  ;;  %v6649_v44 = vld [vmem:[#allocation7 + $0x30] sm:$0xff]  }
 0xdd7   : > { %v6143_v59 = vpop.f32.mrf.mxu1 }
 0xdd8   : > { %6169 = vmatmul.mubr.bf16.gmra.mxu0 %v3413_v8  ;;  %v6650_v8 = vld [vmem:[#allocation9 + $0x30] sm:$0xff]  }
 0xdd9   : > { %6172 = vmatprep.mubr.msk.bf16.mxu0 %vm7262_vm1, %v9456_v54  ;;  %6207 = vmatpush3.bf16.msra.mxu0 %v6650_v8 }
 0xdda   : > { %6208 = vmatprep.subr.bf16.mxu0 %v9456_v54 }
 0xe6e   : > { %v3406_v40 = vpop.f32.mrf.mxu1 }
 0xe6f   : > { %v3414_v31 = vpack.c.bf16 %v3406_v40, %v3406_v40 }
 0xe70   : > { %v6146_v18 = vpop.f32.mrf.mxu1 }
 0xe71   : > { %6173 = vmatmul.mubr.bf16.gmra.mxu0 %v3414_v31  ;;  %v6652_v31 = vld [vmem:[#allocation9 + $0x28] sm:$0xff]   ;;  %v6653_v18 = vld [vmem:[#allocation7 + $0x20] sm:$0xff]  }
 0xe72   : > { %v3409_v7 = vpop.f32.mrf.mxu1  ;;  %6220 = vmatprep.mubr.msk.bf16.mxu0 %vm7262_vm1, %v9456_v54  ;;  %6209 = vmatpush3.bf16.msra.mxu0 %v6652_v31 }
 0xe73   : > { %6210 = vmatprep.subr.bf16.mxu0 %v9456_v54  ;;  %v6654_v7 = vld [vmem:[#allocation9 + $0x20] sm:$0xff]  }
 0xe74   : > { %v6147_v38 = vpop.f32.mrf.mxu1 }
 0xe75   : > { %v6655_v38 = vld [vmem:[#allocation7 + $0x18] sm:$0xff]  }
 0xe76   : > { %6211 = vmatpush3.bf16.msra.mxu0 %v6654_v7 }
 0xe77   : > { %6212 = vmatprep.subr.bf16.mxu0 %v9456_v54 }
 0xe90   : > { %v3513_v23 = vpop.f32.mrf.mxu0 }
 0xe91   : > { %v3535_v25 = vadd.f32 %v3513_v23, %v8380_v15  ;;  %v6656_v23 = vld [vmem:[#allocation9 + $0x18] sm:$0xff]  }
 0xe92   : > { %v6166_v53 = vpop.f32.mrf.mxu0  ;;  %6213 = vmatpush3.bf16.msra.mxu0 %v6656_v23 }
 0xe93   : > { %v3540_v30 = vadd.f32 %v3535_v25, %v9485_v6  ;;  %6214 = vmatprep.subr.bf16.mxu0 %v9456_v54  ;;  %v6657_v25 = vld [vmem:[#allocation7 + $0x10] sm:$0xff]   ;;  %v6660_v6 = vld [vmem:[#allocation9 + $0x8] sm:$0xff]  }
 0xe94   : > { %v3516_v37 = vpop.f32.mrf.mxu0  ;;  %v6658_v53 = vld [vmem:[#allocation9 + $0x10] sm:$0xff]  }
 0xe95   : > { %v3536_v27 = vadd.f32 %v3516_v37, %v8383_v4  ;;  %v8421_v48 = vadd.f32 %v5592_v1, %v3540_v30  ;;  %v6661_v30 = vld [vmem:[#allocation7] sm:$0xff]  }
 0xe96   : > { %v6167_v11 = vpop.f32.mrf.mxu0  ;;  %6215 = vmatpush3.bf16.msra.mxu0 %v6658_v53  ;;  %v6662_v37 = vld [vmem:[#allocation9] sm:$0xff]  }
 0xe97   : > { %9486 = vst [vmem:[#allocation43_spill] sm:$0xff] %v8421_v48  ;;  %v3541_v2 = vadd.f32 %v3536_v27, %v9487_v57  ;;  %3557 = vadd.xlane.f32.xlu0 %v8421_v48  ;;  %6216 = vmatprep.subr.bf16.mxu0 %v9456_v54 }
 0xe98   : > { %v3521_v43 = vpop.f32.mrf.mxu0 }
 0xe99   : > { %v3537_v56 = vadd.f32 %v3521_v43, %v8386_v55  ;;  %v8426_v12 = vadd.f32 %v5592_v1, %v3541_v2  ;;  %v6647_v55 = vld [vmem:[#allocation7 + $0x38] sm:$0xff]  }
 0xe9a   : > { %v6170_v15 = vpop.f32.mrf.mxu0  ;;  %6177 = vmatpush3.bf16.msra.mxu1 %v6647_v55  ;;  %6217 = vmatpush3.bf16.msra.mxu0 %v6660_v6  ;;  %v5593_v55 = vld [vmem:[#allocation16 + $0x6] ss:$0 sm:$0xff] }
 0xe9b   : > { %9488 = vst [vmem:[#allocation40_spill] sm:$0xff] %v8426_v12  ;;  %v3542_v39 = vadd.f32 %v3537_v56, %v9489_v14  ;;  %3559 = vadd.xlane.f32.xlu1 %v8426_v12  ;;  %6178 = vmatprep.subr.bf16.mxu1 %v9456_v54 }
 0xe9c   : > { %v3524_v34 = vpop.f32.mrf.mxu0  ;;  %6218 = vmatprep.subr.bf16.mxu0 %v9456_v54 }
 0xe9d   : > { %v3538_v4 = vadd.f32 %v3524_v34, %v8389_v47  ;;  %v8431_v45 = vadd.f32 %v5592_v1, %v3542_v39 }
 0xe9e   : > { %v6171_v41 = vpop.f32.mrf.mxu0  ;;  %6179 = vmatpush3.bf16.msra.mxu1 %v6649_v44  ;;  %6219 = vmatpush3.bf16.msra.mxu0 %v6662_v37 }
 0xe9f   : > { %9490 = vst [vmem:[#allocation42_spill] sm:$0xff] %v8431_v45  ;;  %v3543_v49 = vadd.f32 %v3538_v4, %v9491_v5  ;;  %3561 = vadd.xlane.f32.xlu0 %v8431_v45  ;;  %6180 = vmatprep.subr.bf16.mxu1 %v9456_v54 }
 0xea0   : > { %6260 = vmatprep.subr.bf16.mxu0 %v9456_v54 }
 0xea1   : > { %v8435_v35 = vadd.f32 %v5592_v1, %v3543_v49 }
 0xea3   : > { %9492 = vst [vmem:[#allocation41_spill] sm:$0xff] %v8435_v35  ;;  %3563 = vadd.xlane.f32.xlu1 %v8435_v35 }
 0xf20   : > { %v3558_v47 = vpop.xlane.xlu0 %3557 }
 0xf21   : > { %v3567_v17 = vmul.f32 0.03125, %v3558_v47 }
 0xf23   : > { %v3572_v26 = vsub.f32 %v8421_v48, %v3567_v17 }
 0xf24   : > { %v3560_v13 = vpop.xlane.xlu1 %3559 }
 0xf25   : > { %v3568_v32 = vmul.f32 0.03125, %v3560_v13  ;;  %v8442_v0 = vmul.f32 %v9493_v46, %v3572_v26  ;;  %v5594_v26 = vld [vmem:[#allocation16 + $0x7] ss:$0 sm:$0xff] }
 0xf27   : > { %v3573_v3 = vsub.f32 %v8426_v12, %v3568_v32  ;;  %v3582_v58 = vmul.f32 %v8442_v0, %v8442_v0 }
 0xf28   : > { %v3562_v60 = vpop.xlane.xlu0 %3561 }
 0xf29   : > { %v3569_v62 = vmul.f32 0.03125, %v3562_v60  ;;  %3587 = vadd.xlane.f32.xlu0 %v3582_v58  ;;  %v8448_v16 = vmul.f32 %v9493_v46, %v3573_v3 }
 0xf2b   : > { %v3574_v61 = vsub.f32 %v8431_v45, %v3569_v62  ;;  %v3583_v29 = vmul.f32 %v8448_v16, %v8448_v16 }
 0xf2c   : > { %v3564_v9 = vpop.xlane.xlu1 %3563 }
 0xf2d   : > { %v3570_v24 = vmul.f32 0.03125, %v3564_v9  ;;  %3589 = vadd.xlane.f32.xlu1 %v3583_v29  ;;  %v8454_v19 = vmul.f32 %v9493_v46, %v3574_v61 }
 0xf2f   : > { %v3575_v22 = vsub.f32 %v8435_v35, %v3570_v24  ;;  %v3584_v10 = vmul.f32 %v8454_v19, %v8454_v19 }
 0xf31   : > { %3591 = vadd.xlane.f32.xlu0 %v3584_v10  ;;  %v3529_v52 = vpop.f32.mrf.mxu0  ;;  %v8460_v33 = vmul.f32 %v9493_v46, %v3575_v22 }
 0xf32   : > { %v3539_v21 = vadd.f32 %v3529_v52, %v8392_v63  ;;  %v6651_v63 = vld [vmem:[#allocation7 + $0x28] sm:$0xff]  }
 0xf33   : > { %v6174_v36 = vpop.f32.mrf.mxu0  ;;  %v3585_v51 = vmul.f32 %v8460_v33, %v8460_v33  ;;  %6181 = vmatpush3.bf16.msra.mxu1 %v6651_v63 }
 0xf34   : > { %v3544_v28 = vadd.f32 %v3539_v21, %v9494_v20  ;;  %6182 = vmatprep.subr.bf16.mxu1 %v9456_v54 }
 0xf35   : > { %3593 = vadd.xlane.f32.xlu1 %v3585_v51  ;;  %v3532_v50 = vpop.f32.mrf.mxu0 }
 0xf36   : > { %v8466_v59 = vadd.f32 %v5592_v1, %v3544_v28  ;;  %v6659_v1 = vld [vmem:[#allocation7 + $0x8] sm:$0xff]  }
 0xf37   : > { %v6175_v40 = vpop.f32.mrf.mxu0  ;;  %6183 = vmatpush3.bf16.msra.mxu1 %v6653_v18 }
 0xf38   : > { %9495 = vst [vmem:[#allocation36_spill] sm:$0xff] %v8466_v59  ;;  %3565 = vadd.xlane.f32.xlu0 %v8466_v59  ;;  %6184 = vmatprep.subr.bf16.mxu1 %v9456_v54 }
 0xf3b   : > { %6185 = vmatpush3.bf16.msra.mxu1 %v6655_v38 }
 0xf3c   : > { %4501 = vadd.xlane.f32.xlu0 %v9456_v54  ;;  %6186 = vmatprep.subr.bf16.mxu1 %v9456_v54 }
 0xf3f   : > { %6187 = vmatpush3.bf16.msra.mxu1 %v6657_v25 }
 0xf40   : > { %6188 = vmatprep.subr.bf16.mxu1 %v9456_v54 }
 0xf43   : > { %6189 = vmatpush3.bf16.msra.mxu1 %v6659_v1 }
 0xf44   : > { %6190 = vmatprep.subr.bf16.mxu1 %v9456_v54 }
 0xf47   : > { %6191 = vmatpush3.bf16.msra.mxu1 %v6661_v30 }
 0xf48   : > { %6232 = vmatprep.subr.bf16.mxu1 %v9456_v54 }
 0xfb2   : > { %v3588_v27 = vpop.xlane.xlu0 %3587 }
 0xfb3   : > { %v3597_v11 = vmul.f32 0.03125, %v3588_v27 }
 0xfb5   : > { %v3602_v57 = vadd.f32 1e-05, %v3597_v11 }
 0xfb6   : > { %v3590_v2 = vpop.xlane.xlu1 %3589 }
 0xfb7   : > { %6807 = vrsqrt.f32 %v3602_v57  ;;  %v3598_v43 = vmul.f32 0.03125, %v3590_v2  ;;  %v8498_v57 = vld [vmem:[#allocation16 + $0x8] ss:$0 sm:$0xff]  ;;  %v8501_v2 = vrot.slane %v9456_v54, 1 }
 0xfb9   : > { %v3603_v56 = vadd.f32 1e-05, %v3598_v43  ;;  %v8503_v43 = vld [vmem:[#allocation10] ss:$0 sm:$0xff] }
 0xfba   : > { %v3592_v15 = vpop.xlane.xlu0 %3591 }
 0xfbb   : > { %6809 = vrsqrt.f32 %v3603_v56  ;;  %v3599_v14 = vmul.f32 0.03125, %v3592_v15  ;;  %v8506_v56 = vrot.slane %v9456_v54, 2 }
 0xfbd   : > { %v3604_v39 = vadd.f32 1e-05, %v3599_v14  ;;  %9496 = vst [vmem:[#allocation35_spill] sm:$0xff] %v8506_v56 }
 0xfbe   : > { %v3594_v34 = vpop.xlane.xlu1 %3593 }
 0xfbf   : > { %6811 = vrsqrt.f32 %v3604_v39  ;;  %v3600_v4 = vmul.f32 0.03125, %v3594_v34  ;;  %v8509_v39 = vld [vmem:[#allocation10 + $0x1] ss:$0 sm:$0xff] }
 0xfc1   : > { %v3605_v41 = vadd.f32 1e-05, %v3600_v4  ;;  %v8511_v4 = vld [vmem:[#allocation10 + $0xf] ss:$0 sm:$0xff] }
 0xfc3   : > { %6813 = vrsqrt.f32 %v3605_v41 }
 0xfc4   : > { %v6808_v5 = vpop.eup %6807 }
 0xfc5   : > { %v3612_v49 = vmul.f32 %v6808_v5, %v8442_v0  ;;  %v3969_v5 = vmul.f32 %v8503_v43, %v8501_v2 }
 0xfc7   : > { %v3621_v47 = vmul.f32 %v5593_v55, %v3612_v49 }
 0xfc8   : > { %v6810_v42 = vpop.eup %6809 }
 0xfc9   : > { %v3613_v17 = vmul.f32 %v6810_v42, %v8448_v16  ;;  %v3630_v3 = vadd.f32 %v5594_v26, %v3621_v47  ;;  %v3995_v42 = vmul.f32 %v8509_v39, %v8506_v56 }
 0xfcb   : > { %v3622_v13 = vmul.f32 %v5593_v55, %v3613_v17 }
 0xfcc   : > { %v6812_v32 = vpop.eup %6811 }
 0xfcd   : > { %v3631_v58 = vadd.f32 %v5594_v26, %v3622_v13  ;;  %v3614_v60 = vmul.f32 %v6812_v32, %v8454_v19  ;;  %v5604_v19 = vld [vmem:[#allocation16 + $0x9] ss:$0 sm:$0xff]  ;;  %v8526_v32 = vld [vmem:[#allocation10 + $0x2] ss:$0 sm:$0xff] }
 0xfcf   : > { %v3635_v62 = vpack.c.bf16 %v3631_v58, %v3630_v3  ;;  %v3623_v9 = vmul.f32 %v5593_v55, %v3614_v60  ;;  %v8530_v60 = vrot.slane %v9456_v54, 3 }
 0xfd0   : > { %v6814_v61 = vpop.eup %6813 }
 0xfd1   : > { %6193 = vmatmul.mubr.bf16.vlgmr.msra.gmra.mxu1 %v3635_v62  ;;  %6221 = vmatmul.mubr.bf16.vlgmr.msra.gmra.mxu0 %v3635_v62  ;;  %v3615_v29 = vmul.f32 %v6814_v61, %v8460_v33  ;;  %v3632_v16 = vadd.f32 %v5594_v26, %v3623_v9  ;;  %v8543_v9 = vrot.slane %v9456_v54, 4 }
 0xfd2   : > { %6196 = vmatprep.mubr.msk.bf16.mxu1 %vm7262_vm1, %v9456_v54  ;;  %6224 = vmatprep.mubr.msk.bf16.mxu0 %vm7262_vm1, %v9456_v54 }
 0xfd3   : > { %v3624_v0 = vmul.f32 %v5593_v55, %v3615_v29  ;;  %v9498_v55 = vld [vmem:[#allocation34_spill] sm:$0xff] }
 0xfd4   : > { %vm3958_vm4 = vcmp.lt.s32.totalorder %v9498_v55, 7  ;;  %vm3984_vm5 = vcmp.lt.s32.totalorder %v9498_v55, 6  ;;  %vm4010_vm6 = vcmp.lt.s32.totalorder %v9498_v55, 5  ;;  %vm4036_vm7 = vcmp.lt.s32.totalorder %v9498_v55, 4 }
 0xfd5   : > { %v3633_v24 = vadd.f32 %v5594_v26, %v3624_v0  ;;  %vm4062_vm8 = vcmp.lt.s32.totalorder %v9498_v55, 3  ;;  %vm4088_vm9 = vcmp.lt.s32.totalorder %v9498_v55, 2  ;;  %vm4114_vm10 = vcmp.lt.s32.totalorder %v9498_v55, 1 }
 0xfd7   : > { %v3636_v22 = vpack.c.bf16 %v3633_v24, %v3632_v16  ;;  %v4021_v24 = vmul.f32 %v8526_v32, %v8530_v60 }
 0xfd9   : > { %6197 = vmatmul.mubr.bf16.gmra.mxu1 %v3636_v22  ;;  %6225 = vmatmul.mubr.bf16.gmra.mxu0 %v3636_v22 }
 0xfda   : > { %6200 = vmatprep.mubr.msk.bf16.mxu1 %vm7262_vm1, %v9456_v54  ;;  %6228 = vmatprep.mubr.msk.bf16.mxu0 %vm7262_vm1, %v9456_v54 }
0x1091   : > { %v3741_v10 = vpop.f32.mrf.mxu1  ;;  %v3866_v52 = vpop.f32.mrf.mxu0 }
0x1092   : > { %v3867_v33 = vadd.f32 %v5604_v19, %v3866_v52  ;;  %v3742_v14 = vadd.f32 %v8498_v57, %v3741_v10 }
0x1093   : > { %v6194_v21 = vpop.f32.mrf.mxu1  ;;  %v6222_v36 = vpop.f32.mrf.mxu0 }
0x1094   : > { %v5613_v51 = vmul.f32 -1.442695, %v3867_v33  ;;  %v8567_v33 = vld [vmem:[#allocation10 + $0x3] ss:$0 sm:$0xff] }
0x1095   : > { %v3744_v20 = vpop.f32.mrf.mxu1  ;;  %v3869_v28 = vpop.f32.mrf.mxu0 }
0x1096   : > { %6815 = vpow2.f32 %v5613_v51  ;;  %v3870_v50 = vadd.f32 %v5604_v19, %v3869_v28  ;;  %v3745_v49 = vadd.f32 %v8498_v57, %v3744_v20  ;;  %v4047_v51 = vmul.f32 %v8567_v33, %v8543_v9 }
0x1097   : > { %v6195_v44 = vpop.f32.mrf.mxu1  ;;  %v6223_v8 = vpop.f32.mrf.mxu0 }
0x1098   : > { %v5614_v40 = vmul.f32 -1.442695, %v3870_v50  ;;  %v8583_v8 = vrot.slane %v9456_v54, 5 }
0x1099   : > { %v8496_v63 = vpop.f32.mrf.mxu1  ;;  %v3874_v31 = vpop.f32.mrf.mxu0 }
0x109a   : > { %6817 = vpow2.f32 %v5614_v40  ;;  %v3875_v38 = vadd.f32 %v5604_v19, %v3874_v31  ;;  %v8587_v31 = vld [vmem:[#allocation10 + $0x4] ss:$0 sm:$0xff] }
0x109b   : > { %v6198_v18 = vpop.f32.mrf.mxu1  ;;  %v6226_v7 = vpop.f32.mrf.mxu0  ;;  %9503 = vst [vmem:[#allocation29_spill] sm:$0xff] %v8587_v31 }
0x109c   : > { %v5615_v6 = vmul.f32 -1.442695, %v3875_v38 }
0x109d   : > { %v3752_v23 = vpop.f32.mrf.mxu1  ;;  %v3877_v25 = vpop.f32.mrf.mxu0 }
0x109e   : > { %6819 = vpow2.f32 %v5615_v6  ;;  %v4073_v23 = vmul.f32 %v8587_v31, %v8583_v8  ;;  %v8598_v6 = vld [vmem:[#allocation10 + $0x5] ss:$0 sm:$0xff] }
0x109f   : > { %v6199_v53 = vpop.f32.mrf.mxu1  ;;  %v6227_v1 = vpop.f32.mrf.mxu0  ;;  %9505 = vst [vmem:[#allocation31_spill] sm:$0xff] %v8598_v6 }
0x10a0   : > { %v8595_v53 = vrot.slane %v9456_v54, 6 }
0x10a2   : > { %9504 = vst [vmem:[#allocation30_spill] sm:$0xff] %v8595_v53 }
0x10a3   : > { %v6816_v30 = vpop.eup %6815 }
0x10a4   : > { %v3903_v37 = vadd.f32 1.0, %v6816_v30 }
0x10a6   : > { %6821 = vrcp.f32 %v3903_v37  ;;  %v4099_v37 = vmul.f32 %v8598_v6, %v8595_v53 }
0x10a7   : > { %v6818_v27 = vpop.eup %6817 }
0x10a8   : > { %v3904_v11 = vadd.f32 1.0, %v6818_v27  ;;  %v8610_v27 = vrot.slane %v9456_v54, 7 }
0x10aa   : > { %6823 = vrcp.f32 %v3904_v11  ;;  %9507 = vst [vmem:[#allocation33_spill] sm:$0xff] %v8610_v27 }
0x10ab   : > { %v6820_v15 = vpop.eup %6819 }
0x10ac   : > { %v3905_v47 = vadd.f32 1.0, %v6820_v15 }
0x10ae   : > { %6825 = vrcp.f32 %v3905_v47 }
0x10b3   : > { %v6822_v34 = vpop.eup %6821 }
0x10b4   : > { %v8513_v41 = vmul.f32 %v6822_v34, %v3742_v14  ;;  %v8615_v34 = vld [vmem:[#allocation10 + $0x6] ss:$0 sm:$0xff] }
0x10b5   : > { %9508 = vst [vmem:[#allocation34_spill] sm:$0xff] %v8615_v34 }
0x10b6   : > { %9497 = vst [vmem:[#allocation38_spill] sm:$0xff] %v8513_v41  ;;  %v3948_v17 = vmul.f32 %v8511_v4, %v8513_v41  ;;  %v3953_v26 = vrot.slane %v8513_v41, 1  ;;  %v3979_v13 = vrot.slane %v8513_v41, 2  ;;  %v4005_v58 = vrot.slane %v8513_v41, 3 }
0x10b7   : > { %v6824_v3 = vpop.eup %6823  ;;  %v4031_v22 = vrot.slane %v8513_v41, 4  ;;  %v9371_v40 = vrot.slane %v8513_v41, 5  ;;  %v9370_v25 = vrot.slane %v8513_v41, 6  ;;  %v9368_v14 = vrot.slane %v8513_v41, 7 }
0x10b8   : > { %v8533_v62 = vmul.f32 %v6824_v3, %v3745_v49  ;;  %v8540_v61 = vsel %vm3958_vm4, %v8501_v2, %v3953_v26  ;;  %v3974_v29 = vadd.f32 %v3969_v5, %v3948_v17  ;;  %v8552_v16 = vsel %vm3984_vm5, %v8506_v56, %v3979_v13 }
0x10b9   : > { %9499 = vst [vmem:[#allocation37_spill] sm:$0xff] %v8540_v61  ;;  %v3970_v0 = vmul.f32 %v8503_v43, %v8540_v61  ;;  %9500 = vst [vmem:[#allocation45_spill] sm:$0xff] %v8552_v16  ;;  %v8565_v52 = vsel %vm4010_vm6, %v8530_v60, %v4005_v58  ;;  %v3996_v36 = vmul.f32 %v8509_v39, %v8552_v16  ;;  %v9522_v59 = vrot.slane %v8513_v41, 6 }
0x10ba   : > { %v3949_v19 = vmul.f32 %v8511_v4, %v8533_v62  ;;  %v4000_v10 = vadd.f32 %v3995_v42, %v3974_v29  ;;  %9501 = vst [vmem:[#allocation44_spill] sm:$0xff] %v8565_v52  ;;  %v8578_v28 = vsel %vm4036_vm7, %v8543_v9, %v4031_v22  ;;  %v4022_v44 = vmul.f32 %v8526_v32, %v8565_v52  ;;  %v8633_v29 = vld [vmem:[#allocation10 + $0x7] ss:$0 sm:$0xff] }
0x10bb   : > { %9502 = vst [vmem:[#allocation39_spill] sm:$0xff] %v8578_v28  ;;  %v4048_v7 = vmul.f32 %v8567_v33, %v8578_v28  ;;  %v8605_v30 = vsel %vm4062_vm8, %v8583_v8, %v9371_v40  ;;  %v8622_v5 = vsel %vm4088_vm9, %v8595_v53, %v9370_v25  ;;  %v4125_v49 = vmul.f32 %v8615_v34, %v8610_v27 }
0x10bc   : > { %v3975_v21 = vadd.f32 %v3970_v0, %v3949_v19  ;;  %v4026_v20 = vadd.f32 %v4021_v24, %v4000_v10  ;;  %9506 = vst [vmem:[#allocation32_spill] sm:$0xff] %v8605_v30  ;;  %v4074_v11 = vmul.f32 %v8587_v31, %v8605_v30  ;;  %9509 = vst [vmem:[#allocation46_spill] sm:$0xff] %v8622_v5  ;;  %v8628_v42 = vadd.s32 16, %v9498_v55  ;;  %v6826_v0 = vpop.eup %6825 }
0x10bd   : > { %v9369_v47 = vrot.slane %v8533_v62, 1  ;;  %v4100_v3 = vmul.f32 %v8598_v6, %v8622_v5  ;;  %v8636_v19 = vmul.f32 0.0, %v8633_v29  ;;  %v3750_v10 = vadd.f32 %v8498_v57, %v8496_v63 }
0x10be   : > { %v4001_v50 = vadd.f32 %v3996_v36, %v3975_v21  ;;  %v4052_v38 = vadd.f32 %v4047_v51, %v4026_v20  ;;  %9510 = vst [vmem:[#allocation47_spill] sm:$0xff] %v8628_v42  ;;  %v3980_v21 = vrot.slane %v8533_v62, 2  ;;  %v8646_v51 = vsel %vm4114_vm10, %v8610_v27, %v9368_v14  ;;  %v8648_v20 = vld [vmem:[#allocation10 + $0x8] ss:$0 sm:$0xff] }
0x10bf   : > { %9511 = vst [vmem:[#allocation48_spill] sm:$0xff] %v8636_v19  ;;  %9512 = vst [vmem:[#allocation49_spill] sm:$0xff] %v8646_v51  ;;  %vm3925_vm11 = vcmp.lt.s32.totalorder %v8628_v42, 22  ;;  %v8659_v63 = vsel %vm3958_vm4, %v3953_v26, %v9369_v47  ;;  %v4006_v57 = vrot.slane %v8533_v62, 3  ;;  %v4110_v42 = vrot.slane %v8533_v62, 7 }
0x10c0   : > { %v4027_v18 = vadd.f32 %v4022_v44, %v4001_v50  ;;  %v4078_v15 = vadd.f32 %v4073_v23, %v4052_v38  ;;  %v4126_v50 = vmul.f32 %v8615_v34, %v8646_v51  ;;  %9513 = vst [vmem:[#allocation50_spill] sm:$0xff] %v8659_v63  ;;  %v4141_v23 = vmul.f32 %v8633_v29, %v8513_v41 }
0x10c1   : > { %v8676_v26 = vsel %vm3984_vm5, %v3979_v13, %v3980_v21  ;;  %v8695_v13 = vsel %vm4010_vm6, %v4005_v58, %v4006_v57  ;;  %v8710_v58 = vmul.f32 %v8503_v43, %v8659_v63 }
0x10c2   : > { %v4053_v1 = vadd.f32 %v4048_v7, %v4027_v18  ;;  %v4104_v24 = vadd.f32 %v4099_v37, %v4078_v15  ;;  %v3920_v18 = vmul.f32 %v6826_v0, %v3750_v10  ;;  %v8662_v7 = vld [vmem:[#allocation10 + $0x9] ss:$0 sm:$0xff]  ;;  %v4155_v37 = vmul.f32 %v8648_v20, %v8540_v61  ;;  %9515 = vst [vmem:[#allocation52_spill] sm:$0xff] %v8676_v26  ;;  %v8685_v10 = vld [vmem:[#allocation10 + $0x10] ss:$0 sm:$0xff] }
0x10c3   : > { %9514 = vst [vmem:[#allocation51_spill] sm:$0xff] %v8662_v7  ;;  %v4032_v15 = vrot.slane %v8533_v62, 4  ;;  %9516 = vst [vmem:[#allocation53_spill] sm:$0xff] %v8685_v10  ;;  %v8714_v14 = vmul.f32 %v8509_v39, %v8676_v26 }
0x10c4   : > { %v4079_v17 = vadd.f32 %v4074_v11, %v4053_v1  ;;  %v4130_v44 = vadd.f32 %v4125_v49, %v4104_v24  ;;  %v8670_v11 = vmul.f32 0.0, %v8511_v4  ;;  %v8679_v49 = vld [vmem:[#allocation10 + $0xa] ss:$0 sm:$0xff]  ;;  %v4170_v24 = vmul.f32 %v8662_v7, %v8552_v16  ;;  %9517 = vst [vmem:[#allocation54_spill] sm:$0xff] %v8695_v13 }
0x10c5   : > { %v4186_v47 = vmul.f32 %v8679_v49, %v8695_v13 }
0x10c6   : > { %v4105_v36 = vadd.f32 %v4100_v3, %v4079_v17  ;;  %v4145_v1 = vadd.f32 %v8636_v19, %v4130_v44  ;;  %v4156_v3 = vmul.f32 %v8648_v20, %v8659_v63  ;;  %v8698_v44 = vld [vmem:[#allocation10 + $0xb] ss:$0 sm:$0xff] }
0x10c7   : > { %v4200_v40 = vmul.f32 %v8698_v44, %v8578_v28  ;;  %v9525_v28 = vrot.slane %v8533_v62, 1 }
0x10c8   : > { %v4131_v38 = vadd.f32 %v4126_v50, %v4105_v36  ;;  %v4160_v0 = vadd.f32 %v4155_v37, %v4145_v1  ;;  %v8689_v36 = vsel %vm3925_vm11, %v3920_v18, 0.0  ;;  %v4058_v50 = vrot.slane %v8533_v62, 5 }
0x10c9   : > { %v4171_v1 = vmul.f32 %v8662_v7, %v8676_v26  ;;  %v4185_v37 = vmul.f32 %v8679_v49, %v8565_v52  ;;  %v3981_v45 = vrot.slane %v8689_v36, 2  ;;  %v9526_v16 = vrot.slane %v8689_v36, 3 }
0x10ca   : > { %v4146_v17 = vadd.f32 %v4141_v23, %v4131_v38  ;;  %v8702_v38 = vmul.f32 %v8685_v10, %v8501_v2  ;;  %v4175_v18 = vadd.f32 %v4170_v24, %v4160_v0  ;;  %v8723_v0 = vld [vmem:[#allocation10 + $0xc] ss:$0 sm:$0xff] }
0x10cb   : > { %v4215_v35 = vmul.f32 %v8723_v0, %v8605_v30  ;;  %v8761_v12 = vsel %vm3984_vm5, %v3980_v21, %v3981_v45  ;;  %v9524_v21 = vrot.slane %v8689_v36, 1 }
0x10cc   : > { %9518 = vst [vmem:[#allocation55_spill] sm:$0xff] %v8702_v38  ;;  %v4161_v23 = vadd.f32 %v4156_v3, %v4146_v17  ;;  %v8720_v17 = vsel %vm4036_vm7, %v4031_v22, %v4032_v15  ;;  %v4084_v3 = vrot.slane %v8533_v62, 6  ;;  %v4190_v25 = vadd.f32 %v4185_v37, %v4175_v18 }
0x10cd   : > { %9519 = vst [vmem:[#allocation56_spill] sm:$0xff] %v8720_v17  ;;  %v9520_v22 = vrot.slane %v8513_v41, 5  ;;  %v4201_v18 = vmul.f32 %v8698_v44, %v8720_v17  ;;  %v8769_v30 = vmul.f32 %v8567_v33, %v8720_v17  ;;  %v8781_v52 = vsel %vm3958_vm4, %v9525_v28, %v9524_v21 }
0x10ce   : > { %v4176_v24 = vadd.f32 %v4171_v1, %v4161_v23  ;;  %v8738_v23 = vld [vmem:[#allocation10 + $0xd] ss:$0 sm:$0xff]  ;;  %v4205_v37 = vadd.f32 %v4200_v40, %v4190_v25  ;;  %v9529_v21 = vrot.slane %v8513_v41, 7  ;;  %v8824_v41 = vld [vmem:[#allocation10 + $0x11] ss:$0 sm:$0xff]  ;;  %v8870_v38 = vmul.f32 %v8633_v29, %v8533_v62 }
0x10cf   : > { %v8736_v48 = vsel %vm4062_vm8, %v9520_v22, %v4058_v50  ;;  %v8750_v22 = vsel %vm4088_vm9, %v9522_v59, %v4084_v3  ;;  %v4230_v46 = vmul.f32 %v8738_v23, %v8622_v5  ;;  %v8765_v59 = vmul.f32 %v8526_v32, %v8695_v13  ;;  %9532 = vst [vmem:[#allocation60_spill] sm:$0xff] %v8824_v41 }
0x10d0   : > { %9521 = vst [vmem:[#allocation57_spill] sm:$0xff] %v8736_v48  ;;  %v4191_v1 = vadd.f32 %v4186_v47, %v4176_v24  ;;  %9523 = vst [vmem:[#allocation58_spill] sm:$0xff] %v8750_v22  ;;  %v8753_v47 = vld [vmem:[#allocation10 + $0xe] ss:$0 sm:$0xff]  ;;  %v4216_v40 = vmul.f32 %v8723_v0, %v8736_v48  ;;  %v4220_v25 = vadd.f32 %v4215_v35, %v4205_v37 }
0x10d1   : > { %v4245_v5 = vmul.f32 %v8753_v47, %v8646_v51  ;;  %v4275_v51 = vmul.f32 %v8824_v41, %v8676_v26 }
0x10d2   : > { %v4206_v24 = vadd.f32 %v4201_v18, %v4191_v1  ;;  %v4235_v37 = vadd.f32 %v4230_v46, %v4220_v25  ;;  %v8787_v1 = vsel %vm4010_vm6, %v4006_v57, %v9526_v16  ;;  %v9528_v25 = vrot.slane %v8689_v36, 5 }
0x10d3   : > { %v8807_v16 = vsel %vm4114_vm10, %v9529_v21, %v4110_v42  ;;  %v3998_v18 = vmul.f32 %v8509_v39, %v8761_v12 }
0x10d4   : > { %v4221_v35 = vadd.f32 %v4216_v40, %v4206_v24  ;;  %v9527_v24 = vrot.slane %v8689_v36, 4  ;;  %v4231_v40 = vmul.f32 %v8738_v23, %v8750_v22  ;;  %v8801_v28 = vsel %vm4062_vm8, %v4058_v50, %v9528_v25  ;;  %9530 = vst [vmem:[#allocation59_spill] sm:$0xff] %v8807_v16 }
0x10d5   : > { %v4250_v57 = vadd.f32 %v4245_v5, %v4235_v37  ;;  %v9531_v50 = vrot.slane %v8689_v36, 6  ;;  %v4024_v5 = vmul.f32 %v8526_v32, %v8787_v1  ;;  %v9533_v37 = vrot.slane %v8689_v36, 7 }
0x10d6   : > { %v8793_v46 = vsel %vm4036_vm7, %v4032_v15, %v9527_v24  ;;  %v4260_v15 = vmul.f32 %v8685_v10, %v8659_v63  ;;  %v8814_v24 = vsel %vm3984_vm5, %v3981_v45, %v8506_v56  ;;  %v4236_v21 = vadd.f32 %v4231_v40, %v4221_v35  ;;  %v8872_v56 = vld [vmem:[#allocation10 + $0x13] ss:$0 sm:$0xff] }
0x10d7   : > { %v8822_v25 = vsel %vm4088_vm9, %v4084_v3, %v9531_v50  ;;  %v8832_v45 = vsel %vm4114_vm10, %v4110_v42, %v9533_v37  ;;  %v4050_v3 = vmul.f32 %v8567_v33, %v8793_v46  ;;  %v8840_v35 = vmul.f32 %v8587_v31, %v8736_v48  ;;  %v8848_v42 = vld [vmem:[#allocation10 + $0x12] ss:$0 sm:$0xff] }
0x10d8   : > { %v4265_v63 = vadd.f32 %v4260_v15, %v4250_v57  ;;  %v8844_v40 = vmul.f32 %v8587_v31, %v8801_v28  ;;  %v4246_v50 = vmul.f32 %v8753_v47, %v8807_v16  ;;  %9534 = vst [vmem:[#allocation61_spill] sm:$0xff] %v8848_v42  ;;  %v8852_v57 = vmul.f32 %v8598_v6, %v8750_v22 }
0x10d9   : > { %v8856_v15 = vmul.f32 %v8598_v6, %v8822_v25  ;;  %v4290_v26 = vmul.f32 %v8848_v42, %v8695_v13  ;;  %v8862_v61 = vmul.f32 %v8615_v34, %v8807_v16  ;;  %v8866_v54 = vmul.f32 %v8615_v34, %v8832_v45 }
0x10da   : > { %v4280_v37 = vadd.f32 %v4275_v51, %v4265_v63  ;;  %v4251_v19 = vadd.f32 %v4246_v50, %v4236_v21  ;;  %v8876_v51 = vmul.f32 %v8633_v29, %v8689_v36  ;;  %v4305_v13 = vmul.f32 %v8872_v56, %v8720_v17  ;;  %v8890_v50 = vld [vmem:[#allocation10 + $0x14] ss:$0 sm:$0xff] }
0x10db   : > { %v3950_v6 = vmul.f32 %v8511_v4, %v8689_v36  ;;  %v8884_v34 = vmul.f32 %v8662_v7, %v8761_v12  ;;  %v8888_v21 = vmul.f32 %v8662_v7, %v8814_v24  ;;  %9536 = vst [vmem:[#allocation63_spill] sm:$0xff] %v8890_v50  ;;  %v3972_v29 = vmul.f32 %v8503_v43, %v8781_v52 }
0x10dc   : > { %v4295_v63 = vadd.f32 %v4290_v26, %v4280_v37  ;;  %v4261_v26 = vmul.f32 %v8685_v10, %v8781_v52  ;;  %v8898_v37 = vmul.f32 %v8679_v49, %v8787_v1  ;;  %v4320_v17 = vmul.f32 %v8890_v50, %v8736_v48 }
0x10dd   : > { %9535 = vst [vmem:[#allocation62_spill] sm:$0xff] %v8888_v21  ;;  %v3976_v27 = vadd.f32 %v8710_v58, %v3950_v6  ;;  %v8905_v7 = vmul.f32 %v8698_v44, %v8793_v46  ;;  %v4276_v31 = vmul.f32 %v8824_v41, %v8761_v12  ;;  %v8909_v21 = vld [vmem:[#allocation10 + $0x15] ss:$0 sm:$0xff]  ;;  %v3977_v10 = vadd.f32 %v3972_v29, %v8670_v11 }
0x10de   : > { %v4310_v4 = vadd.f32 %v4305_v13, %v4295_v63  ;;  %9538 = vst [vmem:[#allocation65_spill] sm:$0xff] %v8909_v21  ;;  %v4266_v53 = vadd.f32 %v4261_v26, %v4251_v19  ;;  %v8914_v13 = vmul.f32 %v8723_v0, %v8801_v28  ;;  %v4335_v6 = vmul.f32 %v8909_v21, %v8750_v22 }
0x10df   : > { %9537 = vst [vmem:[#allocation64_spill] sm:$0xff] %v8905_v7  ;;  %v4002_v58 = vadd.f32 %v8714_v14, %v3976_v27  ;;  %v8921_v48 = vmul.f32 %v8738_v23, %v8822_v25  ;;  %v4291_v41 = vmul.f32 %v8848_v42, %v8787_v1  ;;  %v8925_v7 = vld [vmem:[#allocation10 + $0x16] ss:$0 sm:$0xff]  ;;  %v4003_v19 = vadd.f32 %v3998_v18, %v3977_v10  ;;  %v8938_v42 = vld [vmem:[#allocation10 + $0x17] ss:$0 sm:$0xff] }
0x10e0   : > { %v4325_v63 = vadd.f32 %v4320_v17, %v4310_v4  ;;  %9539 = vst [vmem:[#allocation66_spill] sm:$0xff] %v8925_v7  ;;  %v4281_v29 = vadd.f32 %v4276_v31, %v4266_v53  ;;  %v8929_v26 = vmul.f32 %v8753_v47, %v8832_v45  ;;  %v4350_v4 = vmul.f32 %v8925_v7, %v8807_v16 }
0x10e1   : > { %v4028_v27 = vadd.f32 %v8765_v59, %v4002_v58  ;;  %v4306_v14 = vmul.f32 %v8872_v56, %v8793_v46  ;;  %v4321_v22 = vmul.f32 %v8890_v50, %v8801_v28  ;;  %v4029_v10 = vadd.f32 %v4024_v5, %v4003_v19  ;;  %v8951_v50 = vld [vmem:[#allocation10 + $0x19] ss:$0 sm:$0xff] }
0x10e2   : > { %v4340_v17 = vadd.f32 %v4335_v6, %v4325_v63  ;;  %v4296_v31 = vadd.f32 %v4291_v41, %v4281_v29  ;;  %v4336_v53 = vmul.f32 %v8909_v21, %v8822_v25  ;;  %v4365_v63 = vmul.f32 %v8938_v42, %v8533_v62  ;;  %v8944_v6 = vld [vmem:[#allocation10 + $0x18] ss:$0 sm:$0xff]  ;;  %v8953_v41 = vld [vmem:[#allocation10 + $0x1a] ss:$0 sm:$0xff]  ;;  %v8966_v21 = vld [vmem:[#allocation10 + $0x1d] ss:$0 sm:$0xff] }
0x10e3   : > { %v4054_v59 = vadd.f32 %v8769_v30, %v4028_v27  ;;  %v4351_v58 = vmul.f32 %v8925_v7, %v8832_v45  ;;  %v4380_v16 = vmul.f32 %v8944_v6, %v8781_v52  ;;  %v4055_v5 = vadd.f32 %v4050_v3, %v4029_v10  ;;  %v8959_v30 = vld [vmem:[#allocation10 + $0x1b] ss:$0 sm:$0xff]  ;;  %v8964_v7 = vld [vmem:[#allocation10 + $0x1c] ss:$0 sm:$0xff] }
0x10e4   : > { %v4355_v18 = vadd.f32 %v4350_v4, %v4340_v17  ;;  %v4311_v19 = vadd.f32 %v4306_v14, %v4296_v31  ;;  %v4395_v62 = vmul.f32 %v8951_v50, %v8761_v12  ;;  %v4410_v17 = vmul.f32 %v8953_v41, %v8787_v1  ;;  %v8980_v31 = vld [vmem:[#allocation10 + $0x1e] ss:$0 sm:$0xff] }
0x10e5   : > { %v4080_v4 = vadd.f32 %v8840_v35, %v4054_v59  ;;  %v4425_v27 = vmul.f32 %v8959_v30, %v8793_v46  ;;  %v9540_v3 = vrot.slane %v8689_v36, 1  ;;  %v4081_v1 = vadd.f32 %v8844_v40, %v4055_v5 }
0x10e6   : > { %v4370_v29 = vadd.f32 %v4365_v63, %v4355_v18  ;;  %v4326_v14 = vadd.f32 %v4321_v22, %v4311_v19  ;;  %v4440_v35 = vmul.f32 %v8964_v7, %v8801_v28  ;;  %v4455_v46 = vmul.f32 %v8966_v21, %v8822_v25 }
0x10e7   : > { %v8973_v12 = vsel %vm3958_vm4, %v9540_v3, %v8501_v2  ;;  %v4106_v18 = vadd.f32 %v8852_v57, %v4080_v4  ;;  %v4470_v63 = vmul.f32 %v8980_v31, %v8832_v45  ;;  %v4107_v59 = vadd.f32 %v8856_v15, %v4081_v1 }
0x10e8   : > { %v4385_v10 = vadd.f32 %v4380_v16, %v4370_v29  ;;  %v4157_v40 = vmul.f32 %v8648_v20, %v8781_v52  ;;  %v4341_v22 = vadd.f32 %v4336_v53, %v4326_v14  ;;  %v3973_v28 = vmul.f32 %v8503_v43, %v8973_v12 }
0x10e9   : > { %v4132_v5 = vadd.f32 %v8862_v61, %v4106_v18  ;;  %v9541_v25 = vrot.slane %v8689_v36, 3  ;;  %v4133_v45 = vadd.f32 %v8866_v54, %v4107_v59  ;;  %v9542_v52 = vrot.slane %v8689_v36, 4 }
0x10ea   : > { %v4400_v16 = vadd.f32 %v4395_v62, %v4385_v10  ;;  %v4356_v15 = vadd.f32 %v4351_v58, %v4341_v22  ;;  %v4366_v43 = vmul.f32 %v8938_v42, %v8689_v36  ;;  %v4158_v29 = vmul.f32 %v8648_v20, %v8973_v12 }
0x10eb   : > { %v8996_v57 = vsel %vm4010_vm6, %v9541_v25, %v8530_v60  ;;  %v9004_v53 = vsel %vm4036_vm7, %v9542_v52, %v8543_v9  ;;  %v4147_v19 = vadd.f32 %v8870_v38, %v4132_v5  ;;  %v3999_v54 = vmul.f32 %v8509_v39, %v8814_v24 }
0x10ec   : > { %v4415_v61 = vadd.f32 %v4410_v17, %v4400_v16  ;;  %v4148_v58 = vadd.f32 %v8876_v51, %v4133_v45  ;;  %v4025_v62 = vmul.f32 %v8526_v32, %v8996_v57  ;;  %v4371_v4 = vadd.f32 %v4366_v43, %v4356_v15  ;;  %v9546_v16 = vld [vmem:[#allocation62_spill] sm:$0xff]  ;;  %v9547_v15 = vld [vmem:[#allocation29_spill] sm:$0xff] }
0x10ed   : > { %v4381_v3 = vmul.f32 %v8944_v6, %v8973_v12  ;;  %v4162_v14 = vadd.f32 %v4157_v40, %v4147_v19  ;;  %v4051_v38 = vmul.f32 %v8567_v33, %v9004_v53  ;;  %v3978_v17 = vadd.f32 %v3973_v28, %v8670_v11  ;;  %v9544_v40 = vld [vmem:[#allocation30_spill] sm:$0xff] }
0x10ee   : > { %v4430_v1 = vadd.f32 %v4425_v27, %v4415_v61  ;;  %v4163_v10 = vadd.f32 %v4158_v29, %v4148_v58  ;;  %v9543_v39 = vrot.slane %v8689_v36, 5  ;;  %v4396_v18 = vmul.f32 %v8951_v50, %v8814_v24  ;;  %v9046_v61 = vld [vmem:[#allocation16 + $0xa] ss:$0 sm:$0xff] }
0x10ef   : > { %v4386_v32 = vadd.f32 %v4381_v3, %v4371_v4  ;;  %v4177_v27 = vadd.f32 %v8884_v34, %v4162_v14  ;;  %v9545_v33 = vrot.slane %v8689_v36, 6  ;;  %v4004_v22 = vadd.f32 %v3999_v54, %v3978_v17  ;;  %v9548_v3 = vld [vmem:[#allocation64_spill] sm:$0xff] }
0x10f0   : > { %v9026_v51 = vsel %vm4062_vm8, %v9543_v39, %v8583_v8  ;;  %v4445_v59 = vadd.f32 %v4440_v35, %v4430_v1  ;;  %v4178_v28 = vadd.f32 %v9546_v16, %v4163_v10  ;;  %v4188_v5 = vmul.f32 %v8679_v49, %v8996_v57 }
0x10f1   : > { %v9036_v11 = vsel %vm4088_vm9, %v9545_v33, %v9544_v40  ;;  %v4401_v25 = vadd.f32 %v4396_v18, %v4386_v32  ;;  %v4411_v45 = vmul.f32 %v8953_v41, %v8996_v57  ;;  %v4192_v34 = vadd.f32 %v8898_v37, %v4177_v27 }
0x10f2   : > { %v4460_v35 = vadd.f32 %v4455_v46, %v4445_v59  ;;  %v4077_v52 = vmul.f32 %v9547_v15, %v9026_v51  ;;  %v4030_v43 = vadd.f32 %v4025_v62, %v4004_v22  ;;  %v4203_v19 = vmul.f32 %v8698_v44, %v9004_v53  ;;  %v9549_v46 = vld [vmem:[#allocation33_spill] sm:$0xff] }
0x10f3   : > { %v4416_v29 = vadd.f32 %v4411_v45, %v4401_v25  ;;  %v4426_v54 = vmul.f32 %v8959_v30, %v9004_v53  ;;  %v4193_v58 = vadd.f32 %v4188_v5, %v4178_v28  ;;  %v4207_v1 = vadd.f32 %v9548_v3, %v4192_v34 }
0x10f4   : > { %v4475_v4 = vadd.f32 %v4470_v63, %v4460_v35  ;;  %v9550_v37 = vrot.slane %v8689_v36, 7  ;;  %v4056_v62 = vadd.f32 %v4051_v38, %v4030_v43  ;;  %v4218_v17 = vmul.f32 %v8723_v0, %v9026_v51  ;;  %v9551_v36 = vld [vmem:[#allocation31_spill] sm:$0xff]  ;;  %v9553_v43 = vld [vmem:[#allocation53_spill] sm:$0xff] }
0x10f5   : > { %v4431_v10 = vadd.f32 %v4426_v54, %v4416_v29  ;;  %v4441_v39 = vmul.f32 %v8964_v7, %v9026_v51  ;;  %v4208_v32 = vadd.f32 %v4203_v19, %v4193_v58  ;;  %v4222_v18 = vadd.f32 %v8914_v13, %v4207_v1  ;;  %v9552_v13 = vld [vmem:[#allocation34_spill] sm:$0xff]  ;;  %v9554_v54 = vld [vmem:[#allocation35_spill] sm:$0xff]  ;;  %v9555_v58 = vld [vmem:[#allocation60_spill] sm:$0xff] }
0x10f6   : > { %v9058_v14 = vsel %vm4114_vm10, %v9550_v37, %v9549_v46  ;;  %v9065_v63 = vadd.f32 %v9046_v61, %v4475_v4  ;;  %v4103_v59 = vmul.f32 %v9551_v36, %v9036_v11  ;;  %v4082_v55 = vadd.f32 %v4077_v52, %v4056_v62 }
0x10f7   : > { %v4233_v38 = vmul.f32 %v8738_v23, %v9036_v11  ;;  %v4446_v27 = vadd.f32 %v4441_v39, %v4431_v10  ;;  %v4456_v33 = vmul.f32 %v8966_v21, %v9036_v11  ;;  %v4223_v22 = vadd.f32 %v4218_v17, %v4208_v32  ;;  %v9556_v17 = vld [vmem:[#allocation51_spill] sm:$0xff]  ;;  %v9557_v10 = vld [vmem:[#allocation48_spill] sm:$0xff] }
0x10f8   : > { %4495 = vadd.xlane.f32.xlu1 %v9065_v63  ;;  %v4237_v16 = vadd.f32 %v8921_v48, %v4222_v18  ;;  %v4516_v28 = vmul.f32 %v9065_v63, %v9065_v63  ;;  %v4129_v5 = vmul.f32 %v9552_v13, %v9058_v14  ;;  %v4108_v25 = vadd.f32 %v4103_v59, %v4082_v55  ;;  %v9559_v18 = vld [vmem:[#allocation55_spill] sm:$0xff] }
0x10f9   : > { %v4248_v45 = vmul.f32 %v8753_v47, %v9058_v14  ;;  %v4461_v35 = vadd.f32 %v4456_v33, %v4446_v27  ;;  %v4471_v34 = vmul.f32 %v8980_v31, %v9058_v14  ;;  %v4238_v15 = vadd.f32 %v4233_v38, %v4223_v22 }
0x10fa   : > { %v4252_v52 = vadd.f32 %v8929_v26, %v4237_v16  ;;  %v4262_v48 = vmul.f32 %v9553_v43, %v8973_v12  ;;  %4521 = vadd.xlane.f32.xlu0 %v4516_v28  ;;  %v4159_v19 = vmul.f32 %v8648_v20, %v8501_v2  ;;  %v4134_v29 = vadd.f32 %v4129_v5, %v4108_v25  ;;  %v9558_v12 = vld [vmem:[#allocation61_spill] sm:$0xff] }
0x10fb   : > { %v4278_v4 = vmul.f32 %v9555_v58, %v9554_v54  ;;  %v4476_v3 = vadd.f32 %v4471_v34, %v4461_v35  ;;  %v4253_v1 = vadd.f32 %v4248_v45, %v4238_v15  ;;  %v4277_v37 = vmul.f32 %v9555_v58, %v8814_v24 }
0x10fc   : > { %v4267_v62 = vadd.f32 %v4262_v48, %v4252_v52  ;;  %v4174_v26 = vmul.f32 %v9556_v17, %v9554_v54  ;;  %v4149_v39 = vadd.f32 %v9557_v10, %v4134_v29  ;;  %v4293_v32 = vmul.f32 %v9558_v12, %v8530_v60 }
0x10fd   : > { %v9099_v20 = vadd.f32 %v9046_v61, %v4476_v3  ;;  %v4268_v36 = vadd.f32 %v9559_v18, %v4253_v1  ;;  %v4189_v55 = vmul.f32 %v8679_v49, %v8530_v60  ;;  %v4292_v24 = vmul.f32 %v9558_v12, %v8996_v57  ;;  %v9560_v57 = vld [vmem:[#allocation63_spill] sm:$0xff]  ;;  %v9563_v1 = vld [vmem:[#allocation66_spill] sm:$0xff]  ;;  %v9564_v18 = vld [vmem:[#allocation37_spill] sm:$0xff] }
0x10fe   : > { %v4282_v59 = vadd.f32 %v4277_v37, %v4267_v62  ;;  %v4164_v38 = vadd.f32 %v4159_v19, %v4149_v39  ;;  %v4308_v27 = vmul.f32 %v8872_v56, %v8543_v9  ;;  %v4204_v16 = vmul.f32 %v8698_v44, %v8543_v9  ;;  %v9561_v44 = vld [vmem:[#allocation65_spill] sm:$0xff] }
0x10ff   : > { %4497 = vadd.xlane.f32.xlu0 %v9099_v20  ;;  %v4283_v33 = vadd.f32 %v4278_v4, %v4268_v36  ;;  %v4517_v22 = vmul.f32 %v9099_v20, %v9099_v20  ;;  %v4307_v28 = vmul.f32 %v8872_v56, %v9004_v53  ;;  %v4323_v5 = vmul.f32 %v9560_v57, %v8583_v8 }
0x1100   : > { %v4179_v49 = vadd.f32 %v4174_v26, %v4164_v38  ;;  %v4297_v13 = vadd.f32 %v4292_v24, %v4282_v59  ;;  %v4219_v45 = vmul.f32 %v8723_v0, %v8583_v8  ;;  %v4322_v35 = vmul.f32 %v9560_v57, %v9026_v51 }
0x1101   : > { %v4298_v25 = vadd.f32 %v4293_v32, %v4283_v33  ;;  %4523 = vadd.xlane.f32.xlu1 %v4517_v22  ;;  %v4338_v48 = vmul.f32 %v9561_v44, %v9544_v40  ;;  %v9562_v53 = vmov 0.0   ;;  %v4234_v19 = vmul.f32 %v8738_v23, %v9544_v40 }
0x1102   : > { %v4194_v34 = vadd.f32 %v4189_v55, %v4179_v49  ;;  %v4312_v15 = vadd.f32 %v4307_v28, %v4297_v13  ;;  %v4337_v29 = vmul.f32 %v9561_v44, %v9036_v11  ;;  %v4249_v0 = vmul.f32 %v8753_v47, %v9549_v46  ;;  %v9566_v49 = vld [vmem:[#allocation44_spill] sm:$0xff] }
0x1103   : > { %v4313_v52 = vadd.f32 %v4308_v27, %v4298_v25  ;;  %4503 = vadd.xlane.f32.xlu0 %v9562_v53  ;;  %v4353_v37 = vmul.f32 %v9563_v1, %v9549_v46  ;;  %v4352_v62 = vmul.f32 %v9563_v1, %v9058_v14  ;;  %v4367_v10 = vmul.f32 0.0, %v8938_v42  ;;  %v9565_v27 = vld [vmem:[#allocation45_spill] sm:$0xff] }
0x1104   : > { %v4209_v4 = vadd.f32 %v4204_v16, %v4194_v34  ;;  %v4327_v3 = vadd.f32 %v4322_v35, %v4312_v15  ;;  %v4382_v32 = vmul.f32 %v8944_v6, %v8501_v2  ;;  %v4264_v36 = vmul.f32 %v9553_v43, %v9564_v18  ;;  %v9567_v35 = vld [vmem:[#allocation39_spill] sm:$0xff] }
0x1105   : > { %v4328_v51 = vadd.f32 %v4323_v5, %v4313_v52  ;;  %v4397_v14 = vmul.f32 %v8951_v50, %v9554_v54  ;;  %v4383_v38 = vmul.f32 %v8944_v6, %v9564_v18  ;;  %v4279_v33 = vmul.f32 %v9555_v58, %v9565_v27 }
0x1106   : > { %v4224_v17 = vadd.f32 %v4219_v45, %v4209_v4  ;;  %v4342_v26 = vadd.f32 %v4337_v29, %v4327_v3  ;;  %v4412_v2 = vmul.f32 %v8953_v41, %v8530_v60  ;;  %v4398_v43 = vmul.f32 %v8951_v50, %v9565_v27 }
0x1107   : > { %v4343_v23 = vadd.f32 %v4338_v48, %v4328_v51  ;;  %4529 = vadd.xlane.f32.xlu0 %v9562_v53  ;;  %v4294_v13 = vmul.f32 %v9558_v12, %v9566_v49  ;;  %v4427_v25 = vmul.f32 %v8959_v30, %v8543_v9  ;;  %v4413_v58 = vmul.f32 %v8953_v41, %v9566_v49  ;;  %v9569_v51 = vld [vmem:[#allocation46_spill] sm:$0xff]  ;;  %v9576_v49 = vld [vmem:[#allocation36_spill] sm:$0xff] }
0x1108   : > { %v4239_v11 = vadd.f32 %v4234_v19, %v4224_v17  ;;  %v4357_v39 = vadd.f32 %v4352_v62, %v4342_v26  ;;  %v4309_v34 = vmul.f32 %v8872_v56, %v9567_v35  ;;  %v4442_v52 = vmul.f32 %v8964_v7, %v8583_v8  ;;  %v9568_v19 = vld [vmem:[#allocation32_spill] sm:$0xff] }
0x1109   : > { %v4358_v47 = vadd.f32 %v4353_v37, %v4343_v23  ;;  %v4428_v12 = vmul.f32 %v8959_v30, %v9567_v35  ;;  %v4324_v29 = vmul.f32 %v9560_v57, %v9568_v19  ;;  %v4457_v4 = vmul.f32 %v8966_v21, %v9544_v40 }
0x110a   : > { %v4254_v59 = vadd.f32 %v4249_v0, %v4239_v11  ;;  %v4372_v55 = vadd.f32 %v4367_v10, %v4357_v39  ;;  %v4443_v56 = vmul.f32 %v8964_v7, %v9568_v19  ;;  %v4339_v37 = vmul.f32 %v9561_v44, %v9569_v51  ;;  %v9571_v44 = vld [vmem:[#allocation38_spill] sm:$0xff] }
0x110b   : > { %v4373_v24 = vadd.f32 %v4367_v10, %v4358_v47  ;;  %v4472_v62 = vmul.f32 %v8980_v31, %v9549_v46  ;;  %v4458_v57 = vmul.f32 %v8966_v21, %v9569_v51  ;;  %v9570_v10 = vld [vmem:[#allocation49_spill] sm:$0xff]  ;;  %v3566_v47 = vpop.xlane.xlu0 %3565  ;;  %v4369_v18 = vmul.f32 %v8938_v42, %v9571_v44 }
0x110c   : > { %v4269_v22 = vadd.f32 %v4264_v36, %v4254_v59  ;;  %v4387_v16 = vadd.f32 %v4382_v32, %v4372_v55  ;;  %v4354_v40 = vmul.f32 %v9563_v1, %v9570_v10  ;;  %v4473_v39 = vmul.f32 %v8980_v31, %v9570_v10  ;;  %v9572_v55 = vld [vmem:[#allocation50_spill] sm:$0xff] }
0x110d   : > { %v4388_v28 = vadd.f32 %v4383_v38, %v4373_v24  ;;  %v3571_v38 = vmul.f32 0.03125, %v3566_v47 }
0x110e   : > { %v4284_v54 = vadd.f32 %v4279_v33, %v4269_v22  ;;  %v4402_v5 = vadd.f32 %v4397_v14, %v4387_v16  ;;  %v4384_v14 = vmul.f32 %v8944_v6, %v9572_v55  ;;  %v9573_v33 = vld [vmem:[#allocation52_spill] sm:$0xff] }
0x110f   : > { %v4403_v45 = vadd.f32 %v4398_v43, %v4388_v28  ;;  %v4399_v22 = vmul.f32 %v8951_v50, %v9573_v33  ;;  %v9575_v28 = vld [vmem:[#allocation54_spill] sm:$0xff]  ;;  %v4502_v51 = vpop.xlane.xlu0 %4501 }
0x1110   : > { %v4299_v60 = vadd.f32 %v4294_v13, %v4284_v54  ;;  %v4417_v15 = vadd.f32 %v4412_v2, %v4402_v5  ;;  %v4414_v6 = vmul.f32 %v8953_v41, %v9575_v28  ;;  %v3576_v13 = vsub.f32 %v9576_v49, %v3571_v38  ;;  %v9577_v5 = vld [vmem:[#allocation56_spill] sm:$0xff] }
0x1111   : > { %v4418_v48 = vadd.f32 %v4413_v58, %v4403_v45  ;;  %v9578_v45 = vld [vmem:[#allocation57_spill] sm:$0xff] }
0x1112   : > { %v4432_v9 = vadd.f32 %v4427_v25, %v4417_v15  ;;  %v4314_v3 = vadd.f32 %v4309_v34, %v4299_v60  ;;  %v4429_v25 = vmul.f32 %v8959_v30, %v9577_v5  ;;  %v4444_v50 = vmul.f32 %v8964_v7, %v9578_v45  ;;  %v9579_v34 = vld [vmem:[#allocation28_spill] sm:$0xff]  ;;  %v9580_v15 = vld [vmem:[#allocation58_spill] sm:$0xff] }
0x1113   : > { %v4433_v0 = vadd.f32 %v4428_v12, %v4418_v48  ;;  %v9201_v60 = vmul.f32 %v9579_v34, %v3576_v13  ;;  %v9581_v12 = vld [vmem:[#allocation59_spill] sm:$0xff] }
0x1114   : > { %v4447_v8 = vadd.f32 %v4442_v52, %v4432_v9  ;;  %v4329_v17 = vadd.f32 %v4324_v29, %v4314_v3  ;;  %v4459_v52 = vmul.f32 %v8966_v21, %v9580_v15  ;;  %v4474_v48 = vmul.f32 %v8980_v31, %v9581_v12  ;;  %v6663_v9 = vld [vmem:[#allocation12 + $0x38] sm:$0xff]   ;;  %v6665_v21 = vld [vmem:[#allocation12 + $0x28] sm:$0xff]   ;;  %v6666_v31 = vld [vmem:[#allocation12 + $0x20] sm:$0xff]  }
0x1115   : > { %v4448_v26 = vadd.f32 %v4443_v56, %v4433_v0  ;;  %v3586_v30 = vmul.f32 %v9201_v60, %v9201_v60  ;;  %6233 = vmatpush3.bf16.msra.mxu1 %v6663_v9  ;;  %v6667_v3 = vld [vmem:[#allocation12 + $0x18] sm:$0xff]   ;;  %v6669_v56 = vld [vmem:[#allocation12 + $0x8] sm:$0xff]   ;;  %v6670_v0 = vld [vmem:[#allocation12] sm:$0xff]  }
0x1116   : > { %v4462_v23 = vadd.f32 %v4457_v4, %v4447_v8  ;;  %v4344_v11 = vadd.f32 %v4339_v37, %v4329_v17  ;;  %v6664_v4 = vld [vmem:[#allocation12 + $0x30] sm:$0xff]   ;;  %6234 = vmatprep.subr.bf16.mxu1 %v9562_v53 }
0x1117   : > { %v4463_v32 = vadd.f32 %v4458_v57, %v4448_v26 }
0x1118   : > { %v4477_v36 = vadd.f32 %v4472_v62, %v4462_v23  ;;  %v4359_v46 = vadd.f32 %v4354_v40, %v4344_v11 }
0x1119   : > { %v4478_v59 = vadd.f32 %v4473_v39, %v4463_v32  ;;  %6235 = vmatpush3.bf16.msra.mxu1 %v6664_v4 }
0x111a   : > { %v9183_v24 = vadd.f32 %v9046_v61, %v4477_v36  ;;  %v4374_v1 = vadd.f32 %v4369_v18, %v4359_v46  ;;  %6236 = vmatprep.subr.bf16.mxu1 %v9562_v53 }
0x111b   : > { %v9186_v27 = vadd.f32 %v9046_v61, %v4478_v59 }
0x111c   : > { %v4492_v42 = vsel %vm3925_vm11, %v9183_v24, 0.0  ;;  %v4389_v2 = vadd.f32 %v4384_v14, %v4374_v1 }
0x111d   : > { %4499 = vadd.xlane.f32.xlu1 %v4492_v42  ;;  %v4518_v54 = vmul.f32 %v4492_v42, %v4492_v42  ;;  %6237 = vmatpush3.bf16.msra.mxu1 %v6665_v21 }
0x111e   : > { %v4404_v43 = vadd.f32 %v4399_v22, %v4389_v2  ;;  %6238 = vmatprep.subr.bf16.mxu1 %v9562_v53 }
0x1120   : > { %v4419_v58 = vadd.f32 %v4414_v6, %v4404_v43 }
0x1121   : > { %4525 = vadd.xlane.f32.xlu1 %v4518_v54  ;;  %6239 = vmatpush3.bf16.msra.mxu1 %v6666_v31  ;;  %v5650_v31 = vld [vmem:[#allocation16 + $0xb] ss:$0 sm:$0xff] }
0x1122   : > { %v4434_v35 = vadd.f32 %v4429_v25, %v4419_v58  ;;  %6240 = vmatprep.subr.bf16.mxu1 %v9562_v53 }
0x1124   : > { %v4449_v41 = vadd.f32 %v4444_v50, %v4434_v35 }
0x1125   : > { %4527 = vadd.xlane.f32.xlu1 %v9562_v53  ;;  %6241 = vmatpush3.bf16.msra.mxu1 %v6667_v3 }
0x1126   : > { %v4464_v19 = vadd.f32 %v4459_v52, %v4449_v41  ;;  %6242 = vmatprep.subr.bf16.mxu1 %v9562_v53  ;;  %v6893_v41 = vld [vmem:[#allocation16 + $0x6] ss:$0 sm:$0xff] }
0x1128   : > { %v4479_v29 = vadd.f32 %v4474_v48, %v4464_v19  ;;  %v6894_v48 = vld [vmem:[#allocation16 + $0x7] ss:$0 sm:$0xff] }
0x1129   : > { %3595 = vadd.xlane.f32.xlu1 %v3586_v30 }
0x112a   : > { %v9211_v7 = vadd.f32 %v9046_v61, %v4479_v29  ;;  %v6668_v61 = vld [vmem:[#allocation12 + $0x10] sm:$0xff]  }
0x112b   : > { %6243 = vmatpush3.bf16.msra.mxu1 %v6668_v61 }
0x112c   : > { %6244 = vmatprep.subr.bf16.mxu1 %v9562_v53 }
0x112f   : > { %6245 = vmatpush3.bf16.msra.mxu1 %v6669_v56 }
0x1130   : > { %6246 = vmatprep.subr.bf16.mxu1 %v9562_v53 }
0x1133   : > { %6247 = vmatpush3.bf16.msra.mxu1 %v6670_v0 }
0x1134   : > { %6288 = vmatprep.subr.bf16.mxu1 %v9562_v53 }
0x1181   : > { %v4496_v37 = vpop.xlane.xlu1 %4495 }
0x1183   : > { %v4522_v8 = vpop.xlane.xlu0 %4521 }
0x1188   : > { %v4498_v17 = vpop.xlane.xlu0 %4497 }
0x1189   : > { %v4505_v57 = vadd.f32 %v4498_v17, %v4496_v37  ;;  %v5651_v37 = vld [vmem:[#allocation16 + $0xc] ss:$0 sm:$0xff] }
0x118a   : > { %v4524_v62 = vpop.xlane.xlu1 %4523 }
0x118b   : > { %v4531_v39 = vadd.f32 %v4524_v62, %v4522_v8 }
0x118c   : > { %v4504_v40 = vpop.xlane.xlu0 %4503 }
0x1190   : > { %v4530_v36 = vpop.xlane.xlu0 %4529 }
0x11a6   : > { %v4500_v26 = vpop.xlane.xlu1 %4499 }
0x11a7   : > { %v4506_v10 = vadd.f32 %v4505_v57, %v4500_v26 }
0x11a9   : > { %v4507_v23 = vadd.f32 %v4506_v10, %v4502_v51 }
0x11aa   : > { %v4526_v11 = vpop.xlane.xlu1 %4525 }
0x11ab   : > { %v4508_v32 = vadd.f32 %v4507_v23, %v4504_v40  ;;  %v4532_v44 = vadd.f32 %v4531_v39, %v4526_v11 }
0x11ad   : > { %v4509_v47 = vrot.slane %v4508_v32, 4 }
0x11ae   : > { %v4528_v18 = vpop.xlane.xlu1 %4527 }
0x11af   : > { %v4510_v46 = vadd.f32 %v4509_v47, %v4508_v32  ;;  %v4533_v59 = vadd.f32 %v4532_v44, %v4528_v18 }
0x11b1   : > { %v4511_v55 = vrot.slane %v4510_v46, 2  ;;  %v4534_v14 = vadd.f32 %v4533_v59, %v4530_v36 }
0x11b2   : > { %v3596_v1 = vpop.xlane.xlu1 %3595 }
0x11b3   : > { %v4512_v38 = vadd.f32 %v4511_v55, %v4510_v46  ;;  %v4535_v33 = vrot.slane %v4534_v14, 4  ;;  %v3601_v22 = vmul.f32 0.03125, %v3596_v1 }
0x11b5   : > { %v4513_v16 = vrot.slane %v4512_v38, 1  ;;  %v4536_v42 = vadd.f32 %v4535_v33, %v4534_v14  ;;  %v3606_v2 = vadd.f32 1e-05, %v3601_v22 }
0x11b7   : > { %v4514_v28 = vadd.f32 %v4513_v16, %v4512_v38  ;;  %v4537_v6 = vrot.slane %v4536_v42, 2  ;;  %6827 = vrsqrt.f32 %v3606_v2 }
0x11b9   : > { %v4538_v43 = vadd.f32 %v4537_v6, %v4536_v42  ;;  %v4515_v13 = vmul.f32 0.0014204546, %v4514_v28 }
0x11bb   : > { %v4539_v54 = vrot.slane %v4538_v43, 1  ;;  %v4542_v58 = vmul.f32 %v4515_v13, %v4515_v13  ;;  %v4545_v29 = vsub.f32 %v9065_v63, %v4515_v13  ;;  %v4546_v9 = vsub.f32 %v9099_v20, %v4515_v13 }
0x11bc   : > { %v4548_v4 = vsub.f32 %v9186_v27, %v4515_v13  ;;  %v4549_v3 = vsub.f32 %v9211_v7, %v4515_v13 }
0x11bd   : > { %v4540_v5 = vadd.f32 %v4539_v54, %v4538_v43 }
0x11bf   : > { %v4541_v25 = vmul.f32 0.0014204546, %v4540_v5 }
0x11c1   : > { %v4543_v45 = vsub.f32 %v4541_v25, %v4542_v58 }
0x11c3   : > { %v4544_v50 = vmax.f32 %v4543_v45, 0.0 }
0x11c4   : > { %v6828_v35 = vpop.eup %6827 }
0x11c5   : > { %v4550_v15 = vadd.f32 1e-05, %v4544_v50  ;;  %v3616_v52 = vmul.f32 %v6828_v35, %v9201_v60  ;;  %v4547_v60 = vsub.f32 %v9183_v24, %v4515_v13 }
0x11c7   : > { %6829 = vrsqrt.f32 %v4550_v15  ;;  %v3625_v12 = vmul.f32 %v6893_v41, %v3616_v52 }
0x11c9   : > { %v3634_v19 = vadd.f32 %v6894_v48, %v3625_v12 }
0x11cb   : > { %v3637_v30 = vpack.c.bf16 %v3634_v19, %v3634_v19  ;;  %v5657_v19 = vld [vmem:[#allocation16 + $0xd] ss:$0 sm:$0xff] }
0x11cd   : > { %6201 = vmatmul.mubr.bf16.gmra.mxu1 %v3637_v30  ;;  %6229 = vmatmul.mubr.bf16.gmra.mxu0 %v3637_v30 }
0x11ce   : > { %6248 = vmatprep.mubr.msk.bf16.mxu1 %vm7262_vm1, %v9562_v53  ;;  %6276 = vmatprep.mubr.msk.bf16.mxu0 %vm7262_vm1, %v9562_v53 }
0x11d4   : > { %v6830_v21 = vpop.eup %6829 }
0x11d5   : > { %v4552_v61 = vmul.f32 %v6830_v21, %v4545_v29  ;;  %v4553_v56 = vmul.f32 %v6830_v21, %v4546_v9  ;;  %v4554_v0 = vmul.f32 %v6830_v21, %v4547_v60  ;;  %v4555_v51 = vmul.f32 %v6830_v21, %v4548_v4  ;;  %v9582_v60 = vld [vmem:[#allocation43_spill] sm:$0xff] }
0x11d6   : > { %v4556_v8 = vmul.f32 %v6830_v21, %v4549_v3 }
0x11d7   : > { %v4562_v62 = vmul.f32 %v5650_v31, %v4552_v61  ;;  %v4563_v17 = vmul.f32 %v5650_v31, %v4553_v56  ;;  %v4564_v57 = vmul.f32 %v5650_v31, %v4554_v0  ;;  %v4565_v63 = vmul.f32 %v5650_v31, %v4555_v51  ;;  %v9583_v61 = vld [vmem:[#allocation40_spill] sm:$0xff] }
0x11d8   : > { %v4566_v40 = vmul.f32 %v5650_v31, %v4556_v8  ;;  %v9584_v8 = vld [vmem:[#allocation42_spill] sm:$0xff] }
0x11d9   : > { %v4572_v26 = vadd.f32 %v5651_v37, %v4562_v62  ;;  %v4573_v20 = vadd.f32 %v5651_v37, %v4563_v17  ;;  %v4574_v10 = vadd.f32 %v5651_v37, %v4564_v57  ;;  %v4575_v24 = vadd.f32 %v5651_v37, %v4565_v63 }
0x11da   : > { %v4576_v7 = vadd.f32 %v5651_v37, %v4566_v40 }
0x11db   : > { %v5652_v27 = vmul.f32 -1.442695, %v4572_v26  ;;  %v5653_v23 = vmul.f32 -1.442695, %v4573_v20  ;;  %v5654_v11 = vmul.f32 -1.442695, %v4574_v10 }
0x11dc   : > { %v5655_v39 = vmul.f32 -1.442695, %v4575_v24  ;;  %v5656_v32 = vmul.f32 -1.442695, %v4576_v7 }
0x11dd   : > { %6831 = vpow2.f32 %v5652_v27 }
0x11de   : > { %6833 = vpow2.f32 %v5653_v23 }
0x11df   : > { %6835 = vpow2.f32 %v5654_v11 }
0x11e0   : > { %6837 = vpow2.f32 %v5655_v39  ;;  %v6671_v39 = vld [vmem:[#allocation13 + $0x38] sm:$0xff]  }
0x11e1   : > { %6839 = vpow2.f32 %v5656_v32  ;;  %6261 = vmatpush3.bf16.msra.mxu0 %v6671_v39 }
0x11e2   : > { %6262 = vmatprep.subr.bf16.mxu0 %v9562_v53 }
0x11ea   : > { %v6832_v47 = vpop.eup %6831 }
0x11eb   : > { %v6834_v44 = vpop.eup %6833  ;;  %v4592_v18 = vadd.f32 1.0, %v6832_v47 }
0x11ec   : > { %v6836_v36 = vpop.eup %6835  ;;  %v4593_v46 = vadd.f32 1.0, %v6834_v44 }
0x11ed   : > { %v6838_v59 = vpop.eup %6837  ;;  %6841 = vrcp.f32 %v4592_v18  ;;  %v4594_v55 = vadd.f32 1.0, %v6836_v36 }
0x11ee   : > { %6843 = vrcp.f32 %v4593_v46  ;;  %v4595_v14 = vadd.f32 1.0, %v6838_v59  ;;  %v6840_v1 = vpop.eup %6839 }
0x11ef   : > { %6845 = vrcp.f32 %v4594_v55  ;;  %v4596_v38 = vadd.f32 1.0, %v6840_v1 }
0x11f0   : > { %6847 = vrcp.f32 %v4595_v14 }
0x11f1   : > { %6849 = vrcp.f32 %v4596_v38 }
0x11fa   : > { %v6842_v33 = vpop.eup %6841 }
0x11fb   : > { %v6844_v22 = vpop.eup %6843  ;;  %v4607_v16 = vmul.f32 %v6842_v33, %v4572_v26  ;;  %v9585_v26 = vld [vmem:[#allocation41_spill] sm:$0xff] }
0x11fc   : > { %v4608_v42 = vmul.f32 %v6844_v22, %v4573_v20  ;;  %v6846_v2 = vpop.eup %6845 }
0x11fd   : > { %v6848_v6 = vpop.eup %6847  ;;  %v4609_v43 = vmul.f32 %v6846_v2, %v4574_v10 }
0x11fe   : > { %v4612_v28 = vpack.c.bf16 %v4608_v42, %v4607_v16  ;;  %v4610_v13 = vmul.f32 %v6848_v6, %v4575_v24  ;;  %v6850_v5 = vpop.eup %6849 }
0x11ff   : > { %v4611_v25 = vmul.f32 %v6850_v5, %v4576_v7 }
0x1200   : > { %6249 = vmatmul.mubr.bf16.vlgmr.msra.gmra.mxu1 %v4612_v28  ;;  %v4613_v54 = vpack.c.bf16 %v4610_v13, %v4609_v43 }
0x1201   : > { %6252 = vmatprep.mubr.msk.bf16.mxu1 %vm7262_vm1, %v9562_v53  ;;  %v4614_v58 = vpack.c.bf16 %v4611_v25, %v4611_v25 }
0x1208   : > { %6253 = vmatmul.mubr.bf16.gmra.mxu1 %v4613_v54 }
0x1209   : > { %6256 = vmatprep.mubr.msk.bf16.mxu1 %vm7262_vm1, %v9562_v53 }
0x1210   : > { %6257 = vmatmul.mubr.bf16.gmra.mxu1 %v4614_v58  ;;  %v6672_v58 = vld [vmem:[#allocation13 + $0x30] sm:$0xff]  }
0x1211   : > { %6304 = vmatprep.mubr.msk.bf16.mxu1 %vm7262_vm1, %v9562_v53  ;;  %6263 = vmatpush3.bf16.msra.mxu0 %v6672_v58 }
0x1212   : > { %6264 = vmatprep.subr.bf16.mxu0 %v9562_v53 }
0x128d   : > { %v3757_v45 = vpop.f32.mrf.mxu1  ;;  %v3882_v50 = vpop.f32.mrf.mxu0 }
0x128e   : > { %v6673_v45 = vld [vmem:[#allocation13 + $0x28] sm:$0xff]   ;;  %v6674_v50 = vld [vmem:[#allocation13 + $0x20] sm:$0xff]  }
0x128f   : > { %v6202_v35 = vpop.f32.mrf.mxu1  ;;  %v6230_v15 = vpop.f32.mrf.mxu0  ;;  %6265 = vmatpush3.bf16.msra.mxu0 %v6673_v45 }
0x1290   : > { %6266 = vmatprep.subr.bf16.mxu0 %v9562_v53  ;;  %v6675_v35 = vld [vmem:[#allocation13 + $0x18] sm:$0xff]   ;;  %v6676_v15 = vld [vmem:[#allocation13 + $0x10] sm:$0xff]  }
0x1291   : > { %v3760_v52 = vpop.f32.mrf.mxu1  ;;  %v3885_v41 = vpop.f32.mrf.mxu0 }
0x1292   : > { %v6677_v52 = vld [vmem:[#allocation13 + $0x8] sm:$0xff]   ;;  %v6678_v41 = vld [vmem:[#allocation13] sm:$0xff]  }
0x1293   : > { %v6203_v12 = vpop.f32.mrf.mxu1  ;;  %v6231_v48 = vpop.f32.mrf.mxu0  ;;  %6267 = vmatpush3.bf16.msra.mxu0 %v6674_v50 }
0x1294   : > { %6268 = vmatprep.subr.bf16.mxu0 %v9562_v53 }
0x1297   : > { %6269 = vmatpush3.bf16.msra.mxu0 %v6675_v35 }
0x1298   : > { %6270 = vmatprep.subr.bf16.mxu0 %v9562_v53 }
0x129b   : > { %6271 = vmatpush3.bf16.msra.mxu0 %v6676_v15 }
0x129c   : > { %6272 = vmatprep.subr.bf16.mxu0 %v9562_v53 }
0x129f   : > { %6273 = vmatpush3.bf16.msra.mxu0 %v6677_v52 }
0x12a0   : > { %6274 = vmatprep.subr.bf16.mxu0 %v9562_v53 }
0x12a3   : > { %6275 = vmatpush3.bf16.msra.mxu0 %v6678_v41 }
0x12c0   : > { %v4718_v30 = vpop.f32.mrf.mxu1 }
0x12c1   : > { %v4719_v29 = vadd.f32 %v5657_v19, %v4718_v30 }
0x12c2   : > { %v6250_v9 = vpop.f32.mrf.mxu1 }
0x12c3   : > { %v9238_v4 = vadd.f32 %v4719_v29, %v9582_v60 }
0x12c4   : > { %v4721_v21 = vpop.f32.mrf.mxu1 }
0x12c5   : > { %v4722_v31 = vadd.f32 %v5657_v19, %v4721_v21  ;;  %4749 = vadd.xlane.f32.xlu0 %v9238_v4 }
0x12c6   : > { %v6251_v3 = vpop.f32.mrf.mxu1 }
0x12c7   : > { %v9242_v56 = vadd.f32 %v4722_v31, %v9583_v61 }
0x12c8   : > { %v4726_v0 = vpop.f32.mrf.mxu1 }
0x12c9   : > { %v4727_v51 = vadd.f32 %v5657_v19, %v4726_v0  ;;  %4751 = vadd.xlane.f32.xlu1 %v9242_v56 }
0x12ca   : > { %v6254_v37 = vpop.f32.mrf.mxu1 }
0x12cb   : > { %v9246_v62 = vadd.f32 %v4727_v51, %v9584_v8 }
0x12cc   : > { %v4729_v17 = vpop.f32.mrf.mxu1 }
0x12cd   : > { %v4730_v57 = vadd.f32 %v5657_v19, %v4729_v17  ;;  %4753 = vadd.xlane.f32.xlu0 %v9246_v62 }
0x12ce   : > { %v6255_v63 = vpop.f32.mrf.mxu1 }
0x12cf   : > { %v9250_v20 = vadd.f32 %v4730_v57, %v9585_v26  ;;  %v5666_v63 = vld [vmem:[#allocation16 + $0xe] ss:$0 sm:$0xff] }
0x12d0   : > { %v4734_v10 = vpop.f32.mrf.mxu1 }
0x12d1   : > { %v4735_v24 = vadd.f32 %v5657_v19, %v4734_v10  ;;  %4755 = vadd.xlane.f32.xlu1 %v9250_v20 }
0x12d2   : > { %v6258_v40 = vpop.f32.mrf.mxu1 }
0x12d3   : > { %v9254_v27 = vadd.f32 %v4735_v24, %v9576_v49  ;;  %v5667_v40 = vld [vmem:[#allocation16 + $0xf] ss:$0 sm:$0xff] }
0x12d4   : > { %v4737_v23 = vpop.f32.mrf.mxu1 }
0x12d5   : > { %4757 = vadd.xlane.f32.xlu0 %v9254_v27 }
0x12d6   : > { %v6259_v11 = vpop.f32.mrf.mxu1 }
0x134e   : > { %v4750_v7 = vpop.xlane.xlu0 %4749 }
0x134f   : > { %v4759_v32 = vmul.f32 0.03125, %v4750_v7 }
0x1351   : > { %v4764_v47 = vsub.f32 %v9238_v4, %v4759_v32 }
0x1352   : > { %v4752_v44 = vpop.xlane.xlu1 %4751 }
0x1353   : > { %v4760_v18 = vmul.f32 0.03125, %v4752_v44  ;;  %v9260_v36 = vmul.f32 %v9579_v34, %v4764_v47 }
0x1355   : > { %v4765_v49 = vsub.f32 %v9242_v56, %v4760_v18  ;;  %v4774_v46 = vmul.f32 %v9260_v36, %v9260_v36 }
0x1356   : > { %v4754_v59 = vpop.xlane.xlu0 %4753 }
0x1357   : > { %v4761_v55 = vmul.f32 0.03125, %v4754_v59  ;;  %4779 = vadd.xlane.f32.xlu1 %v4774_v46  ;;  %v9266_v14 = vmul.f32 %v9579_v34, %v4765_v49 }
0x1359   : > { %v4766_v1 = vsub.f32 %v9246_v62, %v4761_v55  ;;  %v4775_v38 = vmul.f32 %v9266_v14, %v9266_v14 }
0x135a   : > { %v4756_v33 = vpop.xlane.xlu1 %4755 }
0x135b   : > { %v4762_v22 = vmul.f32 0.03125, %v4756_v33  ;;  %4781 = vadd.xlane.f32.xlu0 %v4775_v38  ;;  %v9272_v16 = vmul.f32 %v9579_v34, %v4766_v1 }
0x135d   : > { %v4767_v42 = vsub.f32 %v9250_v20, %v4762_v22  ;;  %v4776_v2 = vmul.f32 %v9272_v16, %v9272_v16 }
0x135e   : > { %v4758_v28 = vpop.xlane.xlu0 %4757 }
0x135f   : > { %v4763_v6 = vmul.f32 0.03125, %v4758_v28  ;;  %4783 = vadd.xlane.f32.xlu1 %v4776_v2  ;;  %v4772_v43 = vmul.f32 %v9579_v34, %v4767_v42  ;;  %v6680_v42 = vld [vmem:[#allocation15 + $0x30] sm:$0xff]   ;;  %v6681_v2 = vld [vmem:[#allocation15 + $0x28] sm:$0xff]   ;;  %v6682_v28 = vld [vmem:[#allocation15 + $0x20] sm:$0xff]  }
0x1361   : > { %v4768_v13 = vsub.f32 %v9254_v27, %v4763_v6  ;;  %v4777_v54 = vmul.f32 %v4772_v43, %v4772_v43  ;;  %v6683_v6 = vld [vmem:[#allocation15 + $0x18] sm:$0xff]  }
0x1363   : > { %4785 = vadd.xlane.f32.xlu0 %v4777_v54  ;;  %v9280_v5 = vmul.f32 %v9579_v34, %v4768_v13  ;;  %v6685_v13 = vld [vmem:[#allocation15 + $0x8] sm:$0xff]   ;;  %v6686_v54 = vld [vmem:[#allocation15] sm:$0xff]  }
0x1365   : > { %v4778_v25 = vmul.f32 %v9280_v5, %v9280_v5 }
0x1367   : > { %4787 = vadd.xlane.f32.xlu1 %v4778_v25 }
0x13e0   : > { %v4780_v12 = vpop.xlane.xlu1 %4779 }
0x13e1   : > { %v4789_v48 = vmul.f32 0.03125, %v4780_v12 }
0x13e3   : > { %v4794_v19 = vadd.f32 1e-05, %v4789_v48 }
0x13e4   : > { %v4782_v30 = vpop.xlane.xlu0 %4781 }
0x13e5   : > { %6851 = vrsqrt.f32 %v4794_v19  ;;  %v4790_v29 = vmul.f32 0.03125, %v4782_v30 }
0x13e7   : > { %v4795_v9 = vadd.f32 1e-05, %v4790_v29 }
0x13e8   : > { %v4784_v60 = vpop.xlane.xlu1 %4783 }
0x13e9   : > { %6853 = vrsqrt.f32 %v4795_v9  ;;  %v4791_v21 = vmul.f32 0.03125, %v4784_v60 }
0x13eb   : > { %v4796_v31 = vadd.f32 1e-05, %v4791_v21 }
0x13ec   : > { %v4786_v3 = vpop.xlane.xlu0 %4785 }
0x13ed   : > { %6855 = vrsqrt.f32 %v4796_v31  ;;  %v4792_v61 = vmul.f32 0.03125, %v4786_v3 }
0x13ef   : > { %v4797_v0 = vadd.f32 1e-05, %v4792_v61 }
0x13f0   : > { %v4788_v51 = vpop.xlane.xlu1 %4787 }
0x13f1   : > { %6857 = vrsqrt.f32 %v4797_v0  ;;  %v4793_v37 = vmul.f32 0.03125, %v4788_v51 }
0x13f2   : > { %v6852_v8 = vpop.eup %6851 }
0x13f3   : > { %v4804_v17 = vmul.f32 %v6852_v8, %v9260_v36  ;;  %v4798_v57 = vadd.f32 1e-05, %v4793_v37 }
0x13f5   : > { %6859 = vrsqrt.f32 %v4798_v57  ;;  %v4813_v10 = vmul.f32 %v5666_v63, %v4804_v17 }
0x13f6   : > { %v6854_v26 = vpop.eup %6853 }
0x13f7   : > { %v4805_v24 = vmul.f32 %v6854_v26, %v9266_v14  ;;  %v4822_v39 = vadd.f32 %v5667_v40, %v4813_v10 }
0x13f9   : > { %v4814_v23 = vmul.f32 %v5666_v63, %v4805_v24 }
0x13fa   : > { %v6856_v11 = vpop.eup %6855 }
0x13fb   : > { %v4823_v7 = vadd.f32 %v5667_v40, %v4814_v23  ;;  %v4806_v32 = vmul.f32 %v6856_v11, %v9272_v16  ;;  %v6679_v16 = vld [vmem:[#allocation15 + $0x38] sm:$0xff]  }
0x13fc   : > { %6289 = vmatpush3.bf16.msra.mxu1 %v6679_v16 }
0x13fd   : > { %v4827_v47 = vpack.c.bf16 %v4823_v7, %v4822_v39  ;;  %v4815_v49 = vmul.f32 %v5666_v63, %v4806_v32  ;;  %6290 = vmatprep.subr.bf16.mxu1 %v9562_v53 }
0x13fe   : > { %v6858_v44 = vpop.eup %6857 }
0x13ff   : > { %6277 = vmatmul.mubr.bf16.vlgmr.msra.gmra.mxu0 %v4827_v47  ;;  %v4807_v18 = vmul.f32 %v6858_v44, %v4772_v43  ;;  %v4824_v59 = vadd.f32 %v5667_v40, %v4815_v49  ;;  %v6684_v43 = vld [vmem:[#allocation15 + $0x10] sm:$0xff]  }
0x1400   : > { %6280 = vmatprep.mubr.msk.bf16.mxu0 %vm7262_vm1, %v9562_v53  ;;  %6291 = vmatpush3.bf16.msra.mxu1 %v6680_v42 }
0x1401   : > { %v4816_v36 = vmul.f32 %v5666_v63, %v4807_v18  ;;  %6292 = vmatprep.subr.bf16.mxu1 %v9562_v53 }
0x1402   : > { %v6860_v46 = vpop.eup %6859 }
0x1403   : > { %v4825_v55 = vadd.f32 %v5667_v40, %v4816_v36  ;;  %v4808_v14 = vmul.f32 %v6860_v46, %v9280_v5  ;;  %v5668_v5 = vld [vmem:[#allocation18 + $0x1] ss:$0 sm:$0xff] }
0x1404   : > { %6293 = vmatpush3.bf16.msra.mxu1 %v6681_v2 }
0x1405   : > { %v4828_v1 = vpack.c.bf16 %v4825_v55, %v4824_v59  ;;  %v4817_v38 = vmul.f32 %v5666_v63, %v4808_v14  ;;  %6294 = vmatprep.subr.bf16.mxu1 %v9562_v53 }
0x1407   : > { %6281 = vmatmul.mubr.bf16.gmra.mxu0 %v4828_v1  ;;  %v4826_v33 = vadd.f32 %v5667_v40, %v4817_v38  ;;  %v5682_v38 = vld [vmem:[#allocation16 + $0x10] ss:$0 sm:$0xff] }
0x1408   : > { %6284 = vmatprep.mubr.msk.bf16.mxu0 %vm7262_vm1, %v9562_v53  ;;  %6295 = vmatpush3.bf16.msra.mxu1 %v6682_v28 }
0x1409   : > { %v4829_v22 = vpack.c.bf16 %v4826_v33, %v4826_v33  ;;  %6296 = vmatprep.subr.bf16.mxu1 %v9562_v53 }
0x140c   : > { %6297 = vmatpush3.bf16.msra.mxu1 %v6683_v6 }
0x140d   : > { %6298 = vmatprep.subr.bf16.mxu1 %v9562_v53 }
0x140f   : > { %6285 = vmatmul.mubr.bf16.gmra.mxu0 %v4829_v22 }
0x1410   : > { %6299 = vmatpush3.bf16.msra.mxu1 %v6684_v43 }
0x1411   : > { %6300 = vmatprep.subr.bf16.mxu1 %v9562_v53 }
0x1414   : > { %6301 = vmatpush3.bf16.msra.mxu1 %v6685_v13 }
0x1415   : > { %6302 = vmatprep.subr.bf16.mxu1 %v9562_v53 }
0x1418   : > { %6303 = vmatpush3.bf16.msra.mxu1 %v6686_v54 }
0x14bf   : > { %v4932_v25 = vpop.f32.mrf.mxu0 }
0x14c0   : > { %v4933_v58 = vadd.f32 %v5668_v5, %v4932_v25 }
0x14c1   : > { %v6278_v45 = vpop.f32.mrf.mxu0 }
0x14c2   : > { %v5677_v50 = vmul.f32 -1.442695, %v4933_v58 }
0x14c3   : > { %v4935_v35 = vpop.f32.mrf.mxu0 }
0x14c4   : > { %6861 = vpow2.f32 %v5677_v50  ;;  %v4936_v15 = vadd.f32 %v5668_v5, %v4935_v35 }
0x14c5   : > { %v6279_v52 = vpop.f32.mrf.mxu0 }
0x14c6   : > { %v5678_v41 = vmul.f32 -1.442695, %v4936_v15 }
0x14c7   : > { %v4940_v12 = vpop.f32.mrf.mxu0 }
0x14c8   : > { %6863 = vpow2.f32 %v5678_v41  ;;  %v4941_v48 = vadd.f32 %v5668_v5, %v4940_v12 }
0x14c9   : > { %v6282_v19 = vpop.f32.mrf.mxu0 }
0x14ca   : > { %v5679_v30 = vmul.f32 -1.442695, %v4941_v48 }
0x14cb   : > { %v4943_v29 = vpop.f32.mrf.mxu0 }
0x14cc   : > { %6865 = vpow2.f32 %v5679_v30  ;;  %v4944_v9 = vadd.f32 %v5668_v5, %v4943_v29 }
0x14cd   : > { %v6283_v60 = vpop.f32.mrf.mxu0 }
0x14ce   : > { %v5680_v21 = vmul.f32 -1.442695, %v4944_v9 }
0x14cf   : > { %v4948_v31 = vpop.f32.mrf.mxu0 }
0x14d0   : > { %6867 = vpow2.f32 %v5680_v21  ;;  %v4949_v3 = vadd.f32 %v5668_v5, %v4948_v31 }
0x14d1   : > { %v6862_v61 = vpop.eup %6861  ;;  %v6286_v0 = vpop.f32.mrf.mxu0 }
0x14d2   : > { %v4969_v51 = vadd.f32 1.0, %v6862_v61  ;;  %v5681_v37 = vmul.f32 -1.442695, %v4949_v3 }
0x14d3   : > { %v4951_v8 = vpop.f32.mrf.mxu0 }
0x14d4   : > { %6869 = vpow2.f32 %v5681_v37 }
0x14d5   : > { %v6864_v17 = vpop.eup %6863  ;;  %v6287_v57 = vpop.f32.mrf.mxu0  ;;  %6871 = vrcp.f32 %v4969_v51 }
0x14d6   : > { %v4970_v63 = vadd.f32 1.0, %v6864_v17 }
0x14d8   : > { %6873 = vrcp.f32 %v4970_v63 }
0x14d9   : > { %v6866_v26 = vpop.eup %6865 }
0x14da   : > { %v4971_v10 = vadd.f32 1.0, %v6866_v26 }
0x14dc   : > { %6875 = vrcp.f32 %v4971_v10 }
0x14dd   : > { %v6868_v24 = vpop.eup %6867 }
0x14de   : > { %v4972_v40 = vadd.f32 1.0, %v6868_v24 }
0x14e0   : > { %6877 = vrcp.f32 %v4972_v40 }
0x14e1   : > { %v6870_v23 = vpop.eup %6869 }
0x14e2   : > { %v6872_v11 = vpop.eup %6871  ;;  %v4973_v39 = vadd.f32 1.0, %v6870_v23 }
0x14e3   : > { %v4984_v32 = vmul.f32 %v6872_v11, %v4933_v58 }
0x14e4   : > { %6879 = vrcp.f32 %v4973_v39 }
0x14e5   : > { %v6874_v7 = vpop.eup %6873 }
0x14e6   : > { %v4985_v47 = vmul.f32 %v6874_v7, %v4936_v15 }
0x14e8   : > { %v4989_v44 = vpack.c.bf16 %v4985_v47, %v4984_v32 }
0x14e9   : > { %v6876_v18 = vpop.eup %6875 }
0x14ea   : > { %6305 = vmatmul.mubr.bf16.vlgmr.msra.gmra.mxu1 %v4989_v44  ;;  %v4986_v36 = vmul.f32 %v6876_v18, %v4941_v48 }
0x14eb   : > { %6308 = vmatprep.mubr.msk.bf16.mxu1 %vm7262_vm1, %v9562_v53 }
0x14ed   : > { %v6878_v49 = vpop.eup %6877 }
0x14ee   : > { %v4987_v46 = vmul.f32 %v6878_v49, %v4944_v9 }
0x14f0   : > { %v4990_v59 = vpack.c.bf16 %v4987_v46, %v4986_v36 }
0x14f1   : > { %v6880_v55 = vpop.eup %6879 }
0x14f2   : > { %6309 = vmatmul.mubr.bf16.gmra.mxu1 %v4990_v59  ;;  %v4988_v14 = vmul.f32 %v6880_v55, %v4949_v3 }
0x14f3   : > { %6312 = vmatprep.mubr.msk.bf16.mxu1 %vm7262_vm1, %v9562_v53 }
0x14f4   : > { %v4991_v1 = vpack.c.bf16 %v4988_v14, %v4988_v14 }
0x14fa   : > { %6313 = vmatmul.mubr.bf16.gmra.mxu1 %v4991_v1 }
0x15aa   : > { %v5094_v33 = vpop.f32.mrf.mxu1 }
0x15ab   : > { %v5095_v22 = vadd.f32 %v5682_v38, %v5094_v33 }
0x15ac   : > { %v6306_v16 = vpop.f32.mrf.mxu1 }
0x15ad   : > { %v5116_v42 = vmul.f32 0.5, %v5095_v22 }
0x15ae   : > { %v5097_v2 = vpop.f32.mrf.mxu1 }
0x15af   : > { %v5098_v28 = vadd.f32 %v5682_v38, %v5097_v2  ;;  %v5121_v6 = vadd.f32 %v5116_v42, %v9238_v4  ;;  %v5691_v42 = vld [vmem:[#allocation16 + $0x11] ss:$0 sm:$0xff] }
0x15b0   : > { %v6307_v43 = vpop.f32.mrf.mxu1 }
0x15b1   : > { %v5117_v13 = vmul.f32 0.5, %v5098_v28  ;;  %5128 = vadd.xlane.f32.xlu0 %v5121_v6 }
0x15b2   : > { %v5102_v54 = vpop.f32.mrf.mxu1 }
0x15b3   : > { %v5103_v5 = vadd.f32 %v5682_v38, %v5102_v54  ;;  %v5122_v25 = vadd.f32 %v5117_v13, %v9242_v56 }
0x15b4   : > { %v6310_v53 = vpop.f32.mrf.mxu1 }
0x15b5   : > { %v5118_v58 = vmul.f32 0.5, %v5103_v5  ;;  %5130 = vadd.xlane.f32.xlu1 %v5122_v25 }
0x15b6   : > { %v5105_v45 = vpop.f32.mrf.mxu1 }
0x15b7   : > { %v5106_v50 = vadd.f32 %v5682_v38, %v5105_v45  ;;  %v5123_v35 = vadd.f32 %v5118_v58, %v9246_v62 }
0x15b8   : > { %v6311_v15 = vpop.f32.mrf.mxu1 }
0x15b9   : > { %v5119_v52 = vmul.f32 0.5, %v5106_v50  ;;  %5132 = vadd.xlane.f32.xlu0 %v5123_v35 }
0x15ba   : > { %v5110_v41 = vpop.f32.mrf.mxu1 }
0x15bb   : > { %v5111_v12 = vadd.f32 %v5682_v38, %v5110_v41  ;;  %v5124_v4 = vadd.f32 %v5119_v52, %v9250_v20 }
0x15bc   : > { %v6314_v48 = vpop.f32.mrf.mxu1 }
0x15bd   : > { %v5120_v19 = vmul.f32 0.5, %v5111_v12  ;;  %5134 = vadd.xlane.f32.xlu1 %v5124_v4 }
0x15be   : > { %v5113_v30 = vpop.f32.mrf.mxu1 }
0x15bf   : > { %v5125_v56 = vadd.f32 %v5120_v19, %v9254_v27 }
0x15c0   : > { %v6315_v29 = vpop.f32.mrf.mxu1 }
0x15c1   : > { %5136 = vadd.xlane.f32.xlu0 %v5125_v56 }
0x163a   : > { %v5129_v9 = vpop.xlane.xlu0 %5128 }
0x163b   : > { %v5138_v60 = vmul.f32 0.03125, %v5129_v9 }
0x163d   : > { %v5143_v21 = vsub.f32 %v5121_v6, %v5138_v60  ;;  %v5692_v6 = vld [vmem:[#allocation16 + $0x12] ss:$0 sm:$0xff] }
0x163e   : > { %v5131_v31 = vpop.xlane.xlu1 %5130 }
0x163f   : > { %v5139_v62 = vmul.f32 0.03125, %v5131_v31  ;;  %v5148_v3 = vmul.f32 %v9579_v34, %v5143_v21 }
0x1641   : > { %v5144_v61 = vsub.f32 %v5122_v25, %v5139_v62  ;;  %v5153_v0 = vmul.f32 %v5148_v3, %v5148_v3 }
0x1642   : > { %v5133_v51 = vpop.xlane.xlu0 %5132 }
0x1643   : > { %v5140_v37 = vmul.f32 0.03125, %v5133_v51  ;;  %5158 = vadd.xlane.f32.xlu1 %v5153_v0  ;;  %v5149_v20 = vmul.f32 %v9579_v34, %v5144_v61 }
0x1645   : > { %v5145_v8 = vsub.f32 %v5123_v35, %v5140_v37  ;;  %v5154_v17 = vmul.f32 %v5149_v20, %v5149_v20 }
0x1646   : > { %v5135_v57 = vpop.xlane.xlu1 %5134 }
0x1647   : > { %v5141_v27 = vmul.f32 0.03125, %v5135_v57  ;;  %5160 = vadd.xlane.f32.xlu0 %v5154_v17  ;;  %v5150_v63 = vmul.f32 %v9579_v34, %v5145_v8 }
0x1649   : > { %v5146_v26 = vsub.f32 %v5124_v4, %v5141_v27  ;;  %v5155_v10 = vmul.f32 %v5150_v63, %v5150_v63 }
0x164a   : > { %v5137_v24 = vpop.xlane.xlu0 %5136 }
0x164b   : > { %v5151_v40 = vmul.f32 %v9579_v34, %v5146_v26  ;;  %v5142_v23 = vmul.f32 0.03125, %v5137_v24  ;;  %5162 = vadd.xlane.f32.xlu1 %v5155_v10 }
0x164d   : > { %v5147_v11 = vsub.f32 %v5125_v56, %v5142_v23  ;;  %v5156_v39 = vmul.f32 %v5151_v40, %v5151_v40 }
0x164f   : > { %v5152_v7 = vmul.f32 %v9579_v34, %v5147_v11  ;;  %5164 = vadd.xlane.f32.xlu0 %v5156_v39 }
0x1651   : > { %v5157_v32 = vmul.f32 %v5152_v7, %v5152_v7 }
0x1653   : > { %5166 = vadd.xlane.f32.xlu1 %v5157_v32 }
0x16cc   : > { %v5159_v47 = vpop.xlane.xlu1 %5158 }
0x16cd   : > { %v5168_v44 = vmul.f32 0.03125, %v5159_v47 }
0x16cf   : > { %v5173_v18 = vadd.f32 1e-05, %v5168_v44 }
0x16d0   : > { %v5161_v49 = vpop.xlane.xlu0 %5160 }
0x16d1   : > { %6881 = vrsqrt.f32 %v5173_v18  ;;  %v5169_v36 = vmul.f32 0.03125, %v5161_v49 }
0x16d3   : > { %v5174_v46 = vadd.f32 1e-05, %v5169_v36 }
0x16d4   : > { %v5163_v59 = vpop.xlane.xlu1 %5162 }
0x16d5   : > { %6883 = vrsqrt.f32 %v5174_v46  ;;  %v5170_v55 = vmul.f32 0.03125, %v5163_v59 }
0x16d7   : > { %v5175_v14 = vadd.f32 1e-05, %v5170_v55 }
0x16d8   : > { %v5165_v1 = vpop.xlane.xlu0 %5164 }
0x16d9   : > { %6885 = vrsqrt.f32 %v5175_v14  ;;  %v5171_v38 = vmul.f32 0.03125, %v5165_v1 }
0x16db   : > { %v5176_v33 = vadd.f32 1e-05, %v5171_v38 }
0x16dc   : > { %v5167_v34 = vpop.xlane.xlu1 %5166 }
0x16dd   : > { %6887 = vrsqrt.f32 %v5176_v33  ;;  %v5172_v22 = vmul.f32 0.03125, %v5167_v34 }
0x16de   : > { %v6882_v16 = vpop.eup %6881 }
0x16df   : > { %v5183_v2 = vmul.f32 %v6882_v16, %v5148_v3  ;;  %v5177_v28 = vadd.f32 1e-05, %v5172_v22 }
0x16e1   : > { %v5192_v43 = vmul.f32 %v5691_v42, %v5183_v2  ;;  %6889 = vrsqrt.f32 %v5177_v28 }
0x16e2   : > { %v6884_v13 = vpop.eup %6883 }
0x16e3   : > { %v5201_v54 = vadd.f32 %v5692_v6, %v5192_v43  ;;  %v5184_v5 = vmul.f32 %v6884_v13, %v5149_v20 }
0x16e5   : > { %5206 = vst [vmem:[%s733_s23] sm:$0xff] %v5201_v54  ;;  %v5193_v25 = vmul.f32 %v5691_v42, %v5184_v5 }
0x16e6   : > { %v6886_v53 = vpop.eup %6885 }
0x16e7   : > { %v5202_v58 = vadd.f32 %v5692_v6, %v5193_v25  ;;  %v5185_v45 = vmul.f32 %v6886_v53, %v5150_v63 }
0x16e9   : > { %5207 = vst [vmem:[%s733_s23 + $0x8] sm:$0xff] %v5202_v58  ;;  %v5194_v50 = vmul.f32 %v5691_v42, %v5185_v45 }
0x16ea   : > { %v6888_v35 = vpop.eup %6887 }
0x16eb   : > { %v5203_v15 = vadd.f32 %v5692_v6, %v5194_v50  ;;  %v5186_v52 = vmul.f32 %v6888_v35, %v5151_v40 }
0x16ed   : > { %5208 = vst [vmem:[%s733_s23 + $0x10] sm:$0xff] %v5203_v15  ;;  %v5195_v41 = vmul.f32 %v5691_v42, %v5186_v52 }
0x16ee   : > { %v6890_v12 = vpop.eup %6889 }
0x16ef   : > { %v5204_v4 = vadd.f32 %v5692_v6, %v5195_v41  ;;  %v5187_v48 = vmul.f32 %v6890_v12, %v5152_v7 }
0x16f1   : > { %5209 = vst [vmem:[%s733_s23 + $0x18] sm:$0xff] %v5204_v4  ;;  %v5196_v19 = vmul.f32 %v5691_v42, %v5187_v48 }
0x16f3   : > { %v5205_v30 = vadd.f32 %v5692_v6, %v5196_v19 }
0x16f5   : > { %5210 = vst [vmem:[%s733_s23 + $0x20] sm:$0xff] %v5205_v30 }
0x16f6 PF: > { %s34_s24 = sadd.s32 1, %s7241_s24  }
0x16f7   : > { %p31_p2 = scmp.ge.s32.totalorder %s34_s24, 4  }
0x16f9   :  { %33 = sbr.rel (!%p31_p2) target bundleno = 12 (0xc), region = 172 }
0x16fe   :  { %5232 = vsyncpa [#allocation3], 1 }
0x16ff   :  { %5234 = vsyncpa [#allocation3 + $0x1], 1 }
0x1700   :  { %5235 = vsyncpa [#allocation5], 1 }
0x1701   :  { %5236 = vsyncpa [#allocation8], 1 }
0x1702   :  { %5237 = vsyncpa [#allocation11], 1 }
0x1703   :  { %5238 = vsyncpa [#allocation14], 1 }
0x1704   :  { %5239 = vsyncpa [#allocation17], 1 }
0x1705   :  { %5240 = vsyncpa [#allocation20], 1 }

</bundles_post_ra>
